<compile_context>
chip_gen: v7x
topology: tpu7x:2x2x1
jax: 0.10.0
libtpu: 0.0.40
codegen_flags: <defaults>
</compile_context>

<pallas_src>
import functools
import jax
import jax.numpy as jnp
from jax.experimental import pallas as pl
from jax.experimental.pallas import tpu as pltpu


# ---------------------------------------------------------------------------
# Fused kernel: img_fc+ReLU -> LSTM recurrence -> head (add_fc+res, relu(fc), output)
# ---------------------------------------------------------------------------
def _fused_kernel(img_ref, emb_ref,                      # activations
                  wimg_ref, bimg_ref,                    # img_fc
                  wih_ref, whh_ref, blstm_ref,           # LSTM (b = b_ih + b_hh)
                  wa_ref, ba_ref, wf_ref, bf_ref,        # add_fc, fc
                  wo_ref, bo_ref,                        # output
                  out_ref):
    B = img_ref.shape[0]
    H = whh_ref.shape[0]
    TB = emb_ref.shape[0]          # T * B (caption timesteps, time-major flat)
    T = TB // B

    # ---- img_fc + ReLU (bf16 operands, f32 accumulation) -------------------
    img_embed = jnp.dot(img_ref[...], wimg_ref[...],
                        preferred_element_type=jnp.float32)
    img_embed = jnp.maximum(img_embed + bimg_ref[...], 0.0)          # [B, E] f32

    # ---- hoisted input projection -------------------------------------------
    # caption part: one matmul with M = T*B instead of T tiny matmuls
    wih = wih_ref[...]
    b = blstm_ref[...]                                               # [1, 4H]
    gates_cap = jnp.dot(emb_ref[...], wih,
                        preferred_element_type=jnp.float32) + b      # [T*B, 4H]
    gates_img = jnp.dot(img_embed.astype(jnp.bfloat16), wih,
                        preferred_element_type=jnp.float32) + b      # [B, 4H]

    # ---- LSTM recurrence (fully unrolled; only h @ W_hh is serial) ----------
    whh = whh_ref[...]
    h = jnp.zeros((B, H), jnp.float32)
    c = jnp.zeros((B, H), jnp.float32)
    for t in range(T + 1):                     # static trip count -> unrolled
        gx = gates_img if t == 0 else gates_cap[(t - 1) * B:t * B, :]
        gates = gx + jnp.dot(h.astype(jnp.bfloat16), whh,
                             preferred_element_type=jnp.float32)     # [B, 4H]
        # PyTorch gate order (i, f, g, o); one sigmoid covers i|f contiguously.
        i_f = jax.nn.sigmoid(gates[:, :2 * H])
        g_g = jnp.tanh(gates[:, 2 * H:3 * H])
        o_g = jax.nn.sigmoid(gates[:, 3 * H:])
        c = i_f[:, H:] * c + i_f[:, :H] * g_g
        h = o_g * jnp.tanh(c)

    # h == lstm_out[:, -1, :]  (dropout1/dropout2: identity in eval mode)

    # ---- head ---------------------------------------------------------------
    x = jnp.dot(h.astype(jnp.bfloat16), wa_ref[...],
                preferred_element_type=jnp.float32)
    x = x + ba_ref[...] + img_embed                                  # residual
    x = jnp.dot(x.astype(jnp.bfloat16), wf_ref[...],
                preferred_element_type=jnp.float32) + bf_ref[...]
    x = jnp.maximum(x, 0.0)
    out = jnp.dot(x.astype(jnp.bfloat16), wo_ref[...],
                  preferred_element_type=jnp.float32) + bo_ref[...]
    out_ref[...] = out.astype(out_ref.dtype)


# ---------------------------------------------------------------------------
# Model wrapper
# ---------------------------------------------------------------------------
def init_params(key, vocab_size, embed_dim=256, hidden_dim=256, img_dim=1920):
    ks = jax.random.split(key, 12)
    s = 0.02

    def w(k, shape, dtype=jnp.bfloat16):
        return (s * jax.random.normal(k, shape)).astype(dtype)

    return dict(
        # matmul weights stored pre-transposed as [in, out], bf16
        img_fc_w=w(ks[0], (img_dim, embed_dim)),
        img_fc_b=w(ks[1], (embed_dim,), jnp.float32),
        embedding=w(ks[2], (vocab_size, embed_dim)),
        w_ih_t=w(ks[3], (embed_dim, 4 * hidden_dim)),
        w_hh_t=w(ks[4], (hidden_dim, 4 * hidden_dim)),
        b_ih=w(ks[5], (4 * hidden_dim,), jnp.float32),
        b_hh=w(ks[6], (4 * hidden_dim,), jnp.float32),
        add_fc_w=w(ks[7], (hidden_dim, embed_dim)),
        add_fc_b=w(ks[8], (embed_dim,), jnp.float32),
        fc_w=w(ks[9], (embed_dim, 128)),
        fc_b=w(ks[10], (128,), jnp.float32),
        out_w=w(ks[11], (128, vocab_size)),
        out_b=jnp.zeros((vocab_size,), jnp.float32),
    )


@functools.partial(jax.jit, static_argnames=())
def lstm_model_forward(params, img_features, captions):
    B, T = captions.shape
    E = params["img_fc_w"].shape[1]
    H = params["w_hh_t"].shape[0]
    V = params["out_w"].shape[1]

    # Embedding gather, built time-major flat so the kernel needs no transpose.
    idx_tm = jnp.transpose(captions).reshape(-1)                     # [T*B]
    emb_flat = jnp.take(params["embedding"], idx_tm, axis=0)         # [T*B, E] bf16

    img_bf16 = img_features.astype(jnp.bfloat16)
    b_lstm = (params["b_ih"] + params["b_hh"]).reshape(1, 4 * H)

    logits = pl.pallas_call(
        _fused_kernel,
        out_shape=jax.ShapeDtypeStruct((B, V), jnp.float32),
    )(img_bf16, emb_flat,
      params["img_fc_w"], params["img_fc_b"].reshape(1, E),
      params["w_ih_t"], params["w_hh_t"], b_lstm,
      params["add_fc_w"], params["add_fc_b"].reshape(1, E),
      params["fc_w"], params["fc_b"].reshape(1, 128),
      params["out_w"], params["out_b"].reshape(1, V))
    return logits


if __name__ == "__main__":
    B, T = 2, 8
    VOCAB, EMBED, HIDDEN, IMG_DIM = 512, 256, 256, 1920

    key = jax.random.PRNGKey(0)
    k_params, k_img, k_cap = jax.random.split(key, 3)

    params = init_params(k_params, VOCAB, EMBED, HIDDEN, IMG_DIM)
    img_features = jax.random.normal(k_img, (B, IMG_DIM), dtype=jnp.float32)
    captions = jax.random.randint(k_cap, (B, T), 0, VOCAB, dtype=jnp.int32)

    logits = lstm_model_forward(params, img_features, captions)
    jax.block_until_ready(logits)
    assert logits.shape == (B, VOCAB), logits.shape
    print("KERNEL_OK")
</pallas_src>

<mosaic_0001>
module attributes {stable_mosaic.version = 11 : i64} {
  func.func @_fused_kernel(%arg0: memref<2x1920xbf16, #tpu.memory_space<vmem>>, %arg1: memref<16x256xbf16, #tpu.memory_space<vmem>>, %arg2: memref<1920x256xbf16, #tpu.memory_space<vmem>>, %arg3: memref<1x256xf32, #tpu.memory_space<vmem>>, %arg4: memref<256x1024xbf16, #tpu.memory_space<vmem>>, %arg5: memref<256x1024xbf16, #tpu.memory_space<vmem>>, %arg6: memref<1x1024xf32, #tpu.memory_space<vmem>>, %arg7: memref<256x256xbf16, #tpu.memory_space<vmem>>, %arg8: memref<1x256xf32, #tpu.memory_space<vmem>>, %arg9: memref<256x128xbf16, #tpu.memory_space<vmem>>, %arg10: memref<1x128xf32, #tpu.memory_space<vmem>>, %arg11: memref<128x512xbf16, #tpu.memory_space<vmem>>, %arg12: memref<1x512xf32, #tpu.memory_space<vmem>>, %arg13: memref<2x512xf32, #tpu.memory_space<vmem>>) attributes {dimension_semantics = [], scalar_prefetch = 0 : i64, scratch_operands = 0 : i64, tpu.core_type = #tpu.core_type<tc>} {
    %c0 = arith.constant 0 : index
    %c0_0 = arith.constant 0 : index
    %0 = vector.load %arg0[%c0, %c0_0] : memref<2x1920xbf16, #tpu.memory_space<vmem>>, vector<2x1920xbf16>
    %c0_1 = arith.constant 0 : index
    %c0_2 = arith.constant 0 : index
    %1 = vector.load %arg2[%c0_1, %c0_2] : memref<1920x256xbf16, #tpu.memory_space<vmem>>, vector<1920x256xbf16>
    %cst = arith.constant dense<0.000000e+00> : vector<2x256xf32>
    %2 = tpu.matmul %0, %1, %cst {dimension_numbers = #tpu.dot_dimension_numbers<[1], [0], [0], [1], [0, 0, 1, 1], [], []>} : vector<2x1920xbf16>, vector<1920x256xbf16>, vector<2x256xf32> -> vector<2x256xf32>
    %c0_3 = arith.constant 0 : index
    %c0_4 = arith.constant 0 : index
    %3 = vector.load %arg3[%c0_3, %c0_4] : memref<1x256xf32, #tpu.memory_space<vmem>>, vector<1x256xf32>
    %4 = vector.broadcast %3 : vector<1x256xf32> to vector<2x256xf32>
    %5 = arith.addf %2, %4 : vector<2x256xf32>
    %cst_5 = arith.constant 0.000000e+00 : f32
    %6 = vector.broadcast %cst_5 : f32 to vector<2x256xf32>
    %7 = arith.maximumf %5, %6 : vector<2x256xf32>
    %c0_6 = arith.constant 0 : index
    %c0_7 = arith.constant 0 : index
    %8 = vector.load %arg4[%c0_6, %c0_7] : memref<256x1024xbf16, #tpu.memory_space<vmem>>, vector<256x1024xbf16>
    %c0_8 = arith.constant 0 : index
    %c0_9 = arith.constant 0 : index
    %9 = vector.load %arg6[%c0_8, %c0_9] : memref<1x1024xf32, #tpu.memory_space<vmem>>, vector<1x1024xf32>
    %c0_10 = arith.constant 0 : index
    %c0_11 = arith.constant 0 : index
    %10 = vector.load %arg1[%c0_10, %c0_11] : memref<16x256xbf16, #tpu.memory_space<vmem>>, vector<16x256xbf16>
    %cst_12 = arith.constant dense<0.000000e+00> : vector<16x1024xf32>
    %11 = tpu.matmul %10, %8, %cst_12 {dimension_numbers = #tpu.dot_dimension_numbers<[1], [0], [0], [1], [0, 0, 1, 1], [], []>} : vector<16x256xbf16>, vector<256x1024xbf16>, vector<16x1024xf32> -> vector<16x1024xf32>
    %12 = vector.broadcast %9 : vector<1x1024xf32> to vector<16x1024xf32>
    %13 = arith.addf %11, %12 : vector<16x1024xf32>
    %14 = arith.truncf %7 : vector<2x256xf32> to vector<2x256xbf16>
    %cst_13 = arith.constant dense<0.000000e+00> : vector<2x1024xf32>
    %15 = tpu.matmul %14, %8, %cst_13 {dimension_numbers = #tpu.dot_dimension_numbers<[1], [0], [0], [1], [0, 0, 1, 1], [], []>} : vector<2x256xbf16>, vector<256x1024xbf16>, vector<2x1024xf32> -> vector<2x1024xf32>
    %16 = vector.broadcast %9 : vector<1x1024xf32> to vector<2x1024xf32>
    %17 = arith.addf %15, %16 : vector<2x1024xf32>
    %c0_14 = arith.constant 0 : index
    %c0_15 = arith.constant 0 : index
    %18 = vector.load %arg5[%c0_14, %c0_15] : memref<256x1024xbf16, #tpu.memory_space<vmem>>, vector<256x1024xbf16>
    %cst_16 = arith.constant 0.000000e+00 : f32
    %19 = vector.broadcast %cst_16 : f32 to vector<2x256xf32>
    %cst_17 = arith.constant 0.000000e+00 : f32
    %20 = vector.broadcast %cst_17 : f32 to vector<2x256xf32>
    %21 = arith.truncf %19 : vector<2x256xf32> to vector<2x256xbf16>
    %cst_18 = arith.constant dense<0.000000e+00> : vector<2x1024xf32>
    %22 = tpu.matmul %21, %18, %cst_18 {dimension_numbers = #tpu.dot_dimension_numbers<[1], [0], [0], [1], [0, 0, 1, 1], [], []>} : vector<2x256xbf16>, vector<256x1024xbf16>, vector<2x1024xf32> -> vector<2x1024xf32>
    %23 = arith.addf %17, %22 : vector<2x1024xf32>
    %24 = vector.extract_strided_slice %23 {offsets = [0, 0], sizes = [2, 512], strides = [1, 1]} : vector<2x1024xf32> to vector<2x512xf32>
    %25 = arith.negf %24 : vector<2x512xf32>
    %26 = math.exp %25 : vector<2x512xf32>
    %cst_19 = arith.constant 1.000000e+00 : f32
    %27 = vector.broadcast %cst_19 : f32 to vector<2x512xf32>
    %28 = arith.addf %27, %26 : vector<2x512xf32>
    %29 = arith.divf %27, %28 : vector<2x512xf32>
    %30 = vector.extract_strided_slice %23 {offsets = [0, 512], sizes = [2, 256], strides = [1, 1]} : vector<2x1024xf32> to vector<2x256xf32>
    %31 = math.tanh %30 : vector<2x256xf32>
    %32 = vector.extract_strided_slice %23 {offsets = [0, 768], sizes = [2, 256], strides = [1, 1]} : vector<2x1024xf32> to vector<2x256xf32>
    %33 = arith.negf %32 : vector<2x256xf32>
    %34 = math.exp %33 : vector<2x256xf32>
    %cst_20 = arith.constant 1.000000e+00 : f32
    %35 = vector.broadcast %cst_20 : f32 to vector<2x256xf32>
    %36 = arith.addf %35, %34 : vector<2x256xf32>
    %37 = arith.divf %35, %36 : vector<2x256xf32>
    %38 = vector.extract_strided_slice %29 {offsets = [0, 256], sizes = [2, 256], strides = [1, 1]} : vector<2x512xf32> to vector<2x256xf32>
    %39 = arith.mulf %38, %20 : vector<2x256xf32>
    %40 = vector.extract_strided_slice %29 {offsets = [0, 0], sizes = [2, 256], strides = [1, 1]} : vector<2x512xf32> to vector<2x256xf32>
    %41 = arith.mulf %40, %31 : vector<2x256xf32>
    %42 = arith.addf %39, %41 : vector<2x256xf32>
    %43 = math.tanh %42 : vector<2x256xf32>
    %44 = arith.mulf %37, %43 : vector<2x256xf32>
    %45 = vector.extract_strided_slice %13 {offsets = [0, 0], sizes = [2, 1024], strides = [1, 1]} : vector<16x1024xf32> to vector<2x1024xf32>
    %46 = arith.truncf %44 : vector<2x256xf32> to vector<2x256xbf16>
    %cst_21 = arith.constant dense<0.000000e+00> : vector<2x1024xf32>
    %47 = tpu.matmul %46, %18, %cst_21 {dimension_numbers = #tpu.dot_dimension_numbers<[1], [0], [0], [1], [0, 0, 1, 1], [], []>} : vector<2x256xbf16>, vector<256x1024xbf16>, vector<2x1024xf32> -> vector<2x1024xf32>
    %48 = arith.addf %45, %47 : vector<2x1024xf32>
    %49 = vector.extract_strided_slice %48 {offsets = [0, 0], sizes = [2, 512], strides = [1, 1]} : vector<2x1024xf32> to vector<2x512xf32>
    %50 = arith.negf %49 : vector<2x512xf32>
    %51 = math.exp %50 : vector<2x512xf32>
    %cst_22 = arith.constant 1.000000e+00 : f32
    %52 = vector.broadcast %cst_22 : f32 to vector<2x512xf32>
    %53 = arith.addf %52, %51 : vector<2x512xf32>
    %54 = arith.divf %52, %53 : vector<2x512xf32>
    %55 = vector.extract_strided_slice %48 {offsets = [0, 512], sizes = [2, 256], strides = [1, 1]} : vector<2x1024xf32> to vector<2x256xf32>
    %56 = math.tanh %55 : vector<2x256xf32>
    %57 = vector.extract_strided_slice %48 {offsets = [0, 768], sizes = [2, 256], strides = [1, 1]} : vector<2x1024xf32> to vector<2x256xf32>
    %58 = arith.negf %57 : vector<2x256xf32>
    %59 = math.exp %58 : vector<2x256xf32>
    %cst_23 = arith.constant 1.000000e+00 : f32
    %60 = vector.broadcast %cst_23 : f32 to vector<2x256xf32>
    %61 = arith.addf %60, %59 : vector<2x256xf32>
    %62 = arith.divf %60, %61 : vector<2x256xf32>
    %63 = vector.extract_strided_slice %54 {offsets = [0, 256], sizes = [2, 256], strides = [1, 1]} : vector<2x512xf32> to vector<2x256xf32>
    %64 = arith.mulf %63, %42 : vector<2x256xf32>
    %65 = vector.extract_strided_slice %54 {offsets = [0, 0], sizes = [2, 256], strides = [1, 1]} : vector<2x512xf32> to vector<2x256xf32>
    %66 = arith.mulf %65, %56 : vector<2x256xf32>
    %67 = arith.addf %64, %66 : vector<2x256xf32>
    %68 = math.tanh %67 : vector<2x256xf32>
    %69 = arith.mulf %62, %68 : vector<2x256xf32>
    %70 = vector.extract_strided_slice %13 {offsets = [2, 0], sizes = [2, 1024], strides = [1, 1]} : vector<16x1024xf32> to vector<2x1024xf32>
    %71 = arith.truncf %69 : vector<2x256xf32> to vector<2x256xbf16>
    %cst_24 = arith.constant dense<0.000000e+00> : vector<2x1024xf32>
    %72 = tpu.matmul %71, %18, %cst_24 {dimension_numbers = #tpu.dot_dimension_numbers<[1], [0], [0], [1], [0, 0, 1, 1], [], []>} : vector<2x256xbf16>, vector<256x1024xbf16>, vector<2x1024xf32> -> vector<2x1024xf32>
    %73 = arith.addf %70, %72 : vector<2x1024xf32>
    %74 = vector.extract_strided_slice %73 {offsets = [0, 0], sizes = [2, 512], strides = [1, 1]} : vector<2x1024xf32> to vector<2x512xf32>
    %75 = arith.negf %74 : vector<2x512xf32>
    %76 = math.exp %75 : vector<2x512xf32>
    %cst_25 = arith.constant 1.000000e+00 : f32
    %77 = vector.broadcast %cst_25 : f32 to vector<2x512xf32>
    %78 = arith.addf %77, %76 : vector<2x512xf32>
    %79 = arith.divf %77, %78 : vector<2x512xf32>
    %80 = vector.extract_strided_slice %73 {offsets = [0, 512], sizes = [2, 256], strides = [1, 1]} : vector<2x1024xf32> to vector<2x256xf32>
    %81 = math.tanh %80 : vector<2x256xf32>
    %82 = vector.extract_strided_slice %73 {offsets = [0, 768], sizes = [2, 256], strides = [1, 1]} : vector<2x1024xf32> to vector<2x256xf32>
    %83 = arith.negf %82 : vector<2x256xf32>
    %84 = math.exp %83 : vector<2x256xf32>
    %cst_26 = arith.constant 1.000000e+00 : f32
    %85 = vector.broadcast %cst_26 : f32 to vector<2x256xf32>
    %86 = arith.addf %85, %84 : vector<2x256xf32>
    %87 = arith.divf %85, %86 : vector<2x256xf32>
    %88 = vector.extract_strided_slice %79 {offsets = [0, 256], sizes = [2, 256], strides = [1, 1]} : vector<2x512xf32> to vector<2x256xf32>
    %89 = arith.mulf %88, %67 : vector<2x256xf32>
    %90 = vector.extract_strided_slice %79 {offsets = [0, 0], sizes = [2, 256], strides = [1, 1]} : vector<2x512xf32> to vector<2x256xf32>
    %91 = arith.mulf %90, %81 : vector<2x256xf32>
    %92 = arith.addf %89, %91 : vector<2x256xf32>
    %93 = math.tanh %92 : vector<2x256xf32>
    %94 = arith.mulf %87, %93 : vector<2x256xf32>
    %95 = vector.extract_strided_slice %13 {offsets = [4, 0], sizes = [2, 1024], strides = [1, 1]} : vector<16x1024xf32> to vector<2x1024xf32>
    %96 = arith.truncf %94 : vector<2x256xf32> to vector<2x256xbf16>
    %cst_27 = arith.constant dense<0.000000e+00> : vector<2x1024xf32>
    %97 = tpu.matmul %96, %18, %cst_27 {dimension_numbers = #tpu.dot_dimension_numbers<[1], [0], [0], [1], [0, 0, 1, 1], [], []>} : vector<2x256xbf16>, vector<256x1024xbf16>, vector<2x1024xf32> -> vector<2x1024xf32>
    %98 = arith.addf %95, %97 : vector<2x1024xf32>
    %99 = vector.extract_strided_slice %98 {offsets = [0, 0], sizes = [2, 512], strides = [1, 1]} : vector<2x1024xf32> to vector<2x512xf32>
    %100 = arith.negf %99 : vector<2x512xf32>
    %101 = math.exp %100 : vector<2x512xf32>
    %cst_28 = arith.constant 1.000000e+00 : f32
    %102 = vector.broadcast %cst_28 : f32 to vector<2x512xf32>
    %103 = arith.addf %102, %101 : vector<2x512xf32>
    %104 = arith.divf %102, %103 : vector<2x512xf32>
    %105 = vector.extract_strided_slice %98 {offsets = [0, 512], sizes = [2, 256], strides = [1, 1]} : vector<2x1024xf32> to vector<2x256xf32>
    %106 = math.tanh %105 : vector<2x256xf32>
    %107 = vector.extract_strided_slice %98 {offsets = [0, 768], sizes = [2, 256], strides = [1, 1]} : vector<2x1024xf32> to vector<2x256xf32>
    %108 = arith.negf %107 : vector<2x256xf32>
    %109 = math.exp %108 : vector<2x256xf32>
    %cst_29 = arith.constant 1.000000e+00 : f32
    %110 = vector.broadcast %cst_29 : f32 to vector<2x256xf32>
    %111 = arith.addf %110, %109 : vector<2x256xf32>
    %112 = arith.divf %110, %111 : vector<2x256xf32>
    %113 = vector.extract_strided_slice %104 {offsets = [0, 256], sizes = [2, 256], strides = [1, 1]} : vector<2x512xf32> to vector<2x256xf32>
    %114 = arith.mulf %113, %92 : vector<2x256xf32>
    %115 = vector.extract_strided_slice %104 {offsets = [0, 0], sizes = [2, 256], strides = [1, 1]} : vector<2x512xf32> to vector<2x256xf32>
    %116 = arith.mulf %115, %106 : vector<2x256xf32>
    %117 = arith.addf %114, %116 : vector<2x256xf32>
    %118 = math.tanh %117 : vector<2x256xf32>
    %119 = arith.mulf %112, %118 : vector<2x256xf32>
    %120 = vector.extract_strided_slice %13 {offsets = [6, 0], sizes = [2, 1024], strides = [1, 1]} : vector<16x1024xf32> to vector<2x1024xf32>
    %121 = arith.truncf %119 : vector<2x256xf32> to vector<2x256xbf16>
    %cst_30 = arith.constant dense<0.000000e+00> : vector<2x1024xf32>
    %122 = tpu.matmul %121, %18, %cst_30 {dimension_numbers = #tpu.dot_dimension_numbers<[1], [0], [0], [1], [0, 0, 1, 1], [], []>} : vector<2x256xbf16>, vector<256x1024xbf16>, vector<2x1024xf32> -> vector<2x1024xf32>
    %123 = arith.addf %120, %122 : vector<2x1024xf32>
    %124 = vector.extract_strided_slice %123 {offsets = [0, 0], sizes = [2, 512], strides = [1, 1]} : vector<2x1024xf32> to vector<2x512xf32>
    %125 = arith.negf %124 : vector<2x512xf32>
    %126 = math.exp %125 : vector<2x512xf32>
    %cst_31 = arith.constant 1.000000e+00 : f32
    %127 = vector.broadcast %cst_31 : f32 to vector<2x512xf32>
    %128 = arith.addf %127, %126 : vector<2x512xf32>
    %129 = arith.divf %127, %128 : vector<2x512xf32>
    %130 = vector.extract_strided_slice %123 {offsets = [0, 512], sizes = [2, 256], strides = [1, 1]} : vector<2x1024xf32> to vector<2x256xf32>
    %131 = math.tanh %130 : vector<2x256xf32>
    %132 = vector.extract_strided_slice %123 {offsets = [0, 768], sizes = [2, 256], strides = [1, 1]} : vector<2x1024xf32> to vector<2x256xf32>
    %133 = arith.negf %132 : vector<2x256xf32>
    %134 = math.exp %133 : vector<2x256xf32>
    %cst_32 = arith.constant 1.000000e+00 : f32
    %135 = vector.broadcast %cst_32 : f32 to vector<2x256xf32>
    %136 = arith.addf %135, %134 : vector<2x256xf32>
    %137 = arith.divf %135, %136 : vector<2x256xf32>
    %138 = vector.extract_strided_slice %129 {offsets = [0, 256], sizes = [2, 256], strides = [1, 1]} : vector<2x512xf32> to vector<2x256xf32>
    %139 = arith.mulf %138, %117 : vector<2x256xf32>
    %140 = vector.extract_strided_slice %129 {offsets = [0, 0], sizes = [2, 256], strides = [1, 1]} : vector<2x512xf32> to vector<2x256xf32>
    %141 = arith.mulf %140, %131 : vector<2x256xf32>
    %142 = arith.addf %139, %141 : vector<2x256xf32>
    %143 = math.tanh %142 : vector<2x256xf32>
    %144 = arith.mulf %137, %143 : vector<2x256xf32>
    %145 = vector.extract_strided_slice %13 {offsets = [8, 0], sizes = [2, 1024], strides = [1, 1]} : vector<16x1024xf32> to vector<2x1024xf32>
    %146 = arith.truncf %144 : vector<2x256xf32> to vector<2x256xbf16>
    %cst_33 = arith.constant dense<0.000000e+00> : vector<2x1024xf32>
    %147 = tpu.matmul %146, %18, %cst_33 {dimension_numbers = #tpu.dot_dimension_numbers<[1], [0], [0], [1], [0, 0, 1, 1], [], []>} : vector<2x256xbf16>, vector<256x1024xbf16>, vector<2x1024xf32> -> vector<2x1024xf32>
    %148 = arith.addf %145, %147 : vector<2x1024xf32>
    %149 = vector.extract_strided_slice %148 {offsets = [0, 0], sizes = [2, 512], strides = [1, 1]} : vector<2x1024xf32> to vector<2x512xf32>
    %150 = arith.negf %149 : vector<2x512xf32>
    %151 = math.exp %150 : vector<2x512xf32>
    %cst_34 = arith.constant 1.000000e+00 : f32
    %152 = vector.broadcast %cst_34 : f32 to vector<2x512xf32>
    %153 = arith.addf %152, %151 : vector<2x512xf32>
    %154 = arith.divf %152, %153 : vector<2x512xf32>
    %155 = vector.extract_strided_slice %148 {offsets = [0, 512], sizes = [2, 256], strides = [1, 1]} : vector<2x1024xf32> to vector<2x256xf32>
    %156 = math.tanh %155 : vector<2x256xf32>
    %157 = vector.extract_strided_slice %148 {offsets = [0, 768], sizes = [2, 256], strides = [1, 1]} : vector<2x1024xf32> to vector<2x256xf32>
    %158 = arith.negf %157 : vector<2x256xf32>
    %159 = math.exp %158 : vector<2x256xf32>
    %cst_35 = arith.constant 1.000000e+00 : f32
    %160 = vector.broadcast %cst_35 : f32 to vector<2x256xf32>
    %161 = arith.addf %160, %159 : vector<2x256xf32>
    %162 = arith.divf %160, %161 : vector<2x256xf32>
    %163 = vector.extract_strided_slice %154 {offsets = [0, 256], sizes = [2, 256], strides = [1, 1]} : vector<2x512xf32> to vector<2x256xf32>
    %164 = arith.mulf %163, %142 : vector<2x256xf32>
    %165 = vector.extract_strided_slice %154 {offsets = [0, 0], sizes = [2, 256], strides = [1, 1]} : vector<2x512xf32> to vector<2x256xf32>
    %166 = arith.mulf %165, %156 : vector<2x256xf32>
    %167 = arith.addf %164, %166 : vector<2x256xf32>
    %168 = math.tanh %167 : vector<2x256xf32>
    %169 = arith.mulf %162, %168 : vector<2x256xf32>
    %170 = vector.extract_strided_slice %13 {offsets = [10, 0], sizes = [2, 1024], strides = [1, 1]} : vector<16x1024xf32> to vector<2x1024xf32>
    %171 = arith.truncf %169 : vector<2x256xf32> to vector<2x256xbf16>
    %cst_36 = arith.constant dense<0.000000e+00> : vector<2x1024xf32>
    %172 = tpu.matmul %171, %18, %cst_36 {dimension_numbers = #tpu.dot_dimension_numbers<[1], [0], [0], [1], [0, 0, 1, 1], [], []>} : vector<2x256xbf16>, vector<256x1024xbf16>, vector<2x1024xf32> -> vector<2x1024xf32>
    %173 = arith.addf %170, %172 : vector<2x1024xf32>
    %174 = vector.extract_strided_slice %173 {offsets = [0, 0], sizes = [2, 512], strides = [1, 1]} : vector<2x1024xf32> to vector<2x512xf32>
    %175 = arith.negf %174 : vector<2x512xf32>
    %176 = math.exp %175 : vector<2x512xf32>
    %cst_37 = arith.constant 1.000000e+00 : f32
    %177 = vector.broadcast %cst_37 : f32 to vector<2x512xf32>
    %178 = arith.addf %177, %176 : vector<2x512xf32>
    %179 = arith.divf %177, %178 : vector<2x512xf32>
    %180 = vector.extract_strided_slice %173 {offsets = [0, 512], sizes = [2, 256], strides = [1, 1]} : vector<2x1024xf32> to vector<2x256xf32>
    %181 = math.tanh %180 : vector<2x256xf32>
    %182 = vector.extract_strided_slice %173 {offsets = [0, 768], sizes = [2, 256], strides = [1, 1]} : vector<2x1024xf32> to vector<2x256xf32>
    %183 = arith.negf %182 : vector<2x256xf32>
    %184 = math.exp %183 : vector<2x256xf32>
    %cst_38 = arith.constant 1.000000e+00 : f32
    %185 = vector.broadcast %cst_38 : f32 to vector<2x256xf32>
    %186 = arith.addf %185, %184 : vector<2x256xf32>
    %187 = arith.divf %185, %186 : vector<2x256xf32>
    %188 = vector.extract_strided_slice %179 {offsets = [0, 256], sizes = [2, 256], strides = [1, 1]} : vector<2x512xf32> to vector<2x256xf32>
    %189 = arith.mulf %188, %167 : vector<2x256xf32>
    %190 = vector.extract_strided_slice %179 {offsets = [0, 0], sizes = [2, 256], strides = [1, 1]} : vector<2x512xf32> to vector<2x256xf32>
    %191 = arith.mulf %190, %181 : vector<2x256xf32>
    %192 = arith.addf %189, %191 : vector<2x256xf32>
    %193 = math.tanh %192 : vector<2x256xf32>
    %194 = arith.mulf %187, %193 : vector<2x256xf32>
    %195 = vector.extract_strided_slice %13 {offsets = [12, 0], sizes = [2, 1024], strides = [1, 1]} : vector<16x1024xf32> to vector<2x1024xf32>
    %196 = arith.truncf %194 : vector<2x256xf32> to vector<2x256xbf16>
    %cst_39 = arith.constant dense<0.000000e+00> : vector<2x1024xf32>
    %197 = tpu.matmul %196, %18, %cst_39 {dimension_numbers = #tpu.dot_dimension_numbers<[1], [0], [0], [1], [0, 0, 1, 1], [], []>} : vector<2x256xbf16>, vector<256x1024xbf16>, vector<2x1024xf32> -> vector<2x1024xf32>
    %198 = arith.addf %195, %197 : vector<2x1024xf32>
    %199 = vector.extract_strided_slice %198 {offsets = [0, 0], sizes = [2, 512], strides = [1, 1]} : vector<2x1024xf32> to vector<2x512xf32>
    %200 = arith.negf %199 : vector<2x512xf32>
    %201 = math.exp %200 : vector<2x512xf32>
    %cst_40 = arith.constant 1.000000e+00 : f32
    %202 = vector.broadcast %cst_40 : f32 to vector<2x512xf32>
    %203 = arith.addf %202, %201 : vector<2x512xf32>
    %204 = arith.divf %202, %203 : vector<2x512xf32>
    %205 = vector.extract_strided_slice %198 {offsets = [0, 512], sizes = [2, 256], strides = [1, 1]} : vector<2x1024xf32> to vector<2x256xf32>
    %206 = math.tanh %205 : vector<2x256xf32>
    %207 = vector.extract_strided_slice %198 {offsets = [0, 768], sizes = [2, 256], strides = [1, 1]} : vector<2x1024xf32> to vector<2x256xf32>
    %208 = arith.negf %207 : vector<2x256xf32>
    %209 = math.exp %208 : vector<2x256xf32>
    %cst_41 = arith.constant 1.000000e+00 : f32
    %210 = vector.broadcast %cst_41 : f32 to vector<2x256xf32>
    %211 = arith.addf %210, %209 : vector<2x256xf32>
    %212 = arith.divf %210, %211 : vector<2x256xf32>
    %213 = vector.extract_strided_slice %204 {offsets = [0, 256], sizes = [2, 256], strides = [1, 1]} : vector<2x512xf32> to vector<2x256xf32>
    %214 = arith.mulf %213, %192 : vector<2x256xf32>
    %215 = vector.extract_strided_slice %204 {offsets = [0, 0], sizes = [2, 256], strides = [1, 1]} : vector<2x512xf32> to vector<2x256xf32>
    %216 = arith.mulf %215, %206 : vector<2x256xf32>
    %217 = arith.addf %214, %216 : vector<2x256xf32>
    %218 = math.tanh %217 : vector<2x256xf32>
    %219 = arith.mulf %212, %218 : vector<2x256xf32>
    %220 = vector.extract_strided_slice %13 {offsets = [14, 0], sizes = [2, 1024], strides = [1, 1]} : vector<16x1024xf32> to vector<2x1024xf32>
    %221 = arith.truncf %219 : vector<2x256xf32> to vector<2x256xbf16>
    %cst_42 = arith.constant dense<0.000000e+00> : vector<2x1024xf32>
    %222 = tpu.matmul %221, %18, %cst_42 {dimension_numbers = #tpu.dot_dimension_numbers<[1], [0], [0], [1], [0, 0, 1, 1], [], []>} : vector<2x256xbf16>, vector<256x1024xbf16>, vector<2x1024xf32> -> vector<2x1024xf32>
    %223 = arith.addf %220, %222 : vector<2x1024xf32>
    %224 = vector.extract_strided_slice %223 {offsets = [0, 0], sizes = [2, 512], strides = [1, 1]} : vector<2x1024xf32> to vector<2x512xf32>
    %225 = arith.negf %224 : vector<2x512xf32>
    %226 = math.exp %225 : vector<2x512xf32>
    %cst_43 = arith.constant 1.000000e+00 : f32
    %227 = vector.broadcast %cst_43 : f32 to vector<2x512xf32>
    %228 = arith.addf %227, %226 : vector<2x512xf32>
    %229 = arith.divf %227, %228 : vector<2x512xf32>
    %230 = vector.extract_strided_slice %223 {offsets = [0, 512], sizes = [2, 256], strides = [1, 1]} : vector<2x1024xf32> to vector<2x256xf32>
    %231 = math.tanh %230 : vector<2x256xf32>
    %232 = vector.extract_strided_slice %223 {offsets = [0, 768], sizes = [2, 256], strides = [1, 1]} : vector<2x1024xf32> to vector<2x256xf32>
    %233 = arith.negf %232 : vector<2x256xf32>
    %234 = math.exp %233 : vector<2x256xf32>
    %cst_44 = arith.constant 1.000000e+00 : f32
    %235 = vector.broadcast %cst_44 : f32 to vector<2x256xf32>
    %236 = arith.addf %235, %234 : vector<2x256xf32>
    %237 = arith.divf %235, %236 : vector<2x256xf32>
    %238 = vector.extract_strided_slice %229 {offsets = [0, 256], sizes = [2, 256], strides = [1, 1]} : vector<2x512xf32> to vector<2x256xf32>
    %239 = arith.mulf %238, %217 : vector<2x256xf32>
    %240 = vector.extract_strided_slice %229 {offsets = [0, 0], sizes = [2, 256], strides = [1, 1]} : vector<2x512xf32> to vector<2x256xf32>
    %241 = arith.mulf %240, %231 : vector<2x256xf32>
    %242 = arith.addf %239, %241 : vector<2x256xf32>
    %243 = math.tanh %242 : vector<2x256xf32>
    %244 = arith.mulf %237, %243 : vector<2x256xf32>
    %245 = arith.truncf %244 : vector<2x256xf32> to vector<2x256xbf16>
    %c0_45 = arith.constant 0 : index
    %c0_46 = arith.constant 0 : index
    %246 = vector.load %arg7[%c0_45, %c0_46] : memref<256x256xbf16, #tpu.memory_space<vmem>>, vector<256x256xbf16>
    %cst_47 = arith.constant dense<0.000000e+00> : vector<2x256xf32>
    %247 = tpu.matmul %245, %246, %cst_47 {dimension_numbers = #tpu.dot_dimension_numbers<[1], [0], [0], [1], [0, 0, 1, 1], [], []>} : vector<2x256xbf16>, vector<256x256xbf16>, vector<2x256xf32> -> vector<2x256xf32>
    %c0_48 = arith.constant 0 : index
    %c0_49 = arith.constant 0 : index
    %248 = vector.load %arg8[%c0_48, %c0_49] : memref<1x256xf32, #tpu.memory_space<vmem>>, vector<1x256xf32>
    %249 = vector.broadcast %248 : vector<1x256xf32> to vector<2x256xf32>
    %250 = arith.addf %247, %249 : vector<2x256xf32>
    %251 = arith.addf %250, %7 : vector<2x256xf32>
    %252 = arith.truncf %251 : vector<2x256xf32> to vector<2x256xbf16>
    %c0_50 = arith.constant 0 : index
    %c0_51 = arith.constant 0 : index
    %253 = vector.load %arg9[%c0_50, %c0_51] : memref<256x128xbf16, #tpu.memory_space<vmem>>, vector<256x128xbf16>
    %cst_52 = arith.constant dense<0.000000e+00> : vector<2x128xf32>
    %254 = tpu.matmul %252, %253, %cst_52 {dimension_numbers = #tpu.dot_dimension_numbers<[1], [0], [0], [1], [0, 0, 1, 1], [], []>} : vector<2x256xbf16>, vector<256x128xbf16>, vector<2x128xf32> -> vector<2x128xf32>
    %c0_53 = arith.constant 0 : index
    %c0_54 = arith.constant 0 : index
    %255 = vector.load %arg10[%c0_53, %c0_54] : memref<1x128xf32, #tpu.memory_space<vmem>>, vector<1x128xf32>
    %256 = vector.broadcast %255 : vector<1x128xf32> to vector<2x128xf32>
    %257 = arith.addf %254, %256 : vector<2x128xf32>
    %cst_55 = arith.constant 0.000000e+00 : f32
    %258 = vector.broadcast %cst_55 : f32 to vector<2x128xf32>
    %259 = arith.maximumf %257, %258 : vector<2x128xf32>
    %260 = arith.truncf %259 : vector<2x128xf32> to vector<2x128xbf16>
    %c0_56 = arith.constant 0 : index
    %c0_57 = arith.constant 0 : index
    %261 = vector.load %arg11[%c0_56, %c0_57] : memref<128x512xbf16, #tpu.memory_space<vmem>>, vector<128x512xbf16>
    %cst_58 = arith.constant dense<0.000000e+00> : vector<2x512xf32>
    %262 = tpu.matmul %260, %261, %cst_58 {dimension_numbers = #tpu.dot_dimension_numbers<[1], [0], [0], [1], [0, 0, 1, 1], [], []>} : vector<2x128xbf16>, vector<128x512xbf16>, vector<2x512xf32> -> vector<2x512xf32>
    %c0_59 = arith.constant 0 : index
    %c0_60 = arith.constant 0 : index
    %263 = vector.load %arg12[%c0_59, %c0_60] : memref<1x512xf32, #tpu.memory_space<vmem>>, vector<1x512xf32>
    %264 = vector.broadcast %263 : vector<1x512xf32> to vector<2x512xf32>
    %265 = arith.addf %262, %264 : vector<2x512xf32>
    %c0_61 = arith.constant 0 : index
    %c0_62 = arith.constant 0 : index
    %266 = vector.load %arg13[%c0_61, %c0_62] : memref<2x512xf32, #tpu.memory_space<vmem>>, vector<2x512xf32>
    tpu.vector_store %arg13[%c0_61, %c0_62], %265 {strides = array<i32>} : memref<2x512xf32, #tpu.memory_space<vmem>>, vector<2x512xf32>,
    return
  }
}

</mosaic_0001>

<bundles_post_ra>
// kernel: lstm_model_forward.1
= control target key start
LH: loop header
LB: loop body
LE: loop exit
PB: predicated region body
PF: predicated region fallthrough
CT: control target
= control target key end

     0   :  { %18 = vsyncpa [#allocation3], 0  ;;  %s11209_s0 = inlined_call_operand.vmem [shape: bf16[2,1920], index: 0, kind: input, shape index: {}]   ;;  %s11210_s1 = inlined_call_operand.vmem [shape: bf16[16,256], index: 1, kind: input, shape index: {}]   ;;  %s11211_s2 = inlined_call_operand.hbm [shape: bf16[1920,256], index: 2, kind: input, shape index: {}]   ;;  %s11212_s3 = inlined_call_operand.vmem [shape: f32[1,256], index: 3, kind: input, shape index: {}]   ;;  %s11213_s4 = inlined_call_operand.hbm [shape: bf16[256,1024], index: 4, kind: input, shape index: {}]   ;;  %s11214_s5 = inlined_call_operand.hbm [shape: bf16[256,1024], index: 5, kind: input, shape index: {}]   ;;  %s11215_s6 = inlined_call_operand.vmem [shape: f32[1,1024], index: 6, kind: input, shape index: {}]   ;;  %s11216_s7 = inlined_call_operand.vmem [shape: bf16[256,256], index: 7, kind: input, shape index: {}]   ;;  %s11217_s8 = inlined_call_operand.vmem [shape: f32[1,256], index: 8, kind: input, shape index: {}]   ;;  %s11218_s9 = inlined_call_operand.hbm [shape: bf16[256,128], index: 9, kind: input, shape index: {}]   ;;  %s11219_s10 = inlined_call_operand.vmem [shape: f32[1,128], index: 10, kind: input, shape index: {}]   ;;  %s11220_s11 = inlined_call_operand.hbm [shape: bf16[128,512], index: 11, kind: input, shape index: {}]   ;;  %s11221_s12 = inlined_call_operand.vmem [shape: f32[1,512], index: 12, kind: input, shape index: {}]   ;;  %s11222_s13 = inlined_call_operand.hbm [shape: f32[2,512], index: 13, kind: output, shape index: {}]  }
   0x1   :  { %19 = vsyncpa [#allocation6], 0 }
   0x2   :  { %20 = vsyncpa [#allocation9], 0 }
   0x3   :  { %21 = vsyncpa [#allocation4], 0  ;;  %s8553_s25 = smov [#allocation5]   ;;  %s8413_s29 = scalar_lea.hbm %s11213_s4, 16384 }
   0x4   :  { %s45_s26 = sshll.u32 %s8553_s25, 4  ;;  %p8414_p0 = scmp.ne.s32.totalorder %s11213_s4, %s8413_s29  ;;  %s46_s26 = int_to_ptr.vmem [resolvable:$true] %s45_s26 }
   0x5   :  { %p8417_p1 = scmp.lt.u32.totalorder %s8413_s29, %s11213_s4 }
   0x7   :  { %p8419_p2 = pnand %p8417_p1, %p8414_p0 }
   0x9   :  { %8422 = shalt.err (!%p8419_p2)
}
   0xa   :  { %s8423_s17 = scalar_lea.vmem %s46_s26, 16384  ;;  %p8428_p4 = scmp.lt.s32.totalorder %s46_s26, %s46_s26 }
   0xb   :  { %p8424_p3 = scmp.ne.s32.totalorder %s46_s26, %s8423_s17  ;;  %p8429_p5 = scmp.lt.s32.totalorder %s8423_s17, %s8423_s17 }
   0xd   :  { %p8430_p6 = por %p8429_p5, %p8428_p4 }
   0xf   :  { %p8431_p7 = pnand %p8430_p6, %p8424_p3 }
  0x11   :  { %8434 = shalt.err (!%p8431_p7)
}
  0x12   :  { %s8554_s18 = smov 512   ;;  %s8555_s19 = smov 32  }
  0x13   :  { %51 = dma.hbm_to_vmem [thread:$0]  %s11213_s4, 16384, %s46_s26, [#allocation6], %s8554_s18, %s8554_s18, %s8555_s19  }
  0x14   :  { %s8556_s22 = smov [#allocation8]   ;;  %s8435_s27 = scalar_lea.hbm %s11218_s9, 2048 }
  0x15   :  { %s75_s23 = sshll.u32 %s8556_s22, 4  ;;  %p8436_p8 = scmp.ne.s32.totalorder %s11218_s9, %s8435_s27  ;;  %s76_s23 = int_to_ptr.vmem [resolvable:$true] %s75_s23 }
  0x16   :  { %p8439_p9 = scmp.lt.u32.totalorder %s8435_s27, %s11218_s9 }
  0x18   :  { %p8441_p10 = pnand %p8439_p9, %p8436_p8 }
  0x1a   :  { %8444 = shalt.err (!%p8441_p10)
}
  0x1b   :  { %s8445_s15 = scalar_lea.vmem %s76_s23, 2048  ;;  %p8450_p12 = scmp.lt.s32.totalorder %s76_s23, %s76_s23 }
  0x1c   :  { %p8446_p11 = scmp.ne.s32.totalorder %s76_s23, %s8445_s15  ;;  %p8451_p13 = scmp.lt.s32.totalorder %s8445_s15, %s8445_s15 }
  0x1e   :  { %p8452_p0 = por %p8451_p13, %p8450_p12 }
  0x20   :  { %p8453_p1 = pnand %p8452_p0, %p8446_p11 }
  0x22   :  { %8456 = shalt.err (!%p8453_p1)
}
  0x23   :  { %s8557_s4 = smov 64   ;;  %s8558_s26 = smov 4  }
  0x24   :  { %81 = dma.hbm_to_vmem [thread:$0]  %s11218_s9, 2048, %s76_s23, [#allocation9], %s8557_s4, %s8557_s4, %s8558_s26  }
  0x25   :  { %s8559_s20 = smov [#allocation2]   ;;  %s8457_s25 = scalar_lea.hbm %s11211_s2, 30720 }
  0x26   :  { %s31_s21 = sshll.u32 %s8559_s20, 4  ;;  %p8458_p2 = scmp.ne.s32.totalorder %s11211_s2, %s8457_s25  ;;  %s32_s21 = int_to_ptr.vmem [resolvable:$true] %s31_s21 }
  0x27   :  { %p8461_p3 = scmp.lt.u32.totalorder %s8457_s25, %s11211_s2 }
  0x29   :  { %p8463_p4 = pnand %p8461_p3, %p8458_p2 }
  0x2b   :  { %8466 = shalt.err (!%p8463_p4)
}
  0x2c   :  { %s8467_s14 = scalar_lea.vmem %s32_s21, 30720  ;;  %p8472_p6 = scmp.lt.s32.totalorder %s32_s21, %s32_s21 }
  0x2d   :  { %p8468_p5 = scmp.ne.s32.totalorder %s32_s21, %s8467_s14  ;;  %p8473_p7 = scmp.lt.s32.totalorder %s8467_s14, %s8467_s14 }
  0x2f   :  { %p8474_p8 = por %p8473_p7, %p8472_p6 }
  0x31   :  { %p8475_p9 = pnand %p8474_p8, %p8468_p5 }
  0x33   :  { %8478 = shalt.err (!%p8475_p9)
}
  0x34   :  { %s8560_s9 = smov 128   ;;  %s8561_s23 = smov 8  }
  0x35   :  { %37 = dma.hbm_to_vmem [thread:$0]  %s11211_s2, 30720, %s32_s21, [#allocation3], %s8560_s9, %s8560_s9, %s8561_s23  }
  0x36   :  { %s8562_s26 = smov [#allocation7]   ;;  %s8563_s17 = smov [#allocation10]  }
  0x37   :  { %s57_s16 = sshll.u32 %s8562_s26, 4  ;;  %s89_s20 = sshll.u32 %s8563_s17, 4  ;;  %s58_s16 = int_to_ptr.vmem [resolvable:$true] %s57_s16  ;;  %s90_s20 = int_to_ptr.vmem [resolvable:$true] %s89_s20 }
  0x38   :  { %s8479_s25 = scalar_lea.hbm %s11214_s5, 16384 }
  0x39   :  { %p8480_p10 = scmp.ne.s32.totalorder %s11214_s5, %s8479_s25  ;;  %p8483_p11 = scmp.lt.u32.totalorder %s8479_s25, %s11214_s5 }
  0x3b   :  { %p8485_p12 = pnand %p8483_p11, %p8480_p10 }
  0x3d   :  { %8488 = shalt.err (!%p8485_p12)
}
  0x3e   :  { %s8489_s2 = scalar_lea.vmem %s58_s16, 16384  ;;  %p8494_p0 = scmp.lt.s32.totalorder %s58_s16, %s58_s16 }
  0x3f   :  { %p8490_p13 = scmp.ne.s32.totalorder %s58_s16, %s8489_s2  ;;  %p8495_p1 = scmp.lt.s32.totalorder %s8489_s2, %s8489_s2 }
  0x41   :  { %p8496_p2 = por %p8495_p1, %p8494_p0 }
  0x43   :  { %p8497_p3 = pnand %p8496_p2, %p8490_p13 }
  0x45   :  { %8500 = shalt.err (!%p8497_p3)
}
  0x46   :  { %63 = dma.hbm_to_vmem [thread:$0]  %s11214_s5, 16384, %s58_s16, [#allocation6], %s8554_s18, %s8554_s18, %s8555_s19  }
  0x47   :  { %s8501_s15 = scalar_lea.hbm %s11220_s11, 4096 }
  0x48   :  { %p8502_p4 = scmp.ne.s32.totalorder %s11220_s11, %s8501_s15  ;;  %p8505_p5 = scmp.lt.u32.totalorder %s8501_s15, %s11220_s11 }
  0x4a   :  { %p8507_p6 = pnand %p8505_p5, %p8502_p4 }
  0x4c   :  { %8510 = shalt.err (!%p8507_p6)
}
  0x4d   :  { %s8511_s24 = scalar_lea.vmem %s90_s20, 4096  ;;  %p8516_p8 = scmp.lt.s32.totalorder %s90_s20, %s90_s20 }
  0x4e   :  { %p8512_p7 = scmp.ne.s32.totalorder %s90_s20, %s8511_s24  ;;  %p8517_p9 = scmp.lt.s32.totalorder %s8511_s24, %s8511_s24 }
  0x50   :  { %p8518_p10 = por %p8517_p9, %p8516_p8 }
  0x52   :  { %p8519_p11 = pnand %p8518_p10, %p8512_p7 }
  0x54   :  { %8522 = shalt.err (!%p8519_p11)
}
  0x55   :  { %s8564_s5 = smov 256   ;;  %s8565_s18 = smov 16  }
  0x56   :  { %95 = dma.hbm_to_vmem [thread:$0]  %s11220_s11, 4096, %s90_s20, [#allocation9], %s8564_s5, %s8564_s5, %s8565_s18  }
  0x57   :  { %8545 = dma.done.wait [#allocation3], 30720  }
  0x58   :  { %8546 = vsyncadd [#allocation3], 4294936576 }
  0x59   :  { %8547 = dma.done.wait [#allocation6], 32768  }
  0x5a   :  { %8548 = vsyncadd [#allocation6], 4294934528 }
  0x5b   :  { %8549 = dma.done.wait [#allocation9], 6144  }
  0x5c   :  { %8550 = vsyncadd [#allocation9], 4294961152  ;;  %v7648_v0 = vld [vmem:[#allocation2 + $0x4] ss:$8 sps:$4 sm:$0xff]   ;;  %v7650_v1 = vld [vmem:[#allocation2] ss:$8 sps:$4 sm:$0xff]   ;;  %v358_v7 = vlaneseq }
  0x5d   :  { %1682 = vmatprep.subr.bf16.mxu0 %v7648_v0  ;;  %v7651_v2 = vld [vmem:[#allocation2 + $0x14] ss:$8 sps:$4 sm:$0xff]   ;;  %v7653_v3 = vld [vmem:[#allocation2 + $0x10] ss:$8 sps:$4 sm:$0xff]   ;;  %v7654_v4 = vld [vmem:[#allocation2 + $0x24] ss:$8 sps:$4 sm:$0xff]  }
  0x5e   :  { %1683 = vmatpush1.bf16.msra.mxu0 %v7650_v1  ;;  %v7656_v5 = vld [vmem:[#allocation2 + $0x20] ss:$8 sps:$4 sm:$0xff]   ;;  %v7657_v6 = vld [vmem:[#allocation2 + $0x34] ss:$8 sps:$4 sm:$0xff]   ;;  %v8566_v8 = vmov 1966171168  }
  0x5f   :  { %1684 = vmatprep.subr.bf16.mxu0 %v7651_v2  ;;  %v372_v9 = vunpack.c.l.s4 %v8566_v8  ;;  %v7659_v10 = vld [vmem:[#allocation2 + $0x30] ss:$8 sps:$4 sm:$0xff]   ;;  %v7660_v11 = vld [vmem:[#allocation2 + $0x44] ss:$8 sps:$4 sm:$0xff]   ;;  %v8706_v12 = vshrl.u32 %v358_v7, 7 }
  0x60   :  { %v7662_v14 = vld [vmem:[#allocation2 + $0x40] ss:$8 sps:$4 sm:$0xff]   ;;  %v7663_v15 = vld [vmem:[#allocation2 + $0x54] ss:$8 sps:$4 sm:$0xff]   ;;  %v7665_v17 = vld [vmem:[#allocation2 + $0x50] ss:$8 sps:$4 sm:$0xff]  }
  0x61   :  { %11584 = vst [vmem:[#allocation16_spill] sm:$0xff] %v8706_v12  ;;  %v373_v13 = vunpack.c.0.s8 %v372_v9  ;;  %v7666_v18 = vld [vmem:[#allocation2 + $0x64] ss:$8 sps:$4 sm:$0xff]   ;;  %v7668_v21 = vld [vmem:[#allocation2 + $0x60] ss:$8 sps:$4 sm:$0xff]  }
  0x62   :  { %1685 = vmatpush1.bf16.msra.mxu0 %v7653_v3  ;;  %v8714_v19 = vld [vmem:[%s11209_s0] sm:$0xff]  ;;  %v7669_v22 = vld [vmem:[#allocation2 + $0x74] ss:$8 sps:$4 sm:$0xff]   ;;  %v7671_v25 = vld [vmem:[#allocation2 + $0x70] ss:$8 sps:$4 sm:$0xff]  }
  0x63   :  { %1686 = vmatprep.subr.bf16.mxu0 %v7654_v4  ;;  %v8709_v16 = vsub.s32 %v373_v13, %v8706_v12  ;;  %v7672_v26 = vld [vmem:[#allocation2 + $0x84] ss:$8 sps:$4 sm:$0xff]   ;;  %v7674_v27 = vld [vmem:[#allocation2 + $0x80] ss:$8 sps:$4 sm:$0xff]   ;;  %v7675_v28 = vld [vmem:[#allocation2 + $0x94] ss:$8 sps:$4 sm:$0xff]   ;;  %v370_v7 = vcombine.high %v8714_v19, %v8714_v19 }
  0x64   :  { %v7677_v29 = vld [vmem:[#allocation2 + $0x90] ss:$8 sps:$4 sm:$0xff]   ;;  %v7678_v30 = vld [vmem:[#allocation2 + $0xa4] ss:$8 sps:$4 sm:$0xff]   ;;  %v7680_v31 = vld [vmem:[#allocation2 + $0xa0] ss:$8 sps:$4 sm:$0xff]  }
  0x65   :  { %v377_v20 = vrot.slane %v8714_v19, %v8709_v16  ;;  %v7681_v32 = vld [vmem:[#allocation2 + $0xb4] ss:$8 sps:$4 sm:$0xff]   ;;  %v7683_v33 = vld [vmem:[#allocation2 + $0xb0] ss:$8 sps:$4 sm:$0xff]   ;;  %v7684_v34 = vld [vmem:[#allocation2 + $0xc4] ss:$8 sps:$4 sm:$0xff]   ;;  %v8726_v13 = vrot.slane %v370_v7, %v8709_v16 }
  0x66   :  { %1687 = vmatpush1.bf16.msra.mxu0 %v7656_v5  ;;  %v7686_v35 = vld [vmem:[#allocation2 + $0xc0] ss:$8 sps:$4 sm:$0xff]   ;;  %v7687_v36 = vld [vmem:[#allocation2 + $0xd4] ss:$8 sps:$4 sm:$0xff]   ;;  %v7689_v37 = vld [vmem:[#allocation2 + $0xd0] ss:$8 sps:$4 sm:$0xff]  }
  0x67   :  { %1688 = vmatprep.subr.bf16.mxu0 %v7657_v6  ;;  %v385_v23 = vcombine.high %v377_v20, %v377_v20  ;;  %v7690_v38 = vld [vmem:[#allocation2 + $0xe4] ss:$8 sps:$4 sm:$0xff]   ;;  %v7692_v39 = vld [vmem:[#allocation2 + $0xe0] ss:$8 sps:$4 sm:$0xff]   ;;  %v7693_v40 = vld [vmem:[#allocation2 + $0xf4] ss:$8 sps:$4 sm:$0xff]   ;;  %v8720_v43 = vrot.slane %v377_v20, %v8709_v16 }
  0x68   :  { %v7695_v41 = vld [vmem:[#allocation2 + $0xf0] ss:$8 sps:$4 sm:$0xff]   ;;  %v7699_v42 = vld [vmem:[#allocation2 + $0x104] ss:$8 sps:$4 sm:$0xff]   ;;  %v7697_v45 = vld [vmem:[#allocation2 + $0x100] ss:$8 sps:$4 sm:$0xff]  }
  0x69   :  { %v407_v24 = vrot.slane %v385_v23, %v8709_v16  ;;  %v7702_v46 = vld [vmem:[#allocation2 + $0x114] ss:$8 sps:$4 sm:$0xff]   ;;  %v7700_v47 = vld [vmem:[#allocation2 + $0x110] ss:$8 sps:$4 sm:$0xff]   ;;  %v7705_v48 = vld [vmem:[#allocation2 + $0x124] ss:$8 sps:$4 sm:$0xff]  }
  0x6a   :  { %1689 = vmatpush1.bf16.msra.mxu0 %v7659_v10  ;;  %v7703_v49 = vld [vmem:[#allocation2 + $0x120] ss:$8 sps:$4 sm:$0xff]   ;;  %v7708_v50 = vld [vmem:[#allocation2 + $0x134] ss:$8 sps:$4 sm:$0xff]   ;;  %v7706_v51 = vld [vmem:[#allocation2 + $0x130] ss:$8 sps:$4 sm:$0xff]  }
  0x6b   :  { %1690 = vmatprep.subr.bf16.mxu0 %v7660_v11  ;;  %1714 = vmatprep.mubr.bf16.mxu0 %v407_v24  ;;  %v417_v44 = vcombine.high %v407_v24, %v407_v24  ;;  %v7711_v52 = vld [vmem:[#allocation2 + $0x144] ss:$8 sps:$4 sm:$0xff]   ;;  %v7709_v53 = vld [vmem:[#allocation2 + $0x140] ss:$8 sps:$4 sm:$0xff]   ;;  %v7714_v54 = vld [vmem:[#allocation2 + $0x154] ss:$8 sps:$4 sm:$0xff]  }
  0x6c   :  { %v7712_v55 = vld [vmem:[#allocation2 + $0x150] ss:$8 sps:$4 sm:$0xff]   ;;  %v7717_v56 = vld [vmem:[#allocation2 + $0x164] ss:$8 sps:$4 sm:$0xff]   ;;  %v7715_v57 = vld [vmem:[#allocation2 + $0x160] ss:$8 sps:$4 sm:$0xff]  }
  0x6d   :  { %v7720_v58 = vld [vmem:[#allocation2 + $0x174] ss:$8 sps:$4 sm:$0xff]   ;;  %v7718_v59 = vld [vmem:[#allocation2 + $0x170] ss:$8 sps:$4 sm:$0xff]   ;;  %v7723_v60 = vld [vmem:[#allocation2 + $0x184] ss:$8 sps:$4 sm:$0xff]  }
  0x6e   :  { %1691 = vmatpush1.bf16.msra.mxu0 %v7662_v14  ;;  %v7721_v61 = vld [vmem:[#allocation2 + $0x180] ss:$8 sps:$4 sm:$0xff]   ;;  %v7726_v62 = vld [vmem:[#allocation2 + $0x194] ss:$8 sps:$4 sm:$0xff]   ;;  %v7724_v63 = vld [vmem:[#allocation2 + $0x190] ss:$8 sps:$4 sm:$0xff]  }
  0x6f   :  { %1692 = vmatprep.subr.bf16.mxu0 %v7663_v15  ;;  %v7729_v0 = vld [vmem:[#allocation2 + $0x1a4] ss:$8 sps:$4 sm:$0xff]   ;;  %v7727_v1 = vld [vmem:[#allocation2 + $0x1a0] ss:$8 sps:$4 sm:$0xff]   ;;  %v7732_v2 = vld [vmem:[#allocation2 + $0x1b4] ss:$8 sps:$4 sm:$0xff]  }
  0x70   :  { %v7730_v3 = vld [vmem:[#allocation2 + $0x1b0] ss:$8 sps:$4 sm:$0xff]   ;;  %v7735_v4 = vld [vmem:[#allocation2 + $0x1c4] ss:$8 sps:$4 sm:$0xff]   ;;  %v7733_v5 = vld [vmem:[#allocation2 + $0x1c0] ss:$8 sps:$4 sm:$0xff]  }
  0x71   :  { %v7738_v6 = vld [vmem:[#allocation2 + $0x1d4] ss:$8 sps:$4 sm:$0xff]   ;;  %v7736_v8 = vld [vmem:[#allocation2 + $0x1d0] ss:$8 sps:$4 sm:$0xff]   ;;  %v7741_v9 = vld [vmem:[#allocation2 + $0x1e4] ss:$8 sps:$4 sm:$0xff]  }
  0x72   :  { %1693 = vmatpush1.bf16.msra.mxu0 %v7665_v17  ;;  %v7739_v10 = vld [vmem:[#allocation2 + $0x1e0] ss:$8 sps:$4 sm:$0xff]   ;;  %v7744_v11 = vld [vmem:[#allocation2 + $0x1f4] ss:$8 sps:$4 sm:$0xff]   ;;  %v7742_v14 = vld [vmem:[#allocation2 + $0x1f0] ss:$8 sps:$4 sm:$0xff]   ;;  %v386_v17 = vcombine.high %v8726_v13, %v8726_v13 }
  0x73   :  { %1694 = vmatprep.subr.bf16.mxu0 %v7666_v18  ;;  %v7747_v15 = vld [vmem:[#allocation2 + $0x204] ss:$8 sps:$4 sm:$0xff]   ;;  %v415_v18 = vcombine.high %v8720_v43, %v8720_v43  ;;  %v7745_v19 = vld [vmem:[#allocation2 + $0x200] ss:$8 sps:$4 sm:$0xff]   ;;  %v7750_v20 = vld [vmem:[#allocation2 + $0x214] ss:$8 sps:$4 sm:$0xff]  }
  0x74   :  { %v7753_v23 = vld [vmem:[#allocation2 + $0x224] ss:$8 sps:$4 sm:$0xff]   ;;  %v7751_v24 = vld [vmem:[#allocation2 + $0x220] ss:$8 sps:$4 sm:$0xff]   ;;  %v7822_v7 = vld [vmem:[#allocation2 + $0x394] ss:$8 sps:$4 sm:$0xff]  }
  0x76   :  { %1695 = vmatpush1.bf16.msra.mxu0 %v7668_v21  ;;  %v8733_v21 = vrot.slane %v386_v17, %v8709_v16  ;;  %v7834_v17 = vld [vmem:[#allocation2 + $0x3d4] ss:$8 sps:$4 sm:$0xff]  }
  0x77   :  { %1696 = vmatprep.subr.bf16.mxu0 %v7669_v22  ;;  %v7748_v22 = vld [vmem:[#allocation2 + $0x210] ss:$8 sps:$4 sm:$0xff]  }
  0x7a   :  { %1697 = vmatpush1.bf16.msra.mxu0 %v7671_v25  ;;  %v7756_v25 = vld [vmem:[#allocation2 + $0x234] ss:$8 sps:$4 sm:$0xff]  }
  0x7b   :  { %1698 = vmatprep.subr.bf16.mxu0 %v7672_v26  ;;  %v7754_v26 = vld [vmem:[#allocation2 + $0x230] ss:$8 sps:$4 sm:$0xff]  }
  0x7e   :  { %1699 = vmatpush1.bf16.msra.mxu0 %v7674_v27  ;;  %v7759_v27 = vld [vmem:[#allocation2 + $0x244] ss:$8 sps:$4 sm:$0xff]  }
  0x7f   :  { %1700 = vmatprep.subr.bf16.mxu0 %v7675_v28  ;;  %v7757_v28 = vld [vmem:[#allocation2 + $0x240] ss:$8 sps:$4 sm:$0xff]  }
  0x82   :  { %1701 = vmatpush1.bf16.msra.mxu0 %v7677_v29  ;;  %v7762_v29 = vld [vmem:[#allocation2 + $0x254] ss:$8 sps:$4 sm:$0xff]  }
  0x83   :  { %1702 = vmatprep.subr.bf16.mxu0 %v7678_v30  ;;  %v7760_v30 = vld [vmem:[#allocation2 + $0x250] ss:$8 sps:$4 sm:$0xff]  }
  0x86   :  { %1703 = vmatpush1.bf16.msra.mxu0 %v7680_v31  ;;  %v7765_v31 = vld [vmem:[#allocation2 + $0x264] ss:$8 sps:$4 sm:$0xff]  }
  0x87   :  { %1704 = vmatprep.subr.bf16.mxu0 %v7681_v32  ;;  %v7763_v32 = vld [vmem:[#allocation2 + $0x260] ss:$8 sps:$4 sm:$0xff]  }
  0x8a   :  { %1705 = vmatpush1.bf16.msra.mxu0 %v7683_v33  ;;  %v7768_v33 = vld [vmem:[#allocation2 + $0x274] ss:$8 sps:$4 sm:$0xff]  }
  0x8b   :  { %1706 = vmatprep.subr.bf16.mxu0 %v7684_v34  ;;  %v7766_v34 = vld [vmem:[#allocation2 + $0x270] ss:$8 sps:$4 sm:$0xff]  }
  0x8e   :  { %1707 = vmatpush1.bf16.msra.mxu0 %v7686_v35  ;;  %v7771_v35 = vld [vmem:[#allocation2 + $0x284] ss:$8 sps:$4 sm:$0xff]  }
  0x8f   :  { %1708 = vmatprep.subr.bf16.mxu0 %v7687_v36  ;;  %v7769_v36 = vld [vmem:[#allocation2 + $0x280] ss:$8 sps:$4 sm:$0xff]  }
  0x92   :  { %1709 = vmatpush1.bf16.msra.mxu0 %v7689_v37  ;;  %v7774_v37 = vld [vmem:[#allocation2 + $0x294] ss:$8 sps:$4 sm:$0xff]  }
  0x93   :  { %1710 = vmatprep.subr.bf16.mxu0 %v7690_v38  ;;  %v7772_v38 = vld [vmem:[#allocation2 + $0x290] ss:$8 sps:$4 sm:$0xff]  }
  0x96   :  { %1711 = vmatpush1.bf16.msra.mxu0 %v7692_v39  ;;  %v7777_v39 = vld [vmem:[#allocation2 + $0x2a4] ss:$8 sps:$4 sm:$0xff]  }
  0x97   :  { %1712 = vmatprep.subr.bf16.mxu0 %v7693_v40  ;;  %v7775_v40 = vld [vmem:[#allocation2 + $0x2a0] ss:$8 sps:$4 sm:$0xff]  }
  0x9a   :  { %1713 = vmatpush1.bf16.msra.mxu0 %v7695_v41  ;;  %v7780_v41 = vld [vmem:[#allocation2 + $0x2b4] ss:$8 sps:$4 sm:$0xff]  }
  0x9b   :  { %1723 = vmatprep.subr.bf16.mxu0 %v7699_v42  ;;  %v7778_v42 = vld [vmem:[#allocation2 + $0x2b0] ss:$8 sps:$4 sm:$0xff]  }
  0x9d   :  { %1715 = vmatmul.mubr.bf16.vlgmr.msra.gmra.mrb[0].mxu0 %v8720_v43  ;;  %v7783_v43 = vld [vmem:[#allocation2 + $0x2c4] ss:$8 sps:$4 sm:$0xff]  }
  0x9e   :  { %1724 = vmatpush1.bf16.msra.mxu0 %v7697_v45  ;;  %1755 = vmatprep.mubr.bf16.mxu0 %v417_v44  ;;  %v7781_v44 = vld [vmem:[#allocation2 + $0x2c0] ss:$8 sps:$4 sm:$0xff]   ;;  %v7786_v45 = vld [vmem:[#allocation2 + $0x2d4] ss:$8 sps:$4 sm:$0xff]  }
  0x9f   :  { %1725 = vmatprep.subr.bf16.mxu0 %v7702_v46  ;;  %v7784_v46 = vld [vmem:[#allocation2 + $0x2d0] ss:$8 sps:$4 sm:$0xff]  }
  0xa2   :  { %1726 = vmatpush1.bf16.msra.mxu0 %v7700_v47  ;;  %v7789_v47 = vld [vmem:[#allocation2 + $0x2e4] ss:$8 sps:$4 sm:$0xff]  }
  0xa3   :  { %1727 = vmatprep.subr.bf16.mxu0 %v7705_v48  ;;  %v7787_v48 = vld [vmem:[#allocation2 + $0x2e0] ss:$8 sps:$4 sm:$0xff]  }
  0xa6   :  { %1728 = vmatpush1.bf16.msra.mxu0 %v7703_v49  ;;  %v7792_v49 = vld [vmem:[#allocation2 + $0x2f4] ss:$8 sps:$4 sm:$0xff]  }
  0xa7   :  { %1729 = vmatprep.subr.bf16.mxu0 %v7708_v50  ;;  %v7790_v50 = vld [vmem:[#allocation2 + $0x2f0] ss:$8 sps:$4 sm:$0xff]  }
  0xaa   :  { %1730 = vmatpush1.bf16.msra.mxu0 %v7706_v51  ;;  %v7795_v51 = vld [vmem:[#allocation2 + $0x304] ss:$8 sps:$4 sm:$0xff]  }
  0xab   :  { %1731 = vmatprep.subr.bf16.mxu0 %v7711_v52  ;;  %v8738_v52 = vrot.slane %v8726_v13, %v8709_v16  ;;  %v7826_v13 = vld [vmem:[#allocation2 + $0x3b0] ss:$8 sps:$4 sm:$0xff]  }
  0xae   :  { %1732 = vmatpush1.bf16.msra.mxu0 %v7709_v53  ;;  %v7793_v53 = vld [vmem:[#allocation2 + $0x300] ss:$8 sps:$4 sm:$0xff]  }
  0xaf   :  { %1733 = vmatprep.subr.bf16.mxu0 %v7714_v54  ;;  %v418_v54 = vcombine.high %v8733_v21, %v8733_v21 }
  0xb2   :  { %1734 = vmatpush1.bf16.msra.mxu0 %v7712_v55  ;;  %v7798_v55 = vld [vmem:[#allocation2 + $0x314] ss:$8 sps:$4 sm:$0xff]  }
  0xb3   :  { %1735 = vmatprep.subr.bf16.mxu0 %v7717_v56  ;;  %v7796_v56 = vld [vmem:[#allocation2 + $0x310] ss:$8 sps:$4 sm:$0xff]  }
  0xb6   :  { %1736 = vmatpush1.bf16.msra.mxu0 %v7715_v57  ;;  %v7801_v57 = vld [vmem:[#allocation2 + $0x324] ss:$8 sps:$4 sm:$0xff]  }
  0xb7   :  { %1737 = vmatprep.subr.bf16.mxu0 %v7720_v58  ;;  %v7799_v58 = vld [vmem:[#allocation2 + $0x320] ss:$8 sps:$4 sm:$0xff]  }
  0xba   :  { %1738 = vmatpush1.bf16.msra.mxu0 %v7718_v59  ;;  %v7804_v59 = vld [vmem:[#allocation2 + $0x334] ss:$8 sps:$4 sm:$0xff]  }
  0xbb   :  { %1739 = vmatprep.subr.bf16.mxu0 %v7723_v60  ;;  %v7802_v60 = vld [vmem:[#allocation2 + $0x330] ss:$8 sps:$4 sm:$0xff]  }
  0xbe   :  { %1740 = vmatpush1.bf16.msra.mxu0 %v7721_v61  ;;  %v7807_v61 = vld [vmem:[#allocation2 + $0x344] ss:$8 sps:$4 sm:$0xff]  }
  0xbf   :  { %1741 = vmatprep.subr.bf16.mxu0 %v7726_v62  ;;  %v7805_v62 = vld [vmem:[#allocation2 + $0x340] ss:$8 sps:$4 sm:$0xff]  }
  0xc2   :  { %1742 = vmatpush1.bf16.msra.mxu0 %v7724_v63  ;;  %v7810_v63 = vld [vmem:[#allocation2 + $0x354] ss:$8 sps:$4 sm:$0xff]  }
  0xc3   :  { %1743 = vmatprep.subr.bf16.mxu0 %v7729_v0  ;;  %v7808_v0 = vld [vmem:[#allocation2 + $0x350] ss:$8 sps:$4 sm:$0xff]  }
  0xc6   :  { %1744 = vmatpush1.bf16.msra.mxu0 %v7727_v1  ;;  %v7813_v1 = vld [vmem:[#allocation2 + $0x364] ss:$8 sps:$4 sm:$0xff]  }
  0xc7   :  { %1745 = vmatprep.subr.bf16.mxu0 %v7732_v2  ;;  %v7811_v2 = vld [vmem:[#allocation2 + $0x360] ss:$8 sps:$4 sm:$0xff]  }
  0xca   :  { %1746 = vmatpush1.bf16.msra.mxu0 %v7730_v3  ;;  %v7816_v3 = vld [vmem:[#allocation2 + $0x374] ss:$8 sps:$4 sm:$0xff]  }
  0xcb   :  { %1747 = vmatprep.subr.bf16.mxu0 %v7735_v4  ;;  %v7814_v4 = vld [vmem:[#allocation2 + $0x370] ss:$8 sps:$4 sm:$0xff]  }
  0xce   :  { %1748 = vmatpush1.bf16.msra.mxu0 %v7733_v5  ;;  %v7819_v5 = vld [vmem:[#allocation2 + $0x384] ss:$8 sps:$4 sm:$0xff]  }
  0xcf   :  { %1749 = vmatprep.subr.bf16.mxu0 %v7738_v6  ;;  %v7817_v6 = vld [vmem:[#allocation2 + $0x380] ss:$8 sps:$4 sm:$0xff]  }
  0xd2   :  { %1750 = vmatpush1.bf16.msra.mxu0 %v7736_v8  ;;  %v7820_v8 = vld [vmem:[#allocation2 + $0x390] ss:$8 sps:$4 sm:$0xff]  }
  0xd3   :  { %1751 = vmatprep.subr.bf16.mxu0 %v7741_v9  ;;  %v7825_v9 = vld [vmem:[#allocation2 + $0x3a4] ss:$8 sps:$4 sm:$0xff]  }
  0xd6   :  { %1752 = vmatpush1.bf16.msra.mxu0 %v7739_v10  ;;  %v7823_v10 = vld [vmem:[#allocation2 + $0x3a0] ss:$8 sps:$4 sm:$0xff]  }
  0xd7   :  { %1753 = vmatprep.subr.bf16.mxu0 %v7744_v11  ;;  %v7828_v11 = vld [vmem:[#allocation2 + $0x3b4] ss:$8 sps:$4 sm:$0xff]  }
  0xda   :  { %1754 = vmatpush1.bf16.msra.mxu0 %v7742_v14  ;;  %v7831_v14 = vld [vmem:[#allocation2 + $0x3c4] ss:$8 sps:$4 sm:$0xff]  }
  0xdb   :  { %1764 = vmatprep.subr.bf16.mxu0 %v7747_v15  ;;  %v7829_v15 = vld [vmem:[#allocation2 + $0x3c0] ss:$8 sps:$4 sm:$0xff]  }
  0xdd   :  { %1756 = vmatmul.mubr.bf16.vlgmr.msra.gmra.mrb[0].mxu0 %v415_v18  ;;  %v7832_v18 = vld [vmem:[#allocation2 + $0x3d0] ss:$8 sps:$4 sm:$0xff]  }
  0xde   :  { %1765 = vmatpush1.bf16.msra.mxu0 %v7745_v19  ;;  %1796 = vmatprep.mubr.bf16.mxu0 %v8733_v21  ;;  %v7837_v19 = vld [vmem:[#allocation2 + $0x3e4] ss:$8 sps:$4 sm:$0xff]   ;;  %v7835_v21 = vld [vmem:[#allocation2 + $0x3e0] ss:$8 sps:$4 sm:$0xff]  }
  0xdf   :  { %1766 = vmatprep.subr.bf16.mxu0 %v7750_v20  ;;  %v8746_v20 = vld [vmem:[%s11209_s0 + $0x8] sm:$0x7f] }
  0xe2   :  { %1767 = vmatpush1.bf16.msra.mxu0 %v7748_v22  ;;  %v8750_v22 = vrot.slane %v8746_v20, %v8709_v16 }
  0xe3   :  { %1768 = vmatprep.subr.bf16.mxu0 %v7753_v23  ;;  %v7840_v23 = vld [vmem:[#allocation2 + $0x3f4] ss:$8 sps:$4 sm:$0xff]  }
  0xe6   :  { %1769 = vmatpush1.bf16.msra.mxu0 %v7751_v24  ;;  %v2012_v24 = vld [vmem:[#allocation5] sm:$0xff] }
  0xe7   :  { %1770 = vmatprep.subr.bf16.mxu0 %v7756_v25  ;;  %v2016_v25 = vld [vmem:[#allocation5 + $0x20] sm:$0xff] }
  0xea   :  { %1771 = vmatpush1.bf16.msra.mxu0 %v7754_v26  ;;  %v8752_v26 = vcombine.high %v2012_v24, %v2016_v25 }
  0xeb   :  { %1772 = vmatprep.subr.bf16.mxu0 %v7759_v27  ;;  %v8754_v27 = vcombine.low %v2012_v24, %v2016_v25  ;;  %v7865_v25 = vld [vmem:[#allocation2 + $0x480] ss:$8 sps:$4 sm:$0xff]  }
  0xec   :  { %2834 = vmatprep.subr.bf16.mxu1 %v8752_v26 }
  0xed   :  { %2835 = vmatpush1.bf16.msra.mxu1 %v8754_v27 }
  0xee   :  { %1773 = vmatpush1.bf16.msra.mxu0 %v7757_v28  ;;  %v7838_v28 = vld [vmem:[#allocation2 + $0x3f0] ss:$8 sps:$4 sm:$0xff]  }
  0xef   :  { %1774 = vmatprep.subr.bf16.mxu0 %v7762_v29  ;;  %v434_v29 = vcombine.high %v8750_v22, %v8750_v22 }
  0xf2   :  { %1775 = vmatpush1.bf16.msra.mxu0 %v7760_v30  ;;  %v7843_v30 = vld [vmem:[#allocation2 + $0x404] ss:$8 sps:$4 sm:$0xff]  }
  0xf3   :  { %1776 = vmatprep.subr.bf16.mxu0 %v7765_v31  ;;  %v2020_v31 = vld [vmem:[#allocation5 + $0x40] sm:$0xff] }
  0xf6   :  { %1777 = vmatpush1.bf16.msra.mxu0 %v7763_v32  ;;  %v2024_v32 = vld [vmem:[#allocation5 + $0x60] sm:$0xff] }
  0xf7   :  { %1778 = vmatprep.subr.bf16.mxu0 %v7768_v33  ;;  %v8760_v33 = vcombine.high %v2020_v31, %v2024_v32 }
  0xf9   :  { %2836 = vmatprep.subr.bf16.mxu1 %v8760_v33 }
  0xfa   :  { %1779 = vmatpush1.bf16.msra.mxu0 %v7766_v34  ;;  %v416_v34 = vcombine.high %v8738_v52, %v8738_v52 }
  0xfb   :  { %1780 = vmatprep.subr.bf16.mxu0 %v7771_v35  ;;  %v8764_v35 = vcombine.low %v2020_v31, %v2024_v32 }
  0xfd   :  { %2837 = vmatpush1.bf16.msra.mxu1 %v8764_v35 }
  0xfe   :  { %1781 = vmatpush1.bf16.msra.mxu0 %v7769_v36  ;;  %v7841_v36 = vld [vmem:[#allocation2 + $0x400] ss:$8 sps:$4 sm:$0xff]  }
  0xff   :  { %1782 = vmatprep.subr.bf16.mxu0 %v7774_v37  ;;  %v8767_v37 = vrot.slane %v434_v29, %v8709_v16  ;;  %v2092_v29 = vld [vmem:[#allocation5 + $0x280] sm:$0xff] }
 0x102   :  { %1783 = vmatpush1.bf16.msra.mxu0 %v7772_v38  ;;  %v7846_v38 = vld [vmem:[#allocation2 + $0x414] ss:$8 sps:$4 sm:$0xff]  }
 0x103   :  { %1784 = vmatprep.subr.bf16.mxu0 %v7777_v39  ;;  %v2028_v39 = vld [vmem:[#allocation5 + $0x80] sm:$0xff] }
 0x106   :  { %1785 = vmatpush1.bf16.msra.mxu0 %v7775_v40  ;;  %v2032_v40 = vld [vmem:[#allocation5 + $0xa0] sm:$0xff] }
 0x107   :  { %1786 = vmatprep.subr.bf16.mxu0 %v7780_v41  ;;  %v8771_v41 = vcombine.high %v2028_v39, %v2032_v40 }
 0x109   :  { %2838 = vmatprep.subr.bf16.mxu1 %v8771_v41 }
 0x10a   :  { %1787 = vmatpush1.bf16.msra.mxu0 %v7778_v42  ;;  %v8773_v42 = vcombine.low %v2028_v39, %v2032_v40  ;;  %v2104_v39 = vld [vmem:[#allocation5 + $0x2e0] sm:$0xff] }
 0x10b   :  { %1788 = vmatprep.subr.bf16.mxu0 %v7783_v43  ;;  %v7844_v43 = vld [vmem:[#allocation2 + $0x410] ss:$8 sps:$4 sm:$0xff]  }
 0x10c   :  { %2839 = vmatpush1.bf16.msra.mxu1 %v8773_v42 }
 0x10e   :  { %1789 = vmatpush1.bf16.msra.mxu0 %v7781_v44  ;;  %v7849_v44 = vld [vmem:[#allocation2 + $0x424] ss:$8 sps:$4 sm:$0xff]  }
 0x10f   :  { %1790 = vmatprep.subr.bf16.mxu0 %v7786_v45  ;;  %v2036_v45 = vld [vmem:[#allocation5 + $0xc0] sm:$0xff] }
 0x112   :  { %1791 = vmatpush1.bf16.msra.mxu0 %v7784_v46  ;;  %v2040_v46 = vld [vmem:[#allocation5 + $0xe0] sm:$0xff] }
 0x113   :  { %1792 = vmatprep.subr.bf16.mxu0 %v7789_v47  ;;  %v8778_v47 = vcombine.high %v2036_v45, %v2040_v46 }
 0x115   :  { %2840 = vmatprep.subr.bf16.mxu1 %v8778_v47 }
 0x116   :  { %1793 = vmatpush1.bf16.msra.mxu0 %v7787_v48  ;;  %v8780_v48 = vcombine.low %v2036_v45, %v2040_v46  ;;  %v7876_v45 = vld [vmem:[#allocation2 + $0x4b4] ss:$8 sps:$4 sm:$0xff]   ;;  %v2108_v46 = vld [vmem:[#allocation5 + $0x300] sm:$0xff] }
 0x117   :  { %1794 = vmatprep.subr.bf16.mxu0 %v7792_v49  ;;  %v7847_v49 = vld [vmem:[#allocation2 + $0x420] ss:$8 sps:$4 sm:$0xff]  }
 0x118   :  { %2841 = vmatpush1.bf16.msra.mxu1 %v8780_v48 }
 0x11a   :  { %1795 = vmatpush1.bf16.msra.mxu0 %v7790_v50  ;;  %v7852_v50 = vld [vmem:[#allocation2 + $0x434] ss:$8 sps:$4 sm:$0xff]  }
 0x11b   :  { %1805 = vmatprep.subr.bf16.mxu0 %v7795_v51  ;;  %v2044_v51 = vld [vmem:[#allocation5 + $0x100] sm:$0xff] }
 0x11d   :  { %1797 = vmatmul.mubr.bf16.vlgmr.msra.gmra.mrb[0].mxu0 %v8738_v52  ;;  %v2048_v52 = vld [vmem:[#allocation5 + $0x120] sm:$0xff] }
 0x11e   :  { %1806 = vmatpush1.bf16.msra.mxu0 %v7793_v53  ;;  %1837 = vmatprep.mubr.bf16.mxu0 %v418_v54  ;;  %v8784_v53 = vcombine.high %v2044_v51, %v2048_v52  ;;  %v8786_v54 = vcombine.low %v2044_v51, %v2048_v52  ;;  %v7874_v52 = vld [vmem:[#allocation2 + $0x4b0] ss:$8 sps:$4 sm:$0xff]  }
 0x11f   :  { %1807 = vmatprep.subr.bf16.mxu0 %v7798_v55  ;;  %v7850_v55 = vld [vmem:[#allocation2 + $0x430] ss:$8 sps:$4 sm:$0xff]  }
 0x120   :  { %2842 = vmatprep.subr.bf16.mxu1 %v8784_v53 }
 0x121   :  { %2843 = vmatpush1.bf16.msra.mxu1 %v8786_v54 }
 0x122   :  { %1808 = vmatpush1.bf16.msra.mxu0 %v7796_v56  ;;  %v7855_v56 = vld [vmem:[#allocation2 + $0x444] ss:$8 sps:$4 sm:$0xff]  }
 0x123   :  { %1809 = vmatprep.subr.bf16.mxu0 %v7801_v57  ;;  %v2052_v57 = vld [vmem:[#allocation5 + $0x140] sm:$0xff] }
 0x126   :  { %1810 = vmatpush1.bf16.msra.mxu0 %v7799_v58  ;;  %v2056_v58 = vld [vmem:[#allocation5 + $0x160] sm:$0xff] }
 0x127   :  { %1811 = vmatprep.subr.bf16.mxu0 %v7804_v59  ;;  %v8790_v59 = vcombine.high %v2052_v57, %v2056_v58 }
 0x129   :  { %2844 = vmatprep.subr.bf16.mxu1 %v8790_v59 }
 0x12a   :  { %1812 = vmatpush1.bf16.msra.mxu0 %v7802_v60  ;;  %v8792_v60 = vcombine.low %v2052_v57, %v2056_v58  ;;  %v2120_v57 = vld [vmem:[#allocation5 + $0x360] sm:$0xff] }
 0x12b   :  { %1813 = vmatprep.subr.bf16.mxu0 %v7807_v61  ;;  %v7853_v61 = vld [vmem:[#allocation2 + $0x440] ss:$8 sps:$4 sm:$0xff]  }
 0x12c   :  { %2845 = vmatpush1.bf16.msra.mxu1 %v8792_v60 }
 0x12e   :  { %1814 = vmatpush1.bf16.msra.mxu0 %v7805_v62  ;;  %v7858_v62 = vld [vmem:[#allocation2 + $0x454] ss:$8 sps:$4 sm:$0xff]  }
 0x12f   :  { %1815 = vmatprep.subr.bf16.mxu0 %v7810_v63  ;;  %v2060_v63 = vld [vmem:[#allocation5 + $0x180] sm:$0xff] }
 0x132   :  { %1816 = vmatpush1.bf16.msra.mxu0 %v7808_v0  ;;  %v2064_v0 = vld [vmem:[#allocation5 + $0x1a0] sm:$0xff] }
 0x133   :  { %1817 = vmatprep.subr.bf16.mxu0 %v7813_v1  ;;  %v8796_v1 = vcombine.high %v2060_v63, %v2064_v0 }
 0x135   :  { %2846 = vmatprep.subr.bf16.mxu1 %v8796_v1 }
 0x136   :  { %1818 = vmatpush1.bf16.msra.mxu0 %v7811_v2  ;;  %v8798_v2 = vcombine.low %v2060_v63, %v2064_v0  ;;  %v7882_v63 = vld [vmem:[#allocation2 + $0x4d4] ss:$8 sps:$4 sm:$0xff]   ;;  %v2124_v0 = vld [vmem:[#allocation5 + $0x380] sm:$0xff] }
 0x137   :  { %1819 = vmatprep.subr.bf16.mxu0 %v7816_v3  ;;  %v7856_v3 = vld [vmem:[#allocation2 + $0x450] ss:$8 sps:$4 sm:$0xff]  }
 0x138   :  { %2847 = vmatpush1.bf16.msra.mxu1 %v8798_v2 }
 0x13a   :  { %1820 = vmatpush1.bf16.msra.mxu0 %v7814_v4  ;;  %v7861_v4 = vld [vmem:[#allocation2 + $0x464] ss:$8 sps:$4 sm:$0xff]  }
 0x13b   :  { %1821 = vmatprep.subr.bf16.mxu0 %v7819_v5  ;;  %v2068_v5 = vld [vmem:[#allocation5 + $0x1c0] sm:$0xff] }
 0x13e   :  { %1822 = vmatpush1.bf16.msra.mxu0 %v7817_v6  ;;  %v2072_v6 = vld [vmem:[#allocation5 + $0x1e0] sm:$0xff] }
 0x13f   :  { %1823 = vmatprep.subr.bf16.mxu0 %v7822_v7  ;;  %v8802_v7 = vcombine.high %v2068_v5, %v2072_v6 }
 0x141   :  { %2848 = vmatprep.subr.bf16.mxu1 %v8802_v7 }
 0x142   :  { %1824 = vmatpush1.bf16.msra.mxu0 %v7820_v8  ;;  %v8804_v8 = vcombine.low %v2068_v5, %v2072_v6  ;;  %v7880_v6 = vld [vmem:[#allocation2 + $0x4d0] ss:$8 sps:$4 sm:$0xff]  }
 0x143   :  { %1825 = vmatprep.subr.bf16.mxu0 %v7825_v9  ;;  %v7859_v9 = vld [vmem:[#allocation2 + $0x460] ss:$8 sps:$4 sm:$0xff]  }
 0x144   :  { %2849 = vmatpush1.bf16.msra.mxu1 %v8804_v8 }
 0x146   :  { %1826 = vmatpush1.bf16.msra.mxu0 %v7823_v10  ;;  %v7864_v10 = vld [vmem:[#allocation2 + $0x474] ss:$8 sps:$4 sm:$0xff]  }
 0x147   :  { %1827 = vmatprep.subr.bf16.mxu0 %v7828_v11  ;;  %v2076_v11 = vld [vmem:[#allocation5 + $0x200] sm:$0xff] }
 0x14a   :  { %1828 = vmatpush1.bf16.msra.mxu0 %v7826_v13  ;;  %v2080_v13 = vld [vmem:[#allocation5 + $0x220] sm:$0xff] }
 0x14b   :  { %1829 = vmatprep.subr.bf16.mxu0 %v7831_v14  ;;  %v8808_v14 = vcombine.high %v2076_v11, %v2080_v13 }
 0x14d   :  { %2850 = vmatprep.subr.bf16.mxu1 %v8808_v14 }
 0x14e   :  { %1830 = vmatpush1.bf16.msra.mxu0 %v7829_v15  ;;  %v8810_v15 = vcombine.low %v2076_v11, %v2080_v13  ;;  %v2136_v11 = vld [vmem:[#allocation5 + $0x3e0] sm:$0xff] }
 0x14f   :  { %1831 = vmatprep.subr.bf16.mxu0 %v7834_v17  ;;  %v7862_v17 = vld [vmem:[#allocation2 + $0x470] ss:$8 sps:$4 sm:$0xff]  }
 0x150   :  { %2851 = vmatpush1.bf16.msra.mxu1 %v8810_v15 }
 0x152   :  { %1832 = vmatpush1.bf16.msra.mxu0 %v7832_v18  ;;  %v7867_v18 = vld [vmem:[#allocation2 + $0x484] ss:$8 sps:$4 sm:$0xff]  }
 0x153   :  { %1833 = vmatprep.subr.bf16.mxu0 %v7837_v19  ;;  %v2084_v19 = vld [vmem:[#allocation5 + $0x240] sm:$0xff] }
 0x156   :  { %1834 = vmatpush1.bf16.msra.mxu0 %v7835_v21  ;;  %v2088_v21 = vld [vmem:[#allocation5 + $0x260] sm:$0xff] }
 0x157   :  { %1835 = vmatprep.subr.bf16.mxu0 %v7840_v23  ;;  %v8814_v23 = vcombine.high %v2084_v19, %v2088_v21  ;;  %v8816_v24 = vcombine.low %v2084_v19, %v2088_v21  ;;  %v7888_v19 = vld [vmem:[#allocation2 + $0x4f4] ss:$8 sps:$4 sm:$0xff]   ;;  %v8858_v21 = vld [vmem:[%s11210_s1 + $0x4] ss:$8 sps:$4 sm:$0xff]  }
 0x158   :  { %2866 = vmatprep.mubr.bf16.mxu1 %v8858_v21 }
 0x159   :  { %2852 = vmatprep.subr.bf16.mxu1 %v8814_v23 }
 0x15a   :  { %1836 = vmatpush1.bf16.msra.mxu0 %v7838_v28  ;;  %v7870_v28 = vld [vmem:[#allocation2 + $0x494] ss:$8 sps:$4 sm:$0xff]   ;;  %2853 = vmatpush1.bf16.msra.mxu1 %v8816_v24 }
 0x15b   :  { %1846 = vmatprep.subr.bf16.mxu0 %v7843_v30  ;;  %v2096_v30 = vld [vmem:[#allocation5 + $0x2a0] sm:$0xff] }
 0x15c   :  { %v8820_v31 = vcombine.high %v2092_v29, %v2096_v30  ;;  %v8822_v32 = vcombine.low %v2092_v29, %v2096_v30  ;;  %v8864_v29 = vld [vmem:[%s11210_s1] ss:$8 sps:$4 sm:$0xff]  }
 0x15d   :  { %1838 = vmatmul.mubr.bf16.vlgmr.msra.gmra.mrb[0].mxu0 %v416_v34  ;;  %v7868_v34 = vld [vmem:[#allocation2 + $0x490] ss:$8 sps:$4 sm:$0xff]  }
 0x15e   :  { %1847 = vmatpush1.bf16.msra.mxu0 %v7841_v36  ;;  %1878 = vmatprep.mubr.bf16.mxu0 %v8767_v37  ;;  %v7873_v36 = vld [vmem:[#allocation2 + $0x4a4] ss:$8 sps:$4 sm:$0xff]  }
 0x15f   :  { %1848 = vmatprep.subr.bf16.mxu0 %v7846_v38  ;;  %2854 = vmatprep.subr.bf16.mxu1 %v8820_v31  ;;  %v2100_v38 = vld [vmem:[#allocation5 + $0x2c0] sm:$0xff] }
 0x160   :  { %2855 = vmatpush1.bf16.msra.mxu1 %v8822_v32  ;;  %v8826_v40 = vcombine.high %v2100_v38, %v2104_v39 }
 0x162   :  { %1849 = vmatpush1.bf16.msra.mxu0 %v7844_v43  ;;  %v8828_v43 = vcombine.low %v2100_v38, %v2104_v39  ;;  %2856 = vmatprep.subr.bf16.mxu1 %v8826_v40  ;;  %v7891_v38 = vld [vmem:[#allocation2 + $0x504] ss:$8 sps:$4 sm:$0xff]  }
 0x163   :  { %1850 = vmatprep.subr.bf16.mxu0 %v7849_v44  ;;  %v7871_v44 = vld [vmem:[#allocation2 + $0x4a0] ss:$8 sps:$4 sm:$0xff]  }
 0x164   :  { %2857 = vmatpush1.bf16.msra.mxu1 %v8828_v43  ;;  %v2021_v39 = vld [vmem:[#allocation5 + $0x48] sm:$0xff] }
 0x166   :  { %1851 = vmatpush1.bf16.msra.mxu0 %v7847_v49  ;;  %v2112_v49 = vld [vmem:[#allocation5 + $0x320] sm:$0xff] }
 0x167   :  { %1852 = vmatprep.subr.bf16.mxu0 %v7852_v50  ;;  %v8832_v50 = vcombine.high %v2108_v46, %v2112_v49  ;;  %v8834_v51 = vcombine.low %v2108_v46, %v2112_v49  ;;  %v8879_v46 = vrot.slane %v8750_v22, %v8709_v16 }
 0x169   :  { %2858 = vmatprep.subr.bf16.mxu1 %v8832_v50 }
 0x16a   :  { %1853 = vmatpush1.bf16.msra.mxu0 %v7850_v55  ;;  %v7879_v55 = vld [vmem:[#allocation2 + $0x4c4] ss:$8 sps:$4 sm:$0xff]   ;;  %2859 = vmatpush1.bf16.msra.mxu1 %v8834_v51 }
 0x16b   :  { %1854 = vmatprep.subr.bf16.mxu0 %v7855_v56  ;;  %v2116_v56 = vld [vmem:[#allocation5 + $0x340] sm:$0xff] }
 0x16c   :  { %v8838_v58 = vcombine.high %v2116_v56, %v2120_v57 }
 0x16e   :  { %1855 = vmatpush1.bf16.msra.mxu0 %v7853_v61  ;;  %v8840_v61 = vcombine.low %v2116_v56, %v2120_v57  ;;  %2860 = vmatprep.subr.bf16.mxu1 %v8838_v58  ;;  %v7894_v56 = vld [vmem:[#allocation2 + $0x514] ss:$8 sps:$4 sm:$0xff]   ;;  %v2029_v57 = vld [vmem:[#allocation5 + $0x88] sm:$0xff] }
 0x16f   :  { %1856 = vmatprep.subr.bf16.mxu0 %v7858_v62  ;;  %v7877_v62 = vld [vmem:[#allocation2 + $0x4c0] ss:$8 sps:$4 sm:$0xff]  }
 0x170   :  { %2861 = vmatpush1.bf16.msra.mxu1 %v8840_v61 }
 0x172   :  { %1857 = vmatpush1.bf16.msra.mxu0 %v7856_v3  ;;  %v2128_v3 = vld [vmem:[#allocation5 + $0x3a0] sm:$0xff] }
 0x173   :  { %1858 = vmatprep.subr.bf16.mxu0 %v7861_v4  ;;  %v8844_v4 = vcombine.high %v2124_v0, %v2128_v3  ;;  %v8846_v5 = vcombine.low %v2124_v0, %v2128_v3  ;;  %v7892_v0 = vld [vmem:[#allocation2 + $0x510] ss:$8 sps:$4 sm:$0xff]   ;;  %v7897_v3 = vld [vmem:[#allocation2 + $0x524] ss:$8 sps:$4 sm:$0xff]  }
 0x175   :  { %2862 = vmatprep.subr.bf16.mxu1 %v8844_v4 }
 0x176   :  { %1859 = vmatpush1.bf16.msra.mxu0 %v7859_v9  ;;  %v7885_v9 = vld [vmem:[#allocation2 + $0x4e4] ss:$8 sps:$4 sm:$0xff]   ;;  %2863 = vmatpush1.bf16.msra.mxu1 %v8846_v5 }
 0x177   :  { %1860 = vmatprep.subr.bf16.mxu0 %v7864_v10  ;;  %v2132_v10 = vld [vmem:[#allocation5 + $0x3c0] sm:$0xff] }
 0x178   :  { %v8850_v13 = vcombine.high %v2132_v10, %v2136_v11 }
 0x17a   :  { %1861 = vmatpush1.bf16.msra.mxu0 %v7862_v17  ;;  %v8852_v17 = vcombine.low %v2132_v10, %v2136_v11  ;;  %2864 = vmatprep.subr.bf16.mxu1 %v8850_v13  ;;  %v7895_v11 = vld [vmem:[#allocation2 + $0x520] ss:$8 sps:$4 sm:$0xff]  }
 0x17b   :  { %1862 = vmatprep.subr.bf16.mxu0 %v7867_v18  ;;  %v7883_v18 = vld [vmem:[#allocation2 + $0x4e0] ss:$8 sps:$4 sm:$0xff]  }
 0x17c   :  { %2865 = vmatpush1.bf16.msra.mxu1 %v8852_v17 }
 0x17e   :  { %1863 = vmatpush1.bf16.msra.mxu0 %v7865_v25  ;;  %v2013_v25 = vld [vmem:[#allocation5 + $0x8] sm:$0xff] }
 0x17f   :  { %1864 = vmatprep.subr.bf16.mxu0 %v7870_v28  ;;  %v2017_v28 = vld [vmem:[#allocation5 + $0x28] sm:$0xff]  ;;  %2867 = vmatmul.mubr.bf16.vlgmr.msra.gmra.mrb[0].mxu1 %v8864_v29 }
 0x180   :  { %v8866_v30 = vcombine.high %v2013_v25, %v2017_v28  ;;  %2909 = vmatprep.mubr.bf16.mxu1 %v8858_v21 }
 0x182   :  { %1865 = vmatpush1.bf16.msra.mxu0 %v7868_v34  ;;  %v8869_v34 = vcombine.low %v2013_v25, %v2017_v28  ;;  %2877 = vmatprep.subr.bf16.mxu1 %v8866_v30  ;;  %v2049_v25 = vld [vmem:[#allocation5 + $0x128] sm:$0xff] }
 0x183   :  { %1866 = vmatprep.subr.bf16.mxu0 %v7873_v36  ;;  %v7886_v36 = vld [vmem:[#allocation2 + $0x4f0] ss:$8 sps:$4 sm:$0xff]  }
 0x184   :  { %2878 = vmatpush1.bf16.msra.mxu1 %v8869_v34 }
 0x186   :  { %1867 = vmatpush1.bf16.msra.mxu0 %v7871_v44  ;;  %v2025_v44 = vld [vmem:[#allocation5 + $0x68] sm:$0xff] }
 0x187   :  { %1868 = vmatprep.subr.bf16.mxu0 %v7876_v45  ;;  %v8874_v45 = vcombine.high %v2021_v39, %v2025_v44  ;;  %v8881_v49 = vcombine.low %v2021_v39, %v2025_v44  ;;  %v7903_v39 = vld [vmem:[#allocation2 + $0x544] ss:$8 sps:$4 sm:$0xff]  }
 0x188   :  { %v2053_v44 = vld [vmem:[#allocation5 + $0x148] sm:$0xff] }
 0x189   :  { %2879 = vmatprep.subr.bf16.mxu1 %v8874_v45 }
 0x18a   :  { %1869 = vmatpush1.bf16.msra.mxu0 %v7874_v52  ;;  %v7889_v52 = vld [vmem:[#allocation2 + $0x500] ss:$8 sps:$4 sm:$0xff]   ;;  %2880 = vmatpush1.bf16.msra.mxu1 %v8881_v49 }
 0x18b   :  { %1870 = vmatprep.subr.bf16.mxu0 %v7879_v55  ;;  %v466_v55 = vcombine.high %v8767_v37, %v8767_v37  ;;  %v2037_v37 = vld [vmem:[#allocation5 + $0xc8] sm:$0xff] }
 0x18e   :  { %1871 = vmatpush1.bf16.msra.mxu0 %v7877_v62  ;;  %v2033_v62 = vld [vmem:[#allocation5 + $0xa8] sm:$0xff] }
 0x18f   :  { %1872 = vmatprep.subr.bf16.mxu0 %v7882_v63  ;;  %v8887_v63 = vcombine.high %v2029_v57, %v2033_v62  ;;  %v8890_v22 = vcombine.low %v2029_v57, %v2033_v62  ;;  %v7901_v57 = vld [vmem:[#allocation2 + $0x540] ss:$8 sps:$4 sm:$0xff]   ;;  %v7906_v62 = vld [vmem:[#allocation2 + $0x554] ss:$8 sps:$4 sm:$0xff]  }
 0x191   :  { %2881 = vmatprep.subr.bf16.mxu1 %v8887_v63 }
 0x192   :  { %1873 = vmatpush1.bf16.msra.mxu0 %v7880_v6  ;;  %v2041_v6 = vld [vmem:[#allocation5 + $0xe8] sm:$0xff]  ;;  %2882 = vmatpush1.bf16.msra.mxu1 %v8890_v22 }
 0x193   :  { %1874 = vmatprep.subr.bf16.mxu0 %v7885_v9  ;;  %v8894_v9 = vcombine.high %v2037_v37, %v2041_v6  ;;  %v8896_v10 = vcombine.low %v2037_v37, %v2041_v6 }
 0x195   :  { %2883 = vmatprep.subr.bf16.mxu1 %v8894_v9 }
 0x196   :  { %1875 = vmatpush1.bf16.msra.mxu0 %v7883_v18  ;;  %v7900_v18 = vld [vmem:[#allocation2 + $0x534] ss:$8 sps:$4 sm:$0xff]   ;;  %2884 = vmatpush1.bf16.msra.mxu1 %v8896_v10 }
 0x197   :  { %1876 = vmatprep.subr.bf16.mxu0 %v7888_v19  ;;  %v2045_v19 = vld [vmem:[#allocation5 + $0x108] sm:$0xff] }
 0x198   :  { %v8900_v28 = vcombine.high %v2045_v19, %v2049_v25 }
 0x19a   :  { %1877 = vmatpush1.bf16.msra.mxu0 %v7886_v36  ;;  %v8902_v36 = vcombine.low %v2045_v19, %v2049_v25  ;;  %2885 = vmatprep.subr.bf16.mxu1 %v8900_v28  ;;  %v2069_v19 = vld [vmem:[#allocation5 + $0x1c8] sm:$0xff] }
 0x19b   :  { %1887 = vmatprep.subr.bf16.mxu0 %v7891_v38  ;;  %v7898_v38 = vld [vmem:[#allocation2 + $0x530] ss:$8 sps:$4 sm:$0xff]   ;;  %v2073_v25 = vld [vmem:[#allocation5 + $0x1e8] sm:$0xff] }
 0x19c   :  { %11585 = vst [vmem:[#allocation17_spill] sm:$0xff] %v8902_v36  ;;  %2886 = vmatpush1.bf16.msra.mxu1 %v8902_v36  ;;  %v7942_v36 = vld [vmem:[#allocation2 + $0x614] ss:$8 sps:$4 sm:$0xff]  }
 0x19d   :  { %1879 = vmatmul.mubr.bf16.vlgmr.msra.gmra.mrb[0].mxu0 %v8879_v46 }
 0x19e   :  { %1888 = vmatpush1.bf16.msra.mxu0 %v7889_v52  ;;  %1919 = vmatprep.mubr.bf16.mxu0 %v466_v55  ;;  %v2057_v52 = vld [vmem:[#allocation5 + $0x168] sm:$0xff] }
 0x19f   :  { %1889 = vmatprep.subr.bf16.mxu0 %v7894_v56  ;;  %v8906_v55 = vcombine.high %v2053_v44, %v2057_v52  ;;  %v8908_v56 = vcombine.low %v2053_v44, %v2057_v52  ;;  %v7907_v44 = vld [vmem:[#allocation2 + $0x560] ss:$8 sps:$4 sm:$0xff]   ;;  %v7912_v52 = vld [vmem:[#allocation2 + $0x574] ss:$8 sps:$4 sm:$0xff]  }
 0x1a1   :  { %11586 = vst [vmem:[#allocation18_spill] sm:$0xff] %v8906_v55  ;;  %11587 = vst [vmem:[#allocation19_spill] sm:$0xff] %v8908_v56  ;;  %2887 = vmatprep.subr.bf16.mxu1 %v8906_v55 }
 0x1a2   :  { %1890 = vmatpush1.bf16.msra.mxu0 %v7892_v0  ;;  %v2061_v0 = vld [vmem:[#allocation5 + $0x188] sm:$0xff]  ;;  %2888 = vmatpush1.bf16.msra.mxu1 %v8908_v56  ;;  %v7916_v56 = vld [vmem:[#allocation2 + $0x590] ss:$8 sps:$4 sm:$0xff]  }
 0x1a3   :  { %1891 = vmatprep.subr.bf16.mxu0 %v7897_v3  ;;  %v2065_v3 = vld [vmem:[#allocation5 + $0x1a8] sm:$0xff] }
 0x1a4   :  { %v8912_v37 = vcombine.high %v2061_v0, %v2065_v3  ;;  %v8914_v6 = vcombine.low %v2061_v0, %v2065_v3  ;;  %v2081_v0 = vld [vmem:[#allocation5 + $0x228] sm:$0xff] }
 0x1a6   :  { %1892 = vmatpush1.bf16.msra.mxu0 %v7895_v11  ;;  %11588 = vst [vmem:[#allocation20_spill] sm:$0xff] %v8912_v37  ;;  %11589 = vst [vmem:[#allocation21_spill] sm:$0xff] %v8914_v6  ;;  %v7904_v11 = vld [vmem:[#allocation2 + $0x550] ss:$8 sps:$4 sm:$0xff]   ;;  %2889 = vmatprep.subr.bf16.mxu1 %v8912_v37  ;;  %v2101_v37 = vld [vmem:[#allocation5 + $0x2c8] sm:$0xff] }
 0x1a7   :  { %1893 = vmatprep.subr.bf16.mxu0 %v7900_v18  ;;  %v7909_v18 = vld [vmem:[#allocation2 + $0x564] ss:$8 sps:$4 sm:$0xff]   ;;  %2890 = vmatpush1.bf16.msra.mxu1 %v8914_v6  ;;  %v7910_v6 = vld [vmem:[#allocation2 + $0x570] ss:$8 sps:$4 sm:$0xff]  }
 0x1aa   :  { %1894 = vmatpush1.bf16.msra.mxu0 %v7898_v38  ;;  %v8918_v38 = vcombine.high %v2069_v19, %v2073_v25 }
 0x1ab   :  { %1895 = vmatprep.subr.bf16.mxu0 %v7903_v39  ;;  %v8920_v39 = vcombine.low %v2069_v19, %v2073_v25  ;;  %v7915_v19 = vld [vmem:[#allocation2 + $0x584] ss:$8 sps:$4 sm:$0xff]  }
 0x1ac   :  { %11590 = vst [vmem:[#allocation22_spill] sm:$0xff] %v8918_v38  ;;  %2891 = vmatprep.subr.bf16.mxu1 %v8918_v38  ;;  %v2089_v25 = vld [vmem:[#allocation5 + $0x268] sm:$0xff] }
 0x1ad   :  { %11591 = vst [vmem:[#allocation23_spill] sm:$0xff] %v8920_v39  ;;  %2892 = vmatpush1.bf16.msra.mxu1 %v8920_v39  ;;  %v7913_v39 = vld [vmem:[#allocation2 + $0x580] ss:$8 sps:$4 sm:$0xff]  }
 0x1ae   :  { %1896 = vmatpush1.bf16.msra.mxu0 %v7901_v57  ;;  %v2077_v57 = vld [vmem:[#allocation5 + $0x208] sm:$0xff] }
 0x1af   :  { %1897 = vmatprep.subr.bf16.mxu0 %v7906_v62  ;;  %v8924_v62 = vcombine.high %v2077_v57, %v2081_v0  ;;  %v8926_v3 = vcombine.low %v2077_v57, %v2081_v0  ;;  %v7918_v57 = vld [vmem:[#allocation2 + $0x594] ss:$8 sps:$4 sm:$0xff]   ;;  %v2097_v0 = vld [vmem:[#allocation5 + $0x2a8] sm:$0xff] }
 0x1b1   :  { %11592 = vst [vmem:[#allocation24_spill] sm:$0xff] %v8924_v62  ;;  %11593 = vst [vmem:[#allocation25_spill] sm:$0xff] %v8926_v3  ;;  %2893 = vmatprep.subr.bf16.mxu1 %v8924_v62 }
 0x1b2   :  { %1898 = vmatpush1.bf16.msra.mxu0 %v7904_v11  ;;  %v2085_v11 = vld [vmem:[#allocation5 + $0x248] sm:$0xff]  ;;  %2894 = vmatpush1.bf16.msra.mxu1 %v8926_v3 }
 0x1b3   :  { %1899 = vmatprep.subr.bf16.mxu0 %v7909_v18  ;;  %v8930_v18 = vcombine.high %v2085_v11, %v2089_v25  ;;  %v8932_v38 = vcombine.low %v2085_v11, %v2089_v25  ;;  %v2105_v3 = vld [vmem:[#allocation5 + $0x2e8] sm:$0xff] }
 0x1b4   :  { %v2109_v11 = vld [vmem:[#allocation5 + $0x308] sm:$0xff] }
 0x1b5   :  { %11594 = vst [vmem:[#allocation26_spill] sm:$0xff] %v8930_v18  ;;  %11595 = vst [vmem:[#allocation27_spill] sm:$0xff] %v8932_v38  ;;  %2895 = vmatprep.subr.bf16.mxu1 %v8930_v18  ;;  %v2113_v25 = vld [vmem:[#allocation5 + $0x328] sm:$0xff]  ;;  %v8944_v18 = vcombine.low %v2101_v37, %v2105_v3 }
 0x1b6   :  { %1900 = vmatpush1.bf16.msra.mxu0 %v7907_v44  ;;  %v2093_v44 = vld [vmem:[#allocation5 + $0x288] sm:$0xff]  ;;  %2896 = vmatpush1.bf16.msra.mxu1 %v8932_v38  ;;  %v8950_v55 = vcombine.low %v2109_v11, %v2113_v25 }
 0x1b7   :  { %1901 = vmatprep.subr.bf16.mxu0 %v7912_v52  ;;  %v8936_v52 = vcombine.high %v2093_v44, %v2097_v0  ;;  %v8938_v62 = vcombine.low %v2093_v44, %v2097_v0  ;;  %11599 = vst [vmem:[#allocation31_spill] sm:$0xff] %v8944_v18  ;;  %v8947_v44 = vcombine.high %v2109_v11, %v2113_v25  ;;  %v7919_v0 = vld [vmem:[#allocation2 + $0x5a0] ss:$8 sps:$4 sm:$0xff]  }
 0x1b8   :  { %v2121_v38 = vld [vmem:[#allocation5 + $0x368] sm:$0xff]  ;;  %11601 = vst [vmem:[#allocation33_spill] sm:$0xff] %v8950_v55 }
 0x1b9   :  { %11596 = vst [vmem:[#allocation28_spill] sm:$0xff] %v8936_v52  ;;  %11597 = vst [vmem:[#allocation29_spill] sm:$0xff] %v8938_v62  ;;  %2897 = vmatprep.subr.bf16.mxu1 %v8936_v52  ;;  %v7924_v52 = vld [vmem:[#allocation2 + $0x5b4] ss:$8 sps:$4 sm:$0xff]   ;;  %v7925_v11 = vld [vmem:[#allocation2 + $0x5c0] ss:$8 sps:$4 sm:$0xff]  }
 0x1ba   :  { %1902 = vmatpush1.bf16.msra.mxu0 %v7910_v6  ;;  %v8941_v6 = vcombine.high %v2101_v37, %v2105_v3  ;;  %2898 = vmatpush1.bf16.msra.mxu1 %v8938_v62  ;;  %11600 = vst [vmem:[#allocation32_spill] sm:$0xff] %v8947_v44  ;;  %v7922_v37 = vld [vmem:[#allocation2 + $0x5b0] ss:$8 sps:$4 sm:$0xff]   ;;  %v2125_v3 = vld [vmem:[#allocation5 + $0x388] sm:$0xff] }
 0x1bb   :  { %1903 = vmatprep.subr.bf16.mxu0 %v7915_v19  ;;  %v7921_v19 = vld [vmem:[#allocation2 + $0x5a4] ss:$8 sps:$4 sm:$0xff]  }
 0x1bc   :  { %11598 = vst [vmem:[#allocation30_spill] sm:$0xff] %v8941_v6  ;;  %2899 = vmatprep.subr.bf16.mxu1 %v8941_v6  ;;  %v2129_v6 = vld [vmem:[#allocation5 + $0x3a8] sm:$0xff] }
 0x1bd   :  { %v7927_v62 = vld [vmem:[#allocation2 + $0x5c4] ss:$8 sps:$4 sm:$0xff]  }
 0x1be   :  { %1904 = vmatpush1.bf16.msra.mxu0 %v7913_v39  ;;  %v2117_v39 = vld [vmem:[#allocation5 + $0x348] sm:$0xff]  ;;  %2900 = vmatpush1.bf16.msra.mxu1 %v8944_v18  ;;  %v7930_v18 = vld [vmem:[#allocation2 + $0x5d4] ss:$8 sps:$4 sm:$0xff]  }
 0x1bf   :  { %1905 = vmatprep.subr.bf16.mxu0 %v7918_v57  ;;  %2901 = vmatprep.subr.bf16.mxu1 %v8947_v44  ;;  %v8953_v57 = vcombine.high %v2117_v39, %v2121_v38  ;;  %v2133_v25 = vld [vmem:[#allocation5 + $0x3c8] sm:$0xff] }
 0x1c0   :  { %v2137_v44 = vld [vmem:[#allocation5 + $0x3e8] sm:$0xff] }
 0x1c1   :  { %11602 = vst [vmem:[#allocation34_spill] sm:$0xff] %v8953_v57 }
 0x1c2   :  { %1906 = vmatpush1.bf16.msra.mxu0 %v7916_v56  ;;  %2902 = vmatpush1.bf16.msra.mxu1 %v8950_v55  ;;  %v8956_v56 = vcombine.low %v2117_v39, %v2121_v38  ;;  %v7928_v38 = vld [vmem:[#allocation2 + $0x5d0] ss:$8 sps:$4 sm:$0xff]   ;;  %v419_v39 = vcombine.high %v8746_v20, %v8746_v20  ;;  %v7933_v55 = vld [vmem:[#allocation2 + $0x5e4] ss:$8 sps:$4 sm:$0xff]   ;;  %v7936_v20 = vld [vmem:[#allocation2 + $0x5f4] ss:$8 sps:$4 sm:$0xff]  }
 0x1c3   :  { %1907 = vmatprep.subr.bf16.mxu0 %v7921_v19  ;;  %2903 = vmatprep.subr.bf16.mxu1 %v8953_v57  ;;  %v8959_v19 = vcombine.high %v2125_v3, %v2129_v6  ;;  %v2014_v57 = vld [vmem:[#allocation5 + $0x10] sm:$0xff] }
 0x1c4   :  { %11603 = vst [vmem:[#allocation35_spill] sm:$0xff] %v8956_v56 }
 0x1c5   :  { %11604 = vst [vmem:[#allocation36_spill] sm:$0xff] %v8959_v19 }
 0x1c6   :  { %1908 = vmatpush1.bf16.msra.mxu0 %v7919_v0  ;;  %2904 = vmatpush1.bf16.msra.mxu1 %v8956_v56  ;;  %v8962_v0 = vcombine.low %v2125_v3, %v2129_v6  ;;  %v7931_v3 = vld [vmem:[#allocation2 + $0x5e0] ss:$8 sps:$4 sm:$0xff]   ;;  %v2026_v56 = vld [vmem:[#allocation5 + $0x70] sm:$0xff] }
 0x1c7   :  { %1909 = vmatprep.subr.bf16.mxu0 %v7924_v52  ;;  %2905 = vmatprep.subr.bf16.mxu1 %v8959_v19  ;;  %v8965_v52 = vcombine.high %v2133_v25, %v2137_v44  ;;  %v2022_v19 = vld [vmem:[#allocation5 + $0x50] sm:$0xff] }
 0x1c8   :  { %11605 = vst [vmem:[#allocation37_spill] sm:$0xff] %v8962_v0 }
 0x1c9   :  { %11606 = vst [vmem:[#allocation38_spill] sm:$0xff] %v8965_v52 }
 0x1ca   :  { %1910 = vmatpush1.bf16.msra.mxu0 %v7922_v37  ;;  %v2018_v37 = vld [vmem:[#allocation5 + $0x30] sm:$0xff]  ;;  %2906 = vmatpush1.bf16.msra.mxu1 %v8962_v0  ;;  %v7939_v0 = vld [vmem:[#allocation2 + $0x604] ss:$8 sps:$4 sm:$0xff]  }
 0x1cb   :  { %1911 = vmatprep.subr.bf16.mxu0 %v7927_v62  ;;  %v8970_v62 = vcombine.low %v2133_v25, %v2137_v44  ;;  %2907 = vmatprep.subr.bf16.mxu1 %v8965_v52  ;;  %v8973_v6 = vcombine.high %v2014_v57, %v2018_v37  ;;  %v8982_v44 = vcombine.high %v2022_v19, %v2026_v56  ;;  %v7934_v25 = vld [vmem:[#allocation2 + $0x5f0] ss:$8 sps:$4 sm:$0xff]  }
 0x1cc   :  { %v2030_v52 = vld [vmem:[#allocation5 + $0x90] sm:$0xff] }
 0x1cd   :  { %11607 = vst [vmem:[#allocation39_spill] sm:$0xff] %v8970_v62  ;;  %11608 = vst [vmem:[#allocation40_spill] sm:$0xff] %v8973_v6 }
 0x1ce   :  { %1912 = vmatpush1.bf16.msra.mxu0 %v7925_v11  ;;  %v8976_v11 = vrot.slane %v419_v39, %v8709_v16  ;;  %2908 = vmatpush1.bf16.msra.mxu1 %v8970_v62  ;;  %11609 = vst [vmem:[#allocation41_spill] sm:$0xff] %v8982_v44  ;;  %v2034_v39 = vld [vmem:[#allocation5 + $0xb0] sm:$0xff] }
 0x1cf   :  { %1913 = vmatprep.subr.bf16.mxu0 %v7930_v18  ;;  %v8979_v18 = vcombine.low %v2014_v57, %v2018_v37  ;;  %2920 = vmatprep.subr.bf16.mxu1 %v8973_v6  ;;  %v464_v57 = vcombine.high %v8879_v46, %v8879_v46  ;;  %v8994_v37 = vcombine.high %v2030_v52, %v2034_v39  ;;  %v2038_v6 = vld [vmem:[#allocation5 + $0xd0] sm:$0xff] }
 0x1d0   :  { %v2042_v62 = vld [vmem:[#allocation5 + $0xf0] sm:$0xff] }
 0x1d1   :  { %2910 = vmatmul.mubr.bf16.vlgmr.msra.gmra.mrb[4].mxu1 %v8864_v29  ;;  %11610 = vst [vmem:[#allocation42_spill] sm:$0xff] %v8994_v37  ;;  %v9001_v46 = vcombine.high %v2038_v6, %v2042_v62 }
 0x1d2   :  { %1914 = vmatpush1.bf16.msra.mxu0 %v7928_v38  ;;  %v435_v38 = vcombine.high %v8976_v11, %v8976_v11  ;;  %2921 = vmatpush1.bf16.msra.mxu1 %v8979_v18 }
 0x1d3   :  { %1915 = vmatprep.subr.bf16.mxu0 %v7933_v55  ;;  %v8988_v55 = vcombine.low %v2022_v19, %v2026_v56  ;;  %2952 = vmatprep.mubr.bf16.mxu1 %v8858_v21  ;;  %v8998_v56 = vcombine.low %v2030_v52, %v2034_v39  ;;  %11612 = vst [vmem:[#allocation44_spill] sm:$0xff] %v9001_v46  ;;  %v7940_v19 = vld [vmem:[#allocation2 + $0x610] ss:$8 sps:$4 sm:$0xff]   ;;  %v7943_v39 = vld [vmem:[#allocation2 + $0x620] ss:$8 sps:$4 sm:$0xff]  }
 0x1d4   :  { %2922 = vmatprep.subr.bf16.mxu1 %v8982_v44  ;;  %v2050_v44 = vld [vmem:[#allocation5 + $0x130] sm:$0xff] }
 0x1d5   :  { %11611 = vst [vmem:[#allocation43_spill] sm:$0xff] %v8998_v56 }
 0x1d6   :  { %1916 = vmatpush1.bf16.msra.mxu0 %v7931_v3  ;;  %v7937_v3 = vld [vmem:[#allocation2 + $0x600] ss:$8 sps:$4 sm:$0xff]   ;;  %2923 = vmatpush1.bf16.msra.mxu1 %v8988_v55 }
 0x1d7   :  { %1917 = vmatprep.subr.bf16.mxu0 %v7936_v20  ;;  %v463_v20 = vrot.slane %v435_v38, %v8709_v16  ;;  %2924 = vmatprep.subr.bf16.mxu1 %v8994_v37  ;;  %v7945_v38 = vld [vmem:[#allocation2 + $0x624] ss:$8 sps:$4 sm:$0xff]   ;;  %v2058_v37 = vld [vmem:[#allocation5 + $0x170] sm:$0xff] }
 0x1da   :  { %1918 = vmatpush1.bf16.msra.mxu0 %v7934_v25  ;;  %v2046_v25 = vld [vmem:[#allocation5 + $0x110] sm:$0xff]  ;;  %2925 = vmatpush1.bf16.msra.mxu1 %v8998_v56  ;;  %v7951_v56 = vld [vmem:[#allocation2 + $0x644] ss:$8 sps:$4 sm:$0xff]  }
 0x1db   :  { %1928 = vmatprep.subr.bf16.mxu0 %v7939_v0  ;;  %v9004_v0 = vcombine.low %v2038_v6, %v2042_v62  ;;  %2926 = vmatprep.subr.bf16.mxu1 %v9001_v46  ;;  %v9007_v52 = vcombine.high %v2046_v25, %v2050_v44  ;;  %v7946_v62 = vld [vmem:[#allocation2 + $0x630] ss:$8 sps:$4 sm:$0xff]  }
 0x1dc   :  { %v2062_v6 = vld [vmem:[#allocation5 + $0x190] sm:$0xff] }
 0x1dd   :  { %1920 = vmatmul.mubr.bf16.vlgmr.msra.gmra.mrb[0].mxu0 %v464_v57  ;;  %11613 = vst [vmem:[#allocation45_spill] sm:$0xff] %v9004_v0  ;;  %11614 = vst [vmem:[#allocation46_spill] sm:$0xff] %v9007_v52  ;;  %v2054_v57 = vld [vmem:[#allocation5 + $0x150] sm:$0xff] }
 0x1de   :  { %1929 = vmatpush1.bf16.msra.mxu0 %v7937_v3  ;;  %1960 = vmatprep.mubr.bf16.mxu0 %v463_v20  ;;  %v7948_v3 = vld [vmem:[#allocation2 + $0x634] ss:$8 sps:$4 sm:$0xff]   ;;  %v9010_v20 = vcombine.low %v2046_v25, %v2050_v44  ;;  %v7949_v44 = vld [vmem:[#allocation2 + $0x640] ss:$8 sps:$4 sm:$0xff]  }
 0x1df   :  { %1930 = vmatprep.subr.bf16.mxu0 %v7942_v36  ;;  %2927 = vmatpush1.bf16.msra.mxu1 %v9004_v0  ;;  %v9013_v36 = vcombine.high %v2054_v57, %v2058_v37  ;;  %v2066_v46 = vld [vmem:[#allocation5 + $0x1b0] sm:$0xff] }
 0x1e0   :  { %11615 = vst [vmem:[#allocation47_spill] sm:$0xff] %v9010_v20  ;;  %2928 = vmatprep.subr.bf16.mxu1 %v9007_v52  ;;  %v2070_v25 = vld [vmem:[#allocation5 + $0x1d0] sm:$0xff] }
 0x1e1   :  { %11616 = vst [vmem:[#allocation48_spill] sm:$0xff] %v9013_v36  ;;  %v2074_v52 = vld [vmem:[#allocation5 + $0x1f0] sm:$0xff] }
 0x1e2   :  { %1931 = vmatpush1.bf16.msra.mxu0 %v7940_v19  ;;  %v9016_v19 = vcombine.low %v2054_v57, %v2058_v37  ;;  %v7954_v0 = vld [vmem:[#allocation2 + $0x654] ss:$8 sps:$4 sm:$0xff]   ;;  %v7952_v37 = vld [vmem:[#allocation2 + $0x650] ss:$8 sps:$4 sm:$0xff]  }
 0x1e3   :  { %1932 = vmatprep.subr.bf16.mxu0 %v7945_v38  ;;  %2929 = vmatpush1.bf16.msra.mxu1 %v9010_v20  ;;  %v9019_v38 = vcombine.high %v2062_v6, %v2066_v46  ;;  %v2078_v57 = vld [vmem:[#allocation5 + $0x210] sm:$0xff]  ;;  %v7957_v20 = vld [vmem:[#allocation2 + $0x664] ss:$8 sps:$4 sm:$0xff]  }
 0x1e4   :  { %11617 = vst [vmem:[#allocation49_spill] sm:$0xff] %v9016_v19  ;;  %2930 = vmatprep.subr.bf16.mxu1 %v9013_v36  ;;  %v2082_v36 = vld [vmem:[#allocation5 + $0x230] sm:$0xff] }
 0x1e5   :  { %11618 = vst [vmem:[#allocation50_spill] sm:$0xff] %v9019_v38 }
 0x1e6   :  { %1933 = vmatpush1.bf16.msra.mxu0 %v7943_v39  ;;  %v9022_v39 = vcombine.low %v2062_v6, %v2066_v46  ;;  %v7955_v46 = vld [vmem:[#allocation2 + $0x660] ss:$8 sps:$4 sm:$0xff]   ;;  %v2086_v6 = vld [vmem:[#allocation5 + $0x250] sm:$0xff] }
 0x1e7   :  { %1934 = vmatprep.subr.bf16.mxu0 %v7948_v3  ;;  %2931 = vmatpush1.bf16.msra.mxu1 %v9016_v19  ;;  %v9025_v3 = vcombine.high %v2070_v25, %v2074_v52  ;;  %v7960_v19 = vld [vmem:[#allocation2 + $0x674] ss:$8 sps:$4 sm:$0xff]  }
 0x1e8   :  { %11619 = vst [vmem:[#allocation51_spill] sm:$0xff] %v9022_v39  ;;  %2932 = vmatprep.subr.bf16.mxu1 %v9019_v38  ;;  %v2090_v38 = vld [vmem:[#allocation5 + $0x270] sm:$0xff] }
 0x1e9   :  { %11620 = vst [vmem:[#allocation52_spill] sm:$0xff] %v9025_v3 }
 0x1ea   :  { %1935 = vmatpush1.bf16.msra.mxu0 %v7946_v62  ;;  %v9028_v62 = vcombine.low %v2070_v25, %v2074_v52  ;;  %v7958_v52 = vld [vmem:[#allocation2 + $0x670] ss:$8 sps:$4 sm:$0xff]  }
 0x1eb   :  { %1936 = vmatprep.subr.bf16.mxu0 %v7951_v56  ;;  %2933 = vmatpush1.bf16.msra.mxu1 %v9022_v39  ;;  %v9031_v56 = vcombine.high %v2078_v57, %v2082_v36  ;;  %v2094_v25 = vld [vmem:[#allocation5 + $0x290] sm:$0xff]  ;;  %v7963_v39 = vld [vmem:[#allocation2 + $0x684] ss:$8 sps:$4 sm:$0xff]  }
 0x1ec   :  { %11621 = vst [vmem:[#allocation53_spill] sm:$0xff] %v9028_v62  ;;  %2934 = vmatprep.subr.bf16.mxu1 %v9025_v3  ;;  %v2098_v3 = vld [vmem:[#allocation5 + $0x2b0] sm:$0xff] }
 0x1ed   :  { %11622 = vst [vmem:[#allocation54_spill] sm:$0xff] %v9031_v56 }
 0x1ee   :  { %1937 = vmatpush1.bf16.msra.mxu0 %v7949_v44  ;;  %v9034_v44 = vcombine.low %v2078_v57, %v2082_v36  ;;  %v7961_v36 = vld [vmem:[#allocation2 + $0x680] ss:$8 sps:$4 sm:$0xff]   ;;  %v2102_v57 = vld [vmem:[#allocation5 + $0x2d0] sm:$0xff] }
 0x1ef   :  { %1938 = vmatprep.subr.bf16.mxu0 %v7954_v0  ;;  %2935 = vmatpush1.bf16.msra.mxu1 %v9028_v62  ;;  %v9037_v0 = vcombine.high %v2086_v6, %v2090_v38  ;;  %v7966_v62 = vld [vmem:[#allocation2 + $0x694] ss:$8 sps:$4 sm:$0xff]  }
 0x1f0   :  { %11623 = vst [vmem:[#allocation55_spill] sm:$0xff] %v9034_v44  ;;  %2936 = vmatprep.subr.bf16.mxu1 %v9031_v56  ;;  %v2106_v56 = vld [vmem:[#allocation5 + $0x2f0] sm:$0xff] }
 0x1f1   :  { %11624 = vst [vmem:[#allocation56_spill] sm:$0xff] %v9037_v0 }
 0x1f2   :  { %1939 = vmatpush1.bf16.msra.mxu0 %v7952_v37  ;;  %v9040_v37 = vcombine.low %v2086_v6, %v2090_v38  ;;  %v7964_v38 = vld [vmem:[#allocation2 + $0x690] ss:$8 sps:$4 sm:$0xff]  }
 0x1f3   :  { %1940 = vmatprep.subr.bf16.mxu0 %v7957_v20  ;;  %2937 = vmatpush1.bf16.msra.mxu1 %v9034_v44  ;;  %v9043_v20 = vcombine.high %v2094_v25, %v2098_v3  ;;  %v2110_v6 = vld [vmem:[#allocation5 + $0x310] sm:$0xff]  ;;  %v7969_v44 = vld [vmem:[#allocation2 + $0x6a4] ss:$8 sps:$4 sm:$0xff]  }
 0x1f4   :  { %11625 = vst [vmem:[#allocation57_spill] sm:$0xff] %v9040_v37  ;;  %2938 = vmatprep.subr.bf16.mxu1 %v9037_v0  ;;  %v2114_v0 = vld [vmem:[#allocation5 + $0x330] sm:$0xff] }
 0x1f5   :  { %11626 = vst [vmem:[#allocation58_spill] sm:$0xff] %v9043_v20 }
 0x1f6   :  { %1941 = vmatpush1.bf16.msra.mxu0 %v7955_v46  ;;  %v9046_v46 = vcombine.low %v2094_v25, %v2098_v3  ;;  %v7967_v3 = vld [vmem:[#allocation2 + $0x6a0] ss:$8 sps:$4 sm:$0xff]   ;;  %v2118_v25 = vld [vmem:[#allocation5 + $0x350] sm:$0xff] }
 0x1f7   :  { %1942 = vmatprep.subr.bf16.mxu0 %v7960_v19  ;;  %2939 = vmatpush1.bf16.msra.mxu1 %v9040_v37  ;;  %v9049_v19 = vcombine.high %v2102_v57, %v2106_v56  ;;  %v7972_v37 = vld [vmem:[#allocation2 + $0x6b4] ss:$8 sps:$4 sm:$0xff]  }
 0x1f8   :  { %11627 = vst [vmem:[#allocation59_spill] sm:$0xff] %v9046_v46  ;;  %2940 = vmatprep.subr.bf16.mxu1 %v9043_v20  ;;  %v2122_v20 = vld [vmem:[#allocation5 + $0x370] sm:$0xff] }
 0x1f9   :  { %11628 = vst [vmem:[#allocation60_spill] sm:$0xff] %v9049_v19 }
 0x1fa   :  { %1943 = vmatpush1.bf16.msra.mxu0 %v7958_v52  ;;  %v9052_v52 = vcombine.low %v2102_v57, %v2106_v56  ;;  %v7970_v56 = vld [vmem:[#allocation2 + $0x6b0] ss:$8 sps:$4 sm:$0xff]  }
 0x1fb   :  { %1944 = vmatprep.subr.bf16.mxu0 %v7963_v39  ;;  %2941 = vmatpush1.bf16.msra.mxu1 %v9046_v46  ;;  %v9055_v39 = vcombine.high %v2110_v6, %v2114_v0  ;;  %v2126_v57 = vld [vmem:[#allocation5 + $0x390] sm:$0xff]  ;;  %v7975_v46 = vld [vmem:[#allocation2 + $0x6c4] ss:$8 sps:$4 sm:$0xff]  }
 0x1fc   :  { %11629 = vst [vmem:[#allocation61_spill] sm:$0xff] %v9052_v52  ;;  %2942 = vmatprep.subr.bf16.mxu1 %v9049_v19  ;;  %v2130_v19 = vld [vmem:[#allocation5 + $0x3b0] sm:$0xff] }
 0x1fd   :  { %11630 = vst [vmem:[#allocation62_spill] sm:$0xff] %v9055_v39 }
 0x1fe   :  { %1945 = vmatpush1.bf16.msra.mxu0 %v7961_v36  ;;  %v9058_v36 = vcombine.low %v2110_v6, %v2114_v0  ;;  %v7973_v0 = vld [vmem:[#allocation2 + $0x6c0] ss:$8 sps:$4 sm:$0xff]   ;;  %v2134_v6 = vld [vmem:[#allocation5 + $0x3d0] sm:$0xff] }
 0x1ff   :  { %1946 = vmatprep.subr.bf16.mxu0 %v7966_v62  ;;  %2943 = vmatpush1.bf16.msra.mxu1 %v9052_v52  ;;  %v9061_v62 = vcombine.high %v2118_v25, %v2122_v20  ;;  %v7978_v52 = vld [vmem:[#allocation2 + $0x6d4] ss:$8 sps:$4 sm:$0xff]  }
 0x200   :  { %11631 = vst [vmem:[#allocation63_spill] sm:$0xff] %v9058_v36  ;;  %2944 = vmatprep.subr.bf16.mxu1 %v9055_v39  ;;  %v2138_v39 = vld [vmem:[#allocation5 + $0x3f0] sm:$0xff] }
 0x201   :  { %11632 = vst [vmem:[#allocation64_spill] sm:$0xff] %v9061_v62 }
 0x202   :  { %1947 = vmatpush1.bf16.msra.mxu0 %v7964_v38  ;;  %v9064_v38 = vcombine.low %v2118_v25, %v2122_v20  ;;  %v7976_v20 = vld [vmem:[#allocation2 + $0x6d0] ss:$8 sps:$4 sm:$0xff]  }
 0x203   :  { %1948 = vmatprep.subr.bf16.mxu0 %v7969_v44  ;;  %2945 = vmatpush1.bf16.msra.mxu1 %v9058_v36  ;;  %v9067_v44 = vcombine.high %v2126_v57, %v2130_v19  ;;  %v2015_v25 = vld [vmem:[#allocation5 + $0x18] sm:$0xff]  ;;  %v7981_v36 = vld [vmem:[#allocation2 + $0x6e4] ss:$8 sps:$4 sm:$0xff]  }
 0x204   :  { %11633 = vst [vmem:[#allocation65_spill] sm:$0xff] %v9064_v38  ;;  %2946 = vmatprep.subr.bf16.mxu1 %v9061_v62  ;;  %v2019_v62 = vld [vmem:[#allocation5 + $0x38] sm:$0xff] }
 0x205   :  { %11634 = vst [vmem:[#allocation66_spill] sm:$0xff] %v9067_v44 }
 0x206   :  { %1949 = vmatpush1.bf16.msra.mxu0 %v7967_v3  ;;  %v9070_v3 = vcombine.low %v2126_v57, %v2130_v19  ;;  %v7979_v19 = vld [vmem:[#allocation2 + $0x6e0] ss:$8 sps:$4 sm:$0xff]   ;;  %v2023_v57 = vld [vmem:[#allocation5 + $0x58] sm:$0xff] }
 0x207   :  { %1950 = vmatprep.subr.bf16.mxu0 %v7972_v37  ;;  %2947 = vmatpush1.bf16.msra.mxu1 %v9064_v38  ;;  %v9073_v37 = vcombine.high %v2134_v6, %v2138_v39  ;;  %v7987_v38 = vld [vmem:[#allocation2 + $0x6f4] ss:$8 sps:$4 sm:$0xff]  }
 0x208   :  { %11635 = vst [vmem:[#allocation67_spill] sm:$0xff] %v9070_v3  ;;  %2948 = vmatprep.subr.bf16.mxu1 %v9067_v44  ;;  %v2027_v44 = vld [vmem:[#allocation5 + $0x78] sm:$0xff] }
 0x209   :  { %11636 = vst [vmem:[#allocation68_spill] sm:$0xff] %v9073_v37 }
 0x20a   :  { %1951 = vmatpush1.bf16.msra.mxu0 %v7970_v56  ;;  %v9076_v56 = vcombine.low %v2134_v6, %v2138_v39  ;;  %v7985_v39 = vld [vmem:[#allocation2 + $0x6f0] ss:$8 sps:$4 sm:$0xff]  }
 0x20b   :  { %1952 = vmatprep.subr.bf16.mxu0 %v7975_v46  ;;  %2949 = vmatpush1.bf16.msra.mxu1 %v9070_v3  ;;  %v9079_v46 = vcombine.high %v2015_v25, %v2019_v62  ;;  %v2031_v6 = vld [vmem:[#allocation5 + $0x98] sm:$0xff]  ;;  %v7991_v3 = vld [vmem:[#allocation2 + $0x704] ss:$8 sps:$4 sm:$0xff]  }
 0x20c   :  { %2950 = vmatprep.subr.bf16.mxu1 %v9073_v37  ;;  %v2035_v37 = vld [vmem:[#allocation5 + $0xb8] sm:$0xff] }
 0x20d   :  { %11637 = vst [vmem:[#allocation69_spill] sm:$0xff] %v9079_v46 }
 0x20e   :  { %1953 = vmatpush1.bf16.msra.mxu0 %v7973_v0  ;;  %v9082_v0 = vcombine.low %v2015_v25, %v2019_v62  ;;  %v9094_v62 = vrot.slane %v8976_v11, %v8709_v16  ;;  %v7989_v25 = vld [vmem:[#allocation2 + $0x700] ss:$8 sps:$4 sm:$0xff]   ;;  %v11279_v11 = vmov 0  }
 0x20f   :  { %1954 = vmatprep.subr.bf16.mxu0 %v7978_v52  ;;  %2951 = vmatpush1.bf16.msra.mxu1 %v9076_v56  ;;  %v9085_v52 = vcombine.high %v2023_v57, %v2027_v44 }
 0x210   :  { %2963 = vmatprep.subr.bf16.mxu1 %v9079_v46  ;;  %v7994_v46 = vld [vmem:[#allocation2 + $0x714] ss:$8 sps:$4 sm:$0xff]  }
 0x211   :  { %11638 = vst [vmem:[#allocation70_spill] sm:$0xff] %v9085_v52 }
 0x212   :  { %1955 = vmatpush1.bf16.msra.mxu0 %v7976_v20  ;;  %2953 = vmatmul.mubr.bf16.vlgmr.msra.gmra.mrb[8].mxu1 %v8864_v29  ;;  %v9097_v20 = vcombine.high %v2031_v6, %v2035_v37 }
 0x213   :  { %1956 = vmatprep.subr.bf16.mxu0 %v7981_v36  ;;  %2964 = vmatpush1.bf16.msra.mxu1 %v9082_v0  ;;  %v9089_v36 = vcombine.low %v2023_v57, %v2027_v44  ;;  %v9100_v44 = vcombine.low %v2031_v6, %v2035_v37  ;;  %v2047_v57 = vld [vmem:[#allocation5 + $0x118] sm:$0xff]  ;;  %v7995_v6 = vld [vmem:[#allocation2 + $0x720] ss:$8 sps:$4 sm:$0xff]  }
 0x214   :  { %2995 = vmatprep.mubr.bf16.mxu1 %v8858_v21  ;;  %2965 = vmatprep.subr.bf16.mxu1 %v9085_v52  ;;  %11640 = vst [vmem:[#allocation72_spill] sm:$0xff] %v9097_v20  ;;  %v7992_v21 = vld [vmem:[#allocation2 + $0x710] ss:$8 sps:$4 sm:$0xff]   ;;  %v8000_v52 = vld [vmem:[#allocation2 + $0x734] ss:$8 sps:$4 sm:$0xff]  }
 0x215   :  { %11639 = vst [vmem:[#allocation71_spill] sm:$0xff] %v9089_v36  ;;  %11641 = vst [vmem:[#allocation73_spill] sm:$0xff] %v9100_v44 }
 0x216   :  { %1957 = vmatpush1.bf16.msra.mxu0 %v7979_v19  ;;  %v2043_v19 = vld [vmem:[#allocation5 + $0xf8] sm:$0xff] }
 0x217   :  { %1958 = vmatprep.subr.bf16.mxu0 %v7987_v38  ;;  %v2039_v38 = vld [vmem:[#allocation5 + $0xd8] sm:$0xff]  ;;  %2966 = vmatpush1.bf16.msra.mxu1 %v9089_v36 }
 0x218   :  { %2967 = vmatprep.subr.bf16.mxu1 %v9097_v20  ;;  %v9104_v16 = vcombine.high %v2039_v38, %v2043_v19  ;;  %v9108_v36 = vcombine.low %v2039_v38, %v2043_v19  ;;  %v2055_v20 = vld [vmem:[#allocation5 + $0x158] sm:$0xff] }
 0x219   :  { %v7998_v38 = vld [vmem:[#allocation2 + $0x730] ss:$8 sps:$4 sm:$0xff]  }
 0x21a   :  { %1959 = vmatpush1.bf16.msra.mxu0 %v7985_v39  ;;  %11642 = vst [vmem:[#allocation74_spill] sm:$0xff] %v9104_v16  ;;  %v2051_v39 = vld [vmem:[#allocation5 + $0x138] sm:$0xff]  ;;  %11643 = vst [vmem:[#allocation75_spill] sm:$0xff] %v9108_v36 }
 0x21b   :  { %1969 = vmatprep.subr.bf16.mxu0 %v7991_v3  ;;  %v7997_v3 = vld [vmem:[#allocation2 + $0x724] ss:$8 sps:$4 sm:$0xff]   ;;  %2968 = vmatpush1.bf16.msra.mxu1 %v9100_v44  ;;  %v9111_v37 = vcombine.high %v2047_v57, %v2051_v39  ;;  %v2063_v19 = vld [vmem:[#allocation5 + $0x198] sm:$0xff] }
 0x21c   :  { %2969 = vmatprep.subr.bf16.mxu1 %v9104_v16  ;;  %v2067_v16 = vld [vmem:[#allocation5 + $0x1b8] sm:$0xff]  ;;  %v8003_v44 = vld [vmem:[#allocation2 + $0x744] ss:$8 sps:$4 sm:$0xff]  }
 0x21d   :  { %1961 = vmatmul.mubr.bf16.vlgmr.msra.gmra.mrb[0].mxu0 %v9094_v62  ;;  %11644 = vst [vmem:[#allocation76_spill] sm:$0xff] %v9111_v37 }
 0x21e   :  { %1970 = vmatpush1.bf16.msra.mxu0 %v7989_v25  ;;  %2001 = vmatprep.mubr.bf16.mxu0 %v11279_v11  ;;  %v2059_v25 = vld [vmem:[#allocation5 + $0x178] sm:$0xff]  ;;  %v9114_v11 = vcombine.low %v2047_v57, %v2051_v39  ;;  %v8001_v57 = vld [vmem:[#allocation2 + $0x740] ss:$8 sps:$4 sm:$0xff]  }
 0x21f   :  { %1971 = vmatprep.subr.bf16.mxu0 %v7994_v46  ;;  %2970 = vmatpush1.bf16.msra.mxu1 %v9108_v36  ;;  %v9117_v46 = vcombine.high %v2055_v20, %v2059_v25  ;;  %v2071_v39 = vld [vmem:[#allocation5 + $0x1d8] sm:$0xff] }
 0x220   :  { %11645 = vst [vmem:[#allocation77_spill] sm:$0xff] %v9114_v11  ;;  %2971 = vmatprep.subr.bf16.mxu1 %v9111_v37  ;;  %v2075_v37 = vld [vmem:[#allocation5 + $0x1f8] sm:$0xff] }
 0x221   :  { %11646 = vst [vmem:[#allocation78_spill] sm:$0xff] %v9117_v46  ;;  %v8006_v36 = vld [vmem:[#allocation2 + $0x754] ss:$8 sps:$4 sm:$0xff]  }
 0x222   :  { %1972 = vmatpush1.bf16.msra.mxu0 %v7992_v21  ;;  %v9120_v21 = vcombine.low %v2055_v20, %v2059_v25  ;;  %v8004_v20 = vld [vmem:[#allocation2 + $0x750] ss:$8 sps:$4 sm:$0xff]  }
 0x223   :  { %1973 = vmatprep.subr.bf16.mxu0 %v7997_v3  ;;  %2972 = vmatpush1.bf16.msra.mxu1 %v9114_v11  ;;  %v9123_v3 = vcombine.high %v2063_v19, %v2067_v16  ;;  %v2079_v25 = vld [vmem:[#allocation5 + $0x218] sm:$0xff]  ;;  %v8009_v11 = vld [vmem:[#allocation2 + $0x764] ss:$8 sps:$4 sm:$0xff]  }
 0x224   :  { %11647 = vst [vmem:[#allocation79_spill] sm:$0xff] %v9120_v21  ;;  %2973 = vmatprep.subr.bf16.mxu1 %v9117_v46  ;;  %v2083_v46 = vld [vmem:[#allocation5 + $0x238] sm:$0xff] }
 0x225   :  { %11648 = vst [vmem:[#allocation80_spill] sm:$0xff] %v9123_v3 }
 0x226   :  { %1974 = vmatpush1.bf16.msra.mxu0 %v7995_v6  ;;  %v9126_v6 = vcombine.low %v2063_v19, %v2067_v16  ;;  %v8007_v16 = vld [vmem:[#allocation2 + $0x760] ss:$8 sps:$4 sm:$0xff]   ;;  %v2087_v19 = vld [vmem:[#allocation5 + $0x258] sm:$0xff] }
 0x227   :  { %1975 = vmatprep.subr.bf16.mxu0 %v8000_v52  ;;  %2974 = vmatpush1.bf16.msra.mxu1 %v9120_v21  ;;  %v9129_v52 = vcombine.high %v2071_v39, %v2075_v37  ;;  %v8012_v21 = vld [vmem:[#allocation2 + $0x774] ss:$8 sps:$4 sm:$0xff]  }
 0x228   :  { %2975 = vmatprep.subr.bf16.mxu1 %v9123_v3  ;;  %v2091_v3 = vld [vmem:[#allocation5 + $0x278] sm:$0xff] }
 0x229   :  { %11649 = vst [vmem:[#allocation81_spill] sm:$0xff] %v9129_v52 }
 0x22a   :  { %1976 = vmatpush1.bf16.msra.mxu0 %v7998_v38  ;;  %v9132_v38 = vcombine.low %v2071_v39, %v2075_v37  ;;  %v8010_v37 = vld [vmem:[#allocation2 + $0x770] ss:$8 sps:$4 sm:$0xff]  }
 0x22b   :  { %1977 = vmatprep.subr.bf16.mxu0 %v8003_v44  ;;  %2976 = vmatpush1.bf16.msra.mxu1 %v9126_v6  ;;  %v9135_v44 = vcombine.high %v2079_v25, %v2083_v46  ;;  %v2095_v39 = vld [vmem:[#allocation5 + $0x298] sm:$0xff] }
 0x22c   :  { %2977 = vmatprep.subr.bf16.mxu1 %v9129_v52  ;;  %v2099_v52 = vld [vmem:[#allocation5 + $0x2b8] sm:$0xff] }
 0x22d   :  { %11650 = vst [vmem:[#allocation82_spill] sm:$0xff] %v9135_v44 }
 0x22e   :  { %1978 = vmatpush1.bf16.msra.mxu0 %v8001_v57  ;;  %v9138_v57 = vcombine.low %v2079_v25, %v2083_v46  ;;  %v9149_v46 = vcombine.high %v2095_v39, %v2099_v52  ;;  %v2103_v25 = vld [vmem:[#allocation5 + $0x2d8] sm:$0xff] }
 0x22f   :  { %1979 = vmatprep.subr.bf16.mxu0 %v8006_v36  ;;  %2978 = vmatpush1.bf16.msra.mxu1 %v9132_v38  ;;  %v9141_v36 = vcombine.high %v2087_v19, %v2091_v3 }
 0x230   :  { %11651 = vst [vmem:[#allocation83_spill] sm:$0xff] %v9138_v57  ;;  %2979 = vmatprep.subr.bf16.mxu1 %v9135_v44  ;;  %11653 = vst [vmem:[#allocation85_spill] sm:$0xff] %v9149_v46  ;;  %v2107_v44 = vld [vmem:[#allocation5 + $0x2f8] sm:$0xff] }
 0x231   :  { %11652 = vst [vmem:[#allocation84_spill] sm:$0xff] %v9141_v36 }
 0x232   :  { %1980 = vmatpush1.bf16.msra.mxu0 %v8004_v20  ;;  %v9144_v20 = vcombine.low %v2087_v19, %v2091_v3  ;;  %v2111_v3 = vld [vmem:[#allocation5 + $0x318] sm:$0xff] }
 0x233   :  { %1981 = vmatprep.subr.bf16.mxu0 %v8009_v11  ;;  %2980 = vmatpush1.bf16.msra.mxu1 %v9138_v57  ;;  %v465_v11 = vcombine.high %v9094_v62, %v9094_v62  ;;  %v2115_v19 = vld [vmem:[#allocation5 + $0x338] sm:$0xff]  ;;  %v9158_v62 = vcombine.low %v2103_v25, %v2107_v44 }
 0x234   :  { %2981 = vmatprep.subr.bf16.mxu1 %v9141_v36  ;;  %v2119_v36 = vld [vmem:[#allocation5 + $0x358] sm:$0xff] }
 0x235   :  { %v2123_v57 = vld [vmem:[#allocation5 + $0x378] sm:$0xff] }
 0x236   :  { %1982 = vmatpush1.bf16.msra.mxu0 %v8007_v16  ;;  %v9152_v16 = vcombine.low %v2095_v39, %v2099_v52  ;;  %v9164_v52 = vcombine.low %v2111_v3, %v2115_v19  ;;  %v9167_v39 = vcombine.high %v2119_v36, %v2123_v57 }
 0x237   :  { %1983 = vmatprep.subr.bf16.mxu0 %v8012_v21  ;;  %2982 = vmatpush1.bf16.msra.mxu1 %v9144_v20  ;;  %v9155_v21 = vcombine.high %v2103_v25, %v2107_v44  ;;  %v9170_v44 = vcombine.low %v2119_v36, %v2123_v57  ;;  %v11688_v57 = vld [vmem:[#allocation28_spill] sm:$0xff]  ;;  %v11689_v36 = vld [vmem:[#allocation29_spill] sm:$0xff] }
 0x238   :  { %11654 = vst [vmem:[#allocation86_spill] sm:$0xff] %v9152_v16  ;;  %2983 = vmatprep.subr.bf16.mxu1 %v9149_v46  ;;  %v2131_v46 = vld [vmem:[#allocation5 + $0x3b8] sm:$0xff] }
 0x239   :  { %11655 = vst [vmem:[#allocation87_spill] sm:$0xff] %v9155_v21 }
 0x23a   :  { %1984 = vmatpush1.bf16.msra.mxu0 %v8010_v37  ;;  %v9161_v37 = vcombine.high %v2111_v3, %v2115_v19 }
 0x23b   :  { %2984 = vmatpush1.bf16.msra.mxu1 %v9152_v16  ;;  %v2139_v16 = vld [vmem:[#allocation5 + $0x3f8] sm:$0xff] }
 0x23c   :  { %2985 = vmatprep.subr.bf16.mxu1 %v9155_v21  ;;  %11656 = vst [vmem:[#allocation88_spill] sm:$0xff] %v9161_v37  ;;  %v2135_v21 = vld [vmem:[#allocation5 + $0x3d8] sm:$0xff] }
 0x23d   :  { %2002 = vmatmul.mubr.bf16.vlgmr.msra.gmra.mrb[0].mxu0 %v465_v11  ;;  %v2127_v11 = vld [vmem:[#allocation5 + $0x398] sm:$0xff]  ;;  %v9179_v19 = vcombine.high %v2135_v21, %v2139_v16 }
 0x23e   :  { %v9173_v25 = vcombine.high %v2127_v11, %v2131_v46  ;;  %v9176_v3 = vcombine.low %v2127_v11, %v2131_v46  ;;  %v11690_v46 = vld [vmem:[#allocation30_spill] sm:$0xff]  ;;  %v11693_v11 = vld [vmem:[#allocation33_spill] sm:$0xff] }
 0x23f   :  { %2986 = vmatpush1.bf16.msra.mxu1 %v9158_v62 }
 0x240   :  { %2987 = vmatprep.subr.bf16.mxu1 %v9161_v37  ;;  %v9182_v37 = vcombine.low %v2135_v21, %v2139_v16  ;;  %v11691_v16 = vld [vmem:[#allocation31_spill] sm:$0xff]  ;;  %v11692_v21 = vld [vmem:[#allocation32_spill] sm:$0xff] }
 0x243   :  { %2988 = vmatpush1.bf16.msra.mxu1 %v9164_v52 }
 0x244   :  { %2989 = vmatprep.subr.bf16.mxu1 %v9167_v39 }
 0x247   :  { %2990 = vmatpush1.bf16.msra.mxu1 %v9170_v44 }
 0x248   :  { %2991 = vmatprep.subr.bf16.mxu1 %v9173_v25 }
 0x24b   :  { %2992 = vmatpush1.bf16.msra.mxu1 %v9176_v3 }
 0x24c   :  { %2993 = vmatprep.subr.bf16.mxu1 %v9179_v19 }
 0x24f   :  { %2994 = vmatpush1.bf16.msra.mxu1 %v9182_v37 }
 0x250   :  { %3008 = vmatprep.subr.bf16.mxu1 %v8752_v26 }
 0x252   :  { %2996 = vmatmul.mubr.bf16.vlgmr.msra.gmra.mrb[12].mxu1 %v8864_v29  ;;  %v9198_v26 = vpop.f32.mrb[0].mxu1 }
 0x253   :  { %3009 = vmatpush1.bf16.msra.mxu1 %v8754_v27  ;;  %11657 = vst [vmem:[#allocation89_spill] sm:$0xff] %v9198_v26  ;;  %v9200_v27 = vpop.f32.mrb[1].mxu1  ;;  %v3261_v26 = vld [vmem:[#allocation7 + $0x2c8] sm:$0xff] }
 0x254   :  { %3010 = vmatprep.subr.bf16.mxu1 %v8760_v33  ;;  %11658 = vst [vmem:[#allocation90_spill] sm:$0xff] %v9200_v27  ;;  %v9202_v33 = vpop.f32.mrb[2].mxu1  ;;  %v3257_v27 = vld [vmem:[#allocation7 + $0x2a8] sm:$0xff] }
 0x255   :  { %11659 = vst [vmem:[#allocation91_spill] sm:$0xff] %v9202_v33  ;;  %v11754_v33 = vld [vmem:[#allocation66_spill] sm:$0xff] }
 0x257   :  { %3011 = vmatpush1.bf16.msra.mxu1 %v8764_v35  ;;  %v9205_v35 = vpop.f32.mrb[3].mxu1 }
 0x258   :  { %3012 = vmatprep.subr.bf16.mxu1 %v8771_v41  ;;  %11660 = vst [vmem:[#allocation92_spill] sm:$0xff] %v9205_v35 }
 0x25b   :  { %3013 = vmatpush1.bf16.msra.mxu1 %v8773_v42 }
 0x25c   :  { %3014 = vmatprep.subr.bf16.mxu1 %v8778_v47 }
 0x25f   :  { %3015 = vmatpush1.bf16.msra.mxu1 %v8780_v48 }
 0x260   :  { %3016 = vmatprep.subr.bf16.mxu1 %v8784_v53 }
 0x263   :  { %3017 = vmatpush1.bf16.msra.mxu1 %v8786_v54 }
 0x264   :  { %3018 = vmatprep.subr.bf16.mxu1 %v8790_v59 }
 0x267   :  { %3019 = vmatpush1.bf16.msra.mxu1 %v8792_v60 }
 0x268   :  { %3020 = vmatprep.subr.bf16.mxu1 %v8796_v1  ;;  %v356_v1 = vld [vmem:[%s11212_s3] sm:$0x3] }
 0x26b   :  { %3021 = vmatpush1.bf16.msra.mxu1 %v8798_v2  ;;  %v9248_v2 = vsub.s32 0, %v8706_v12 }
 0x26c   :  { %3022 = vmatprep.subr.bf16.mxu1 %v8802_v7  ;;  %v9251_v7 = vsub.s32 1, %v8706_v12 }
 0x26d   :  { %11669 = vst [vmem:[#allocation101_spill] sm:$0xff] %v9248_v2 }
 0x26e   :  { %11670 = vst [vmem:[#allocation102_spill] sm:$0xff] %v9251_v7 }
 0x26f   :  { %3023 = vmatpush1.bf16.msra.mxu1 %v8804_v8  ;;  %v361_v8 = vrot.slane %v356_v1, %v9248_v2 }
 0x270   :  { %3024 = vmatprep.subr.bf16.mxu1 %v8808_v14  ;;  %v365_v14 = vrot.slane %v356_v1, %v9251_v7  ;;  %v11694_v1 = vld [vmem:[#allocation34_spill] sm:$0xff] }
 0x273   :  { %3025 = vmatpush1.bf16.msra.mxu1 %v8810_v15 }
 0x274   :  { %3026 = vmatprep.subr.bf16.mxu1 %v8814_v23 }
 0x277   :  { %3027 = vmatpush1.bf16.msra.mxu1 %v8816_v24 }
 0x278   :  { %3028 = vmatprep.subr.bf16.mxu1 %v8820_v31 }
 0x27b   :  { %3029 = vmatpush1.bf16.msra.mxu1 %v8822_v32 }
 0x27c   :  { %3030 = vmatprep.subr.bf16.mxu1 %v8826_v40 }
 0x27f   :  { %3031 = vmatpush1.bf16.msra.mxu1 %v8828_v43 }
 0x280   :  { %3032 = vmatprep.subr.bf16.mxu1 %v8832_v50 }
 0x283   :  { %3033 = vmatpush1.bf16.msra.mxu1 %v8834_v51 }
 0x284   :  { %3034 = vmatprep.subr.bf16.mxu1 %v8838_v58 }
 0x287   :  { %3035 = vmatpush1.bf16.msra.mxu1 %v8840_v61  ;;  %v11673_v61 = vld [vmem:[#allocation17_spill] sm:$0xff] }
 0x288   :  { %3036 = vmatprep.subr.bf16.mxu1 %v8844_v4 }
 0x28b   :  { %3037 = vmatpush1.bf16.msra.mxu1 %v8846_v5  ;;  %v11675_v5 = vld [vmem:[#allocation18_spill] sm:$0xff] }
 0x28c   :  { %3038 = vmatprep.subr.bf16.mxu1 %v8850_v13 }
 0x28f   :  { %3039 = vmatpush1.bf16.msra.mxu1 %v8852_v17 }
 0x290   :  { %3049 = vmatprep.subr.bf16.mxu1 %v8866_v30  ;;  %v11679_v30 = vld [vmem:[#allocation19_spill] sm:$0xff] }
 0x2a4   :  { %v9228_v41 = vpop.f32.mrb[4].mxu1 }
 0x2a5   :  { %11661 = vst [vmem:[#allocation93_spill] sm:$0xff] %v9228_v41  ;;  %v9230_v42 = vpop.f32.mrb[5].mxu1  ;;  %v3253_v41 = vld [vmem:[#allocation7 + $0x288] sm:$0xff] }
 0x2a6   :  { %11662 = vst [vmem:[#allocation94_spill] sm:$0xff] %v9230_v42  ;;  %v9232_v47 = vpop.f32.mrb[6].mxu1  ;;  %v3249_v42 = vld [vmem:[#allocation7 + $0x268] sm:$0xff] }
 0x2a7   :  { %11663 = vst [vmem:[#allocation95_spill] sm:$0xff] %v9232_v47  ;;  %v9234_v48 = vpop.f32.mrb[7].mxu1  ;;  %v11758_v47 = vld [vmem:[#allocation68_spill] sm:$0xff] }
 0x2a8   :  { %11664 = vst [vmem:[#allocation96_spill] sm:$0xff] %v9234_v48 }
 0x2e5   :  { %v9236_v53 = vpop.f32.mrb[8].mxu1 }
 0x2e6   :  { %11665 = vst [vmem:[#allocation97_spill] sm:$0xff] %v9236_v53  ;;  %v9238_v54 = vpop.f32.mrb[9].mxu1  ;;  %v11772_v53 = vld [vmem:[#allocation78_spill] sm:$0xff] }
 0x2e7   :  { %11666 = vst [vmem:[#allocation98_spill] sm:$0xff] %v9238_v54  ;;  %v9240_v59 = vpop.f32.mrb[10].mxu1  ;;  %v11771_v54 = vld [vmem:[#allocation77_spill] sm:$0xff] }
 0x2e8   :  { %11667 = vst [vmem:[#allocation99_spill] sm:$0xff] %v9240_v59  ;;  %v9242_v60 = vpop.f32.mrb[11].mxu1  ;;  %v11750_v59 = vld [vmem:[#allocation64_spill] sm:$0xff] }
 0x2e9   :  { %11668 = vst [vmem:[#allocation100_spill] sm:$0xff] %v9242_v60  ;;  %v11746_v60 = vld [vmem:[#allocation62_spill] sm:$0xff] }
 0x310   :  { %v2003_v15 = vpop.f32.mrb[0].mxu0 }
 0x311   :  { %v7577_v23 = vadd.f32 %v2003_v15, %v361_v8  ;;  %v2005_v24 = vpop.f32.mrb[1].mxu0  ;;  %v11695_v8 = vld [vmem:[#allocation35_spill] sm:$0xff]  ;;  %v11697_v15 = vld [vmem:[#allocation37_spill] sm:$0xff] }
 0x312   :  { %v7578_v31 = vadd.f32 %v2005_v24, %v365_v14  ;;  %v2007_v32 = vpop.f32.mrb[2].mxu0  ;;  %v11696_v14 = vld [vmem:[#allocation36_spill] sm:$0xff]  ;;  %v11699_v24 = vld [vmem:[#allocation39_spill] sm:$0xff] }
 0x313   :  { %v9255_v40 = vmax.f32 %v7577_v23, 0.0  ;;  %v2008_v43 = vpop.f32.mrb[3].mxu0  ;;  %v11698_v23 = vld [vmem:[#allocation38_spill] sm:$0xff]  ;;  %v3176_v32 = vld [vmem:[#allocation7 + $0x20] sm:$0xff] }
 0x314   :  { %v9257_v50 = vmax.f32 %v7578_v31, 0.0  ;;  %v3172_v31 = vld [vmem:[#allocation7] sm:$0xff]  ;;  %v11700_v43 = vld [vmem:[#allocation40_spill] sm:$0xff] }
 0x315   :  { %11671 = vst [vmem:[#allocation103_spill] sm:$0xff] %v9255_v40  ;;  %v9265_v58 = vpack.c.bf16 %v9255_v40, %v9255_v40  ;;  %v11742_v40 = vld [vmem:[#allocation60_spill] sm:$0xff] }
 0x316   :  { %11672 = vst [vmem:[#allocation104_spill] sm:$0xff] %v9257_v50  ;;  %v9261_v51 = vpack.c.bf16 %v9257_v50, %v9257_v50 }
 0x318   :  { %3040 = vmatprep.mubr.bf16.mxu1 %v9261_v51 }
 0x319   :  { %3041 = vmatmul.mubr.bf16.vlgmr.msra.gmra.mrb[16].mxu1 %v9265_v58 }
 0x31a   :  { %3050 = vmatpush1.bf16.msra.mxu1 %v8869_v34  ;;  %3081 = vmatprep.mubr.bf16.mxu1 %v9261_v51  ;;  %v11680_v34 = vld [vmem:[#allocation20_spill] sm:$0xff] }
 0x31b   :  { %3051 = vmatprep.subr.bf16.mxu1 %v8874_v45  ;;  %v11681_v45 = vld [vmem:[#allocation21_spill] sm:$0xff] }
 0x31e   :  { %3052 = vmatpush1.bf16.msra.mxu1 %v8881_v49  ;;  %v11682_v49 = vld [vmem:[#allocation22_spill] sm:$0xff] }
 0x31f   :  { %3053 = vmatprep.subr.bf16.mxu1 %v8887_v63  ;;  %v11683_v63 = vld [vmem:[#allocation23_spill] sm:$0xff] }
 0x322   :  { %3054 = vmatpush1.bf16.msra.mxu1 %v8890_v22  ;;  %v11684_v22 = vld [vmem:[#allocation24_spill] sm:$0xff] }
 0x323   :  { %3055 = vmatprep.subr.bf16.mxu1 %v8894_v9  ;;  %v11685_v9 = vld [vmem:[#allocation25_spill] sm:$0xff] }
 0x325   :  { %v9279_v4 = vpop.f32.mrb[12].mxu1 }
 0x326   :  { %3056 = vmatpush1.bf16.msra.mxu1 %v8896_v10  ;;  %11674 = vst [vmem:[#allocation17_spill] sm:$0xff] %v9279_v4  ;;  %v9282_v13 = vpop.f32.mrb[13].mxu1  ;;  %v11686_v10 = vld [vmem:[#allocation26_spill] sm:$0xff] }
 0x327   :  { %3057 = vmatprep.subr.bf16.mxu1 %v8900_v28  ;;  %11676 = vst [vmem:[#allocation18_spill] sm:$0xff] %v9282_v13  ;;  %v9284_v17 = vpop.f32.mrb[14].mxu1  ;;  %v11687_v28 = vld [vmem:[#allocation27_spill] sm:$0xff] }
 0x328   :  { %11677 = vst [vmem:[#allocation105_spill] sm:$0xff] %v9284_v17  ;;  %v9286_v29 = vpop.f32.mrb[15].mxu1 }
 0x329   :  { %11678 = vst [vmem:[#allocation106_spill] sm:$0xff] %v9286_v29 }
 0x32a   :  { %3058 = vmatpush1.bf16.msra.mxu1 %v11673_v61  ;;  %v9310_v61 = vcombine.high %v3172_v31, %v3176_v32 }
 0x32b   :  { %3059 = vmatprep.subr.bf16.mxu1 %v11675_v5  ;;  %v9313_v5 = vcombine.low %v3172_v31, %v3176_v32  ;;  %v3212_v31 = vld [vmem:[#allocation7 + $0x140] sm:$0xff] }
 0x32c   :  { %11701 = vst [vmem:[#allocation19_spill] sm:$0xff] %v9310_v61  ;;  %4162 = vmatprep.subr.bf16.mxu0 %v9310_v61  ;;  %v3216_v32 = vld [vmem:[#allocation7 + $0x160] sm:$0xff] }
 0x32d   :  { %11702 = vst [vmem:[#allocation20_spill] sm:$0xff] %v9313_v5  ;;  %4163 = vmatpush1.bf16.msra.mxu0 %v9313_v5 }
 0x32e   :  { %3060 = vmatpush1.bf16.msra.mxu1 %v11679_v30  ;;  %v3180_v30 = vld [vmem:[#allocation7 + $0x40] sm:$0xff] }
 0x32f   :  { %3061 = vmatprep.subr.bf16.mxu1 %v11680_v34  ;;  %v3184_v34 = vld [vmem:[#allocation7 + $0x60] sm:$0xff] }
 0x332   :  { %3062 = vmatpush1.bf16.msra.mxu1 %v11681_v45  ;;  %v11703_v45 = vld [vmem:[#allocation41_spill] sm:$0xff] }
 0x333   :  { %3063 = vmatprep.subr.bf16.mxu1 %v11682_v49  ;;  %v9319_v49 = vcombine.high %v3180_v30, %v3184_v34 }
 0x335   :  { %11704 = vst [vmem:[#allocation21_spill] sm:$0xff] %v9319_v49  ;;  %4164 = vmatprep.subr.bf16.mxu0 %v9319_v49 }
 0x336   :  { %3064 = vmatpush1.bf16.msra.mxu1 %v11683_v63  ;;  %v9322_v63 = vcombine.low %v3180_v30, %v3184_v34  ;;  %v9351_v30 = vcombine.high %v3212_v31, %v3216_v32  ;;  %v9354_v34 = vcombine.low %v3212_v31, %v3216_v32  ;;  %v3236_v31 = vld [vmem:[#allocation7 + $0x200] sm:$0xff] }
 0x337   :  { %3065 = vmatprep.subr.bf16.mxu1 %v11684_v22  ;;  %v3188_v22 = vld [vmem:[#allocation7 + $0x80] sm:$0xff] }
 0x338   :  { %11705 = vst [vmem:[#allocation22_spill] sm:$0xff] %v9322_v63  ;;  %4165 = vmatpush1.bf16.msra.mxu0 %v9322_v63  ;;  %11719 = vst [vmem:[#allocation29_spill] sm:$0xff] %v9351_v30  ;;  %v3240_v32 = vld [vmem:[#allocation7 + $0x220] sm:$0xff] }
 0x339   :  { %11720 = vst [vmem:[#allocation30_spill] sm:$0xff] %v9354_v34 }
 0x33a   :  { %3066 = vmatpush1.bf16.msra.mxu1 %v11685_v9  ;;  %v3192_v9 = vld [vmem:[#allocation7 + $0xa0] sm:$0xff] }
 0x33b   :  { %3067 = vmatprep.subr.bf16.mxu1 %v11686_v10  ;;  %v11706_v10 = vld [vmem:[#allocation42_spill] sm:$0xff] }
 0x33e   :  { %3068 = vmatpush1.bf16.msra.mxu1 %v11687_v28  ;;  %v9330_v28 = vcombine.low %v3188_v22, %v3192_v9 }
 0x33f   :  { %3069 = vmatprep.subr.bf16.mxu1 %v11688_v57  ;;  %v11709_v57 = vld [vmem:[#allocation43_spill] sm:$0xff] }
 0x340   :  { %11708 = vst [vmem:[#allocation24_spill] sm:$0xff] %v9330_v28 }
 0x342   :  { %3070 = vmatpush1.bf16.msra.mxu1 %v11689_v36  ;;  %v3196_v36 = vld [vmem:[#allocation7 + $0xc0] sm:$0xff] }
 0x343   :  { %3071 = vmatprep.subr.bf16.mxu1 %v11690_v46  ;;  %v3200_v46 = vld [vmem:[#allocation7 + $0xe0] sm:$0xff] }
 0x346   :  { %3072 = vmatpush1.bf16.msra.mxu1 %v11691_v16  ;;  %v11710_v16 = vld [vmem:[#allocation44_spill] sm:$0xff] }
 0x347   :  { %3073 = vmatprep.subr.bf16.mxu1 %v11692_v21  ;;  %v9335_v21 = vcombine.high %v3196_v36, %v3200_v46 }
 0x349   :  { %11711 = vst [vmem:[#allocation25_spill] sm:$0xff] %v9335_v21 }
 0x34a   :  { %3074 = vmatpush1.bf16.msra.mxu1 %v11693_v11  ;;  %v11713_v11 = vld [vmem:[#allocation45_spill] sm:$0xff] }
 0x34b   :  { %3075 = vmatprep.subr.bf16.mxu1 %v11694_v1  ;;  %v3204_v1 = vld [vmem:[#allocation7 + $0x100] sm:$0xff] }
 0x34e   :  { %3076 = vmatpush1.bf16.msra.mxu1 %v11695_v8  ;;  %v3208_v8 = vld [vmem:[#allocation7 + $0x120] sm:$0xff] }
 0x34f   :  { %3077 = vmatprep.subr.bf16.mxu1 %v11696_v14  ;;  %v11714_v14 = vld [vmem:[#allocation46_spill] sm:$0xff] }
 0x352   :  { %3078 = vmatpush1.bf16.msra.mxu1 %v11697_v15  ;;  %v9343_v15 = vcombine.high %v3204_v1, %v3208_v8 }
 0x353   :  { %3079 = vmatprep.subr.bf16.mxu1 %v11698_v23  ;;  %v9346_v23 = vcombine.low %v3204_v1, %v3208_v8  ;;  %v11726_v1 = vld [vmem:[#allocation52_spill] sm:$0xff] }
 0x354   :  { %11715 = vst [vmem:[#allocation27_spill] sm:$0xff] %v9343_v15 }
 0x355   :  { %11716 = vst [vmem:[#allocation28_spill] sm:$0xff] %v9346_v23 }
 0x356   :  { %3080 = vmatpush1.bf16.msra.mxu1 %v11699_v24  ;;  %v11717_v24 = vld [vmem:[#allocation47_spill] sm:$0xff] }
 0x357   :  { %3090 = vmatprep.subr.bf16.mxu1 %v11700_v43  ;;  %v11718_v43 = vld [vmem:[#allocation48_spill] sm:$0xff] }
 0x359   :  { %3082 = vmatmul.mubr.bf16.vlgmr.msra.gmra.mrb[20].mxu1 %v9265_v58 }
 0x35a   :  { %3091 = vmatpush1.bf16.msra.mxu1 %v8979_v18  ;;  %3122 = vmatprep.mubr.bf16.mxu1 %v9261_v51  ;;  %v9327_v18 = vcombine.high %v3188_v22, %v3192_v9  ;;  %v3220_v22 = vld [vmem:[#allocation7 + $0x180] sm:$0xff] }
 0x35b   :  { %3092 = vmatprep.subr.bf16.mxu1 %v11703_v45  ;;  %v11721_v45 = vld [vmem:[#allocation49_spill] sm:$0xff]  ;;  %v3224_v9 = vld [vmem:[#allocation7 + $0x1a0] sm:$0xff] }
 0x35c   :  { %11707 = vst [vmem:[#allocation23_spill] sm:$0xff] %v9327_v18  ;;  %4166 = vmatprep.subr.bf16.mxu0 %v9327_v18 }
 0x35d   :  { %4167 = vmatpush1.bf16.msra.mxu0 %v9330_v28 }
 0x35e   :  { %3093 = vmatpush1.bf16.msra.mxu1 %v8988_v55  ;;  %v9338_v55 = vcombine.low %v3196_v36, %v3200_v46  ;;  %4168 = vmatprep.subr.bf16.mxu0 %v9335_v21  ;;  %v9362_v36 = vcombine.low %v3220_v22, %v3224_v9  ;;  %v11725_v46 = vld [vmem:[#allocation51_spill] sm:$0xff] }
 0x35f   :  { %3094 = vmatprep.subr.bf16.mxu1 %v11706_v10  ;;  %v11722_v10 = vld [vmem:[#allocation50_spill] sm:$0xff] }
 0x360   :  { %11712 = vst [vmem:[#allocation26_spill] sm:$0xff] %v9338_v55  ;;  %11724 = vst [vmem:[#allocation32_spill] sm:$0xff] %v9362_v36 }
 0x361   :  { %4169 = vmatpush1.bf16.msra.mxu0 %v9338_v55 }
 0x362   :  { %3095 = vmatpush1.bf16.msra.mxu1 %v11709_v57  ;;  %4170 = vmatprep.subr.bf16.mxu0 %v9343_v15  ;;  %v9359_v57 = vcombine.high %v3220_v22, %v3224_v9  ;;  %v9378_v22 = vcombine.low %v3236_v31, %v3240_v32  ;;  %v11733_v9 = vld [vmem:[#allocation55_spill] sm:$0xff] }
 0x363   :  { %3096 = vmatprep.subr.bf16.mxu1 %v11710_v16  ;;  %v3228_v16 = vld [vmem:[#allocation7 + $0x1c0] sm:$0xff] }
 0x364   :  { %11723 = vst [vmem:[#allocation31_spill] sm:$0xff] %v9359_v57  ;;  %11732 = vst [vmem:[#allocation36_spill] sm:$0xff] %v9378_v22 }
 0x365   :  { %4171 = vmatpush1.bf16.msra.mxu0 %v9346_v23 }
 0x366   :  { %3097 = vmatpush1.bf16.msra.mxu1 %v11713_v11  ;;  %4172 = vmatprep.subr.bf16.mxu0 %v9351_v30  ;;  %v3232_v11 = vld [vmem:[#allocation7 + $0x1e0] sm:$0xff] }
 0x367   :  { %3098 = vmatprep.subr.bf16.mxu1 %v11714_v14  ;;  %v9367_v8 = vcombine.high %v3228_v16, %v3232_v11  ;;  %v9370_v14 = vcombine.low %v3228_v16, %v3232_v11  ;;  %v11734_v16 = vld [vmem:[#allocation56_spill] sm:$0xff] }
 0x369   :  { %4173 = vmatpush1.bf16.msra.mxu0 %v9354_v34  ;;  %11727 = vst [vmem:[#allocation33_spill] sm:$0xff] %v9367_v8  ;;  %11728 = vst [vmem:[#allocation34_spill] sm:$0xff] %v9370_v14 }
 0x36a   :  { %3099 = vmatpush1.bf16.msra.mxu1 %v11717_v24  ;;  %4174 = vmatprep.subr.bf16.mxu0 %v9359_v57  ;;  %v11729_v24 = vld [vmem:[#allocation53_spill] sm:$0xff] }
 0x36b   :  { %3100 = vmatprep.subr.bf16.mxu1 %v11718_v43  ;;  %v11730_v43 = vld [vmem:[#allocation54_spill] sm:$0xff] }
 0x36d   :  { %4175 = vmatpush1.bf16.msra.mxu0 %v9362_v36 }
 0x36e   :  { %3101 = vmatpush1.bf16.msra.mxu1 %v11721_v45  ;;  %4176 = vmatprep.subr.bf16.mxu0 %v9367_v8  ;;  %v9375_v45 = vcombine.high %v3236_v31, %v3240_v32  ;;  %v3252_v31 = vld [vmem:[#allocation7 + $0x280] sm:$0xff] }
 0x36f   :  { %3102 = vmatprep.subr.bf16.mxu1 %v11722_v10  ;;  %v3244_v10 = vld [vmem:[#allocation7 + $0x240] sm:$0xff] }
 0x370   :  { %11731 = vst [vmem:[#allocation35_spill] sm:$0xff] %v9375_v45  ;;  %v3256_v32 = vld [vmem:[#allocation7 + $0x2a0] sm:$0xff] }
 0x371   :  { %4177 = vmatpush1.bf16.msra.mxu0 %v9370_v14  ;;  %v9391_v50 = vcombine.high %v3252_v31, %v3256_v32 }
 0x372   :  { %3103 = vmatpush1.bf16.msra.mxu1 %v11725_v46  ;;  %4178 = vmatprep.subr.bf16.mxu0 %v9375_v45  ;;  %v3248_v46 = vld [vmem:[#allocation7 + $0x260] sm:$0xff] }
 0x373   :  { %3104 = vmatprep.subr.bf16.mxu1 %v11726_v1  ;;  %v9383_v11 = vcombine.high %v3244_v10, %v3248_v46  ;;  %v9386_v1 = vcombine.low %v3244_v10, %v3248_v46  ;;  %11739 = vst [vmem:[#allocation39_spill] sm:$0xff] %v9391_v50  ;;  %v3260_v10 = vld [vmem:[#allocation7 + $0x2c0] sm:$0xff] }
 0x374   :  { %v3264_v46 = vld [vmem:[#allocation7 + $0x2e0] sm:$0xff] }
 0x375   :  { %11735 = vst [vmem:[#allocation37_spill] sm:$0xff] %v9383_v11  ;;  %4179 = vmatpush1.bf16.msra.mxu0 %v9378_v22  ;;  %11736 = vst [vmem:[#allocation38_spill] sm:$0xff] %v9386_v1  ;;  %v9399_v29 = vcombine.high %v3260_v10, %v3264_v46 }
 0x376   :  { %3105 = vmatpush1.bf16.msra.mxu1 %v11729_v24  ;;  %4180 = vmatprep.subr.bf16.mxu0 %v9383_v11  ;;  %v11737_v24 = vld [vmem:[#allocation57_spill] sm:$0xff] }
 0x377   :  { %3106 = vmatprep.subr.bf16.mxu1 %v11730_v43  ;;  %v11738_v43 = vld [vmem:[#allocation58_spill] sm:$0xff]  ;;  %11743 = vst [vmem:[#allocation41_spill] sm:$0xff] %v9399_v29 }
 0x379   :  { %4181 = vmatpush1.bf16.msra.mxu0 %v9386_v1 }
 0x37a   :  { %3107 = vmatpush1.bf16.msra.mxu1 %v11733_v9  ;;  %v9394_v9 = vcombine.low %v3252_v31, %v3256_v32  ;;  %4182 = vmatprep.subr.bf16.mxu0 %v9391_v50  ;;  %v3268_v31 = vld [vmem:[#allocation7 + $0x300] sm:$0xff] }
 0x37b   :  { %3108 = vmatprep.subr.bf16.mxu1 %v11734_v16  ;;  %v11741_v16 = vld [vmem:[#allocation59_spill] sm:$0xff] }
 0x37c   :  { %11740 = vst [vmem:[#allocation40_spill] sm:$0xff] %v9394_v9  ;;  %v3272_v32 = vld [vmem:[#allocation7 + $0x320] sm:$0xff] }
 0x37d   :  { %4183 = vmatpush1.bf16.msra.mxu0 %v9394_v9  ;;  %v9407_v17 = vcombine.high %v3268_v31, %v3272_v32 }
 0x37e   :  { %3109 = vmatpush1.bf16.msra.mxu1 %v11737_v24  ;;  %v9402_v24 = vcombine.low %v3260_v10, %v3264_v46  ;;  %4184 = vmatprep.subr.bf16.mxu0 %v9399_v29  ;;  %v3276_v10 = vld [vmem:[#allocation7 + $0x340] sm:$0xff] }
 0x37f   :  { %3110 = vmatprep.subr.bf16.mxu1 %v11738_v43  ;;  %v11745_v43 = vld [vmem:[#allocation61_spill] sm:$0xff]  ;;  %11747 = vst [vmem:[#allocation43_spill] sm:$0xff] %v9407_v17  ;;  %v3280_v46 = vld [vmem:[#allocation7 + $0x360] sm:$0xff] }
 0x380   :  { %11744 = vst [vmem:[#allocation42_spill] sm:$0xff] %v9402_v24  ;;  %v9415_v35 = vcombine.high %v3276_v10, %v3280_v46 }
 0x381   :  { %4185 = vmatpush1.bf16.msra.mxu0 %v9402_v24 }
 0x382   :  { %3111 = vmatpush1.bf16.msra.mxu1 %v11741_v16  ;;  %v9410_v16 = vcombine.low %v3268_v31, %v3272_v32  ;;  %4186 = vmatprep.subr.bf16.mxu0 %v9407_v17  ;;  %11751 = vst [vmem:[#allocation45_spill] sm:$0xff] %v9415_v35  ;;  %v3284_v31 = vld [vmem:[#allocation7 + $0x380] sm:$0xff] }
 0x383   :  { %3112 = vmatprep.subr.bf16.mxu1 %v11742_v40  ;;  %v11749_v40 = vld [vmem:[#allocation63_spill] sm:$0xff] }
 0x384   :  { %11748 = vst [vmem:[#allocation44_spill] sm:$0xff] %v9410_v16  ;;  %v3288_v32 = vld [vmem:[#allocation7 + $0x3a0] sm:$0xff] }
 0x385   :  { %4187 = vmatpush1.bf16.msra.mxu0 %v9410_v16  ;;  %v9423_v48 = vcombine.high %v3284_v31, %v3288_v32 }
 0x386   :  { %3113 = vmatpush1.bf16.msra.mxu1 %v11745_v43  ;;  %v9418_v43 = vcombine.low %v3276_v10, %v3280_v46  ;;  %4188 = vmatprep.subr.bf16.mxu0 %v9415_v35  ;;  %v3292_v10 = vld [vmem:[#allocation7 + $0x3c0] sm:$0xff] }
 0x387   :  { %3114 = vmatprep.subr.bf16.mxu1 %v11746_v60  ;;  %v11753_v60 = vld [vmem:[#allocation65_spill] sm:$0xff]  ;;  %11755 = vst [vmem:[#allocation47_spill] sm:$0xff] %v9423_v48  ;;  %v3296_v46 = vld [vmem:[#allocation7 + $0x3e0] sm:$0xff] }
 0x388   :  { %11752 = vst [vmem:[#allocation46_spill] sm:$0xff] %v9418_v43  ;;  %v9431_v13 = vcombine.high %v3292_v10, %v3296_v46 }
 0x389   :  { %4189 = vmatpush1.bf16.msra.mxu0 %v9418_v43 }
 0x38a   :  { %3115 = vmatpush1.bf16.msra.mxu1 %v11749_v40  ;;  %v9426_v40 = vcombine.low %v3284_v31, %v3288_v32  ;;  %4190 = vmatprep.subr.bf16.mxu0 %v9423_v48  ;;  %11759 = vst [vmem:[#allocation49_spill] sm:$0xff] %v9431_v13  ;;  %v3177_v31 = vld [vmem:[#allocation7 + $0x28] sm:$0xff]  ;;  %v11761_v32 = vld [vmem:[#allocation69_spill] sm:$0xff] }
 0x38b   :  { %3116 = vmatprep.subr.bf16.mxu1 %v11750_v59  ;;  %v11757_v59 = vld [vmem:[#allocation67_spill] sm:$0xff] }
 0x38c   :  { %11756 = vst [vmem:[#allocation48_spill] sm:$0xff] %v9426_v40 }
 0x38d   :  { %4191 = vmatpush1.bf16.msra.mxu0 %v9426_v40 }
 0x38e   :  { %3117 = vmatpush1.bf16.msra.mxu1 %v11753_v60  ;;  %v9434_v60 = vcombine.low %v3292_v10, %v3296_v46  ;;  %4192 = vmatprep.subr.bf16.mxu0 %v9431_v13  ;;  %v11766_v10 = vld [vmem:[#allocation72_spill] sm:$0xff]  ;;  %v11767_v46 = vld [vmem:[#allocation73_spill] sm:$0xff] }
 0x38f   :  { %3118 = vmatprep.subr.bf16.mxu1 %v11754_v33  ;;  %v3173_v33 = vld [vmem:[#allocation7 + $0x8] sm:$0xff] }
 0x390   :  { %11760 = vst [vmem:[#allocation50_spill] sm:$0xff] %v9434_v60  ;;  %v9439_v4 = vcombine.high %v3173_v33, %v3177_v31 }
 0x391   :  { %4193 = vmatpush1.bf16.msra.mxu0 %v9434_v60 }
 0x392   :  { %3119 = vmatpush1.bf16.msra.mxu1 %v11757_v59  ;;  %11762 = vst [vmem:[#allocation51_spill] sm:$0xff] %v9439_v4  ;;  %v9442_v59 = vcombine.low %v3173_v33, %v3177_v31  ;;  %4203 = vmatprep.subr.bf16.mxu0 %v9439_v4  ;;  %v11769_v33 = vld [vmem:[#allocation75_spill] sm:$0xff]  ;;  %v11770_v31 = vld [vmem:[#allocation76_spill] sm:$0xff] }
 0x393   :  { %3120 = vmatprep.subr.bf16.mxu1 %v11758_v47  ;;  %v11764_v47 = vld [vmem:[#allocation70_spill] sm:$0xff] }
 0x394   :  { %11763 = vst [vmem:[#allocation52_spill] sm:$0xff] %v9442_v59 }
 0x396   :  { %3121 = vmatpush1.bf16.msra.mxu1 %v9076_v56  ;;  %v11765_v56 = vld [vmem:[#allocation71_spill] sm:$0xff] }
 0x397   :  { %3131 = vmatprep.subr.bf16.mxu1 %v11761_v32  ;;  %v11768_v32 = vld [vmem:[#allocation74_spill] sm:$0xff] }
 0x399   :  { %3123 = vmatmul.mubr.bf16.vlgmr.msra.gmra.mrb[24].mxu1 %v9265_v58 }
 0x39a   :  { %3132 = vmatpush1.bf16.msra.mxu1 %v9082_v0  ;;  %3163 = vmatprep.mubr.bf16.mxu1 %v9261_v51  ;;  %v11773_v0 = vld [vmem:[#allocation79_spill] sm:$0xff]  ;;  %v11774_v51 = vld [vmem:[#allocation80_spill] sm:$0xff] }
 0x39b   :  { %3133 = vmatprep.subr.bf16.mxu1 %v11764_v47  ;;  %v11775_v47 = vld [vmem:[#allocation81_spill] sm:$0xff] }
 0x39e   :  { %3134 = vmatpush1.bf16.msra.mxu1 %v11765_v56  ;;  %v11776_v56 = vld [vmem:[#allocation82_spill] sm:$0xff] }
 0x39f   :  { %3135 = vmatprep.subr.bf16.mxu1 %v11766_v10  ;;  %v11777_v10 = vld [vmem:[#allocation83_spill] sm:$0xff] }
 0x3a2   :  { %3136 = vmatpush1.bf16.msra.mxu1 %v11767_v46  ;;  %v11778_v46 = vld [vmem:[#allocation84_spill] sm:$0xff] }
 0x3a3   :  { %3137 = vmatprep.subr.bf16.mxu1 %v11768_v32  ;;  %v11781_v32 = vld [vmem:[#allocation87_spill] sm:$0xff] }
 0x3a6   :  { %3138 = vmatpush1.bf16.msra.mxu1 %v11769_v33 }
 0x3a7   :  { %3139 = vmatprep.subr.bf16.mxu1 %v11770_v31  ;;  %v3205_v31 = vld [vmem:[#allocation7 + $0x108] sm:$0xff] }
 0x3aa   :  { %3140 = vmatpush1.bf16.msra.mxu1 %v11771_v54  ;;  %v11779_v54 = vld [vmem:[#allocation85_spill] sm:$0xff] }
 0x3ab   :  { %3141 = vmatprep.subr.bf16.mxu1 %v11772_v53  ;;  %v11780_v53 = vld [vmem:[#allocation86_spill] sm:$0xff] }
 0x3ae   :  { %3142 = vmatpush1.bf16.msra.mxu1 %v11773_v0  ;;  %v3209_v0 = vld [vmem:[#allocation7 + $0x128] sm:$0xff] }
 0x3af   :  { %3143 = vmatprep.subr.bf16.mxu1 %v11774_v51 }
 0x3b2   :  { %3144 = vmatpush1.bf16.msra.mxu1 %v9126_v6  ;;  %v11782_v6 = vld [vmem:[#allocation88_spill] sm:$0xff] }
 0x3b3   :  { %3145 = vmatprep.subr.bf16.mxu1 %v11775_v47  ;;  %v9533_v47 = vcombine.high %v3205_v31, %v3209_v0 }
 0x3b5   :  { %11790 = vst [vmem:[#allocation59_spill] sm:$0xff] %v9533_v47 }
 0x3b6   :  { %3146 = vmatpush1.bf16.msra.mxu1 %v9132_v38  ;;  %v11783_v38 = vmov 0  }
 0x3b7   :  { %3147 = vmatprep.subr.bf16.mxu1 %v11776_v56  ;;  %v3213_v56 = vld [vmem:[#allocation7 + $0x148] sm:$0xff] }
 0x3ba   :  { %3148 = vmatpush1.bf16.msra.mxu1 %v11777_v10  ;;  %v3217_v10 = vld [vmem:[#allocation7 + $0x168] sm:$0xff] }
 0x3bb   :  { %3149 = vmatprep.subr.bf16.mxu1 %v11778_v46  ;;  %v9536_v46 = vcombine.low %v3205_v31, %v3209_v0  ;;  %v3241_v31 = vld [vmem:[#allocation7 + $0x228] sm:$0xff] }
 0x3bd   :  { %11791 = vst [vmem:[#allocation60_spill] sm:$0xff] %v9536_v46 }
 0x3be   :  { %3150 = vmatpush1.bf16.msra.mxu1 %v9144_v20  ;;  %v3181_v20 = vld [vmem:[#allocation7 + $0x48] sm:$0xff] }
 0x3bf   :  { %3151 = vmatprep.subr.bf16.mxu1 %v11779_v54  ;;  %v9539_v54 = vcombine.high %v3213_v56, %v3217_v10 }
 0x3c1   :  { %11792 = vst [vmem:[#allocation61_spill] sm:$0xff] %v9539_v54 }
 0x3c2   :  { %3152 = vmatpush1.bf16.msra.mxu1 %v11780_v53  ;;  %v3221_v53 = vld [vmem:[#allocation7 + $0x188] sm:$0xff] }
 0x3c3   :  { %3153 = vmatprep.subr.bf16.mxu1 %v11781_v32  ;;  %v3225_v32 = vld [vmem:[#allocation7 + $0x1a8] sm:$0xff] }
 0x3c6   :  { %3154 = vmatpush1.bf16.msra.mxu1 %v9158_v62  ;;  %v3185_v62 = vld [vmem:[#allocation7 + $0x68] sm:$0xff] }
 0x3c7   :  { %3155 = vmatprep.subr.bf16.mxu1 %v11782_v6  ;;  %v9542_v6 = vcombine.low %v3213_v56, %v3217_v10  ;;  %v3245_v10 = vld [vmem:[#allocation7 + $0x248] sm:$0xff] }
 0x3c9   :  { %11793 = vst [vmem:[#allocation62_spill] sm:$0xff] %v9542_v6 }
 0x3ca   :  { %3156 = vmatpush1.bf16.msra.mxu1 %v9164_v52  ;;  %v3189_v52 = vld [vmem:[#allocation7 + $0x88] sm:$0xff] }
 0x3cb   :  { %3157 = vmatprep.subr.bf16.mxu1 %v9167_v39  ;;  %v3193_v39 = vld [vmem:[#allocation7 + $0xa8] sm:$0xff] }
 0x3ce   :  { %3158 = vmatpush1.bf16.msra.mxu1 %v9170_v44  ;;  %v9517_v44 = vcombine.low %v3181_v20, %v3185_v62 }
 0x3cf   :  { %3159 = vmatprep.subr.bf16.mxu1 %v9173_v25  ;;  %v9521_v25 = vcombine.high %v3189_v52, %v3193_v39 }
 0x3d0   :  { %11785 = vst [vmem:[#allocation54_spill] sm:$0xff] %v9517_v44 }
 0x3d1   :  { %11786 = vst [vmem:[#allocation55_spill] sm:$0xff] %v9521_v25 }
 0x3d2   :  { %3160 = vmatpush1.bf16.msra.mxu1 %v9176_v3  ;;  %v3197_v3 = vld [vmem:[#allocation7 + $0xc8] sm:$0xff] }
 0x3d3   :  { %3161 = vmatprep.subr.bf16.mxu1 %v9179_v19  ;;  %v3201_v19 = vld [vmem:[#allocation7 + $0xe8] sm:$0xff] }
 0x3d4   :  { %v9527_v33 = vcombine.high %v3197_v3, %v3201_v19  ;;  %v9530_v51 = vcombine.low %v3197_v3, %v3201_v19  ;;  %v3237_v19 = vld [vmem:[#allocation7 + $0x208] sm:$0xff] }
 0x3d5   :  { %v9557_v56 = vcombine.high %v3237_v19, %v3241_v31 }
 0x3d6   :  { %3162 = vmatpush1.bf16.msra.mxu1 %v9182_v37  ;;  %v9513_v37 = vcombine.high %v3181_v20, %v3185_v62  ;;  %11788 = vst [vmem:[#allocation57_spill] sm:$0xff] %v9527_v33  ;;  %11789 = vst [vmem:[#allocation58_spill] sm:$0xff] %v9530_v51  ;;  %v9545_v20 = vcombine.high %v3221_v53, %v3225_v32  ;;  %v3229_v62 = vld [vmem:[#allocation7 + $0x1c8] sm:$0xff] }
 0x3d7   :  { %3940 = vmatprep.subr.bf16.mxu1 %v9310_v61  ;;  %11798 = vst [vmem:[#allocation67_spill] sm:$0xff] %v9557_v56  ;;  %v3262_v61 = vld [vmem:[#allocation7 + $0x2d0] sm:$0xff] }
 0x3d8   :  { %11784 = vst [vmem:[#allocation53_spill] sm:$0xff] %v9513_v37  ;;  %11794 = vst [vmem:[#allocation63_spill] sm:$0xff] %v9545_v20 }
 0x3d9   :  { %3164 = vmatmul.mubr.bf16.vlgmr.msra.gmra.mrb[28].mxu1 %v9265_v58  ;;  %v9524_v58 = vcombine.low %v3189_v52, %v3193_v39  ;;  %v3233_v52 = vld [vmem:[#allocation7 + $0x1e8] sm:$0xff]  ;;  %v9548_v39 = vcombine.low %v3221_v53, %v3225_v32  ;;  %v9560_v53 = vcombine.low %v3237_v19, %v3241_v31  ;;  %v9563_v32 = vcombine.high %v3245_v10, %v3249_v42 }
 0x3da   :  { %3941 = vmatpush1.bf16.msra.mxu1 %v9313_v5  ;;  %3972 = vmatprep.mubr.bf16.mxu1 %v11783_v38  ;;  %v9551_v3 = vcombine.high %v3229_v62, %v3233_v52  ;;  %v9554_v0 = vcombine.low %v3229_v62, %v3233_v52  ;;  %v9566_v62 = vcombine.low %v3245_v10, %v3249_v42  ;;  %v3258_v5 = vld [vmem:[#allocation7 + $0x2b0] sm:$0xff] }
 0x3db   :  { %3942 = vmatprep.subr.bf16.mxu1 %v9319_v49  ;;  %11787 = vst [vmem:[#allocation56_spill] sm:$0xff] %v9524_v58  ;;  %11795 = vst [vmem:[#allocation64_spill] sm:$0xff] %v9548_v39  ;;  %v9569_v52 = vcombine.high %v3253_v41, %v3257_v27  ;;  %v9572_v19 = vcombine.low %v3253_v41, %v3257_v27  ;;  %v3254_v49 = vld [vmem:[#allocation7 + $0x290] sm:$0xff] }
 0x3dc   :  { %11796 = vst [vmem:[#allocation65_spill] sm:$0xff] %v9551_v3  ;;  %11797 = vst [vmem:[#allocation66_spill] sm:$0xff] %v9554_v0 }
 0x3dd   :  { %11799 = vst [vmem:[#allocation68_spill] sm:$0xff] %v9560_v53  ;;  %11800 = vst [vmem:[#allocation69_spill] sm:$0xff] %v9563_v32 }
 0x3de   :  { %3943 = vmatpush1.bf16.msra.mxu1 %v9322_v63  ;;  %11801 = vst [vmem:[#allocation70_spill] sm:$0xff] %v9566_v62  ;;  %11802 = vst [vmem:[#allocation71_spill] sm:$0xff] %v9569_v52  ;;  %v3250_v63 = vld [vmem:[#allocation7 + $0x270] sm:$0xff] }
 0x3df   :  { %3944 = vmatprep.subr.bf16.mxu1 %v9327_v18  ;;  %11803 = vst [vmem:[#allocation72_spill] sm:$0xff] %v9572_v19  ;;  %v3246_v18 = vld [vmem:[#allocation7 + $0x250] sm:$0xff] }
 0x3e2   :  { %3945 = vmatpush1.bf16.msra.mxu1 %v9330_v28  ;;  %v3242_v28 = vld [vmem:[#allocation7 + $0x230] sm:$0xff] }
 0x3e3   :  { %3946 = vmatprep.subr.bf16.mxu1 %v9335_v21  ;;  %v3238_v21 = vld [vmem:[#allocation7 + $0x210] sm:$0xff] }
 0x3e6   :  { %3947 = vmatpush1.bf16.msra.mxu1 %v9338_v55  ;;  %v3234_v55 = vld [vmem:[#allocation7 + $0x1f0] sm:$0xff] }
 0x3e7   :  { %3948 = vmatprep.subr.bf16.mxu1 %v9343_v15  ;;  %v3230_v15 = vld [vmem:[#allocation7 + $0x1d0] sm:$0xff] }
 0x3ea   :  { %3949 = vmatpush1.bf16.msra.mxu1 %v9346_v23  ;;  %v3226_v23 = vld [vmem:[#allocation7 + $0x1b0] sm:$0xff] }
 0x3eb   :  { %3950 = vmatprep.subr.bf16.mxu1 %v9351_v30  ;;  %v3222_v30 = vld [vmem:[#allocation7 + $0x190] sm:$0xff] }
 0x3ee   :  { %3951 = vmatpush1.bf16.msra.mxu1 %v9354_v34  ;;  %v3218_v34 = vld [vmem:[#allocation7 + $0x170] sm:$0xff] }
 0x3ef   :  { %3952 = vmatprep.subr.bf16.mxu1 %v9359_v57  ;;  %v3214_v57 = vld [vmem:[#allocation7 + $0x150] sm:$0xff] }
 0x3f2   :  { %3953 = vmatpush1.bf16.msra.mxu1 %v9362_v36  ;;  %v3210_v36 = vld [vmem:[#allocation7 + $0x130] sm:$0xff] }
 0x3f3   :  { %3954 = vmatprep.subr.bf16.mxu1 %v9367_v8  ;;  %v3206_v8 = vld [vmem:[#allocation7 + $0x110] sm:$0xff] }
 0x3f6   :  { %3955 = vmatpush1.bf16.msra.mxu1 %v9370_v14 }
 0x3f7   :  { %3956 = vmatprep.subr.bf16.mxu1 %v9375_v45 }
 0x3fa   :  { %3957 = vmatpush1.bf16.msra.mxu1 %v9378_v22  ;;  %v3194_v22 = vld [vmem:[#allocation7 + $0xb0] sm:$0xff] }
 0x3fb   :  { %3958 = vmatprep.subr.bf16.mxu1 %v9383_v11  ;;  %v3190_v11 = vld [vmem:[#allocation7 + $0x90] sm:$0xff] }
 0x3fc   :  { %v9622_v45 = vcombine.low %v3190_v11, %v3194_v22 }
 0x3fe   :  { %3959 = vmatpush1.bf16.msra.mxu1 %v9386_v1  ;;  %v3186_v1 = vld [vmem:[#allocation7 + $0x70] sm:$0xff] }
 0x3ff   :  { %3960 = vmatprep.subr.bf16.mxu1 %v9391_v50  ;;  %v3182_v50 = vld [vmem:[#allocation7 + $0x50] sm:$0xff] }
 0x402   :  { %3961 = vmatpush1.bf16.msra.mxu1 %v9394_v9  ;;  %v3178_v9 = vld [vmem:[#allocation7 + $0x30] sm:$0xff] }
 0x403   :  { %3962 = vmatprep.subr.bf16.mxu1 %v9399_v29  ;;  %v3174_v29 = vld [vmem:[#allocation7 + $0x10] sm:$0xff] }
 0x406   :  { %3963 = vmatpush1.bf16.msra.mxu1 %v9402_v24  ;;  %v3297_v24 = vld [vmem:[#allocation7 + $0x3e8] sm:$0xff] }
 0x407   :  { %3964 = vmatprep.subr.bf16.mxu1 %v9407_v17  ;;  %v3293_v17 = vld [vmem:[#allocation7 + $0x3c8] sm:$0xff] }
 0x40a   :  { %3965 = vmatpush1.bf16.msra.mxu1 %v9410_v16  ;;  %v3289_v16 = vld [vmem:[#allocation7 + $0x3a8] sm:$0xff] }
 0x40b   :  { %3966 = vmatprep.subr.bf16.mxu1 %v9415_v35  ;;  %v3285_v35 = vld [vmem:[#allocation7 + $0x388] sm:$0xff] }
 0x40e   :  { %3967 = vmatpush1.bf16.msra.mxu1 %v9418_v43  ;;  %v3281_v43 = vld [vmem:[#allocation7 + $0x368] sm:$0xff] }
 0x40f   :  { %3968 = vmatprep.subr.bf16.mxu1 %v9423_v48  ;;  %v3277_v48 = vld [vmem:[#allocation7 + $0x348] sm:$0xff] }
 0x410   :  { %v9587_v41 = vcombine.high %v3277_v48, %v3281_v43 }
 0x412   :  { %3969 = vmatpush1.bf16.msra.mxu1 %v9426_v40  ;;  %v3273_v40 = vld [vmem:[#allocation7 + $0x328] sm:$0xff]  ;;  %11808 = vst [vmem:[#allocation77_spill] sm:$0xff] %v9587_v41 }
 0x413   :  { %3970 = vmatprep.subr.bf16.mxu1 %v9431_v13  ;;  %v3269_v13 = vld [vmem:[#allocation7 + $0x308] sm:$0xff] }
 0x414   :  { %v9581_v10 = vcombine.high %v3269_v13, %v3273_v40  ;;  %v9584_v27 = vcombine.low %v3269_v13, %v3273_v40  ;;  %v9596_v13 = vcombine.low %v3285_v35, %v3289_v16  ;;  %v9599_v40 = vcombine.high %v3293_v17, %v3297_v24 }
 0x416   :  { %3971 = vmatpush1.bf16.msra.mxu1 %v9434_v60  ;;  %v3265_v60 = vld [vmem:[#allocation7 + $0x2e8] sm:$0xff]  ;;  %11806 = vst [vmem:[#allocation75_spill] sm:$0xff] %v9581_v10  ;;  %11807 = vst [vmem:[#allocation76_spill] sm:$0xff] %v9584_v27 }
 0x417   :  { %3981 = vmatprep.subr.bf16.mxu1 %v9439_v4  ;;  %v9575_v31 = vcombine.high %v3261_v26, %v3265_v60  ;;  %v9578_v42 = vcombine.low %v3261_v26, %v3265_v60  ;;  %v9590_v26 = vcombine.low %v3277_v48, %v3281_v43  ;;  %v9593_v60 = vcombine.high %v3285_v35, %v3289_v16 }
 0x418   :  { %11811 = vst [vmem:[#allocation80_spill] sm:$0xff] %v9596_v13  ;;  %11812 = vst [vmem:[#allocation81_spill] sm:$0xff] %v9599_v40  ;;  %v9602_v48 = vcombine.low %v3293_v17, %v3297_v24  ;;  %v9605_v43 = vcombine.high %v3174_v29, %v3178_v9  ;;  %v9608_v35 = vcombine.low %v3174_v29, %v3178_v9  ;;  %v3198_v29 = vld [vmem:[#allocation7 + $0xd0] sm:$0xff] }
 0x419   :  { %3973 = vmatmul.mubr.bf16.vlgmr.msra.gmra.mrb[16].mxu1 %v11783_v38  ;;  %11804 = vst [vmem:[#allocation73_spill] sm:$0xff] %v9575_v31  ;;  %11805 = vst [vmem:[#allocation74_spill] sm:$0xff] %v9578_v42  ;;  %v9611_v16 = vcombine.high %v3182_v50, %v3186_v1  ;;  %v9615_v17 = vcombine.low %v3182_v50, %v3186_v1  ;;  %v9619_v24 = vcombine.high %v3190_v11, %v3194_v22  ;;  %v3202_v9 = vld [vmem:[#allocation7 + $0xf0] sm:$0xff] }
 0x41a   :  { %3982 = vmatpush1.bf16.msra.mxu1 %v9442_v59  ;;  %4013 = vmatprep.mubr.bf16.mxu1 %v11783_v38  ;;  %11809 = vst [vmem:[#allocation78_spill] sm:$0xff] %v9590_v26  ;;  %11810 = vst [vmem:[#allocation79_spill] sm:$0xff] %v9593_v60  ;;  %v9625_v14 = vcombine.high %v3198_v29, %v3202_v9  ;;  %v9628_v50 = vcombine.low %v3198_v29, %v3202_v9 }
 0x41b   :  { %3983 = vmatprep.subr.bf16.mxu1 %v9513_v37  ;;  %11813 = vst [vmem:[#allocation82_spill] sm:$0xff] %v9602_v48  ;;  %11814 = vst [vmem:[#allocation83_spill] sm:$0xff] %v9605_v43  ;;  %v9631_v1 = vcombine.high %v3206_v8, %v3210_v36  ;;  %v9634_v22 = vcombine.low %v3206_v8, %v3210_v36  ;;  %v9637_v11 = vcombine.high %v3214_v57, %v3218_v34 }
 0x41c   :  { %v9640_v29 = vcombine.low %v3214_v57, %v3218_v34  ;;  %v9643_v9 = vcombine.high %v3222_v30, %v3226_v23  ;;  %v9646_v36 = vcombine.low %v3222_v30, %v3226_v23  ;;  %v9649_v8 = vcombine.high %v3230_v15, %v3234_v55 }
 0x41d   :  { %v9652_v34 = vcombine.low %v3230_v15, %v3234_v55  ;;  %v9655_v57 = vcombine.high %v3238_v21, %v3242_v28  ;;  %v9658_v23 = vcombine.low %v3238_v21, %v3242_v28  ;;  %v9661_v30 = vcombine.high %v3246_v18, %v3250_v63 }
 0x41e   :  { %3984 = vmatpush1.bf16.msra.mxu1 %v9517_v44  ;;  %11815 = vst [vmem:[#allocation84_spill] sm:$0xff] %v9640_v29  ;;  %11816 = vst [vmem:[#allocation85_spill] sm:$0xff] %v9643_v9  ;;  %v9664_v55 = vcombine.low %v3246_v18, %v3250_v63  ;;  %v9667_v15 = vcombine.high %v3254_v49, %v3258_v5  ;;  %v9670_v28 = vcombine.low %v3254_v49, %v3258_v5 }
 0x41f   :  { %3985 = vmatprep.subr.bf16.mxu1 %v9521_v25  ;;  %11817 = vst [vmem:[#allocation86_spill] sm:$0xff] %v9646_v36  ;;  %11818 = vst [vmem:[#allocation87_spill] sm:$0xff] %v9649_v8 }
 0x420   :  { %11819 = vst [vmem:[#allocation88_spill] sm:$0xff] %v9652_v34  ;;  %11820 = vst [vmem:[#allocation107_spill] sm:$0xff] %v9655_v57 }
 0x421   :  { %11821 = vst [vmem:[#allocation108_spill] sm:$0xff] %v9658_v23  ;;  %11822 = vst [vmem:[#allocation109_spill] sm:$0xff] %v9661_v30 }
 0x422   :  { %3986 = vmatpush1.bf16.msra.mxu1 %v9524_v58  ;;  %11823 = vst [vmem:[#allocation110_spill] sm:$0xff] %v9664_v55  ;;  %11824 = vst [vmem:[#allocation111_spill] sm:$0xff] %v9667_v15 }
 0x423   :  { %3987 = vmatprep.subr.bf16.mxu1 %v9527_v33  ;;  %11825 = vst [vmem:[#allocation112_spill] sm:$0xff] %v9670_v28 }
 0x426   :  { %3988 = vmatpush1.bf16.msra.mxu1 %v9530_v51 }
 0x427   :  { %3989 = vmatprep.subr.bf16.mxu1 %v9533_v47 }
 0x42a   :  { %3990 = vmatpush1.bf16.msra.mxu1 %v9536_v46 }
 0x42b   :  { %3991 = vmatprep.subr.bf16.mxu1 %v9539_v54 }
 0x42e   :  { %3992 = vmatpush1.bf16.msra.mxu1 %v9542_v6 }
 0x42f   :  { %3993 = vmatprep.subr.bf16.mxu1 %v9545_v20 }
 0x432   :  { %3994 = vmatpush1.bf16.msra.mxu1 %v9548_v39 }
 0x433   :  { %3995 = vmatprep.subr.bf16.mxu1 %v9551_v3 }
 0x436   :  { %3996 = vmatpush1.bf16.msra.mxu1 %v9554_v0 }
 0x437   :  { %3997 = vmatprep.subr.bf16.mxu1 %v9557_v56 }
 0x43a   :  { %3998 = vmatpush1.bf16.msra.mxu1 %v9560_v53 }
 0x43b   :  { %3999 = vmatprep.subr.bf16.mxu1 %v9563_v32 }
 0x43e   :  { %4000 = vmatpush1.bf16.msra.mxu1 %v9566_v62 }
 0x43f   :  { %4001 = vmatprep.subr.bf16.mxu1 %v9569_v52 }
 0x442   :  { %4002 = vmatpush1.bf16.msra.mxu1 %v9572_v19 }
 0x443   :  { %4003 = vmatprep.subr.bf16.mxu1 %v9575_v31 }
 0x446   :  { %4004 = vmatpush1.bf16.msra.mxu1 %v9578_v42 }
 0x447   :  { %4005 = vmatprep.subr.bf16.mxu1 %v9581_v10 }
 0x44a   :  { %4006 = vmatpush1.bf16.msra.mxu1 %v9584_v27 }
 0x44b   :  { %4007 = vmatprep.subr.bf16.mxu1 %v9587_v41 }
 0x44e   :  { %4008 = vmatpush1.bf16.msra.mxu1 %v9590_v26 }
 0x44f   :  { %4009 = vmatprep.subr.bf16.mxu1 %v9593_v60 }
 0x452   :  { %4010 = vmatpush1.bf16.msra.mxu1 %v9596_v13 }
 0x453   :  { %4011 = vmatprep.subr.bf16.mxu1 %v9599_v40 }
 0x456   :  { %4012 = vmatpush1.bf16.msra.mxu1 %v9602_v48 }
 0x457   :  { %4022 = vmatprep.subr.bf16.mxu1 %v9605_v43 }
 0x459   :  { %4014 = vmatmul.mubr.bf16.vlgmr.msra.gmra.mrb[20].mxu1 %v11783_v38 }
 0x45a   :  { %4023 = vmatpush1.bf16.msra.mxu1 %v9608_v35  ;;  %4054 = vmatprep.mubr.bf16.mxu1 %v11783_v38 }
 0x45b   :  { %4024 = vmatprep.subr.bf16.mxu1 %v9611_v16 }
 0x45e   :  { %4025 = vmatpush1.bf16.msra.mxu1 %v9615_v17 }
 0x45f   :  { %4026 = vmatprep.subr.bf16.mxu1 %v9619_v24 }
 0x462   :  { %4027 = vmatpush1.bf16.msra.mxu1 %v9622_v45 }
 0x463   :  { %4028 = vmatprep.subr.bf16.mxu1 %v9625_v14 }
 0x466   :  { %4029 = vmatpush1.bf16.msra.mxu1 %v9628_v50 }
 0x467   :  { %4030 = vmatprep.subr.bf16.mxu1 %v9631_v1 }
 0x46a   :  { %4031 = vmatpush1.bf16.msra.mxu1 %v9634_v22 }
 0x46b   :  { %4032 = vmatprep.subr.bf16.mxu1 %v9637_v11 }
 0x46e   :  { %4033 = vmatpush1.bf16.msra.mxu1 %v9640_v29 }
 0x46f   :  { %4034 = vmatprep.subr.bf16.mxu1 %v9643_v9 }
 0x472   :  { %4035 = vmatpush1.bf16.msra.mxu1 %v9646_v36  ;;  %v3219_v36 = vld [vmem:[#allocation7 + $0x178] sm:$0xff] }
 0x473   :  { %4036 = vmatprep.subr.bf16.mxu1 %v9649_v8  ;;  %v3266_v8 = vld [vmem:[#allocation7 + $0x2f0] sm:$0xff] }
 0x474   :  { %v9673_v21 = vcombine.high %v3262_v61, %v3266_v8  ;;  %v9676_v63 = vcombine.low %v3262_v61, %v3266_v8 }
 0x476   :  { %4037 = vmatpush1.bf16.msra.mxu1 %v9652_v34  ;;  %11826 = vst [vmem:[#allocation113_spill] sm:$0xff] %v9673_v21  ;;  %v3274_v34 = vld [vmem:[#allocation7 + $0x330] sm:$0xff]  ;;  %11827 = vst [vmem:[#allocation114_spill] sm:$0xff] %v9676_v63 }
 0x477   :  { %4038 = vmatprep.subr.bf16.mxu1 %v9655_v57  ;;  %v3270_v57 = vld [vmem:[#allocation7 + $0x310] sm:$0xff] }
 0x478   :  { %v9679_v18 = vcombine.high %v3270_v57, %v3274_v34  ;;  %v9682_v5 = vcombine.low %v3270_v57, %v3274_v34 }
 0x47a   :  { %4039 = vmatpush1.bf16.msra.mxu1 %v9658_v23  ;;  %11828 = vst [vmem:[#allocation115_spill] sm:$0xff] %v9679_v18  ;;  %v3282_v23 = vld [vmem:[#allocation7 + $0x370] sm:$0xff]  ;;  %11829 = vst [vmem:[#allocation116_spill] sm:$0xff] %v9682_v5 }
 0x47b   :  { %4040 = vmatprep.subr.bf16.mxu1 %v9661_v30  ;;  %v3278_v30 = vld [vmem:[#allocation7 + $0x350] sm:$0xff] }
 0x47c   :  { %v9685_v49 = vcombine.high %v3278_v30, %v3282_v23  ;;  %v9688_v61 = vcombine.low %v3278_v30, %v3282_v23 }
 0x47e   :  { %4041 = vmatpush1.bf16.msra.mxu1 %v9664_v55  ;;  %11830 = vst [vmem:[#allocation117_spill] sm:$0xff] %v9685_v49  ;;  %v3290_v55 = vld [vmem:[#allocation7 + $0x3b0] sm:$0xff]  ;;  %11831 = vst [vmem:[#allocation118_spill] sm:$0xff] %v9688_v61 }
 0x47f   :  { %4042 = vmatprep.subr.bf16.mxu1 %v9667_v15  ;;  %v3286_v15 = vld [vmem:[#allocation7 + $0x390] sm:$0xff] }
 0x480   :  { %v9691_v8 = vcombine.high %v3286_v15, %v3290_v55  ;;  %v9694_v34 = vcombine.low %v3286_v15, %v3290_v55 }
 0x482   :  { %4043 = vmatpush1.bf16.msra.mxu1 %v9670_v28  ;;  %11832 = vst [vmem:[#allocation119_spill] sm:$0xff] %v9691_v8  ;;  %v3298_v28 = vld [vmem:[#allocation7 + $0x3f0] sm:$0xff]  ;;  %11833 = vst [vmem:[#allocation120_spill] sm:$0xff] %v9694_v34 }
 0x483   :  { %4044 = vmatprep.subr.bf16.mxu1 %v9673_v21  ;;  %v3294_v21 = vld [vmem:[#allocation7 + $0x3d0] sm:$0xff] }
 0x484   :  { %v9697_v57 = vcombine.high %v3294_v21, %v3298_v28  ;;  %v9700_v23 = vcombine.low %v3294_v21, %v3298_v28 }
 0x486   :  { %4045 = vmatpush1.bf16.msra.mxu1 %v9676_v63  ;;  %11834 = vst [vmem:[#allocation121_spill] sm:$0xff] %v9697_v57  ;;  %v3179_v63 = vld [vmem:[#allocation7 + $0x38] sm:$0xff]  ;;  %11835 = vst [vmem:[#allocation122_spill] sm:$0xff] %v9700_v23 }
 0x487   :  { %4046 = vmatprep.subr.bf16.mxu1 %v9679_v18  ;;  %v3175_v18 = vld [vmem:[#allocation7 + $0x18] sm:$0xff] }
 0x488   :  { %v9703_v30 = vcombine.high %v3175_v18, %v3179_v63  ;;  %v9706_v55 = vcombine.low %v3175_v18, %v3179_v63  ;;  %v3199_v63 = vld [vmem:[#allocation7 + $0xd8] sm:$0xff] }
 0x489   :  { %v3203_v18 = vld [vmem:[#allocation7 + $0xf8] sm:$0xff] }
 0x48a   :  { %4047 = vmatpush1.bf16.msra.mxu1 %v9682_v5  ;;  %11836 = vst [vmem:[#allocation123_spill] sm:$0xff] %v9703_v30  ;;  %v3187_v5 = vld [vmem:[#allocation7 + $0x78] sm:$0xff]  ;;  %11837 = vst [vmem:[#allocation124_spill] sm:$0xff] %v9706_v55 }
 0x48b   :  { %4048 = vmatprep.subr.bf16.mxu1 %v9685_v49  ;;  %v3183_v49 = vld [vmem:[#allocation7 + $0x58] sm:$0xff] }
 0x48c   :  { %v9709_v15 = vcombine.high %v3183_v49, %v3187_v5  ;;  %v9713_v28 = vcombine.low %v3183_v49, %v3187_v5  ;;  %v9726_v5 = vcombine.low %v3199_v63, %v3203_v18 }
 0x48e   :  { %4049 = vmatpush1.bf16.msra.mxu1 %v9688_v61  ;;  %11838 = vst [vmem:[#allocation125_spill] sm:$0xff] %v9709_v15  ;;  %v3195_v61 = vld [vmem:[#allocation7 + $0xb8] sm:$0xff]  ;;  %11839 = vst [vmem:[#allocation126_spill] sm:$0xff] %v9713_v28 }
 0x48f   :  { %4050 = vmatprep.subr.bf16.mxu1 %v9691_v8  ;;  %v3191_v8 = vld [vmem:[#allocation7 + $0x98] sm:$0xff]  ;;  %11843 = vst [vmem:[#allocation130_spill] sm:$0xff] %v9726_v5 }
 0x490   :  { %v9717_v21 = vcombine.high %v3191_v8, %v3195_v61 }
 0x492   :  { %4051 = vmatpush1.bf16.msra.mxu1 %v9694_v34  ;;  %11840 = vst [vmem:[#allocation127_spill] sm:$0xff] %v9717_v21  ;;  %v3207_v34 = vld [vmem:[#allocation7 + $0x118] sm:$0xff] }
 0x493   :  { %4052 = vmatprep.subr.bf16.mxu1 %v9697_v57  ;;  %v9723_v57 = vcombine.high %v3199_v63, %v3203_v18 }
 0x495   :  { %11842 = vst [vmem:[#allocation129_spill] sm:$0xff] %v9723_v57 }
 0x496   :  { %4053 = vmatpush1.bf16.msra.mxu1 %v9700_v23  ;;  %v9720_v23 = vcombine.low %v3191_v8, %v3195_v61 }
 0x497   :  { %4063 = vmatprep.subr.bf16.mxu1 %v9703_v30 }
 0x498   :  { %11841 = vst [vmem:[#allocation128_spill] sm:$0xff] %v9720_v23 }
 0x499   :  { %4055 = vmatmul.mubr.bf16.vlgmr.msra.gmra.mrb[24].mxu1 %v11783_v38 }
 0x49a   :  { %4064 = vmatpush1.bf16.msra.mxu1 %v9706_v55  ;;  %4095 = vmatprep.mubr.bf16.mxu1 %v11783_v38  ;;  %v3211_v55 = vld [vmem:[#allocation7 + $0x138] sm:$0xff] }
 0x49b   :  { %4065 = vmatprep.subr.bf16.mxu1 %v9709_v15  ;;  %v9729_v49 = vcombine.high %v3207_v34, %v3211_v55  ;;  %v3215_v15 = vld [vmem:[#allocation7 + $0x158] sm:$0xff]  ;;  %v9732_v61 = vcombine.low %v3207_v34, %v3211_v55 }
 0x49c   :  { %v9735_v8 = vcombine.high %v3215_v15, %v3219_v36  ;;  %v9738_v63 = vcombine.low %v3215_v15, %v3219_v36 }
 0x49d   :  { %11844 = vst [vmem:[#allocation131_spill] sm:$0xff] %v9729_v49  ;;  %11845 = vst [vmem:[#allocation132_spill] sm:$0xff] %v9732_v61 }
 0x49e   :  { %4066 = vmatpush1.bf16.msra.mxu1 %v9713_v28  ;;  %11846 = vst [vmem:[#allocation133_spill] sm:$0xff] %v9735_v8  ;;  %v3227_v28 = vld [vmem:[#allocation7 + $0x1b8] sm:$0xff]  ;;  %11847 = vst [vmem:[#allocation134_spill] sm:$0xff] %v9738_v63 }
 0x49f   :  { %4067 = vmatprep.subr.bf16.mxu1 %v9717_v21  ;;  %v3223_v21 = vld [vmem:[#allocation7 + $0x198] sm:$0xff] }
 0x4a0   :  { %v9741_v18 = vcombine.high %v3223_v21, %v3227_v28  ;;  %v9744_v34 = vcombine.low %v3223_v21, %v3227_v28 }
 0x4a2   :  { %4068 = vmatpush1.bf16.msra.mxu1 %v9720_v23  ;;  %11848 = vst [vmem:[#allocation135_spill] sm:$0xff] %v9741_v18  ;;  %v3235_v23 = vld [vmem:[#allocation7 + $0x1f8] sm:$0xff]  ;;  %11849 = vst [vmem:[#allocation136_spill] sm:$0xff] %v9744_v34 }
 0x4a3   :  { %4069 = vmatprep.subr.bf16.mxu1 %v9723_v57  ;;  %v3231_v57 = vld [vmem:[#allocation7 + $0x1d8] sm:$0xff] }
 0x4a4   :  { %v9747_v55 = vcombine.high %v3231_v57, %v3235_v23  ;;  %v9750_v36 = vcombine.low %v3231_v57, %v3235_v23 }
 0x4a6   :  { %4070 = vmatpush1.bf16.msra.mxu1 %v9726_v5  ;;  %11850 = vst [vmem:[#allocation137_spill] sm:$0xff] %v9747_v55  ;;  %v3243_v5 = vld [vmem:[#allocation7 + $0x238] sm:$0xff]  ;;  %11851 = vst [vmem:[#allocation138_spill] sm:$0xff] %v9750_v36 }
 0x4a7   :  { %4071 = vmatprep.subr.bf16.mxu1 %v9729_v49  ;;  %v3239_v49 = vld [vmem:[#allocation7 + $0x218] sm:$0xff] }
 0x4a8   :  { %v9753_v15 = vcombine.high %v3239_v49, %v3243_v5  ;;  %v9756_v28 = vcombine.low %v3239_v49, %v3243_v5 }
 0x4aa   :  { %4072 = vmatpush1.bf16.msra.mxu1 %v9732_v61  ;;  %11852 = vst [vmem:[#allocation139_spill] sm:$0xff] %v9753_v15  ;;  %v3251_v61 = vld [vmem:[#allocation7 + $0x278] sm:$0xff]  ;;  %11853 = vst [vmem:[#allocation140_spill] sm:$0xff] %v9756_v28 }
 0x4ab   :  { %4073 = vmatprep.subr.bf16.mxu1 %v9735_v8  ;;  %v3247_v8 = vld [vmem:[#allocation7 + $0x258] sm:$0xff] }
 0x4ac   :  { %v9759_v21 = vcombine.high %v3247_v8, %v3251_v61  ;;  %v9762_v57 = vcombine.low %v3247_v8, %v3251_v61 }
 0x4ae   :  { %4074 = vmatpush1.bf16.msra.mxu1 %v9738_v63  ;;  %11854 = vst [vmem:[#allocation141_spill] sm:$0xff] %v9759_v21  ;;  %v3259_v63 = vld [vmem:[#allocation7 + $0x2b8] sm:$0xff]  ;;  %11855 = vst [vmem:[#allocation142_spill] sm:$0xff] %v9762_v57 }
 0x4af   :  { %4075 = vmatprep.subr.bf16.mxu1 %v9741_v18  ;;  %v3255_v18 = vld [vmem:[#allocation7 + $0x298] sm:$0xff] }
 0x4b0   :  { %v9765_v23 = vcombine.high %v3255_v18, %v3259_v63  ;;  %v9768_v5 = vcombine.low %v3255_v18, %v3259_v63 }
 0x4b2   :  { %4076 = vmatpush1.bf16.msra.mxu1 %v9744_v34  ;;  %11856 = vst [vmem:[#allocation143_spill] sm:$0xff] %v9765_v23  ;;  %v3267_v34 = vld [vmem:[#allocation7 + $0x2f8] sm:$0xff]  ;;  %11857 = vst [vmem:[#allocation144_spill] sm:$0xff] %v9768_v5 }
 0x4b3   :  { %4077 = vmatprep.subr.bf16.mxu1 %v9747_v55  ;;  %v3263_v55 = vld [vmem:[#allocation7 + $0x2d8] sm:$0xff] }
 0x4b4   :  { %v9771_v49 = vcombine.high %v3263_v55, %v3267_v34  ;;  %v9774_v61 = vcombine.low %v3263_v55, %v3267_v34 }
 0x4b6   :  { %4078 = vmatpush1.bf16.msra.mxu1 %v9750_v36  ;;  %11858 = vst [vmem:[#allocation145_spill] sm:$0xff] %v9771_v49  ;;  %v3275_v36 = vld [vmem:[#allocation7 + $0x338] sm:$0xff]  ;;  %11859 = vst [vmem:[#allocation146_spill] sm:$0xff] %v9774_v61 }
 0x4b7   :  { %4079 = vmatprep.subr.bf16.mxu1 %v9753_v15  ;;  %v3271_v15 = vld [vmem:[#allocation7 + $0x318] sm:$0xff] }
 0x4b8   :  { %v9777_v8 = vcombine.high %v3271_v15, %v3275_v36  ;;  %v9780_v63 = vcombine.low %v3271_v15, %v3275_v36 }
 0x4ba   :  { %4080 = vmatpush1.bf16.msra.mxu1 %v9756_v28  ;;  %11860 = vst [vmem:[#allocation147_spill] sm:$0xff] %v9777_v8  ;;  %v3283_v28 = vld [vmem:[#allocation7 + $0x378] sm:$0xff]  ;;  %11861 = vst [vmem:[#allocation148_spill] sm:$0xff] %v9780_v63 }
 0x4bb   :  { %4081 = vmatprep.subr.bf16.mxu1 %v9759_v21  ;;  %v3279_v21 = vld [vmem:[#allocation7 + $0x358] sm:$0xff] }
 0x4bc   :  { %v9783_v18 = vcombine.high %v3279_v21, %v3283_v28  ;;  %v9786_v34 = vcombine.low %v3279_v21, %v3283_v28 }
 0x4be   :  { %4082 = vmatpush1.bf16.msra.mxu1 %v9762_v57  ;;  %11862 = vst [vmem:[#allocation149_spill] sm:$0xff] %v9783_v18  ;;  %v3291_v57 = vld [vmem:[#allocation7 + $0x3b8] sm:$0xff]  ;;  %11863 = vst [vmem:[#allocation150_spill] sm:$0xff] %v9786_v34 }
 0x4bf   :  { %4083 = vmatprep.subr.bf16.mxu1 %v9765_v23  ;;  %v3287_v23 = vld [vmem:[#allocation7 + $0x398] sm:$0xff] }
 0x4c0   :  { %v9789_v55 = vcombine.high %v3287_v23, %v3291_v57  ;;  %v9792_v36 = vcombine.low %v3287_v23, %v3291_v57 }
 0x4c2   :  { %4084 = vmatpush1.bf16.msra.mxu1 %v9768_v5  ;;  %11864 = vst [vmem:[#allocation151_spill] sm:$0xff] %v9789_v55  ;;  %v3299_v5 = vld [vmem:[#allocation7 + $0x3f8] sm:$0xff]  ;;  %11865 = vst [vmem:[#allocation152_spill] sm:$0xff] %v9792_v36 }
 0x4c3   :  { %4085 = vmatprep.subr.bf16.mxu1 %v9771_v49  ;;  %v3295_v49 = vld [vmem:[#allocation7 + $0x3d8] sm:$0xff] }
 0x4c4   :  { %v9795_v15 = vcombine.high %v3295_v49, %v3299_v5 }
 0x4c6   :  { %4086 = vmatpush1.bf16.msra.mxu1 %v9774_v61  ;;  %11866 = vst [vmem:[#allocation153_spill] sm:$0xff] %v9795_v15 }
 0x4c7   :  { %4087 = vmatprep.subr.bf16.mxu1 %v9777_v8  ;;  %v9798_v8 = vcombine.low %v3295_v49, %v3299_v5 }
 0x4c9   :  { %11867 = vst [vmem:[#allocation154_spill] sm:$0xff] %v9798_v8 }
 0x4ca   :  { %4088 = vmatpush1.bf16.msra.mxu1 %v9780_v63 }
 0x4cb   :  { %4089 = vmatprep.subr.bf16.mxu1 %v9783_v18 }
 0x4ce   :  { %4090 = vmatpush1.bf16.msra.mxu1 %v9786_v34 }
 0x4cf   :  { %4091 = vmatprep.subr.bf16.mxu1 %v9789_v55 }
 0x4d2   :  { %4092 = vmatpush1.bf16.msra.mxu1 %v9792_v36 }
 0x4d3   :  { %4093 = vmatprep.subr.bf16.mxu1 %v9795_v15 }
 0x4d6   :  { %4094 = vmatpush1.bf16.msra.mxu1 %v9798_v8  ;;  %v11477_v8 = vsub.s32 3, %v8706_v12 }
 0x4d7   :  { %4425 = vmatprep.subr.bf16.mxu1 %v9439_v4  ;;  %v11472_v4 = vsub.s32 2, %v8706_v12 }
 0x4d9   :  { %4096 = vmatmul.mubr.bf16.vlgmr.msra.gmra.mrb[28].mxu1 %v11783_v38  ;;  %v2140_v38 = vld [vmem:[%s11215_s6] sm:$0xff] }
 0x4da   :  { %4426 = vmatpush1.bf16.msra.mxu1 %v9442_v59  ;;  %v9842_v15 = vrot.slane %v2140_v38, %v9248_v2  ;;  %v9845_v36 = vrot.slane %v2140_v38, %v9251_v7  ;;  %v9849_v55 = vrot.slane %v2140_v38, %v11472_v4 }
 0x4db   :  { %4427 = vmatprep.subr.bf16.mxu1 %v9513_v37 }
 0x4dc   :  { %11868 = vst [vmem:[#allocation155_spill] sm:$0xff] %v9842_v15  ;;  %11869 = vst [vmem:[#allocation156_spill] sm:$0xff] %v9845_v36 }
 0x4dd   :  { %11870 = vst [vmem:[#allocation157_spill] sm:$0xff] %v9849_v55 }
 0x4de   :  { %4428 = vmatpush1.bf16.msra.mxu1 %v9517_v44 }
 0x4df   :  { %4429 = vmatprep.subr.bf16.mxu1 %v9521_v25 }
 0x4e2   :  { %4430 = vmatpush1.bf16.msra.mxu1 %v9524_v58 }
 0x4e3   :  { %4431 = vmatprep.subr.bf16.mxu1 %v9527_v33 }
 0x4e6   :  { %4432 = vmatpush1.bf16.msra.mxu1 %v9530_v51 }
 0x4e7   :  { %4433 = vmatprep.subr.bf16.mxu1 %v9533_v47 }
 0x4ea   :  { %4434 = vmatpush1.bf16.msra.mxu1 %v9536_v46 }
 0x4eb   :  { %4435 = vmatprep.subr.bf16.mxu1 %v9539_v54 }
 0x4ec   :  { %v3974_v28 = vpop.f32.mrb[16].mxu1 }
 0x4ed   :  { %v3976_v21 = vpop.f32.mrb[17].mxu1 }
 0x4ee   :  { %v3978_v57 = vpop.f32.mrb[18].mxu1  ;;  %4436 = vmatpush1.bf16.msra.mxu1 %v9542_v6  ;;  %v7580_v34 = vadd.f32 %v3976_v21, %v9845_v36  ;;  %v2166_v21 = vsub.s32 5, %v8706_v12 }
 0x4ef   :  { %v3979_v23 = vpop.f32.mrb[19].mxu1  ;;  %4437 = vmatprep.subr.bf16.mxu1 %v9545_v20 }
 0x4f0   :  { %v7421_v61 = vmul.f32 -1.442695, %v7580_v34 }
 0x4f2   :  { %4438 = vmatpush1.bf16.msra.mxu1 %v9548_v39 }
 0x4f3   :  { %4439 = vmatprep.subr.bf16.mxu1 %v9551_v3 }
 0x4f6   :  { %4440 = vmatpush1.bf16.msra.mxu1 %v9554_v0 }
 0x4f7   :  { %4441 = vmatprep.subr.bf16.mxu1 %v9557_v56 }
 0x4fa   :  { %4442 = vmatpush1.bf16.msra.mxu1 %v9560_v53 }
 0x4fb   :  { %4443 = vmatprep.subr.bf16.mxu1 %v9563_v32 }
 0x4fe   :  { %4444 = vmatpush1.bf16.msra.mxu1 %v9566_v62 }
 0x4ff   :  { %4445 = vmatprep.subr.bf16.mxu1 %v9569_v52 }
 0x502   :  { %4446 = vmatpush1.bf16.msra.mxu1 %v9572_v19 }
 0x503   :  { %4447 = vmatprep.subr.bf16.mxu1 %v9575_v31 }
 0x506   :  { %4448 = vmatpush1.bf16.msra.mxu1 %v9578_v42 }
 0x507   :  { %4449 = vmatprep.subr.bf16.mxu1 %v9581_v10 }
 0x50a   :  { %4450 = vmatpush1.bf16.msra.mxu1 %v9584_v27 }
 0x50b   :  { %4451 = vmatprep.subr.bf16.mxu1 %v9587_v41 }
 0x50e   :  { %4452 = vmatpush1.bf16.msra.mxu1 %v9590_v26 }
 0x50f   :  { %4453 = vmatprep.subr.bf16.mxu1 %v9593_v60 }
 0x512   :  { %4454 = vmatpush1.bf16.msra.mxu1 %v9596_v13 }
 0x513   :  { %4455 = vmatprep.subr.bf16.mxu1 %v9599_v40 }
 0x516   :  { %4456 = vmatpush1.bf16.msra.mxu1 %v9602_v48 }
 0x517   :  { %4507 = vmatprep.subr.bf16.mxu1 %v9703_v30 }
 0x52c   :  { %v4015_v5 = vpop.f32.mrb[20].mxu1 }
 0x52d   :  { %v4017_v49 = vpop.f32.mrb[21].mxu1  ;;  %v7581_v18 = vadd.f32 %v4015_v5, %v9849_v55 }
 0x52e   :  { %v4019_v57 = vpop.f32.mrb[22].mxu1 }
 0x52f   :  { %v4020_v23 = vpop.f32.mrb[23].mxu1  ;;  %v7579_v57 = vadd.f32 %v3974_v28, %v9842_v15  ;;  %v7422_v7 = vmul.f32 -1.442695, %v7581_v18 }
 0x530   :  { %v9854_v23 = vrot.slane %v2140_v38, %v11477_v8  ;;  %v2162_v8 = vsub.s32 4, %v8706_v12 }
 0x531   :  { %v7420_v63 = vmul.f32 -1.442695, %v7579_v57 }
 0x532   :  { %11871 = vst [vmem:[#allocation158_spill] sm:$0xff] %v9854_v23  ;;  %v7582_v2 = vadd.f32 %v4017_v49, %v9854_v23  ;;  %v9861_v57 = vrot.slane %v2140_v38, %v2162_v8 }
 0x533   :  { %8125 = vpow2.f32 %v7420_v63 }
 0x534   :  { %v7423_v30 = vmul.f32 -1.442695, %v7582_v2  ;;  %8127 = vpow2.f32 %v7421_v61  ;;  %11872 = vst [vmem:[#allocation159_spill] sm:$0xff] %v9861_v57  ;;  %v9863_v2 = vrot.slane %v2140_v38, %v2166_v21 }
 0x535   :  { %8129 = vpow2.f32 %v7422_v7 }
 0x536   :  { %8131 = vpow2.f32 %v7423_v30  ;;  %11873 = vst [vmem:[#allocation160_spill] sm:$0xff] %v9863_v2 }
 0x53d   :  { %v8126_v4 = vpop.eup %8125 }
 0x53e   :  { %v8128_v28 = vpop.eup %8127  ;;  %v4124_v29 = vadd.f32 1.0, %v8126_v4 }
 0x53f   :  { %v8130_v15 = vpop.eup %8129  ;;  %v4125_v5 = vadd.f32 1.0, %v8128_v28 }
 0x540   :  { %v8132_v9 = vpop.eup %8131  ;;  %v4126_v55 = vadd.f32 1.0, %v8130_v15  ;;  %8133 = vrcp.f32 %v4124_v29 }
 0x541   :  { %v4127_v49 = vadd.f32 1.0, %v8132_v9  ;;  %8135 = vrcp.f32 %v4125_v5 }
 0x542   :  { %8137 = vrcp.f32 %v4126_v55 }
 0x543   :  { %8139 = vrcp.f32 %v4127_v49  ;;  %v2170_v49 = vsub.s32 6, %v8706_v12 }
 0x54a   :  { %v8134_v34 = vpop.eup %8133 }
 0x54b   :  { %v8136_v9 = vpop.eup %8135 }
 0x54c   :  { %v8138_v8 = vpop.eup %8137 }
 0x54d   :  { %v8140_v15 = vpop.eup %8139  ;;  %v4150_v21 = vmul.f32 0.0, %v8138_v8 }
 0x54e   :  { %v4151_v23 = vmul.f32 0.0, %v8140_v15 }
 0x56c   :  { %v4056_v7 = vpop.f32.mrb[24].mxu1 }
 0x56d   :  { %v7583_v30 = vadd.f32 %v4056_v7, %v9861_v57  ;;  %v4058_v61 = vpop.f32.mrb[25].mxu1 }
 0x56e   :  { %v7584_v63 = vadd.f32 %v4058_v61, %v9863_v2  ;;  %v4060_v4 = vpop.f32.mrb[26].mxu1  ;;  %v9873_v61 = vrot.slane %v2140_v38, %v2170_v49 }
 0x56f   :  { %8141 = vtanh.f32 %v7583_v30  ;;  %v4061_v18 = vpop.f32.mrb[27].mxu1  ;;  %v2174_v30 = vsub.s32 7, %v8706_v12  ;;  %v11890_v12 = vld [vmem:[#allocation116_spill] sm:$0xff] }
 0x570   :  { %8143 = vtanh.f32 %v7584_v63  ;;  %11874 = vst [vmem:[#allocation161_spill] sm:$0xff] %v9873_v61 }
 0x571   :  { %v9875_v63 = vrot.slane %v2140_v38, %v2174_v30 }
 0x573   :  { %11875 = vst [vmem:[#allocation162_spill] sm:$0xff] %v9875_v63 }
 0x579   :  { %v8142_v29 = vpop.eup %8141 }
 0x57a   :  { %v8144_v28 = vpop.eup %8143  ;;  %v4152_v5 = vmul.f32 %v8142_v29, %v8134_v34 }
 0x57b   :  { %v4153_v55 = vmul.f32 %v8144_v28, %v8136_v9 }
 0x57c   :  { %v9867_v36 = vadd.f32 %v4152_v5, %v4150_v21 }
 0x57d   :  { %v9869_v7 = vadd.f32 %v4153_v55, %v4151_v23 }
 0x5ac   :  { %v4097_v4 = vpop.f32.mrb[28].mxu1 }
 0x5ad   :  { %v7585_v18 = vadd.f32 %v4097_v4, %v9873_v61  ;;  %v4099_v2 = vpop.f32.mrb[29].mxu1 }
 0x5ae   :  { %v7586_v34 = vadd.f32 %v4099_v2, %v9875_v63  ;;  %v4101_v8 = vpop.f32.mrb[30].mxu1 }
 0x5af   :  { %v7424_v9 = vmul.f32 -1.442695, %v7585_v18  ;;  %v4102_v15 = vpop.f32.mrb[31].mxu1  ;;  %v11876_v8 = vld [vmem:[#allocation84_spill] sm:$0xff] }
 0x5b0   :  { %v7425_v29 = vmul.f32 -1.442695, %v7586_v34  ;;  %v11878_v15 = vld [vmem:[#allocation86_spill] sm:$0xff] }
 0x5b1   :  { %8145 = vpow2.f32 %v7424_v9  ;;  %v11877_v9 = vld [vmem:[#allocation85_spill] sm:$0xff] }
 0x5b2   :  { %8147 = vpow2.f32 %v7425_v29  ;;  %v11879_v29 = vld [vmem:[#allocation87_spill] sm:$0xff] }
 0x5b3   :  { %8149 = vtanh.f32 %v9867_v36 }
 0x5b4   :  { %8151 = vtanh.f32 %v9869_v7 }
 0x5bb   :  { %v8146_v23 = vpop.eup %8145 }
 0x5bc   :  { %v8148_v28 = vpop.eup %8147  ;;  %v4144_v21 = vadd.f32 1.0, %v8146_v23  ;;  %v11880_v23 = vld [vmem:[#allocation88_spill] sm:$0xff] }
 0x5bd   :  { %v4145_v38 = vadd.f32 1.0, %v8148_v28  ;;  %v8150_v5 = vpop.eup %8149  ;;  %v11881_v28 = vld [vmem:[#allocation107_spill] sm:$0xff] }
 0x5be   :  { %8153 = vrcp.f32 %v4144_v21  ;;  %v8152_v55 = vpop.eup %8151  ;;  %v11882_v21 = vld [vmem:[#allocation108_spill] sm:$0xff] }
 0x5bf   :  { %8155 = vrcp.f32 %v4145_v38  ;;  %v11883_v38 = vld [vmem:[#allocation109_spill] sm:$0xff] }
 0x5c8   :  { %v8154_v49 = vpop.eup %8153 }
 0x5c9   :  { %v8156_v2 = vpop.eup %8155  ;;  %v4158_v30 = vmul.f32 %v8154_v49, %v8150_v5  ;;  %v11884_v5 = vld [vmem:[#allocation110_spill] sm:$0xff]  ;;  %v11886_v49 = vld [vmem:[#allocation112_spill] sm:$0xff] }
 0x5ca   :  { %v4159_v4 = vmul.f32 %v8156_v2, %v8152_v55  ;;  %v11885_v55 = vld [vmem:[#allocation111_spill] sm:$0xff]  ;;  %v11887_v2 = vld [vmem:[#allocation113_spill] sm:$0xff] }
 0x5cb   :  { %v9883_v34 = vpack.c.bf16 %v4158_v30, %v4158_v30  ;;  %v11888_v30 = vld [vmem:[#allocation114_spill] sm:$0xff] }
 0x5cc   :  { %v9881_v18 = vpack.c.bf16 %v4159_v4, %v4159_v4  ;;  %v11889_v4 = vld [vmem:[#allocation115_spill] sm:$0xff] }
 0x5ce   :  { %4194 = vmatprep.mubr.bf16.mxu0 %v9881_v18 }
 0x5cf   :  { %4195 = vmatmul.mubr.bf16.vlgmr.msra.gmra.mrb[4].mxu0 %v9883_v34 }
 0x5d0   :  { %4204 = vmatpush1.bf16.msra.mxu0 %v9442_v59  ;;  %4235 = vmatprep.mubr.bf16.mxu0 %v9881_v18  ;;  %v11923_v59 = vld [vmem:[#allocation149_spill] sm:$0xff] }
 0x5d1   :  { %4205 = vmatprep.subr.bf16.mxu0 %v9513_v37  ;;  %v11922_v37 = vld [vmem:[#allocation148_spill] sm:$0xff] }
 0x5d4   :  { %4206 = vmatpush1.bf16.msra.mxu0 %v9517_v44  ;;  %v11921_v44 = vld [vmem:[#allocation147_spill] sm:$0xff] }
 0x5d5   :  { %4207 = vmatprep.subr.bf16.mxu0 %v9521_v25  ;;  %v11920_v25 = vld [vmem:[#allocation146_spill] sm:$0xff] }
 0x5d8   :  { %4208 = vmatpush1.bf16.msra.mxu0 %v9524_v58  ;;  %v11919_v58 = vld [vmem:[#allocation145_spill] sm:$0xff] }
 0x5d9   :  { %4209 = vmatprep.subr.bf16.mxu0 %v9527_v33  ;;  %v11918_v33 = vld [vmem:[#allocation144_spill] sm:$0xff] }
 0x5dc   :  { %4210 = vmatpush1.bf16.msra.mxu0 %v9530_v51  ;;  %v11917_v51 = vld [vmem:[#allocation143_spill] sm:$0xff] }
 0x5dd   :  { %4211 = vmatprep.subr.bf16.mxu0 %v9533_v47  ;;  %v11916_v47 = vld [vmem:[#allocation142_spill] sm:$0xff] }
 0x5e0   :  { %4212 = vmatpush1.bf16.msra.mxu0 %v9536_v46  ;;  %v11915_v46 = vld [vmem:[#allocation141_spill] sm:$0xff] }
 0x5e1   :  { %4213 = vmatprep.subr.bf16.mxu0 %v9539_v54  ;;  %v11914_v54 = vld [vmem:[#allocation140_spill] sm:$0xff] }
 0x5e4   :  { %4214 = vmatpush1.bf16.msra.mxu0 %v9542_v6  ;;  %v11913_v6 = vld [vmem:[#allocation139_spill] sm:$0xff] }
 0x5e5   :  { %4215 = vmatprep.subr.bf16.mxu0 %v9545_v20  ;;  %v11912_v20 = vld [vmem:[#allocation138_spill] sm:$0xff] }
 0x5e8   :  { %4216 = vmatpush1.bf16.msra.mxu0 %v9548_v39  ;;  %v11911_v39 = vld [vmem:[#allocation137_spill] sm:$0xff] }
 0x5e9   :  { %4217 = vmatprep.subr.bf16.mxu0 %v9551_v3  ;;  %v11910_v3 = vld [vmem:[#allocation136_spill] sm:$0xff] }
 0x5ec   :  { %4218 = vmatpush1.bf16.msra.mxu0 %v9554_v0  ;;  %v11908_v0 = vld [vmem:[#allocation134_spill] sm:$0xff] }
 0x5ed   :  { %4219 = vmatprep.subr.bf16.mxu0 %v9557_v56  ;;  %v11907_v56 = vld [vmem:[#allocation133_spill] sm:$0xff] }
 0x5f0   :  { %4220 = vmatpush1.bf16.msra.mxu0 %v9560_v53  ;;  %v11905_v53 = vld [vmem:[#allocation131_spill] sm:$0xff] }
 0x5f1   :  { %4221 = vmatprep.subr.bf16.mxu0 %v9563_v32  ;;  %v11904_v32 = vld [vmem:[#allocation130_spill] sm:$0xff] }
 0x5f4   :  { %4222 = vmatpush1.bf16.msra.mxu0 %v9566_v62  ;;  %v11903_v62 = vld [vmem:[#allocation129_spill] sm:$0xff] }
 0x5f5   :  { %4223 = vmatprep.subr.bf16.mxu0 %v9569_v52  ;;  %v11902_v52 = vld [vmem:[#allocation128_spill] sm:$0xff] }
 0x5f8   :  { %4224 = vmatpush1.bf16.msra.mxu0 %v9572_v19  ;;  %v11901_v19 = vld [vmem:[#allocation127_spill] sm:$0xff] }
 0x5f9   :  { %4225 = vmatprep.subr.bf16.mxu0 %v9575_v31  ;;  %v11900_v31 = vld [vmem:[#allocation126_spill] sm:$0xff] }
 0x5fc   :  { %4226 = vmatpush1.bf16.msra.mxu0 %v9578_v42  ;;  %v11899_v42 = vld [vmem:[#allocation125_spill] sm:$0xff] }
 0x5fd   :  { %4227 = vmatprep.subr.bf16.mxu0 %v9581_v10  ;;  %v11898_v10 = vld [vmem:[#allocation124_spill] sm:$0xff] }
 0x600   :  { %4228 = vmatpush1.bf16.msra.mxu0 %v9584_v27  ;;  %v11897_v27 = vld [vmem:[#allocation123_spill] sm:$0xff] }
 0x601   :  { %4229 = vmatprep.subr.bf16.mxu0 %v9587_v41  ;;  %v11896_v41 = vld [vmem:[#allocation122_spill] sm:$0xff] }
 0x604   :  { %4230 = vmatpush1.bf16.msra.mxu0 %v9590_v26  ;;  %v11895_v26 = vld [vmem:[#allocation121_spill] sm:$0xff] }
 0x605   :  { %4231 = vmatprep.subr.bf16.mxu0 %v9593_v60  ;;  %v11894_v60 = vld [vmem:[#allocation120_spill] sm:$0xff] }
 0x608   :  { %4232 = vmatpush1.bf16.msra.mxu0 %v9596_v13  ;;  %v11893_v13 = vld [vmem:[#allocation119_spill] sm:$0xff] }
 0x609   :  { %4233 = vmatprep.subr.bf16.mxu0 %v9599_v40  ;;  %v11892_v40 = vld [vmem:[#allocation118_spill] sm:$0xff] }
 0x60c   :  { %4234 = vmatpush1.bf16.msra.mxu0 %v9602_v48  ;;  %v11891_v48 = vld [vmem:[#allocation117_spill] sm:$0xff] }
 0x60d   :  { %4244 = vmatprep.subr.bf16.mxu0 %v9605_v43 }
 0x60f   :  { %4236 = vmatmul.mubr.bf16.vlgmr.msra.gmra.mrb[8].mxu0 %v9883_v34 }
 0x610   :  { %4245 = vmatpush1.bf16.msra.mxu0 %v9608_v35  ;;  %4276 = vmatprep.mubr.bf16.mxu0 %v9881_v18 }
 0x611   :  { %4246 = vmatprep.subr.bf16.mxu0 %v9611_v16 }
 0x614   :  { %4247 = vmatpush1.bf16.msra.mxu0 %v9615_v17 }
 0x615   :  { %4248 = vmatprep.subr.bf16.mxu0 %v9619_v24 }
 0x618   :  { %4249 = vmatpush1.bf16.msra.mxu0 %v9622_v45 }
 0x619   :  { %4250 = vmatprep.subr.bf16.mxu0 %v9625_v14 }
 0x61c   :  { %4251 = vmatpush1.bf16.msra.mxu0 %v9628_v50 }
 0x61d   :  { %4252 = vmatprep.subr.bf16.mxu0 %v9631_v1 }
 0x620   :  { %4253 = vmatpush1.bf16.msra.mxu0 %v9634_v22 }
 0x621   :  { %4254 = vmatprep.subr.bf16.mxu0 %v9637_v11 }
 0x624   :  { %4255 = vmatpush1.bf16.msra.mxu0 %v11876_v8 }
 0x625   :  { %4256 = vmatprep.subr.bf16.mxu0 %v11877_v9 }
 0x628   :  { %4257 = vmatpush1.bf16.msra.mxu0 %v11878_v15 }
 0x629   :  { %4258 = vmatprep.subr.bf16.mxu0 %v11879_v29 }
 0x62c   :  { %4259 = vmatpush1.bf16.msra.mxu0 %v11880_v23 }
 0x62d   :  { %4260 = vmatprep.subr.bf16.mxu0 %v11881_v28 }
 0x630   :  { %4261 = vmatpush1.bf16.msra.mxu0 %v11882_v21 }
 0x631   :  { %4262 = vmatprep.subr.bf16.mxu0 %v11883_v38 }
 0x634   :  { %4263 = vmatpush1.bf16.msra.mxu0 %v11884_v5 }
 0x635   :  { %4264 = vmatprep.subr.bf16.mxu0 %v11885_v55 }
 0x638   :  { %4265 = vmatpush1.bf16.msra.mxu0 %v11886_v49 }
 0x639   :  { %4266 = vmatprep.subr.bf16.mxu0 %v11887_v2 }
 0x63c   :  { %4267 = vmatpush1.bf16.msra.mxu0 %v11888_v30  ;;  %v11961_v30 = vld [vmem:[#allocation155_spill] sm:$0xff] }
 0x63d   :  { %4268 = vmatprep.subr.bf16.mxu0 %v11889_v4 }
 0x640   :  { %4269 = vmatpush1.bf16.msra.mxu0 %v11890_v12  ;;  %v11930_v12 = vld [vmem:[#allocation20_spill] sm:$0xff] }
 0x641   :  { %4270 = vmatprep.subr.bf16.mxu0 %v11891_v48  ;;  %v11929_v48 = vld [vmem:[#allocation19_spill] sm:$0xff] }
 0x644   :  { %4271 = vmatpush1.bf16.msra.mxu0 %v11892_v40  ;;  %v11928_v40 = vld [vmem:[#allocation154_spill] sm:$0xff] }
 0x645   :  { %4272 = vmatprep.subr.bf16.mxu0 %v11893_v13  ;;  %v11927_v13 = vld [vmem:[#allocation153_spill] sm:$0xff] }
 0x648   :  { %4273 = vmatpush1.bf16.msra.mxu0 %v11894_v60  ;;  %v11926_v60 = vld [vmem:[#allocation152_spill] sm:$0xff] }
 0x649   :  { %4274 = vmatprep.subr.bf16.mxu0 %v11895_v26  ;;  %v11925_v26 = vld [vmem:[#allocation151_spill] sm:$0xff] }
 0x64c   :  { %4275 = vmatpush1.bf16.msra.mxu0 %v11896_v41  ;;  %v11924_v41 = vld [vmem:[#allocation150_spill] sm:$0xff] }
 0x64d   :  { %4285 = vmatprep.subr.bf16.mxu0 %v11897_v27  ;;  %v11906_v27 = vld [vmem:[#allocation132_spill] sm:$0xff] }
 0x64f   :  { %4277 = vmatmul.mubr.bf16.vlgmr.msra.gmra.mrb[12].mxu0 %v9883_v34 }
 0x650   :  { %4286 = vmatpush1.bf16.msra.mxu0 %v11898_v10  ;;  %4317 = vmatprep.mubr.bf16.mxu0 %v9881_v18  ;;  %v11909_v18 = vld [vmem:[#allocation135_spill] sm:$0xff] }
 0x651   :  { %4287 = vmatprep.subr.bf16.mxu0 %v11899_v42 }
 0x654   :  { %4288 = vmatpush1.bf16.msra.mxu0 %v11900_v31 }
 0x655   :  { %4289 = vmatprep.subr.bf16.mxu0 %v11901_v19 }
 0x658   :  { %4290 = vmatpush1.bf16.msra.mxu0 %v11902_v52 }
 0x659   :  { %4291 = vmatprep.subr.bf16.mxu0 %v11903_v62 }
 0x65c   :  { %4292 = vmatpush1.bf16.msra.mxu0 %v11904_v32 }
 0x65d   :  { %4293 = vmatprep.subr.bf16.mxu0 %v11905_v53 }
 0x660   :  { %4294 = vmatpush1.bf16.msra.mxu0 %v11906_v27 }
 0x661   :  { %4295 = vmatprep.subr.bf16.mxu0 %v11907_v56 }
 0x664   :  { %4296 = vmatpush1.bf16.msra.mxu0 %v11908_v0 }
 0x665   :  { %4297 = vmatprep.subr.bf16.mxu0 %v11909_v18 }
 0x668   :  { %4298 = vmatpush1.bf16.msra.mxu0 %v11910_v3 }
 0x669   :  { %4299 = vmatprep.subr.bf16.mxu0 %v11911_v39 }
 0x66c   :  { %4300 = vmatpush1.bf16.msra.mxu0 %v11912_v20 }
 0x66d   :  { %4301 = vmatprep.subr.bf16.mxu0 %v11913_v6 }
 0x670   :  { %4302 = vmatpush1.bf16.msra.mxu0 %v11914_v54 }
 0x671   :  { %4303 = vmatprep.subr.bf16.mxu0 %v11915_v46 }
 0x674   :  { %4304 = vmatpush1.bf16.msra.mxu0 %v11916_v47 }
 0x675   :  { %4305 = vmatprep.subr.bf16.mxu0 %v11917_v51 }
 0x678   :  { %4306 = vmatpush1.bf16.msra.mxu0 %v11918_v33 }
 0x679   :  { %4307 = vmatprep.subr.bf16.mxu0 %v11919_v58 }
 0x67c   :  { %4308 = vmatpush1.bf16.msra.mxu0 %v11920_v25  ;;  %v11941_v25 = vld [vmem:[#allocation31_spill] sm:$0xff] }
 0x67d   :  { %4309 = vmatprep.subr.bf16.mxu0 %v11921_v44  ;;  %v11931_v44 = vld [vmem:[#allocation21_spill] sm:$0xff] }
 0x680   :  { %4310 = vmatpush1.bf16.msra.mxu0 %v11922_v37  ;;  %v11932_v37 = vld [vmem:[#allocation22_spill] sm:$0xff] }
 0x681   :  { %4311 = vmatprep.subr.bf16.mxu0 %v11923_v59  ;;  %v11933_v59 = vld [vmem:[#allocation23_spill] sm:$0xff] }
 0x684   :  { %4312 = vmatpush1.bf16.msra.mxu0 %v11924_v41  ;;  %v11934_v41 = vld [vmem:[#allocation24_spill] sm:$0xff] }
 0x685   :  { %4313 = vmatprep.subr.bf16.mxu0 %v11925_v26  ;;  %v11935_v26 = vld [vmem:[#allocation25_spill] sm:$0xff] }
 0x688   :  { %4314 = vmatpush1.bf16.msra.mxu0 %v11926_v60  ;;  %v11936_v60 = vld [vmem:[#allocation26_spill] sm:$0xff] }
 0x689   :  { %4315 = vmatprep.subr.bf16.mxu0 %v11927_v13  ;;  %v11937_v13 = vld [vmem:[#allocation27_spill] sm:$0xff] }
 0x68c   :  { %4316 = vmatpush1.bf16.msra.mxu0 %v11928_v40  ;;  %v11938_v40 = vld [vmem:[#allocation28_spill] sm:$0xff] }
 0x68d   :  { %4384 = vmatprep.subr.bf16.mxu0 %v11929_v48  ;;  %v11939_v48 = vld [vmem:[#allocation29_spill] sm:$0xff] }
 0x68f   :  { %4318 = vmatmul.mubr.bf16.vlgmr.msra.gmra.mrb[16].mxu0 %v9883_v34 }
 0x690   :  { %4385 = vmatpush1.bf16.msra.mxu0 %v11930_v12 }
 0x691   :  { %4386 = vmatprep.subr.bf16.mxu0 %v11931_v44  ;;  %v11940_v44 = vld [vmem:[#allocation30_spill] sm:$0xff] }
 0x694   :  { %4387 = vmatpush1.bf16.msra.mxu0 %v11932_v37 }
 0x695   :  { %4388 = vmatprep.subr.bf16.mxu0 %v11933_v59  ;;  %v11942_v59 = vld [vmem:[#allocation32_spill] sm:$0xff] }
 0x698   :  { %4389 = vmatpush1.bf16.msra.mxu0 %v11934_v41  ;;  %v11943_v41 = vld [vmem:[#allocation33_spill] sm:$0xff] }
 0x699   :  { %4390 = vmatprep.subr.bf16.mxu0 %v11935_v26  ;;  %v11944_v26 = vld [vmem:[#allocation34_spill] sm:$0xff] }
 0x69c   :  { %4391 = vmatpush1.bf16.msra.mxu0 %v11936_v60  ;;  %v11945_v60 = vld [vmem:[#allocation35_spill] sm:$0xff] }
 0x69d   :  { %4392 = vmatprep.subr.bf16.mxu0 %v11937_v13  ;;  %v11946_v13 = vld [vmem:[#allocation36_spill] sm:$0xff] }
 0x6a0   :  { %4393 = vmatpush1.bf16.msra.mxu0 %v11938_v40  ;;  %v11947_v40 = vld [vmem:[#allocation37_spill] sm:$0xff] }
 0x6a1   :  { %4394 = vmatprep.subr.bf16.mxu0 %v11939_v48  ;;  %v11948_v48 = vld [vmem:[#allocation38_spill] sm:$0xff] }
 0x6a2   :  { %v4196_v34 = vpop.f32.mrb[4].mxu0 }
 0x6a3   :  { %v4198_v12 = vpop.f32.mrb[5].mxu0 }
 0x6a4   :  { %v4200_v4 = vpop.f32.mrb[6].mxu0  ;;  %4395 = vmatpush1.bf16.msra.mxu0 %v11940_v44  ;;  %v11950_v44 = vld [vmem:[#allocation40_spill] sm:$0xff] }
 0x6a5   :  { %v4201_v37 = vpop.f32.mrb[7].mxu0  ;;  %4396 = vmatprep.subr.bf16.mxu0 %v11941_v25  ;;  %v11949_v4 = vld [vmem:[#allocation39_spill] sm:$0xff]  ;;  %v11952_v25 = vld [vmem:[#allocation42_spill] sm:$0xff] }
 0x6a6   :  { %v11951_v37 = vld [vmem:[#allocation41_spill] sm:$0xff] }
 0x6a8   :  { %4397 = vmatpush1.bf16.msra.mxu0 %v11942_v59  ;;  %v11953_v59 = vld [vmem:[#allocation43_spill] sm:$0xff] }
 0x6a9   :  { %4398 = vmatprep.subr.bf16.mxu0 %v11943_v41  ;;  %v11954_v41 = vld [vmem:[#allocation44_spill] sm:$0xff] }
 0x6ac   :  { %4399 = vmatpush1.bf16.msra.mxu0 %v11944_v26  ;;  %v11955_v26 = vld [vmem:[#allocation45_spill] sm:$0xff] }
 0x6ad   :  { %4400 = vmatprep.subr.bf16.mxu0 %v11945_v60  ;;  %v11956_v60 = vld [vmem:[#allocation46_spill] sm:$0xff] }
 0x6b0   :  { %4401 = vmatpush1.bf16.msra.mxu0 %v11946_v13  ;;  %v11957_v13 = vld [vmem:[#allocation47_spill] sm:$0xff] }
 0x6b1   :  { %4402 = vmatprep.subr.bf16.mxu0 %v11947_v40  ;;  %v11958_v40 = vld [vmem:[#allocation48_spill] sm:$0xff] }
 0x6b4   :  { %4403 = vmatpush1.bf16.msra.mxu0 %v11948_v48  ;;  %v11959_v48 = vld [vmem:[#allocation49_spill] sm:$0xff] }
 0x6b5   :  { %4404 = vmatprep.subr.bf16.mxu0 %v11949_v4  ;;  %v11960_v4 = vld [vmem:[#allocation50_spill] sm:$0xff] }
 0x6b8   :  { %4405 = vmatpush1.bf16.msra.mxu0 %v11950_v44 }
 0x6b9   :  { %4406 = vmatprep.subr.bf16.mxu0 %v11951_v37 }
 0x6bc   :  { %4407 = vmatpush1.bf16.msra.mxu0 %v11952_v25 }
 0x6bd   :  { %4408 = vmatprep.subr.bf16.mxu0 %v11953_v59 }
 0x6c0   :  { %4409 = vmatpush1.bf16.msra.mxu0 %v11954_v41  ;;  %v11962_v41 = vld [vmem:[#allocation89_spill] sm:$0xff] }
 0x6c1   :  { %4410 = vmatprep.subr.bf16.mxu0 %v11955_v26  ;;  %v10023_v58 = vadd.f32 %v11962_v41, %v11961_v30  ;;  %v11964_v26 = vld [vmem:[#allocation156_spill] sm:$0xff] }
 0x6c3   :  { %11963 = vst [vmem:[#allocation84_spill] sm:$0xff] %v10023_v58 }
 0x6c4   :  { %4411 = vmatpush1.bf16.msra.mxu0 %v11956_v60  ;;  %v11965_v60 = vld [vmem:[#allocation90_spill] sm:$0xff] }
 0x6c5   :  { %4412 = vmatprep.subr.bf16.mxu0 %v11957_v13  ;;  %v10027_v2 = vadd.f32 %v11965_v60, %v11964_v26  ;;  %v11967_v13 = vld [vmem:[#allocation157_spill] sm:$0xff] }
 0x6c7   :  { %11966 = vst [vmem:[#allocation85_spill] sm:$0xff] %v10027_v2 }
 0x6c8   :  { %4413 = vmatpush1.bf16.msra.mxu0 %v11958_v40  ;;  %v11968_v40 = vld [vmem:[#allocation93_spill] sm:$0xff] }
 0x6c9   :  { %4414 = vmatprep.subr.bf16.mxu0 %v11959_v48  ;;  %v10031_v33 = vadd.f32 %v11968_v40, %v11967_v13  ;;  %v11970_v48 = vld [vmem:[#allocation158_spill] sm:$0xff] }
 0x6cb   :  { %11969 = vst [vmem:[#allocation86_spill] sm:$0xff] %v10031_v33 }
 0x6cc   :  { %4415 = vmatpush1.bf16.msra.mxu0 %v11960_v4  ;;  %v4326_v4 = vadd.f32 %v4196_v34, %v10023_v58 }
 0x6cd   :  { %4466 = vmatprep.subr.bf16.mxu0 %v9605_v43  ;;  %v11971_v43 = vld [vmem:[#allocation94_spill] sm:$0xff] }
 0x6ce   :  { %v10036_v49 = vadd.f32 %v11971_v43, %v11970_v48  ;;  %v7426_v30 = vmul.f32 -1.442695, %v4326_v4  ;;  %v11975_v4 = vld [vmem:[#allocation98_spill] sm:$0xff] }
 0x6d0   :  { %11972 = vst [vmem:[#allocation87_spill] sm:$0xff] %v10036_v49  ;;  %8157 = vpow2.f32 %v7426_v30 }
 0x6da   :  { %v8158_v40 = vpop.eup %8157 }
 0x6db   :  { %v4346_v43 = vadd.f32 1.0, %v8158_v40 }
 0x6e2   :  { %v4237_v37 = vpop.f32.mrb[8].mxu0 }
 0x6e3   :  { %v4239_v25 = vpop.f32.mrb[9].mxu0 }
 0x6e4   :  { %v4241_v44 = vpop.f32.mrb[10].mxu0  ;;  %v4329_v41 = vadd.f32 %v4239_v25, %v10036_v49  ;;  %v11974_v25 = vld [vmem:[#allocation160_spill] sm:$0xff] }
 0x6e5   :  { %v4242_v59 = vpop.f32.mrb[11].mxu0  ;;  %v4328_v44 = vadd.f32 %v4237_v37, %v10031_v33  ;;  %v11973_v37 = vld [vmem:[#allocation97_spill] sm:$0xff] }
 0x6e6   :  { %v4327_v59 = vadd.f32 %v4198_v12, %v10027_v2  ;;  %v7429_v26 = vmul.f32 -1.442695, %v4329_v41  ;;  %v10043_v2 = vadd.f32 %v11973_v37, %v9861_v57 }
 0x6e7   :  { %v7428_v60 = vmul.f32 -1.442695, %v4328_v44 }
 0x6e8   :  { %v7427_v51 = vmul.f32 -1.442695, %v4327_v59  ;;  %v10047_v59 = vadd.f32 %v11975_v4, %v11974_v25 }
 0x6ea   :  { %8159 = vpow2.f32 %v7427_v51 }
 0x6eb   :  { %8161 = vpow2.f32 %v7428_v60 }
 0x6ec   :  { %8163 = vpow2.f32 %v7429_v26 }
 0x6ed   :  { %8165 = vrcp.f32 %v4346_v43 }
 0x6f4   :  { %v8160_v34 = vpop.eup %8159 }
 0x6f5   :  { %v8162_v13 = vpop.eup %8161  ;;  %v4347_v48 = vadd.f32 1.0, %v8160_v34 }
 0x6f6   :  { %v8164_v58 = vpop.eup %8163  ;;  %v4348_v55 = vadd.f32 1.0, %v8162_v13 }
 0x6f7   :  { %v4349_v12 = vadd.f32 1.0, %v8164_v58  ;;  %8167 = vrcp.f32 %v4347_v48  ;;  %v8166_v41 = vpop.eup %8165 }
 0x6f8   :  { %8169 = vrcp.f32 %v4348_v55 }
 0x6f9   :  { %8171 = vrcp.f32 %v4349_v12 }
 0x701   :  { %v8168_v60 = vpop.eup %8167 }
 0x702   :  { %v8170_v40 = vpop.eup %8169 }
 0x703   :  { %v8172_v34 = vpop.eup %8171  ;;  %v4372_v48 = vmul.f32 %v8170_v40, %v9867_v36 }
 0x704   :  { %v4373_v55 = vmul.f32 %v8172_v34, %v9869_v7 }
 0x722   :  { %v4278_v51 = vpop.f32.mrb[12].mxu0 }
 0x723   :  { %v4330_v26 = vadd.f32 %v4278_v51, %v10043_v2  ;;  %v4280_v30 = vpop.f32.mrb[13].mxu0 }
 0x724   :  { %v4331_v44 = vadd.f32 %v4280_v30, %v10047_v59  ;;  %v4282_v13 = vpop.f32.mrb[14].mxu0 }
 0x725   :  { %8173 = vtanh.f32 %v4330_v26  ;;  %v4283_v58 = vpop.f32.mrb[15].mxu0  ;;  %v11976_v26 = vld [vmem:[#allocation17_spill] sm:$0xff] }
 0x726   :  { %8175 = vtanh.f32 %v4331_v44  ;;  %v10059_v30 = vadd.f32 %v11976_v26, %v9873_v61  ;;  %v11977_v44 = vld [vmem:[#allocation18_spill] sm:$0xff]  ;;  %v11994_v61 = vld [vmem:[#allocation119_spill] sm:$0xff] }
 0x727   :  { %v10063_v13 = vadd.f32 %v11977_v44, %v9875_v63  ;;  %v11993_v63 = vld [vmem:[#allocation150_spill] sm:$0xff] }
 0x72f   :  { %v8174_v43 = vpop.eup %8173 }
 0x730   :  { %v8176_v37 = vpop.eup %8175  ;;  %v4374_v4 = vmul.f32 %v8174_v43, %v8166_v41 }
 0x731   :  { %v4375_v51 = vmul.f32 %v8176_v37, %v8168_v60 }
 0x732   :  { %v10053_v25 = vadd.f32 %v4374_v4, %v4372_v48 }
 0x733   :  { %v10055_v12 = vadd.f32 %v4375_v51, %v4373_v55 }
 0x762   :  { %v4319_v58 = vpop.f32.mrb[16].mxu0 }
 0x763   :  { %v4332_v57 = vadd.f32 %v4319_v58, %v10059_v30  ;;  %v4321_v36 = vpop.f32.mrb[17].mxu0 }
 0x764   :  { %v4333_v41 = vadd.f32 %v4321_v36, %v10063_v13  ;;  %v4323_v7 = vpop.f32.mrb[18].mxu0 }
 0x765   :  { %v7430_v60 = vmul.f32 -1.442695, %v4332_v57  ;;  %v4324_v40 = vpop.f32.mrb[19].mxu0  ;;  %v11978_v7 = vld [vmem:[#allocation111_spill] sm:$0xff] }
 0x766   :  { %v7431_v34 = vmul.f32 -1.442695, %v4333_v41  ;;  %v11980_v40 = vld [vmem:[#allocation112_spill] sm:$0xff] }
 0x767   :  { %8177 = vpow2.f32 %v7430_v60  ;;  %v11979_v60 = vld [vmem:[#allocation143_spill] sm:$0xff] }
 0x768   :  { %8179 = vpow2.f32 %v7431_v34  ;;  %v11981_v34 = vld [vmem:[#allocation144_spill] sm:$0xff] }
 0x769   :  { %8181 = vtanh.f32 %v10053_v25 }
 0x76a   :  { %8183 = vtanh.f32 %v10055_v12 }
 0x771   :  { %v8178_v43 = vpop.eup %8177 }
 0x772   :  { %v8180_v37 = vpop.eup %8179  ;;  %v4366_v48 = vadd.f32 1.0, %v8178_v43  ;;  %v11982_v43 = vld [vmem:[#allocation113_spill] sm:$0xff] }
 0x773   :  { %v4367_v4 = vadd.f32 1.0, %v8180_v37  ;;  %v8182_v55 = vpop.eup %8181  ;;  %v11983_v37 = vld [vmem:[#allocation145_spill] sm:$0xff] }
 0x774   :  { %8185 = vrcp.f32 %v4366_v48  ;;  %v8184_v51 = vpop.eup %8183  ;;  %v11984_v48 = vld [vmem:[#allocation114_spill] sm:$0xff] }
 0x775   :  { %8187 = vrcp.f32 %v4367_v4  ;;  %v11985_v4 = vld [vmem:[#allocation146_spill] sm:$0xff] }
 0x77e   :  { %v8186_v26 = vpop.eup %8185 }
 0x77f   :  { %v8188_v44 = vpop.eup %8187  ;;  %v4380_v58 = vmul.f32 %v8186_v26, %v8182_v55  ;;  %v11986_v55 = vld [vmem:[#allocation115_spill] sm:$0xff]  ;;  %v11988_v26 = vld [vmem:[#allocation116_spill] sm:$0xff] }
 0x780   :  { %v4381_v57 = vmul.f32 %v8188_v44, %v8184_v51  ;;  %v11987_v51 = vld [vmem:[#allocation147_spill] sm:$0xff]  ;;  %v11989_v44 = vld [vmem:[#allocation148_spill] sm:$0xff] }
 0x781   :  { %v10069_v41 = vpack.c.bf16 %v4380_v58, %v4380_v58  ;;  %v11990_v58 = vld [vmem:[#allocation117_spill] sm:$0xff] }
 0x782   :  { %v4383_v36 = vpack.c.bf16 %v4381_v57, %v4381_v57  ;;  %v11991_v57 = vld [vmem:[#allocation149_spill] sm:$0xff] }
 0x784   :  { %4416 = vmatprep.mubr.bf16.mxu0 %v4383_v36  ;;  %4457 = vmatprep.mubr.bf16.mxu1 %v4383_v36 }
 0x785   :  { %4417 = vmatmul.mubr.bf16.vlgmr.msra.gmra.mrb[20].mxu0 %v10069_v41  ;;  %4458 = vmatmul.mubr.bf16.vlgmr.msra.gmra.mrb[32].mxu1 %v10069_v41 }
 0x786   :  { %4467 = vmatpush1.bf16.msra.mxu0 %v9608_v35  ;;  %4508 = vmatpush1.bf16.msra.mxu1 %v11898_v10 }
 0x787   :  { %4498 = vmatprep.mubr.bf16.mxu0 %v4383_v36  ;;  %4539 = vmatprep.mubr.bf16.mxu1 %v4383_v36  ;;  %v11992_v36 = vld [vmem:[#allocation118_spill] sm:$0xff] }
 0x788   :  { %4468 = vmatprep.subr.bf16.mxu0 %v9611_v16  ;;  %4509 = vmatprep.subr.bf16.mxu1 %v11899_v42 }
 0x78a   :  { %4469 = vmatpush1.bf16.msra.mxu0 %v9615_v17  ;;  %4510 = vmatpush1.bf16.msra.mxu1 %v11900_v31 }
 0x78b   :  { %4470 = vmatprep.subr.bf16.mxu0 %v9619_v24  ;;  %4511 = vmatprep.subr.bf16.mxu1 %v11901_v19 }
 0x78e   :  { %4471 = vmatpush1.bf16.msra.mxu0 %v9622_v45  ;;  %4512 = vmatpush1.bf16.msra.mxu1 %v11902_v52 }
 0x78f   :  { %4472 = vmatprep.subr.bf16.mxu0 %v9625_v14  ;;  %4513 = vmatprep.subr.bf16.mxu1 %v11903_v62 }
 0x792   :  { %4473 = vmatpush1.bf16.msra.mxu0 %v9628_v50  ;;  %4514 = vmatpush1.bf16.msra.mxu1 %v11904_v32 }
 0x793   :  { %4474 = vmatprep.subr.bf16.mxu0 %v9631_v1  ;;  %4515 = vmatprep.subr.bf16.mxu1 %v11905_v53 }
 0x796   :  { %4475 = vmatpush1.bf16.msra.mxu0 %v9634_v22  ;;  %4516 = vmatpush1.bf16.msra.mxu1 %v11906_v27 }
 0x797   :  { %4476 = vmatprep.subr.bf16.mxu0 %v9637_v11  ;;  %4517 = vmatprep.subr.bf16.mxu1 %v11907_v56 }
 0x79a   :  { %4477 = vmatpush1.bf16.msra.mxu0 %v11876_v8  ;;  %4518 = vmatpush1.bf16.msra.mxu1 %v11908_v0 }
 0x79b   :  { %4478 = vmatprep.subr.bf16.mxu0 %v11877_v9  ;;  %4519 = vmatprep.subr.bf16.mxu1 %v11909_v18 }
 0x79e   :  { %4479 = vmatpush1.bf16.msra.mxu0 %v11878_v15  ;;  %4520 = vmatpush1.bf16.msra.mxu1 %v11910_v3 }
 0x79f   :  { %4480 = vmatprep.subr.bf16.mxu0 %v11879_v29  ;;  %4521 = vmatprep.subr.bf16.mxu1 %v11911_v39 }
 0x7a2   :  { %4481 = vmatpush1.bf16.msra.mxu0 %v11880_v23  ;;  %4522 = vmatpush1.bf16.msra.mxu1 %v11912_v20 }
 0x7a3   :  { %4482 = vmatprep.subr.bf16.mxu0 %v11881_v28  ;;  %4523 = vmatprep.subr.bf16.mxu1 %v11913_v6 }
 0x7a6   :  { %4483 = vmatpush1.bf16.msra.mxu0 %v11882_v21  ;;  %4524 = vmatpush1.bf16.msra.mxu1 %v11914_v54 }
 0x7a7   :  { %4484 = vmatprep.subr.bf16.mxu0 %v11883_v38  ;;  %4525 = vmatprep.subr.bf16.mxu1 %v11915_v46 }
 0x7aa   :  { %4485 = vmatpush1.bf16.msra.mxu0 %v11884_v5  ;;  %4526 = vmatpush1.bf16.msra.mxu1 %v11916_v47 }
 0x7ab   :  { %4486 = vmatprep.subr.bf16.mxu0 %v11978_v7  ;;  %4527 = vmatprep.subr.bf16.mxu1 %v11979_v60 }
 0x7ae   :  { %4487 = vmatpush1.bf16.msra.mxu0 %v11980_v40  ;;  %4528 = vmatpush1.bf16.msra.mxu1 %v11981_v34 }
 0x7af   :  { %4488 = vmatprep.subr.bf16.mxu0 %v11982_v43  ;;  %4529 = vmatprep.subr.bf16.mxu1 %v11983_v37 }
 0x7b2   :  { %4489 = vmatpush1.bf16.msra.mxu0 %v11984_v48  ;;  %4530 = vmatpush1.bf16.msra.mxu1 %v11985_v4  ;;  %v11995_v48 = vld [vmem:[#allocation151_spill] sm:$0xff]  ;;  %v11996_v4 = vld [vmem:[#allocation120_spill] sm:$0xff] }
 0x7b3   :  { %4490 = vmatprep.subr.bf16.mxu0 %v11986_v55  ;;  %4531 = vmatprep.subr.bf16.mxu1 %v11987_v51  ;;  %v11997_v55 = vld [vmem:[#allocation152_spill] sm:$0xff]  ;;  %v11998_v51 = vld [vmem:[#allocation121_spill] sm:$0xff] }
 0x7b6   :  { %4491 = vmatpush1.bf16.msra.mxu0 %v11988_v26  ;;  %4532 = vmatpush1.bf16.msra.mxu1 %v11989_v44  ;;  %v11999_v26 = vld [vmem:[#allocation153_spill] sm:$0xff]  ;;  %v12000_v44 = vld [vmem:[#allocation122_spill] sm:$0xff] }
 0x7b7   :  { %4492 = vmatprep.subr.bf16.mxu0 %v11990_v58  ;;  %4533 = vmatprep.subr.bf16.mxu1 %v11991_v57  ;;  %v12001_v58 = vld [vmem:[#allocation154_spill] sm:$0xff]  ;;  %v12002_v57 = vld [vmem:[#allocation19_spill] sm:$0xff] }
 0x7ba   :  { %4493 = vmatpush1.bf16.msra.mxu0 %v11992_v36  ;;  %4534 = vmatpush1.bf16.msra.mxu1 %v11993_v63  ;;  %v12003_v36 = vld [vmem:[#allocation51_spill] sm:$0xff] }
 0x7bb   :  { %4494 = vmatprep.subr.bf16.mxu0 %v11994_v61  ;;  %4535 = vmatprep.subr.bf16.mxu1 %v11995_v48  ;;  %v12004_v48 = vld [vmem:[#allocation20_spill] sm:$0xff] }
 0x7bc   :  { %v12013_v61 = vld [vmem:[#allocation56_spill] sm:$0xff] }
 0x7be   :  { %4495 = vmatpush1.bf16.msra.mxu0 %v11996_v4  ;;  %4536 = vmatpush1.bf16.msra.mxu1 %v11997_v55  ;;  %v12005_v4 = vld [vmem:[#allocation52_spill] sm:$0xff]  ;;  %v12006_v55 = vld [vmem:[#allocation21_spill] sm:$0xff] }
 0x7bf   :  { %4496 = vmatprep.subr.bf16.mxu0 %v11998_v51  ;;  %4537 = vmatprep.subr.bf16.mxu1 %v11999_v26  ;;  %v12007_v51 = vld [vmem:[#allocation53_spill] sm:$0xff]  ;;  %v12008_v26 = vld [vmem:[#allocation22_spill] sm:$0xff] }
 0x7c2   :  { %4497 = vmatpush1.bf16.msra.mxu0 %v12000_v44  ;;  %4538 = vmatpush1.bf16.msra.mxu1 %v12001_v58  ;;  %v12009_v44 = vld [vmem:[#allocation54_spill] sm:$0xff]  ;;  %v12010_v58 = vld [vmem:[#allocation23_spill] sm:$0xff] }
 0x7c3   :  { %4642 = vmatprep.subr.bf16.mxu0 %v12002_v57  ;;  %4683 = vmatprep.subr.bf16.mxu1 %v12003_v36  ;;  %v12011_v57 = vld [vmem:[#allocation55_spill] sm:$0xff]  ;;  %v12012_v36 = vld [vmem:[#allocation24_spill] sm:$0xff] }
 0x7c5   :  { %4499 = vmatmul.mubr.bf16.vlgmr.msra.gmra.mrb[24].mxu0 %v10069_v41  ;;  %4540 = vmatmul.mubr.bf16.vlgmr.msra.gmra.mrb[36].mxu1 %v10069_v41  ;;  %v12014_v41 = vld [vmem:[#allocation25_spill] sm:$0xff] }
 0x7c6   :  { %4643 = vmatpush1.bf16.msra.mxu0 %v12004_v48  ;;  %4684 = vmatpush1.bf16.msra.mxu1 %v12005_v4  ;;  %v12015_v48 = vld [vmem:[#allocation57_spill] sm:$0xff]  ;;  %v12016_v4 = vld [vmem:[#allocation26_spill] sm:$0xff] }
 0x7c7   :  { %4644 = vmatprep.subr.bf16.mxu0 %v12006_v55  ;;  %4685 = vmatprep.subr.bf16.mxu1 %v12007_v51  ;;  %v12017_v55 = vld [vmem:[#allocation58_spill] sm:$0xff]  ;;  %v12018_v51 = vld [vmem:[#allocation27_spill] sm:$0xff] }
 0x7ca   :  { %4645 = vmatpush1.bf16.msra.mxu0 %v12008_v26  ;;  %4686 = vmatpush1.bf16.msra.mxu1 %v12009_v44  ;;  %v12019_v26 = vld [vmem:[#allocation59_spill] sm:$0xff]  ;;  %v12020_v44 = vld [vmem:[#allocation28_spill] sm:$0xff] }
 0x7cb   :  { %4646 = vmatprep.subr.bf16.mxu0 %v12010_v58  ;;  %4687 = vmatprep.subr.bf16.mxu1 %v12011_v57  ;;  %v12021_v58 = vld [vmem:[#allocation60_spill] sm:$0xff]  ;;  %v12022_v57 = vld [vmem:[#allocation29_spill] sm:$0xff] }
 0x7ce   :  { %4647 = vmatpush1.bf16.msra.mxu0 %v12012_v36  ;;  %4688 = vmatpush1.bf16.msra.mxu1 %v12013_v61  ;;  %v12023_v36 = vld [vmem:[#allocation61_spill] sm:$0xff]  ;;  %v12024_v61 = vld [vmem:[#allocation30_spill] sm:$0xff] }
 0x7cf   :  { %4648 = vmatprep.subr.bf16.mxu0 %v12014_v41  ;;  %4689 = vmatprep.subr.bf16.mxu1 %v12015_v48  ;;  %v12025_v41 = vld [vmem:[#allocation62_spill] sm:$0xff]  ;;  %v12026_v48 = vld [vmem:[#allocation31_spill] sm:$0xff] }
 0x7d2   :  { %4649 = vmatpush1.bf16.msra.mxu0 %v12016_v4  ;;  %4690 = vmatpush1.bf16.msra.mxu1 %v12017_v55  ;;  %v12027_v4 = vld [vmem:[#allocation63_spill] sm:$0xff]  ;;  %v12028_v55 = vld [vmem:[#allocation32_spill] sm:$0xff] }
 0x7d3   :  { %4650 = vmatprep.subr.bf16.mxu0 %v12018_v51  ;;  %4691 = vmatprep.subr.bf16.mxu1 %v12019_v26  ;;  %v12029_v51 = vld [vmem:[#allocation64_spill] sm:$0xff]  ;;  %v12030_v26 = vld [vmem:[#allocation33_spill] sm:$0xff] }
 0x7d6   :  { %4651 = vmatpush1.bf16.msra.mxu0 %v12020_v44  ;;  %4692 = vmatpush1.bf16.msra.mxu1 %v12021_v58  ;;  %v12031_v44 = vld [vmem:[#allocation65_spill] sm:$0xff]  ;;  %v12032_v58 = vld [vmem:[#allocation34_spill] sm:$0xff] }
 0x7d7   :  { %4652 = vmatprep.subr.bf16.mxu0 %v12022_v57  ;;  %4693 = vmatprep.subr.bf16.mxu1 %v12023_v36  ;;  %v12033_v57 = vld [vmem:[#allocation66_spill] sm:$0xff]  ;;  %v12034_v36 = vld [vmem:[#allocation35_spill] sm:$0xff] }
 0x7da   :  { %4653 = vmatpush1.bf16.msra.mxu0 %v12024_v61  ;;  %4694 = vmatpush1.bf16.msra.mxu1 %v12025_v41  ;;  %v12035_v61 = vld [vmem:[#allocation67_spill] sm:$0xff]  ;;  %v12036_v41 = vld [vmem:[#allocation36_spill] sm:$0xff] }
 0x7db   :  { %4654 = vmatprep.subr.bf16.mxu0 %v12026_v48  ;;  %4695 = vmatprep.subr.bf16.mxu1 %v12027_v4  ;;  %v12037_v48 = vld [vmem:[#allocation68_spill] sm:$0xff]  ;;  %v12038_v4 = vld [vmem:[#allocation37_spill] sm:$0xff] }
 0x7de   :  { %4655 = vmatpush1.bf16.msra.mxu0 %v12028_v55  ;;  %4696 = vmatpush1.bf16.msra.mxu1 %v12029_v51  ;;  %v12039_v55 = vld [vmem:[#allocation69_spill] sm:$0xff]  ;;  %v12040_v51 = vld [vmem:[#allocation38_spill] sm:$0xff] }
 0x7df   :  { %4656 = vmatprep.subr.bf16.mxu0 %v12030_v26  ;;  %4697 = vmatprep.subr.bf16.mxu1 %v12031_v44  ;;  %v12041_v26 = vld [vmem:[#allocation70_spill] sm:$0xff]  ;;  %v12042_v44 = vld [vmem:[#allocation39_spill] sm:$0xff] }
 0x7e2   :  { %4657 = vmatpush1.bf16.msra.mxu0 %v12032_v58  ;;  %4698 = vmatpush1.bf16.msra.mxu1 %v12033_v57  ;;  %v12043_v58 = vld [vmem:[#allocation71_spill] sm:$0xff]  ;;  %v12044_v57 = vld [vmem:[#allocation40_spill] sm:$0xff] }
 0x7e3   :  { %4658 = vmatprep.subr.bf16.mxu0 %v12034_v36  ;;  %4699 = vmatprep.subr.bf16.mxu1 %v12035_v61  ;;  %v12045_v36 = vld [vmem:[#allocation72_spill] sm:$0xff]  ;;  %v12046_v61 = vld [vmem:[#allocation41_spill] sm:$0xff] }
 0x7e6   :  { %4659 = vmatpush1.bf16.msra.mxu0 %v12036_v41  ;;  %4700 = vmatpush1.bf16.msra.mxu1 %v12037_v48  ;;  %v12047_v41 = vld [vmem:[#allocation73_spill] sm:$0xff]  ;;  %v12048_v48 = vld [vmem:[#allocation42_spill] sm:$0xff] }
 0x7e7   :  { %4660 = vmatprep.subr.bf16.mxu0 %v12038_v4  ;;  %4701 = vmatprep.subr.bf16.mxu1 %v12039_v55  ;;  %v12049_v4 = vld [vmem:[#allocation74_spill] sm:$0xff]  ;;  %v12050_v55 = vld [vmem:[#allocation43_spill] sm:$0xff] }
 0x7ea   :  { %4661 = vmatpush1.bf16.msra.mxu0 %v12040_v51  ;;  %4702 = vmatpush1.bf16.msra.mxu1 %v12041_v26  ;;  %v12051_v51 = vld [vmem:[#allocation75_spill] sm:$0xff]  ;;  %v12052_v26 = vld [vmem:[#allocation44_spill] sm:$0xff] }
 0x7eb   :  { %4662 = vmatprep.subr.bf16.mxu0 %v12042_v44  ;;  %4703 = vmatprep.subr.bf16.mxu1 %v12043_v58  ;;  %v12053_v44 = vld [vmem:[#allocation76_spill] sm:$0xff]  ;;  %v12054_v58 = vld [vmem:[#allocation45_spill] sm:$0xff] }
 0x7ee   :  { %4663 = vmatpush1.bf16.msra.mxu0 %v12044_v57  ;;  %4704 = vmatpush1.bf16.msra.mxu1 %v12045_v36  ;;  %v12055_v57 = vld [vmem:[#allocation77_spill] sm:$0xff]  ;;  %v12056_v36 = vld [vmem:[#allocation46_spill] sm:$0xff] }
 0x7ef   :  { %4664 = vmatprep.subr.bf16.mxu0 %v12046_v61  ;;  %4705 = vmatprep.subr.bf16.mxu1 %v12047_v41  ;;  %v12057_v61 = vld [vmem:[#allocation78_spill] sm:$0xff]  ;;  %v12058_v41 = vld [vmem:[#allocation47_spill] sm:$0xff] }
 0x7f2   :  { %4665 = vmatpush1.bf16.msra.mxu0 %v12048_v48  ;;  %4706 = vmatpush1.bf16.msra.mxu1 %v12049_v4  ;;  %v12059_v48 = vld [vmem:[#allocation79_spill] sm:$0xff]  ;;  %v12060_v4 = vld [vmem:[#allocation48_spill] sm:$0xff] }
 0x7f3   :  { %4666 = vmatprep.subr.bf16.mxu0 %v12050_v55  ;;  %4707 = vmatprep.subr.bf16.mxu1 %v12051_v51  ;;  %v12061_v55 = vld [vmem:[#allocation80_spill] sm:$0xff]  ;;  %v12062_v51 = vld [vmem:[#allocation49_spill] sm:$0xff] }
 0x7f6   :  { %4667 = vmatpush1.bf16.msra.mxu0 %v12052_v26  ;;  %4708 = vmatpush1.bf16.msra.mxu1 %v12053_v44  ;;  %v12063_v26 = vld [vmem:[#allocation81_spill] sm:$0xff]  ;;  %v12064_v44 = vld [vmem:[#allocation50_spill] sm:$0xff] }
 0x7f7   :  { %4668 = vmatprep.subr.bf16.mxu0 %v12054_v58  ;;  %4709 = vmatprep.subr.bf16.mxu1 %v12055_v57  ;;  %v12065_v58 = vld [vmem:[#allocation82_spill] sm:$0xff]  ;;  %v12066_v57 = vld [vmem:[#allocation83_spill] sm:$0xff] }
 0x7fa   :  { %4669 = vmatpush1.bf16.msra.mxu0 %v12056_v36  ;;  %4710 = vmatpush1.bf16.msra.mxu1 %v12057_v61  ;;  %v12067_v36 = vld [vmem:[#allocation123_spill] sm:$0xff] }
 0x7fb   :  { %4670 = vmatprep.subr.bf16.mxu0 %v12058_v41  ;;  %4711 = vmatprep.subr.bf16.mxu1 %v12059_v48 }
 0x7fe   :  { %4671 = vmatpush1.bf16.msra.mxu0 %v12060_v4  ;;  %4712 = vmatpush1.bf16.msra.mxu1 %v12061_v55 }
 0x7ff   :  { %4672 = vmatprep.subr.bf16.mxu0 %v12062_v51  ;;  %4713 = vmatprep.subr.bf16.mxu1 %v12063_v26 }
 0x802   :  { %4673 = vmatpush1.bf16.msra.mxu0 %v12064_v44  ;;  %4714 = vmatpush1.bf16.msra.mxu1 %v12065_v58 }
 0x803   :  { %4724 = vmatprep.subr.bf16.mxu0 %v12066_v57  ;;  %4765 = vmatprep.subr.bf16.mxu1 %v12067_v36 }
 0x858   :  { %v4418_v61 = vpop.f32.mrb[20].mxu0  ;;  %v4459_v41 = vpop.f32.mrb[32].mxu1 }
 0x859   :  { %v4558_v63 = vrot.slane %v4459_v41, 6  ;;  %v4420_v48 = vpop.f32.mrb[21].mxu0  ;;  %v4461_v37 = vpop.f32.mrb[33].mxu1 }
 0x85a   :  { %v4559_v4 = vrot.slane %v4461_v37, 6  ;;  %v4422_v43 = vpop.f32.mrb[22].mxu0  ;;  %v4463_v55 = vpop.f32.mrb[34].mxu1  ;;  %v4620_v37 = vrot.slane %v10053_v25, 6 }
 0x85b   :  { %v4574_v51 = vadd.f32 %v4558_v63, %v10031_v33  ;;  %v4423_v34 = vpop.f32.mrb[23].mxu0  ;;  %v4464_v26 = vpop.f32.mrb[35].mxu1  ;;  %v4621_v55 = vrot.slane %v10055_v12, 6  ;;  %v4556_v33 = vrot.slane %v4418_v61, 6 }
 0x85c   :  { %v4575_v44 = vadd.f32 %v4559_v4, %v10036_v49  ;;  %v4557_v4 = vrot.slane %v4420_v48, 6 }
 0x85d   :  { %v7434_v40 = vmul.f32 -1.442695, %v4574_v51  ;;  %v12068_v51 = vld [vmem:[#allocation84_spill] sm:$0xff] }
 0x85e   :  { %v7435_v58 = vmul.f32 -1.442695, %v4575_v44  ;;  %v4572_v44 = vadd.f32 %v4556_v33, %v12068_v51 }
 0x85f   :  { %8189 = vpow2.f32 %v7434_v40  ;;  %v12069_v40 = vld [vmem:[#allocation85_spill] sm:$0xff] }
 0x860   :  { %8191 = vpow2.f32 %v7435_v58  ;;  %v4573_v58 = vadd.f32 %v4557_v4, %v12069_v40  ;;  %v7432_v49 = vmul.f32 -1.442695, %v4572_v44 }
 0x869   :  { %v8190_v57 = vpop.eup %8189 }
 0x86a   :  { %v4594_v36 = vadd.f32 1.0, %v8190_v57  ;;  %v8192_v60 = vpop.eup %8191  ;;  %v7433_v57 = vmul.f32 -1.442695, %v4573_v58 }
 0x86b   :  { %v4595_v41 = vadd.f32 1.0, %v8192_v60 }
 0x86c   :  { %8193 = vrcp.f32 %v4594_v36 }
 0x86d   :  { %8195 = vrcp.f32 %v4595_v41 }
 0x86e   :  { %8197 = vpow2.f32 %v7432_v49 }
 0x86f   :  { %8199 = vpow2.f32 %v7433_v57 }
 0x876   :  { %v8194_v43 = vpop.eup %8193 }
 0x877   :  { %v4624_v63 = vmul.f32 %v8194_v43, %v4620_v37  ;;  %v8196_v34 = vpop.eup %8195 }
 0x878   :  { %v4625_v26 = vmul.f32 %v8196_v34, %v4621_v55  ;;  %v8198_v60 = vpop.eup %8197 }
 0x879   :  { %v8200_v36 = vpop.eup %8199  ;;  %v4592_v41 = vadd.f32 1.0, %v8198_v60 }
 0x87a   :  { %v4593_v25 = vadd.f32 1.0, %v8200_v36 }
 0x87b   :  { %8201 = vrcp.f32 %v4592_v41 }
 0x87c   :  { %8203 = vrcp.f32 %v4593_v25 }
 0x885   :  { %v8202_v36 = vpop.eup %8201 }
 0x898   :  { %v4500_v7 = vpop.f32.mrb[24].mxu0  ;;  %v4541_v47 = vpop.f32.mrb[36].mxu1 }
 0x899   :  { %v4560_v12 = vrot.slane %v4500_v7, 6  ;;  %v4562_v37 = vrot.slane %v4541_v47, 6  ;;  %v4502_v43 = vpop.f32.mrb[25].mxu0  ;;  %v4543_v55 = vpop.f32.mrb[37].mxu1 }
 0x89a   :  { %v4561_v61 = vrot.slane %v4502_v43, 6  ;;  %v4563_v48 = vrot.slane %v4543_v55, 6  ;;  %v4504_v34 = vpop.f32.mrb[26].mxu0  ;;  %v4545_v33 = vpop.f32.mrb[38].mxu1 }
 0x89b   :  { %v4576_v4 = vadd.f32 %v4560_v12, %v10043_v2  ;;  %v4578_v49 = vadd.f32 %v4562_v37, %v10059_v30  ;;  %v4505_v44 = vpop.f32.mrb[27].mxu0  ;;  %v4546_v58 = vpop.f32.mrb[39].mxu1 }
 0x89c   :  { %v4577_v57 = vadd.f32 %v4561_v61, %v10047_v59  ;;  %v4579_v60 = vadd.f32 %v4563_v48, %v10063_v13  ;;  %v8204_v43 = vpop.eup %8203 }
 0x89d   :  { %8205 = vtanh.f32 %v4576_v4  ;;  %v7436_v47 = vmul.f32 -1.442695, %v4578_v49 }
 0x89e   :  { %8207 = vtanh.f32 %v4577_v57  ;;  %v7437_v7 = vmul.f32 -1.442695, %v4579_v60 }
 0x89f   :  { %8209 = vpow2.f32 %v7436_v47 }
 0x8a0   :  { %8211 = vpow2.f32 %v7437_v7 }
 0x8a7   :  { %v8206_v41 = vpop.eup %8205 }
 0x8a8   :  { %v8208_v55 = vpop.eup %8207  ;;  %v4626_v12 = vmul.f32 %v8206_v41, %v8202_v36  ;;  %v12071_v41 = vld [vmem:[#allocation111_spill] sm:$0xff] }
 0x8a9   :  { %v8210_v34 = vpop.eup %8209  ;;  %v4627_v37 = vmul.f32 %v8208_v55, %v8204_v43  ;;  %v12072_v55 = vld [vmem:[#allocation143_spill] sm:$0xff] }
 0x8aa   :  { %v8212_v33 = vpop.eup %8211  ;;  %v10213_v44 = vadd.f32 %v4626_v12, %v4624_v63  ;;  %v4612_v25 = vadd.f32 1.0, %v8210_v34  ;;  %v12073_v12 = vld [vmem:[#allocation112_spill] sm:$0xff] }
 0x8ab   :  { %v10215_v61 = vadd.f32 %v4627_v37, %v4625_v26  ;;  %v4613_v48 = vadd.f32 1.0, %v8212_v33  ;;  %v12070_v26 = vld [vmem:[#allocation142_spill] sm:$0xff]  ;;  %v12074_v34 = vld [vmem:[#allocation144_spill] sm:$0xff]  ;;  %v12075_v37 = vld [vmem:[#allocation113_spill] sm:$0xff] }
 0x8ac   :  { %8213 = vtanh.f32 %v10213_v44  ;;  %v12076_v33 = vld [vmem:[#allocation145_spill] sm:$0xff] }
 0x8ad   :  { %8215 = vrcp.f32 %v4612_v25  ;;  %v12077_v25 = vld [vmem:[#allocation114_spill] sm:$0xff] }
 0x8ae   :  { %8217 = vtanh.f32 %v10215_v61 }
 0x8af   :  { %8219 = vrcp.f32 %v4613_v48  ;;  %v12078_v48 = vld [vmem:[#allocation146_spill] sm:$0xff] }
 0x8b6   :  { %v8214_v4 = vpop.eup %8213 }
 0x8b7   :  { %v8216_v49 = vpop.eup %8215 }
 0x8b8   :  { %v8218_v58 = vpop.eup %8217  ;;  %v4632_v57 = vmul.f32 %v8216_v49, %v8214_v4  ;;  %v12079_v4 = vld [vmem:[#allocation115_spill] sm:$0xff] }
 0x8b9   :  { %v8220_v60 = vpop.eup %8219  ;;  %v12080_v49 = vld [vmem:[#allocation147_spill] sm:$0xff] }
 0x8ba   :  { %v4633_v47 = vmul.f32 %v8220_v60, %v8218_v58  ;;  %v4634_v7 = vpack.c.bf16 %v4632_v57, %v4632_v57  ;;  %v12081_v58 = vld [vmem:[#allocation116_spill] sm:$0xff]  ;;  %v12083_v60 = vld [vmem:[#allocation117_spill] sm:$0xff] }
 0x8bb   :  { %v12082_v57 = vld [vmem:[#allocation148_spill] sm:$0xff] }
 0x8bc   :  { %v4635_v36 = vpack.c.bf16 %v4633_v47, %v4633_v47  ;;  %v10219_v43 = vrot.slane %v4634_v7, 1  ;;  %v12084_v47 = vld [vmem:[#allocation149_spill] sm:$0xff]  ;;  %v12085_v7 = vld [vmem:[#allocation118_spill] sm:$0xff] }
 0x8be   :  { %v4639_v63 = vrot.slane %v4635_v36, 1  ;;  %v12086_v36 = vld [vmem:[#allocation150_spill] sm:$0xff] }
 0x8c0   :  { %4674 = vmatprep.mubr.bf16.mxu0 %v4639_v63  ;;  %4715 = vmatprep.mubr.bf16.mxu1 %v4639_v63 }
 0x8c1   :  { %4675 = vmatmul.mubr.bf16.vlgmr.msra.gmra.mrb[28].mxu0 %v10219_v43  ;;  %4716 = vmatmul.mubr.bf16.vlgmr.msra.gmra.mrb[40].mxu1 %v10219_v43 }
 0x8c2   :  { %4725 = vmatpush1.bf16.msra.mxu0 %v9608_v35  ;;  %4766 = vmatpush1.bf16.msra.mxu1 %v11898_v10 }
 0x8c3   :  { %4756 = vmatprep.mubr.bf16.mxu0 %v4639_v63  ;;  %4797 = vmatprep.mubr.bf16.mxu1 %v4639_v63  ;;  %v12087_v63 = vld [vmem:[#allocation119_spill] sm:$0xff] }
 0x8c4   :  { %4726 = vmatprep.subr.bf16.mxu0 %v9611_v16  ;;  %4767 = vmatprep.subr.bf16.mxu1 %v11899_v42 }
 0x8c6   :  { %4727 = vmatpush1.bf16.msra.mxu0 %v9615_v17  ;;  %4768 = vmatpush1.bf16.msra.mxu1 %v11900_v31 }
 0x8c7   :  { %4728 = vmatprep.subr.bf16.mxu0 %v9619_v24  ;;  %4769 = vmatprep.subr.bf16.mxu1 %v11901_v19 }
 0x8ca   :  { %4729 = vmatpush1.bf16.msra.mxu0 %v9622_v45  ;;  %4770 = vmatpush1.bf16.msra.mxu1 %v11902_v52 }
 0x8cb   :  { %4730 = vmatprep.subr.bf16.mxu0 %v9625_v14  ;;  %4771 = vmatprep.subr.bf16.mxu1 %v11903_v62 }
 0x8ce   :  { %4731 = vmatpush1.bf16.msra.mxu0 %v9628_v50  ;;  %4772 = vmatpush1.bf16.msra.mxu1 %v11904_v32 }
 0x8cf   :  { %4732 = vmatprep.subr.bf16.mxu0 %v9631_v1  ;;  %4773 = vmatprep.subr.bf16.mxu1 %v11905_v53 }
 0x8d2   :  { %4733 = vmatpush1.bf16.msra.mxu0 %v9634_v22  ;;  %4774 = vmatpush1.bf16.msra.mxu1 %v11906_v27 }
 0x8d3   :  { %4734 = vmatprep.subr.bf16.mxu0 %v9637_v11  ;;  %4775 = vmatprep.subr.bf16.mxu1 %v11907_v56 }
 0x8d6   :  { %4735 = vmatpush1.bf16.msra.mxu0 %v11876_v8  ;;  %4776 = vmatpush1.bf16.msra.mxu1 %v11908_v0 }
 0x8d7   :  { %4736 = vmatprep.subr.bf16.mxu0 %v11877_v9  ;;  %4777 = vmatprep.subr.bf16.mxu1 %v11909_v18 }
 0x8da   :  { %4737 = vmatpush1.bf16.msra.mxu0 %v11878_v15  ;;  %4778 = vmatpush1.bf16.msra.mxu1 %v11910_v3 }
 0x8db   :  { %4738 = vmatprep.subr.bf16.mxu0 %v11879_v29  ;;  %4779 = vmatprep.subr.bf16.mxu1 %v11911_v39 }
 0x8de   :  { %4739 = vmatpush1.bf16.msra.mxu0 %v11880_v23  ;;  %4780 = vmatpush1.bf16.msra.mxu1 %v11912_v20 }
 0x8df   :  { %4740 = vmatprep.subr.bf16.mxu0 %v11881_v28  ;;  %4781 = vmatprep.subr.bf16.mxu1 %v11913_v6 }
 0x8e2   :  { %4741 = vmatpush1.bf16.msra.mxu0 %v11882_v21  ;;  %4782 = vmatpush1.bf16.msra.mxu1 %v11914_v54 }
 0x8e3   :  { %4742 = vmatprep.subr.bf16.mxu0 %v11883_v38  ;;  %4783 = vmatprep.subr.bf16.mxu1 %v11915_v46 }
 0x8e6   :  { %4743 = vmatpush1.bf16.msra.mxu0 %v11884_v5  ;;  %4784 = vmatpush1.bf16.msra.mxu1 %v12070_v26 }
 0x8e7   :  { %4744 = vmatprep.subr.bf16.mxu0 %v12071_v41  ;;  %4785 = vmatprep.subr.bf16.mxu1 %v12072_v55  ;;  %v12162_v55 = vld [vmem:[#allocation87_spill] sm:$0xff] }
 0x8ea   :  { %4745 = vmatpush1.bf16.msra.mxu0 %v12073_v12  ;;  %4786 = vmatpush1.bf16.msra.mxu1 %v12074_v34  ;;  %v12161_v34 = vld [vmem:[#allocation86_spill] sm:$0xff] }
 0x8eb   :  { %4746 = vmatprep.subr.bf16.mxu0 %v12075_v37  ;;  %4787 = vmatprep.subr.bf16.mxu1 %v12076_v33 }
 0x8ee   :  { %4747 = vmatpush1.bf16.msra.mxu0 %v12077_v25  ;;  %4788 = vmatpush1.bf16.msra.mxu1 %v12078_v48  ;;  %v12088_v25 = vld [vmem:[#allocation151_spill] sm:$0xff]  ;;  %v12089_v48 = vld [vmem:[#allocation120_spill] sm:$0xff] }
 0x8ef   :  { %4748 = vmatprep.subr.bf16.mxu0 %v12079_v4  ;;  %4789 = vmatprep.subr.bf16.mxu1 %v12080_v49  ;;  %v12090_v4 = vld [vmem:[#allocation152_spill] sm:$0xff]  ;;  %v12091_v49 = vld [vmem:[#allocation121_spill] sm:$0xff] }
 0x8f2   :  { %4749 = vmatpush1.bf16.msra.mxu0 %v12081_v58  ;;  %4790 = vmatpush1.bf16.msra.mxu1 %v12082_v57  ;;  %v12092_v58 = vld [vmem:[#allocation153_spill] sm:$0xff]  ;;  %v12093_v57 = vld [vmem:[#allocation122_spill] sm:$0xff] }
 0x8f3   :  { %4750 = vmatprep.subr.bf16.mxu0 %v12083_v60  ;;  %4791 = vmatprep.subr.bf16.mxu1 %v12084_v47  ;;  %v12094_v60 = vld [vmem:[#allocation154_spill] sm:$0xff]  ;;  %v12095_v47 = vld [vmem:[#allocation19_spill] sm:$0xff] }
 0x8f6   :  { %4751 = vmatpush1.bf16.msra.mxu0 %v12085_v7  ;;  %4792 = vmatpush1.bf16.msra.mxu1 %v12086_v36  ;;  %v12096_v7 = vld [vmem:[#allocation51_spill] sm:$0xff] }
 0x8f7   :  { %4752 = vmatprep.subr.bf16.mxu0 %v12087_v63  ;;  %4793 = vmatprep.subr.bf16.mxu1 %v12088_v25  ;;  %v12097_v25 = vld [vmem:[#allocation20_spill] sm:$0xff] }
 0x8f8   :  { %v12106_v63 = vld [vmem:[#allocation56_spill] sm:$0xff] }
 0x8fa   :  { %4753 = vmatpush1.bf16.msra.mxu0 %v12089_v48  ;;  %4794 = vmatpush1.bf16.msra.mxu1 %v12090_v4  ;;  %v12098_v48 = vld [vmem:[#allocation52_spill] sm:$0xff]  ;;  %v12099_v4 = vld [vmem:[#allocation21_spill] sm:$0xff] }
 0x8fb   :  { %4754 = vmatprep.subr.bf16.mxu0 %v12091_v49  ;;  %4795 = vmatprep.subr.bf16.mxu1 %v12092_v58  ;;  %v12100_v49 = vld [vmem:[#allocation53_spill] sm:$0xff]  ;;  %v12101_v58 = vld [vmem:[#allocation22_spill] sm:$0xff] }
 0x8fe   :  { %4755 = vmatpush1.bf16.msra.mxu0 %v12093_v57  ;;  %4796 = vmatpush1.bf16.msra.mxu1 %v12094_v60  ;;  %v12102_v57 = vld [vmem:[#allocation54_spill] sm:$0xff]  ;;  %v12103_v60 = vld [vmem:[#allocation23_spill] sm:$0xff] }
 0x8ff   :  { %4900 = vmatprep.subr.bf16.mxu0 %v12095_v47  ;;  %4941 = vmatprep.subr.bf16.mxu1 %v12096_v7  ;;  %v12104_v47 = vld [vmem:[#allocation55_spill] sm:$0xff]  ;;  %v12105_v7 = vld [vmem:[#allocation24_spill] sm:$0xff] }
 0x901   :  { %4757 = vmatmul.mubr.bf16.vlgmr.msra.gmra.mrb[32].mxu0 %v10219_v43  ;;  %4798 = vmatmul.mubr.bf16.vlgmr.msra.gmra.mrb[44].mxu1 %v10219_v43  ;;  %v12107_v43 = vld [vmem:[#allocation25_spill] sm:$0xff] }
 0x902   :  { %4901 = vmatpush1.bf16.msra.mxu0 %v12097_v25  ;;  %4942 = vmatpush1.bf16.msra.mxu1 %v12098_v48  ;;  %v12108_v25 = vld [vmem:[#allocation57_spill] sm:$0xff]  ;;  %v12109_v48 = vld [vmem:[#allocation26_spill] sm:$0xff] }
 0x903   :  { %4902 = vmatprep.subr.bf16.mxu0 %v12099_v4  ;;  %4943 = vmatprep.subr.bf16.mxu1 %v12100_v49  ;;  %v12110_v4 = vld [vmem:[#allocation58_spill] sm:$0xff]  ;;  %v12111_v49 = vld [vmem:[#allocation27_spill] sm:$0xff] }
 0x906   :  { %4903 = vmatpush1.bf16.msra.mxu0 %v12101_v58  ;;  %4944 = vmatpush1.bf16.msra.mxu1 %v12102_v57  ;;  %v12112_v58 = vld [vmem:[#allocation59_spill] sm:$0xff]  ;;  %v12113_v57 = vld [vmem:[#allocation28_spill] sm:$0xff] }
 0x907   :  { %4904 = vmatprep.subr.bf16.mxu0 %v12103_v60  ;;  %4945 = vmatprep.subr.bf16.mxu1 %v12104_v47  ;;  %v12114_v60 = vld [vmem:[#allocation60_spill] sm:$0xff]  ;;  %v12115_v47 = vld [vmem:[#allocation29_spill] sm:$0xff] }
 0x90a   :  { %4905 = vmatpush1.bf16.msra.mxu0 %v12105_v7  ;;  %4946 = vmatpush1.bf16.msra.mxu1 %v12106_v63  ;;  %v12116_v7 = vld [vmem:[#allocation61_spill] sm:$0xff]  ;;  %v12117_v63 = vld [vmem:[#allocation30_spill] sm:$0xff] }
 0x90b   :  { %4906 = vmatprep.subr.bf16.mxu0 %v12107_v43  ;;  %4947 = vmatprep.subr.bf16.mxu1 %v12108_v25  ;;  %v12118_v43 = vld [vmem:[#allocation62_spill] sm:$0xff]  ;;  %v12119_v25 = vld [vmem:[#allocation31_spill] sm:$0xff] }
 0x90e   :  { %4907 = vmatpush1.bf16.msra.mxu0 %v12109_v48  ;;  %4948 = vmatpush1.bf16.msra.mxu1 %v12110_v4  ;;  %v12120_v48 = vld [vmem:[#allocation63_spill] sm:$0xff]  ;;  %v12121_v4 = vld [vmem:[#allocation32_spill] sm:$0xff] }
 0x90f   :  { %4908 = vmatprep.subr.bf16.mxu0 %v12111_v49  ;;  %4949 = vmatprep.subr.bf16.mxu1 %v12112_v58  ;;  %v12122_v49 = vld [vmem:[#allocation64_spill] sm:$0xff]  ;;  %v12123_v58 = vld [vmem:[#allocation33_spill] sm:$0xff] }
 0x912   :  { %4909 = vmatpush1.bf16.msra.mxu0 %v12113_v57  ;;  %4950 = vmatpush1.bf16.msra.mxu1 %v12114_v60  ;;  %v12124_v57 = vld [vmem:[#allocation65_spill] sm:$0xff]  ;;  %v12125_v60 = vld [vmem:[#allocation34_spill] sm:$0xff] }
 0x913   :  { %4910 = vmatprep.subr.bf16.mxu0 %v12115_v47  ;;  %4951 = vmatprep.subr.bf16.mxu1 %v12116_v7  ;;  %v12126_v47 = vld [vmem:[#allocation66_spill] sm:$0xff]  ;;  %v12127_v7 = vld [vmem:[#allocation35_spill] sm:$0xff] }
 0x916   :  { %4911 = vmatpush1.bf16.msra.mxu0 %v12117_v63  ;;  %4952 = vmatpush1.bf16.msra.mxu1 %v12118_v43  ;;  %v12128_v63 = vld [vmem:[#allocation67_spill] sm:$0xff]  ;;  %v12129_v43 = vld [vmem:[#allocation36_spill] sm:$0xff] }
 0x917   :  { %4912 = vmatprep.subr.bf16.mxu0 %v12119_v25  ;;  %4953 = vmatprep.subr.bf16.mxu1 %v12120_v48  ;;  %v12130_v25 = vld [vmem:[#allocation68_spill] sm:$0xff]  ;;  %v12131_v48 = vld [vmem:[#allocation37_spill] sm:$0xff] }
 0x91a   :  { %4913 = vmatpush1.bf16.msra.mxu0 %v12121_v4  ;;  %4954 = vmatpush1.bf16.msra.mxu1 %v12122_v49  ;;  %v12132_v4 = vld [vmem:[#allocation69_spill] sm:$0xff]  ;;  %v12133_v49 = vld [vmem:[#allocation38_spill] sm:$0xff] }
 0x91b   :  { %4914 = vmatprep.subr.bf16.mxu0 %v12123_v58  ;;  %4955 = vmatprep.subr.bf16.mxu1 %v12124_v57  ;;  %v12134_v58 = vld [vmem:[#allocation70_spill] sm:$0xff]  ;;  %v12135_v57 = vld [vmem:[#allocation39_spill] sm:$0xff] }
 0x91e   :  { %4915 = vmatpush1.bf16.msra.mxu0 %v12125_v60  ;;  %4956 = vmatpush1.bf16.msra.mxu1 %v12126_v47  ;;  %v12136_v60 = vld [vmem:[#allocation71_spill] sm:$0xff]  ;;  %v12137_v47 = vld [vmem:[#allocation40_spill] sm:$0xff] }
 0x91f   :  { %4916 = vmatprep.subr.bf16.mxu0 %v12127_v7  ;;  %4957 = vmatprep.subr.bf16.mxu1 %v12128_v63  ;;  %v12138_v7 = vld [vmem:[#allocation72_spill] sm:$0xff]  ;;  %v12139_v63 = vld [vmem:[#allocation41_spill] sm:$0xff] }
 0x922   :  { %4917 = vmatpush1.bf16.msra.mxu0 %v12129_v43  ;;  %4958 = vmatpush1.bf16.msra.mxu1 %v12130_v25  ;;  %v12140_v43 = vld [vmem:[#allocation73_spill] sm:$0xff]  ;;  %v12141_v25 = vld [vmem:[#allocation42_spill] sm:$0xff] }
 0x923   :  { %4918 = vmatprep.subr.bf16.mxu0 %v12131_v48  ;;  %4959 = vmatprep.subr.bf16.mxu1 %v12132_v4  ;;  %v12142_v48 = vld [vmem:[#allocation74_spill] sm:$0xff]  ;;  %v12143_v4 = vld [vmem:[#allocation43_spill] sm:$0xff] }
 0x926   :  { %4919 = vmatpush1.bf16.msra.mxu0 %v12133_v49  ;;  %4960 = vmatpush1.bf16.msra.mxu1 %v12134_v58  ;;  %v12144_v49 = vld [vmem:[#allocation75_spill] sm:$0xff]  ;;  %v12145_v58 = vld [vmem:[#allocation44_spill] sm:$0xff] }
 0x927   :  { %4920 = vmatprep.subr.bf16.mxu0 %v12135_v57  ;;  %4961 = vmatprep.subr.bf16.mxu1 %v12136_v60  ;;  %v12146_v57 = vld [vmem:[#allocation76_spill] sm:$0xff]  ;;  %v12147_v60 = vld [vmem:[#allocation45_spill] sm:$0xff] }
 0x92a   :  { %4921 = vmatpush1.bf16.msra.mxu0 %v12137_v47  ;;  %4962 = vmatpush1.bf16.msra.mxu1 %v12138_v7  ;;  %v12148_v47 = vld [vmem:[#allocation77_spill] sm:$0xff]  ;;  %v12149_v7 = vld [vmem:[#allocation46_spill] sm:$0xff] }
 0x92b   :  { %4922 = vmatprep.subr.bf16.mxu0 %v12139_v63  ;;  %4963 = vmatprep.subr.bf16.mxu1 %v12140_v43  ;;  %v12150_v63 = vld [vmem:[#allocation78_spill] sm:$0xff]  ;;  %v12151_v43 = vld [vmem:[#allocation47_spill] sm:$0xff] }
 0x92e   :  { %4923 = vmatpush1.bf16.msra.mxu0 %v12141_v25  ;;  %4964 = vmatpush1.bf16.msra.mxu1 %v12142_v48  ;;  %v12152_v25 = vld [vmem:[#allocation79_spill] sm:$0xff]  ;;  %v12153_v48 = vld [vmem:[#allocation48_spill] sm:$0xff] }
 0x92f   :  { %4924 = vmatprep.subr.bf16.mxu0 %v12143_v4  ;;  %4965 = vmatprep.subr.bf16.mxu1 %v12144_v49  ;;  %v12154_v4 = vld [vmem:[#allocation80_spill] sm:$0xff]  ;;  %v12155_v49 = vld [vmem:[#allocation49_spill] sm:$0xff] }
 0x932   :  { %4925 = vmatpush1.bf16.msra.mxu0 %v12145_v58  ;;  %4966 = vmatpush1.bf16.msra.mxu1 %v12146_v57  ;;  %v12156_v58 = vld [vmem:[#allocation81_spill] sm:$0xff]  ;;  %v12157_v57 = vld [vmem:[#allocation50_spill] sm:$0xff] }
 0x933   :  { %4926 = vmatprep.subr.bf16.mxu0 %v12147_v60  ;;  %4967 = vmatprep.subr.bf16.mxu1 %v12148_v47  ;;  %v12158_v60 = vld [vmem:[#allocation82_spill] sm:$0xff]  ;;  %v12159_v47 = vld [vmem:[#allocation83_spill] sm:$0xff] }
 0x936   :  { %4927 = vmatpush1.bf16.msra.mxu0 %v12149_v7  ;;  %4968 = vmatpush1.bf16.msra.mxu1 %v12150_v63  ;;  %v12160_v7 = vld [vmem:[#allocation123_spill] sm:$0xff] }
 0x937   :  { %4928 = vmatprep.subr.bf16.mxu0 %v12151_v43  ;;  %4969 = vmatprep.subr.bf16.mxu1 %v12152_v25 }
 0x93a   :  { %4929 = vmatpush1.bf16.msra.mxu0 %v12153_v48  ;;  %4970 = vmatpush1.bf16.msra.mxu1 %v12154_v4 }
 0x93b   :  { %4930 = vmatprep.subr.bf16.mxu0 %v12155_v49  ;;  %4971 = vmatprep.subr.bf16.mxu1 %v12156_v58 }
 0x93e   :  { %4931 = vmatpush1.bf16.msra.mxu0 %v12157_v57  ;;  %4972 = vmatpush1.bf16.msra.mxu1 %v12158_v60 }
 0x93f   :  { %4982 = vmatprep.subr.bf16.mxu0 %v12159_v47  ;;  %5023 = vmatprep.subr.bf16.mxu1 %v12160_v7 }
 0x994   :  { %v4676_v63 = vpop.f32.mrb[28].mxu0  ;;  %v4717_v43 = vpop.f32.mrb[40].mxu1 }
 0x995   :  { %v4816_v36 = vrot.slane %v4717_v43, 4  ;;  %v4678_v25 = vpop.f32.mrb[29].mxu0  ;;  %v4719_v33 = vpop.f32.mrb[41].mxu1 }
 0x996   :  { %v4817_v48 = vrot.slane %v4719_v33, 4  ;;  %v4680_v37 = vpop.f32.mrb[30].mxu0  ;;  %v4721_v4 = vpop.f32.mrb[42].mxu1  ;;  %v4878_v33 = vrot.slane %v10213_v44, 6 }
 0x997   :  { %v4832_v49 = vadd.f32 %v4816_v36, %v12161_v34  ;;  %v4681_v12 = vpop.f32.mrb[31].mxu0  ;;  %v4722_v58 = vpop.f32.mrb[43].mxu1  ;;  %v4879_v4 = vrot.slane %v10215_v61, 6  ;;  %v4814_v34 = vrot.slane %v4676_v63, 4 }
 0x998   :  { %v4833_v57 = vadd.f32 %v4817_v48, %v12162_v55  ;;  %v4815_v48 = vrot.slane %v4678_v25, 4 }
 0x999   :  { %v7440_v41 = vmul.f32 -1.442695, %v4832_v49  ;;  %v4830_v49 = vadd.f32 %v4814_v34, %v12068_v51 }
 0x99a   :  { %v7441_v60 = vmul.f32 -1.442695, %v4833_v57 }
 0x99b   :  { %8221 = vpow2.f32 %v7440_v41  ;;  %v4831_v41 = vadd.f32 %v4815_v48, %v12069_v40  ;;  %v7438_v57 = vmul.f32 -1.442695, %v4830_v49 }
 0x99c   :  { %8223 = vpow2.f32 %v7441_v60 }
 0x99d   :  { %v7439_v60 = vmul.f32 -1.442695, %v4831_v41 }
 0x9a5   :  { %v8222_v47 = vpop.eup %8221 }
 0x9a6   :  { %v4852_v7 = vadd.f32 1.0, %v8222_v47  ;;  %v8224_v26 = vpop.eup %8223 }
 0x9a7   :  { %v4853_v43 = vadd.f32 1.0, %v8224_v26 }
 0x9a8   :  { %8225 = vrcp.f32 %v4852_v7 }
 0x9a9   :  { %8227 = vrcp.f32 %v4853_v43 }
 0x9aa   :  { %8229 = vpow2.f32 %v7438_v57 }
 0x9ab   :  { %8231 = vpow2.f32 %v7439_v60 }
 0x9b2   :  { %v8226_v37 = vpop.eup %8225 }
 0x9b3   :  { %v4882_v36 = vmul.f32 %v8226_v37, %v4878_v33  ;;  %v8228_v12 = vpop.eup %8227 }
 0x9b4   :  { %v4883_v58 = vmul.f32 %v8228_v12, %v4879_v4  ;;  %v8230_v26 = vpop.eup %8229 }
 0x9b5   :  { %v8232_v47 = vpop.eup %8231  ;;  %v4850_v7 = vadd.f32 1.0, %v8230_v26 }
 0x9b6   :  { %v4851_v44 = vadd.f32 1.0, %v8232_v47 }
 0x9b7   :  { %8233 = vrcp.f32 %v4850_v7 }
 0x9b8   :  { %8235 = vrcp.f32 %v4851_v44 }
 0x9d4   :  { %v4758_v43 = vpop.f32.mrb[32].mxu0  ;;  %v4799_v55 = vpop.f32.mrb[44].mxu1 }
 0x9d5   :  { %v4818_v61 = vrot.slane %v4758_v43, 4  ;;  %v4820_v33 = vrot.slane %v4799_v55, 4  ;;  %v4760_v37 = vpop.f32.mrb[33].mxu0  ;;  %v4801_v4 = vpop.f32.mrb[45].mxu1 }
 0x9d6   :  { %v4819_v63 = vrot.slane %v4760_v37, 4  ;;  %v4821_v25 = vrot.slane %v4801_v4, 4  ;;  %v4762_v12 = vpop.f32.mrb[34].mxu0  ;;  %v4803_v34 = vpop.f32.mrb[46].mxu1 }
 0x9d7   :  { %v4834_v48 = vadd.f32 %v4818_v61, %v10043_v2  ;;  %v4836_v49 = vadd.f32 %v4820_v33, %v10059_v30  ;;  %v4763_v41 = vpop.f32.mrb[35].mxu0  ;;  %v4804_v57 = vpop.f32.mrb[47].mxu1 }
 0x9d8   :  { %v4835_v60 = vadd.f32 %v4819_v63, %v10047_v59  ;;  %v4837_v26 = vadd.f32 %v4821_v25, %v10063_v13  ;;  %v8234_v43 = vpop.eup %8233 }
 0x9d9   :  { %8237 = vtanh.f32 %v4834_v48  ;;  %v7442_v55 = vmul.f32 -1.442695, %v4836_v49  ;;  %v8236_v37 = vpop.eup %8235 }
 0x9da   :  { %8239 = vtanh.f32 %v4835_v60  ;;  %v7443_v47 = vmul.f32 -1.442695, %v4837_v26 }
 0x9db   :  { %8241 = vpow2.f32 %v7442_v55 }
 0x9dc   :  { %8243 = vpow2.f32 %v7443_v47 }
 0x9e3   :  { %v8238_v7 = vpop.eup %8237 }
 0x9e4   :  { %v8240_v4 = vpop.eup %8239  ;;  %v4884_v61 = vmul.f32 %v8238_v7, %v8234_v43  ;;  %v12164_v7 = vld [vmem:[#allocation111_spill] sm:$0xff] }
 0x9e5   :  { %v8242_v12 = vpop.eup %8241  ;;  %v4885_v33 = vmul.f32 %v8240_v4, %v8236_v37  ;;  %v12165_v4 = vld [vmem:[#allocation143_spill] sm:$0xff] }
 0x9e6   :  { %v8244_v34 = vpop.eup %8243  ;;  %v10363_v41 = vadd.f32 %v4884_v61, %v4882_v36  ;;  %v4870_v44 = vadd.f32 1.0, %v8242_v12  ;;  %v12166_v61 = vld [vmem:[#allocation112_spill] sm:$0xff] }
 0x9e7   :  { %v10365_v63 = vadd.f32 %v4885_v33, %v4883_v58  ;;  %v4871_v25 = vadd.f32 1.0, %v8244_v34  ;;  %v12163_v58 = vld [vmem:[#allocation142_spill] sm:$0xff]  ;;  %v12167_v12 = vld [vmem:[#allocation144_spill] sm:$0xff]  ;;  %v12168_v33 = vld [vmem:[#allocation113_spill] sm:$0xff] }
 0x9e8   :  { %8245 = vtanh.f32 %v10363_v41  ;;  %v12169_v34 = vld [vmem:[#allocation145_spill] sm:$0xff] }
 0x9e9   :  { %8247 = vrcp.f32 %v4870_v44  ;;  %v12170_v44 = vld [vmem:[#allocation114_spill] sm:$0xff] }
 0x9ea   :  { %8249 = vtanh.f32 %v10365_v63 }
 0x9eb   :  { %8251 = vrcp.f32 %v4871_v25  ;;  %v12171_v25 = vld [vmem:[#allocation146_spill] sm:$0xff] }
 0x9f2   :  { %v8246_v48 = vpop.eup %8245 }
 0x9f3   :  { %v8248_v49 = vpop.eup %8247 }
 0x9f4   :  { %v8250_v57 = vpop.eup %8249  ;;  %v4890_v60 = vmul.f32 %v8248_v49, %v8246_v48  ;;  %v12172_v48 = vld [vmem:[#allocation115_spill] sm:$0xff] }
 0x9f5   :  { %v8252_v26 = vpop.eup %8251  ;;  %v12173_v49 = vld [vmem:[#allocation147_spill] sm:$0xff] }
 0x9f6   :  { %v4891_v55 = vmul.f32 %v8252_v26, %v8250_v57  ;;  %v4892_v47 = vpack.c.bf16 %v4890_v60, %v4890_v60  ;;  %v12174_v57 = vld [vmem:[#allocation116_spill] sm:$0xff]  ;;  %v12176_v26 = vld [vmem:[#allocation117_spill] sm:$0xff] }
 0x9f7   :  { %v12175_v60 = vld [vmem:[#allocation148_spill] sm:$0xff] }
 0x9f8   :  { %v4893_v43 = vpack.c.bf16 %v4891_v55, %v4891_v55  ;;  %v10369_v37 = vrot.slane %v4892_v47, 2  ;;  %v12177_v55 = vld [vmem:[#allocation149_spill] sm:$0xff]  ;;  %v12178_v47 = vld [vmem:[#allocation118_spill] sm:$0xff] }
 0x9fa   :  { %v4897_v36 = vrot.slane %v4893_v43, 2  ;;  %v12179_v43 = vld [vmem:[#allocation150_spill] sm:$0xff] }
 0x9fc   :  { %4932 = vmatprep.mubr.bf16.mxu0 %v4897_v36  ;;  %4973 = vmatprep.mubr.bf16.mxu1 %v4897_v36 }
 0x9fd   :  { %4933 = vmatmul.mubr.bf16.vlgmr.msra.gmra.mrb[36].mxu0 %v10369_v37  ;;  %4974 = vmatmul.mubr.bf16.vlgmr.msra.gmra.mrb[48].mxu1 %v10369_v37 }
 0x9fe   :  { %4983 = vmatpush1.bf16.msra.mxu0 %v9608_v35  ;;  %5024 = vmatpush1.bf16.msra.mxu1 %v11898_v10 }
 0x9ff   :  { %5014 = vmatprep.mubr.bf16.mxu0 %v4897_v36  ;;  %5055 = vmatprep.mubr.bf16.mxu1 %v4897_v36  ;;  %v12180_v36 = vld [vmem:[#allocation119_spill] sm:$0xff] }
 0xa00   :  { %4984 = vmatprep.subr.bf16.mxu0 %v9611_v16  ;;  %5025 = vmatprep.subr.bf16.mxu1 %v11899_v42 }
 0xa02   :  { %4985 = vmatpush1.bf16.msra.mxu0 %v9615_v17  ;;  %5026 = vmatpush1.bf16.msra.mxu1 %v11900_v31 }
 0xa03   :  { %4986 = vmatprep.subr.bf16.mxu0 %v9619_v24  ;;  %5027 = vmatprep.subr.bf16.mxu1 %v11901_v19 }
 0xa06   :  { %4987 = vmatpush1.bf16.msra.mxu0 %v9622_v45  ;;  %5028 = vmatpush1.bf16.msra.mxu1 %v11902_v52 }
 0xa07   :  { %4988 = vmatprep.subr.bf16.mxu0 %v9625_v14  ;;  %5029 = vmatprep.subr.bf16.mxu1 %v11903_v62 }
 0xa0a   :  { %4989 = vmatpush1.bf16.msra.mxu0 %v9628_v50  ;;  %5030 = vmatpush1.bf16.msra.mxu1 %v11904_v32 }
 0xa0b   :  { %4990 = vmatprep.subr.bf16.mxu0 %v9631_v1  ;;  %5031 = vmatprep.subr.bf16.mxu1 %v11905_v53 }
 0xa0e   :  { %4991 = vmatpush1.bf16.msra.mxu0 %v9634_v22  ;;  %5032 = vmatpush1.bf16.msra.mxu1 %v11906_v27 }
 0xa0f   :  { %4992 = vmatprep.subr.bf16.mxu0 %v9637_v11  ;;  %5033 = vmatprep.subr.bf16.mxu1 %v11907_v56 }
 0xa12   :  { %4993 = vmatpush1.bf16.msra.mxu0 %v11876_v8  ;;  %5034 = vmatpush1.bf16.msra.mxu1 %v11908_v0 }
 0xa13   :  { %4994 = vmatprep.subr.bf16.mxu0 %v11877_v9  ;;  %5035 = vmatprep.subr.bf16.mxu1 %v11909_v18 }
 0xa16   :  { %4995 = vmatpush1.bf16.msra.mxu0 %v11878_v15  ;;  %5036 = vmatpush1.bf16.msra.mxu1 %v11910_v3 }
 0xa17   :  { %4996 = vmatprep.subr.bf16.mxu0 %v11879_v29  ;;  %5037 = vmatprep.subr.bf16.mxu1 %v11911_v39 }
 0xa1a   :  { %4997 = vmatpush1.bf16.msra.mxu0 %v11880_v23  ;;  %5038 = vmatpush1.bf16.msra.mxu1 %v11912_v20 }
 0xa1b   :  { %4998 = vmatprep.subr.bf16.mxu0 %v11881_v28  ;;  %5039 = vmatprep.subr.bf16.mxu1 %v11913_v6 }
 0xa1e   :  { %4999 = vmatpush1.bf16.msra.mxu0 %v11882_v21  ;;  %5040 = vmatpush1.bf16.msra.mxu1 %v11914_v54 }
 0xa1f   :  { %5000 = vmatprep.subr.bf16.mxu0 %v11883_v38  ;;  %5041 = vmatprep.subr.bf16.mxu1 %v11915_v46 }
 0xa22   :  { %5001 = vmatpush1.bf16.msra.mxu0 %v11884_v5  ;;  %5042 = vmatpush1.bf16.msra.mxu1 %v12163_v58 }
 0xa23   :  { %5002 = vmatprep.subr.bf16.mxu0 %v12164_v7  ;;  %5043 = vmatprep.subr.bf16.mxu1 %v12165_v4  ;;  %v12255_v4 = vld [vmem:[#allocation87_spill] sm:$0xff] }
 0xa26   :  { %5003 = vmatpush1.bf16.msra.mxu0 %v12166_v61  ;;  %5044 = vmatpush1.bf16.msra.mxu1 %v12167_v12  ;;  %v12254_v12 = vld [vmem:[#allocation86_spill] sm:$0xff] }
 0xa27   :  { %5004 = vmatprep.subr.bf16.mxu0 %v12168_v33  ;;  %5045 = vmatprep.subr.bf16.mxu1 %v12169_v34 }
 0xa2a   :  { %5005 = vmatpush1.bf16.msra.mxu0 %v12170_v44  ;;  %5046 = vmatpush1.bf16.msra.mxu1 %v12171_v25  ;;  %v12181_v44 = vld [vmem:[#allocation151_spill] sm:$0xff]  ;;  %v12182_v25 = vld [vmem:[#allocation120_spill] sm:$0xff] }
 0xa2b   :  { %5006 = vmatprep.subr.bf16.mxu0 %v12172_v48  ;;  %5047 = vmatprep.subr.bf16.mxu1 %v12173_v49  ;;  %v12183_v48 = vld [vmem:[#allocation152_spill] sm:$0xff]  ;;  %v12184_v49 = vld [vmem:[#allocation121_spill] sm:$0xff] }
 0xa2e   :  { %5007 = vmatpush1.bf16.msra.mxu0 %v12174_v57  ;;  %5048 = vmatpush1.bf16.msra.mxu1 %v12175_v60  ;;  %v12185_v57 = vld [vmem:[#allocation153_spill] sm:$0xff]  ;;  %v12186_v60 = vld [vmem:[#allocation122_spill] sm:$0xff] }
 0xa2f   :  { %5008 = vmatprep.subr.bf16.mxu0 %v12176_v26  ;;  %5049 = vmatprep.subr.bf16.mxu1 %v12177_v55  ;;  %v12187_v26 = vld [vmem:[#allocation154_spill] sm:$0xff]  ;;  %v12188_v55 = vld [vmem:[#allocation19_spill] sm:$0xff] }
 0xa32   :  { %5009 = vmatpush1.bf16.msra.mxu0 %v12178_v47  ;;  %5050 = vmatpush1.bf16.msra.mxu1 %v12179_v43  ;;  %v12189_v47 = vld [vmem:[#allocation51_spill] sm:$0xff] }
 0xa33   :  { %5010 = vmatprep.subr.bf16.mxu0 %v12180_v36  ;;  %5051 = vmatprep.subr.bf16.mxu1 %v12181_v44  ;;  %v12190_v44 = vld [vmem:[#allocation20_spill] sm:$0xff] }
 0xa34   :  { %v12199_v36 = vld [vmem:[#allocation56_spill] sm:$0xff] }
 0xa36   :  { %5011 = vmatpush1.bf16.msra.mxu0 %v12182_v25  ;;  %5052 = vmatpush1.bf16.msra.mxu1 %v12183_v48  ;;  %v12191_v25 = vld [vmem:[#allocation52_spill] sm:$0xff]  ;;  %v12192_v48 = vld [vmem:[#allocation21_spill] sm:$0xff] }
 0xa37   :  { %5012 = vmatprep.subr.bf16.mxu0 %v12184_v49  ;;  %5053 = vmatprep.subr.bf16.mxu1 %v12185_v57  ;;  %v12193_v49 = vld [vmem:[#allocation53_spill] sm:$0xff]  ;;  %v12194_v57 = vld [vmem:[#allocation22_spill] sm:$0xff] }
 0xa3a   :  { %5013 = vmatpush1.bf16.msra.mxu0 %v12186_v60  ;;  %5054 = vmatpush1.bf16.msra.mxu1 %v12187_v26  ;;  %v12195_v60 = vld [vmem:[#allocation54_spill] sm:$0xff]  ;;  %v12196_v26 = vld [vmem:[#allocation23_spill] sm:$0xff] }
 0xa3b   :  { %5158 = vmatprep.subr.bf16.mxu0 %v12188_v55  ;;  %5199 = vmatprep.subr.bf16.mxu1 %v12189_v47  ;;  %v12197_v55 = vld [vmem:[#allocation55_spill] sm:$0xff]  ;;  %v12198_v47 = vld [vmem:[#allocation24_spill] sm:$0xff] }
 0xa3d   :  { %5015 = vmatmul.mubr.bf16.vlgmr.msra.gmra.mrb[40].mxu0 %v10369_v37  ;;  %5056 = vmatmul.mubr.bf16.vlgmr.msra.gmra.mrb[52].mxu1 %v10369_v37  ;;  %v12200_v37 = vld [vmem:[#allocation25_spill] sm:$0xff] }
 0xa3e   :  { %5159 = vmatpush1.bf16.msra.mxu0 %v12190_v44  ;;  %5200 = vmatpush1.bf16.msra.mxu1 %v12191_v25  ;;  %v12201_v44 = vld [vmem:[#allocation57_spill] sm:$0xff]  ;;  %v12202_v25 = vld [vmem:[#allocation26_spill] sm:$0xff] }
 0xa3f   :  { %5160 = vmatprep.subr.bf16.mxu0 %v12192_v48  ;;  %5201 = vmatprep.subr.bf16.mxu1 %v12193_v49  ;;  %v12203_v48 = vld [vmem:[#allocation58_spill] sm:$0xff]  ;;  %v12204_v49 = vld [vmem:[#allocation27_spill] sm:$0xff] }
 0xa42   :  { %5161 = vmatpush1.bf16.msra.mxu0 %v12194_v57  ;;  %5202 = vmatpush1.bf16.msra.mxu1 %v12195_v60  ;;  %v12205_v57 = vld [vmem:[#allocation59_spill] sm:$0xff]  ;;  %v12206_v60 = vld [vmem:[#allocation28_spill] sm:$0xff] }
 0xa43   :  { %5162 = vmatprep.subr.bf16.mxu0 %v12196_v26  ;;  %5203 = vmatprep.subr.bf16.mxu1 %v12197_v55  ;;  %v12207_v26 = vld [vmem:[#allocation60_spill] sm:$0xff]  ;;  %v12208_v55 = vld [vmem:[#allocation29_spill] sm:$0xff] }
 0xa46   :  { %5163 = vmatpush1.bf16.msra.mxu0 %v12198_v47  ;;  %5204 = vmatpush1.bf16.msra.mxu1 %v12199_v36  ;;  %v12209_v47 = vld [vmem:[#allocation61_spill] sm:$0xff]  ;;  %v12210_v36 = vld [vmem:[#allocation30_spill] sm:$0xff] }
 0xa47   :  { %5164 = vmatprep.subr.bf16.mxu0 %v12200_v37  ;;  %5205 = vmatprep.subr.bf16.mxu1 %v12201_v44  ;;  %v12211_v37 = vld [vmem:[#allocation62_spill] sm:$0xff]  ;;  %v12212_v44 = vld [vmem:[#allocation31_spill] sm:$0xff] }
 0xa4a   :  { %5165 = vmatpush1.bf16.msra.mxu0 %v12202_v25  ;;  %5206 = vmatpush1.bf16.msra.mxu1 %v12203_v48  ;;  %v12213_v25 = vld [vmem:[#allocation63_spill] sm:$0xff]  ;;  %v12214_v48 = vld [vmem:[#allocation32_spill] sm:$0xff] }
 0xa4b   :  { %5166 = vmatprep.subr.bf16.mxu0 %v12204_v49  ;;  %5207 = vmatprep.subr.bf16.mxu1 %v12205_v57  ;;  %v12215_v49 = vld [vmem:[#allocation64_spill] sm:$0xff]  ;;  %v12216_v57 = vld [vmem:[#allocation33_spill] sm:$0xff] }
 0xa4e   :  { %5167 = vmatpush1.bf16.msra.mxu0 %v12206_v60  ;;  %5208 = vmatpush1.bf16.msra.mxu1 %v12207_v26  ;;  %v12217_v60 = vld [vmem:[#allocation65_spill] sm:$0xff]  ;;  %v12218_v26 = vld [vmem:[#allocation34_spill] sm:$0xff] }
 0xa4f   :  { %5168 = vmatprep.subr.bf16.mxu0 %v12208_v55  ;;  %5209 = vmatprep.subr.bf16.mxu1 %v12209_v47  ;;  %v12219_v55 = vld [vmem:[#allocation66_spill] sm:$0xff]  ;;  %v12220_v47 = vld [vmem:[#allocation35_spill] sm:$0xff] }
 0xa52   :  { %5169 = vmatpush1.bf16.msra.mxu0 %v12210_v36  ;;  %5210 = vmatpush1.bf16.msra.mxu1 %v12211_v37  ;;  %v12221_v36 = vld [vmem:[#allocation67_spill] sm:$0xff]  ;;  %v12222_v37 = vld [vmem:[#allocation36_spill] sm:$0xff] }
 0xa53   :  { %5170 = vmatprep.subr.bf16.mxu0 %v12212_v44  ;;  %5211 = vmatprep.subr.bf16.mxu1 %v12213_v25  ;;  %v12223_v44 = vld [vmem:[#allocation68_spill] sm:$0xff]  ;;  %v12224_v25 = vld [vmem:[#allocation37_spill] sm:$0xff] }
 0xa56   :  { %5171 = vmatpush1.bf16.msra.mxu0 %v12214_v48  ;;  %5212 = vmatpush1.bf16.msra.mxu1 %v12215_v49  ;;  %v12225_v48 = vld [vmem:[#allocation69_spill] sm:$0xff]  ;;  %v12226_v49 = vld [vmem:[#allocation38_spill] sm:$0xff] }
 0xa57   :  { %5172 = vmatprep.subr.bf16.mxu0 %v12216_v57  ;;  %5213 = vmatprep.subr.bf16.mxu1 %v12217_v60  ;;  %v12227_v57 = vld [vmem:[#allocation70_spill] sm:$0xff]  ;;  %v12228_v60 = vld [vmem:[#allocation39_spill] sm:$0xff] }
 0xa5a   :  { %5173 = vmatpush1.bf16.msra.mxu0 %v12218_v26  ;;  %5214 = vmatpush1.bf16.msra.mxu1 %v12219_v55  ;;  %v12229_v26 = vld [vmem:[#allocation71_spill] sm:$0xff]  ;;  %v12230_v55 = vld [vmem:[#allocation40_spill] sm:$0xff] }
 0xa5b   :  { %5174 = vmatprep.subr.bf16.mxu0 %v12220_v47  ;;  %5215 = vmatprep.subr.bf16.mxu1 %v12221_v36  ;;  %v12231_v47 = vld [vmem:[#allocation72_spill] sm:$0xff]  ;;  %v12232_v36 = vld [vmem:[#allocation41_spill] sm:$0xff] }
 0xa5e   :  { %5175 = vmatpush1.bf16.msra.mxu0 %v12222_v37  ;;  %5216 = vmatpush1.bf16.msra.mxu1 %v12223_v44  ;;  %v12233_v37 = vld [vmem:[#allocation73_spill] sm:$0xff]  ;;  %v12234_v44 = vld [vmem:[#allocation42_spill] sm:$0xff] }
 0xa5f   :  { %5176 = vmatprep.subr.bf16.mxu0 %v12224_v25  ;;  %5217 = vmatprep.subr.bf16.mxu1 %v12225_v48  ;;  %v12235_v25 = vld [vmem:[#allocation74_spill] sm:$0xff]  ;;  %v12236_v48 = vld [vmem:[#allocation43_spill] sm:$0xff] }
 0xa62   :  { %5177 = vmatpush1.bf16.msra.mxu0 %v12226_v49  ;;  %5218 = vmatpush1.bf16.msra.mxu1 %v12227_v57  ;;  %v12237_v49 = vld [vmem:[#allocation75_spill] sm:$0xff]  ;;  %v12238_v57 = vld [vmem:[#allocation44_spill] sm:$0xff] }
 0xa63   :  { %5178 = vmatprep.subr.bf16.mxu0 %v12228_v60  ;;  %5219 = vmatprep.subr.bf16.mxu1 %v12229_v26  ;;  %v12239_v60 = vld [vmem:[#allocation76_spill] sm:$0xff]  ;;  %v12240_v26 = vld [vmem:[#allocation45_spill] sm:$0xff] }
 0xa66   :  { %5179 = vmatpush1.bf16.msra.mxu0 %v12230_v55  ;;  %5220 = vmatpush1.bf16.msra.mxu1 %v12231_v47  ;;  %v12241_v55 = vld [vmem:[#allocation77_spill] sm:$0xff]  ;;  %v12242_v47 = vld [vmem:[#allocation46_spill] sm:$0xff] }
 0xa67   :  { %5180 = vmatprep.subr.bf16.mxu0 %v12232_v36  ;;  %5221 = vmatprep.subr.bf16.mxu1 %v12233_v37  ;;  %v12243_v36 = vld [vmem:[#allocation78_spill] sm:$0xff]  ;;  %v12244_v37 = vld [vmem:[#allocation47_spill] sm:$0xff] }
 0xa6a   :  { %5181 = vmatpush1.bf16.msra.mxu0 %v12234_v44  ;;  %5222 = vmatpush1.bf16.msra.mxu1 %v12235_v25  ;;  %v12245_v44 = vld [vmem:[#allocation79_spill] sm:$0xff]  ;;  %v12246_v25 = vld [vmem:[#allocation48_spill] sm:$0xff] }
 0xa6b   :  { %5182 = vmatprep.subr.bf16.mxu0 %v12236_v48  ;;  %5223 = vmatprep.subr.bf16.mxu1 %v12237_v49  ;;  %v12247_v48 = vld [vmem:[#allocation80_spill] sm:$0xff]  ;;  %v12248_v49 = vld [vmem:[#allocation49_spill] sm:$0xff] }
 0xa6e   :  { %5183 = vmatpush1.bf16.msra.mxu0 %v12238_v57  ;;  %5224 = vmatpush1.bf16.msra.mxu1 %v12239_v60  ;;  %v12249_v57 = vld [vmem:[#allocation81_spill] sm:$0xff]  ;;  %v12250_v60 = vld [vmem:[#allocation50_spill] sm:$0xff] }
 0xa6f   :  { %5184 = vmatprep.subr.bf16.mxu0 %v12240_v26  ;;  %5225 = vmatprep.subr.bf16.mxu1 %v12241_v55  ;;  %v12251_v26 = vld [vmem:[#allocation82_spill] sm:$0xff]  ;;  %v12252_v55 = vld [vmem:[#allocation83_spill] sm:$0xff] }
 0xa72   :  { %5185 = vmatpush1.bf16.msra.mxu0 %v12242_v47  ;;  %5226 = vmatpush1.bf16.msra.mxu1 %v12243_v36  ;;  %v12253_v47 = vld [vmem:[#allocation123_spill] sm:$0xff] }
 0xa73   :  { %5186 = vmatprep.subr.bf16.mxu0 %v12244_v37  ;;  %5227 = vmatprep.subr.bf16.mxu1 %v12245_v44 }
 0xa76   :  { %5187 = vmatpush1.bf16.msra.mxu0 %v12246_v25  ;;  %5228 = vmatpush1.bf16.msra.mxu1 %v12247_v48 }
 0xa77   :  { %5188 = vmatprep.subr.bf16.mxu0 %v12248_v49  ;;  %5229 = vmatprep.subr.bf16.mxu1 %v12249_v57 }
 0xa7a   :  { %5189 = vmatpush1.bf16.msra.mxu0 %v12250_v60  ;;  %5230 = vmatpush1.bf16.msra.mxu1 %v12251_v26 }
 0xa7b   :  { %5240 = vmatprep.subr.bf16.mxu0 %v12252_v55  ;;  %5281 = vmatprep.subr.bf16.mxu1 %v12253_v47 }
 0xad0   :  { %v4934_v36 = vpop.f32.mrb[36].mxu0  ;;  %v4975_v37 = vpop.f32.mrb[48].mxu1 }
 0xad1   :  { %v5074_v43 = vrot.slane %v4975_v37, 2  ;;  %v4936_v44 = vpop.f32.mrb[37].mxu0  ;;  %v4977_v34 = vpop.f32.mrb[49].mxu1 }
 0xad2   :  { %v5075_v25 = vrot.slane %v4977_v34, 2  ;;  %v4938_v33 = vpop.f32.mrb[38].mxu0  ;;  %v4979_v48 = vpop.f32.mrb[50].mxu1  ;;  %v5136_v34 = vrot.slane %v10363_v41, 6 }
 0xad3   :  { %v5090_v49 = vadd.f32 %v5074_v43, %v12254_v12  ;;  %v4939_v61 = vpop.f32.mrb[39].mxu0  ;;  %v4980_v57 = vpop.f32.mrb[51].mxu1  ;;  %v5137_v48 = vrot.slane %v10365_v63, 6  ;;  %v5072_v43 = vrot.slane %v4934_v36, 2 }
 0xad4   :  { %v5091_v60 = vadd.f32 %v5075_v25, %v12255_v4  ;;  %v5073_v4 = vrot.slane %v4936_v44, 2 }
 0xad5   :  { %v7446_v7 = vmul.f32 -1.442695, %v5090_v49  ;;  %v5088_v25 = vadd.f32 %v5072_v43, %v12068_v51 }
 0xad6   :  { %v7447_v26 = vmul.f32 -1.442695, %v5091_v60 }
 0xad7   :  { %8253 = vpow2.f32 %v7446_v7  ;;  %v5089_v7 = vadd.f32 %v5073_v4, %v12069_v40  ;;  %v7444_v49 = vmul.f32 -1.442695, %v5088_v25 }
 0xad8   :  { %8255 = vpow2.f32 %v7447_v26 }
 0xad9   :  { %v7445_v60 = vmul.f32 -1.442695, %v5089_v7 }
 0xae1   :  { %v8254_v55 = vpop.eup %8253 }
 0xae2   :  { %v5110_v47 = vadd.f32 1.0, %v8254_v55  ;;  %v8256_v58 = vpop.eup %8255 }
 0xae3   :  { %v5111_v37 = vadd.f32 1.0, %v8256_v58 }
 0xae4   :  { %8257 = vrcp.f32 %v5110_v47 }
 0xae5   :  { %8259 = vrcp.f32 %v5111_v37 }
 0xae6   :  { %8261 = vpow2.f32 %v7444_v49 }
 0xae7   :  { %8263 = vpow2.f32 %v7445_v60 }
 0xaee   :  { %v8258_v33 = vpop.eup %8257 }
 0xaef   :  { %v5140_v12 = vmul.f32 %v8258_v33, %v5136_v34  ;;  %v8260_v61 = vpop.eup %8259 }
 0xaf0   :  { %v5141_v57 = vmul.f32 %v8260_v61, %v5137_v48  ;;  %v8262_v58 = vpop.eup %8261 }
 0xaf1   :  { %v8264_v26 = vpop.eup %8263  ;;  %v5108_v55 = vadd.f32 1.0, %v8262_v58 }
 0xaf2   :  { %v5109_v41 = vadd.f32 1.0, %v8264_v26 }
 0xaf3   :  { %8265 = vrcp.f32 %v5108_v55 }
 0xaf4   :  { %8267 = vrcp.f32 %v5109_v41 }
 0xafd   :  { %v8266_v26 = vpop.eup %8265 }
 0xb10   :  { %v5016_v47 = vpop.f32.mrb[40].mxu0  ;;  %v5057_v37 = vpop.f32.mrb[52].mxu1 }
 0xb11   :  { %v5076_v63 = vrot.slane %v5016_v47, 2  ;;  %v5078_v34 = vrot.slane %v5057_v37, 2  ;;  %v5018_v33 = vpop.f32.mrb[41].mxu0  ;;  %v5059_v48 = vpop.f32.mrb[53].mxu1 }
 0xb12   :  { %v5077_v36 = vrot.slane %v5018_v33, 2  ;;  %v5079_v44 = vrot.slane %v5059_v48, 2  ;;  %v5020_v61 = vpop.f32.mrb[42].mxu0  ;;  %v5061_v51 = vpop.f32.mrb[54].mxu1 }
 0xb13   :  { %v5092_v40 = vadd.f32 %v5076_v63, %v10043_v2  ;;  %v5094_v43 = vadd.f32 %v5078_v34, %v10059_v30  ;;  %v5021_v4 = vpop.f32.mrb[43].mxu0  ;;  %v5062_v25 = vpop.f32.mrb[55].mxu1 }
 0xb14   :  { %v5093_v7 = vadd.f32 %v5077_v36, %v10047_v59  ;;  %v5095_v49 = vadd.f32 %v5079_v44, %v10063_v13  ;;  %v8268_v47 = vpop.eup %8267 }
 0xb15   :  { %8269 = vtanh.f32 %v5092_v40  ;;  %v7448_v60 = vmul.f32 -1.442695, %v5094_v43 }
 0xb16   :  { %8271 = vtanh.f32 %v5093_v7  ;;  %v7449_v58 = vmul.f32 -1.442695, %v5095_v49  ;;  %v12257_v7 = vld [vmem:[#allocation111_spill] sm:$0xff] }
 0xb17   :  { %8273 = vpow2.f32 %v7448_v60  ;;  %v12258_v49 = vld [vmem:[#allocation143_spill] sm:$0xff]  ;;  %v12259_v60 = vld [vmem:[#allocation112_spill] sm:$0xff] }
 0xb18   :  { %8275 = vpow2.f32 %v7449_v58  ;;  %v12260_v58 = vld [vmem:[#allocation144_spill] sm:$0xff] }
 0xb1f   :  { %v8270_v55 = vpop.eup %8269 }
 0xb20   :  { %v8272_v37 = vpop.eup %8271  ;;  %v5142_v2 = vmul.f32 %v8270_v55, %v8266_v26  ;;  %v12261_v26 = vld [vmem:[#allocation113_spill] sm:$0xff]  ;;  %v12263_v55 = vld [vmem:[#allocation114_spill] sm:$0xff] }
 0xb21   :  { %v8274_v63 = vpop.eup %8273  ;;  %v5143_v30 = vmul.f32 %v8272_v37, %v8268_v47  ;;  %v12262_v47 = vld [vmem:[#allocation145_spill] sm:$0xff]  ;;  %v12264_v37 = vld [vmem:[#allocation146_spill] sm:$0xff] }
 0xb22   :  { %v8276_v34 = vpop.eup %8275  ;;  %v10513_v33 = vadd.f32 %v5142_v2, %v5140_v12  ;;  %v5128_v41 = vadd.f32 1.0, %v8274_v63  ;;  %v12265_v2 = vld [vmem:[#allocation115_spill] sm:$0xff] }
 0xb23   :  { %v10515_v59 = vadd.f32 %v5143_v30, %v5141_v57  ;;  %v5129_v13 = vadd.f32 1.0, %v8276_v34  ;;  %v12256_v57 = vld [vmem:[#allocation142_spill] sm:$0xff]  ;;  %v12266_v63 = vld [vmem:[#allocation147_spill] sm:$0xff]  ;;  %v12267_v30 = vld [vmem:[#allocation116_spill] sm:$0xff] }
 0xb24   :  { %8277 = vtanh.f32 %v10513_v33  ;;  %v12268_v34 = vld [vmem:[#allocation148_spill] sm:$0xff] }
 0xb25   :  { %8279 = vrcp.f32 %v5128_v41  ;;  %v12269_v41 = vld [vmem:[#allocation117_spill] sm:$0xff] }
 0xb26   :  { %8281 = vtanh.f32 %v10515_v59 }
 0xb27   :  { %8283 = vrcp.f32 %v5129_v13  ;;  %v12270_v13 = vld [vmem:[#allocation149_spill] sm:$0xff] }
 0xb2e   :  { %v8278_v48 = vpop.eup %8277 }
 0xb2f   :  { %v8280_v36 = vpop.eup %8279 }
 0xb30   :  { %v8282_v44 = vpop.eup %8281  ;;  %v5148_v61 = vmul.f32 %v8280_v36, %v8278_v48  ;;  %v12271_v48 = vld [vmem:[#allocation118_spill] sm:$0xff] }
 0xb31   :  { %v8284_v51 = vpop.eup %8283  ;;  %v12272_v36 = vld [vmem:[#allocation150_spill] sm:$0xff] }
 0xb32   :  { %v5149_v40 = vmul.f32 %v8284_v51, %v8282_v44  ;;  %v5150_v43 = vpack.c.bf16 %v5148_v61, %v5148_v61  ;;  %v12273_v44 = vld [vmem:[#allocation119_spill] sm:$0xff]  ;;  %v12275_v51 = vld [vmem:[#allocation120_spill] sm:$0xff] }
 0xb33   :  { %v12274_v61 = vld [vmem:[#allocation151_spill] sm:$0xff] }
 0xb34   :  { %v5151_v4 = vpack.c.bf16 %v5149_v40, %v5149_v40  ;;  %v10519_v25 = vrot.slane %v5150_v43, 3  ;;  %v12276_v40 = vld [vmem:[#allocation152_spill] sm:$0xff]  ;;  %v12277_v43 = vld [vmem:[#allocation121_spill] sm:$0xff] }
 0xb36   :  { %v5155_v12 = vrot.slane %v5151_v4, 3  ;;  %v12278_v4 = vld [vmem:[#allocation153_spill] sm:$0xff] }
 0xb38   :  { %5190 = vmatprep.mubr.bf16.mxu0 %v5155_v12  ;;  %5231 = vmatprep.mubr.bf16.mxu1 %v5155_v12 }
 0xb39   :  { %5191 = vmatmul.mubr.bf16.vlgmr.msra.gmra.mrb[44].mxu0 %v10519_v25  ;;  %5232 = vmatmul.mubr.bf16.vlgmr.msra.gmra.mrb[56].mxu1 %v10519_v25 }
 0xb3a   :  { %5241 = vmatpush1.bf16.msra.mxu0 %v9608_v35  ;;  %5282 = vmatpush1.bf16.msra.mxu1 %v11898_v10 }
 0xb3b   :  { %5272 = vmatprep.mubr.bf16.mxu0 %v5155_v12  ;;  %5313 = vmatprep.mubr.bf16.mxu1 %v5155_v12  ;;  %v12279_v12 = vld [vmem:[#allocation122_spill] sm:$0xff] }
 0xb3c   :  { %5242 = vmatprep.subr.bf16.mxu0 %v9611_v16  ;;  %5283 = vmatprep.subr.bf16.mxu1 %v11899_v42 }
 0xb3e   :  { %5243 = vmatpush1.bf16.msra.mxu0 %v9615_v17  ;;  %5284 = vmatpush1.bf16.msra.mxu1 %v11900_v31 }
 0xb3f   :  { %5244 = vmatprep.subr.bf16.mxu0 %v9619_v24  ;;  %5285 = vmatprep.subr.bf16.mxu1 %v11901_v19 }
 0xb42   :  { %5245 = vmatpush1.bf16.msra.mxu0 %v9622_v45  ;;  %5286 = vmatpush1.bf16.msra.mxu1 %v11902_v52 }
 0xb43   :  { %5246 = vmatprep.subr.bf16.mxu0 %v9625_v14  ;;  %5287 = vmatprep.subr.bf16.mxu1 %v11903_v62 }
 0xb46   :  { %5247 = vmatpush1.bf16.msra.mxu0 %v9628_v50  ;;  %5288 = vmatpush1.bf16.msra.mxu1 %v11904_v32 }
 0xb47   :  { %5248 = vmatprep.subr.bf16.mxu0 %v9631_v1  ;;  %5289 = vmatprep.subr.bf16.mxu1 %v11905_v53 }
 0xb4a   :  { %5249 = vmatpush1.bf16.msra.mxu0 %v9634_v22  ;;  %5290 = vmatpush1.bf16.msra.mxu1 %v11906_v27 }
 0xb4b   :  { %5250 = vmatprep.subr.bf16.mxu0 %v9637_v11  ;;  %5291 = vmatprep.subr.bf16.mxu1 %v11907_v56 }
 0xb4e   :  { %5251 = vmatpush1.bf16.msra.mxu0 %v11876_v8  ;;  %5292 = vmatpush1.bf16.msra.mxu1 %v11908_v0 }
 0xb4f   :  { %5252 = vmatprep.subr.bf16.mxu0 %v11877_v9  ;;  %5293 = vmatprep.subr.bf16.mxu1 %v11909_v18 }
 0xb52   :  { %5253 = vmatpush1.bf16.msra.mxu0 %v11878_v15  ;;  %5294 = vmatpush1.bf16.msra.mxu1 %v11910_v3 }
 0xb53   :  { %5254 = vmatprep.subr.bf16.mxu0 %v11879_v29  ;;  %5295 = vmatprep.subr.bf16.mxu1 %v11911_v39 }
 0xb56   :  { %5255 = vmatpush1.bf16.msra.mxu0 %v11880_v23  ;;  %5296 = vmatpush1.bf16.msra.mxu1 %v11912_v20 }
 0xb57   :  { %5256 = vmatprep.subr.bf16.mxu0 %v11881_v28  ;;  %5297 = vmatprep.subr.bf16.mxu1 %v11913_v6 }
 0xb5a   :  { %5257 = vmatpush1.bf16.msra.mxu0 %v11882_v21  ;;  %5298 = vmatpush1.bf16.msra.mxu1 %v11914_v54 }
 0xb5b   :  { %5258 = vmatprep.subr.bf16.mxu0 %v11883_v38  ;;  %5299 = vmatprep.subr.bf16.mxu1 %v11915_v46 }
 0xb5e   :  { %5259 = vmatpush1.bf16.msra.mxu0 %v11884_v5  ;;  %5300 = vmatpush1.bf16.msra.mxu1 %v12256_v57 }
 0xb5f   :  { %5260 = vmatprep.subr.bf16.mxu0 %v12257_v7  ;;  %5301 = vmatprep.subr.bf16.mxu1 %v12258_v49 }
 0xb62   :  { %5261 = vmatpush1.bf16.msra.mxu0 %v12259_v60  ;;  %5302 = vmatpush1.bf16.msra.mxu1 %v12260_v58 }
 0xb63   :  { %5262 = vmatprep.subr.bf16.mxu0 %v12261_v26  ;;  %5303 = vmatprep.subr.bf16.mxu1 %v12262_v47 }
 0xb66   :  { %5263 = vmatpush1.bf16.msra.mxu0 %v12263_v55  ;;  %5304 = vmatpush1.bf16.msra.mxu1 %v12264_v37 }
 0xb67   :  { %5264 = vmatprep.subr.bf16.mxu0 %v12265_v2  ;;  %5305 = vmatprep.subr.bf16.mxu1 %v12266_v63 }
 0xb6a   :  { %5265 = vmatpush1.bf16.msra.mxu0 %v12267_v30  ;;  %5306 = vmatpush1.bf16.msra.mxu1 %v12268_v34 }
 0xb6b   :  { %5266 = vmatprep.subr.bf16.mxu0 %v12269_v41  ;;  %5307 = vmatprep.subr.bf16.mxu1 %v12270_v13  ;;  %v12280_v41 = vld [vmem:[#allocation154_spill] sm:$0xff]  ;;  %v12281_v13 = vld [vmem:[#allocation19_spill] sm:$0xff] }
 0xb6e   :  { %5267 = vmatpush1.bf16.msra.mxu0 %v12271_v48  ;;  %5308 = vmatpush1.bf16.msra.mxu1 %v12272_v36  ;;  %v12282_v48 = vld [vmem:[#allocation51_spill] sm:$0xff] }
 0xb6f   :  { %5268 = vmatprep.subr.bf16.mxu0 %v12273_v44  ;;  %5309 = vmatprep.subr.bf16.mxu1 %v12274_v61  ;;  %v12283_v61 = vld [vmem:[#allocation20_spill] sm:$0xff] }
 0xb70   :  { %v12292_v44 = vld [vmem:[#allocation56_spill] sm:$0xff] }
 0xb72   :  { %5269 = vmatpush1.bf16.msra.mxu0 %v12275_v51  ;;  %5310 = vmatpush1.bf16.msra.mxu1 %v12276_v40  ;;  %v12284_v51 = vld [vmem:[#allocation52_spill] sm:$0xff]  ;;  %v12285_v40 = vld [vmem:[#allocation21_spill] sm:$0xff] }
 0xb73   :  { %5270 = vmatprep.subr.bf16.mxu0 %v12277_v43  ;;  %5311 = vmatprep.subr.bf16.mxu1 %v12278_v4  ;;  %v12286_v43 = vld [vmem:[#allocation53_spill] sm:$0xff]  ;;  %v12287_v4 = vld [vmem:[#allocation22_spill] sm:$0xff] }
 0xb76   :  { %5271 = vmatpush1.bf16.msra.mxu0 %v12279_v12  ;;  %5312 = vmatpush1.bf16.msra.mxu1 %v12280_v41  ;;  %v12288_v12 = vld [vmem:[#allocation54_spill] sm:$0xff]  ;;  %v12289_v41 = vld [vmem:[#allocation23_spill] sm:$0xff] }
 0xb77   :  { %5386 = vmatprep.subr.bf16.mxu0 %v12281_v13  ;;  %5427 = vmatprep.subr.bf16.mxu1 %v12282_v48  ;;  %v12290_v13 = vld [vmem:[#allocation55_spill] sm:$0xff]  ;;  %v12291_v48 = vld [vmem:[#allocation24_spill] sm:$0xff] }
 0xb79   :  { %5273 = vmatmul.mubr.bf16.vlgmr.msra.gmra.mrb[48].mxu0 %v10519_v25  ;;  %5314 = vmatmul.mubr.bf16.vlgmr.msra.gmra.mrb[60].mxu1 %v10519_v25  ;;  %v12293_v25 = vld [vmem:[#allocation25_spill] sm:$0xff] }
 0xb7a   :  { %5387 = vmatpush1.bf16.msra.mxu0 %v12283_v61  ;;  %5428 = vmatpush1.bf16.msra.mxu1 %v12284_v51  ;;  %v12294_v61 = vld [vmem:[#allocation57_spill] sm:$0xff]  ;;  %v12295_v51 = vld [vmem:[#allocation26_spill] sm:$0xff] }
 0xb7b   :  { %5388 = vmatprep.subr.bf16.mxu0 %v12285_v40  ;;  %5429 = vmatprep.subr.bf16.mxu1 %v12286_v43  ;;  %v12296_v40 = vld [vmem:[#allocation58_spill] sm:$0xff]  ;;  %v12297_v43 = vld [vmem:[#allocation27_spill] sm:$0xff] }
 0xb7e   :  { %5389 = vmatpush1.bf16.msra.mxu0 %v12287_v4  ;;  %5430 = vmatpush1.bf16.msra.mxu1 %v12288_v12  ;;  %v12298_v4 = vld [vmem:[#allocation59_spill] sm:$0xff]  ;;  %v12299_v12 = vld [vmem:[#allocation28_spill] sm:$0xff] }
 0xb7f   :  { %5390 = vmatprep.subr.bf16.mxu0 %v12289_v41  ;;  %5431 = vmatprep.subr.bf16.mxu1 %v12290_v13  ;;  %v12300_v41 = vld [vmem:[#allocation60_spill] sm:$0xff]  ;;  %v12301_v13 = vld [vmem:[#allocation29_spill] sm:$0xff] }
 0xb82   :  { %5391 = vmatpush1.bf16.msra.mxu0 %v12291_v48  ;;  %5432 = vmatpush1.bf16.msra.mxu1 %v12292_v44  ;;  %v12302_v48 = vld [vmem:[#allocation61_spill] sm:$0xff]  ;;  %v12303_v44 = vld [vmem:[#allocation30_spill] sm:$0xff] }
 0xb83   :  { %5392 = vmatprep.subr.bf16.mxu0 %v12293_v25  ;;  %5433 = vmatprep.subr.bf16.mxu1 %v12294_v61  ;;  %v12304_v25 = vld [vmem:[#allocation62_spill] sm:$0xff]  ;;  %v12305_v61 = vld [vmem:[#allocation31_spill] sm:$0xff] }
 0xb86   :  { %5393 = vmatpush1.bf16.msra.mxu0 %v12295_v51  ;;  %5434 = vmatpush1.bf16.msra.mxu1 %v12296_v40  ;;  %v12306_v51 = vld [vmem:[#allocation63_spill] sm:$0xff]  ;;  %v12307_v40 = vld [vmem:[#allocation32_spill] sm:$0xff] }
 0xb87   :  { %5394 = vmatprep.subr.bf16.mxu0 %v12297_v43  ;;  %5435 = vmatprep.subr.bf16.mxu1 %v12298_v4  ;;  %v12308_v43 = vld [vmem:[#allocation64_spill] sm:$0xff]  ;;  %v12309_v4 = vld [vmem:[#allocation33_spill] sm:$0xff] }
 0xb8a   :  { %5395 = vmatpush1.bf16.msra.mxu0 %v12299_v12  ;;  %5436 = vmatpush1.bf16.msra.mxu1 %v12300_v41  ;;  %v12310_v12 = vld [vmem:[#allocation65_spill] sm:$0xff]  ;;  %v12311_v41 = vld [vmem:[#allocation34_spill] sm:$0xff] }
 0xb8b   :  { %5396 = vmatprep.subr.bf16.mxu0 %v12301_v13  ;;  %5437 = vmatprep.subr.bf16.mxu1 %v12302_v48  ;;  %v12312_v13 = vld [vmem:[#allocation66_spill] sm:$0xff]  ;;  %v12313_v48 = vld [vmem:[#allocation35_spill] sm:$0xff] }
 0xb8e   :  { %5397 = vmatpush1.bf16.msra.mxu0 %v12303_v44  ;;  %5438 = vmatpush1.bf16.msra.mxu1 %v12304_v25  ;;  %v12314_v44 = vld [vmem:[#allocation67_spill] sm:$0xff]  ;;  %v12315_v25 = vld [vmem:[#allocation36_spill] sm:$0xff] }
 0xb8f   :  { %5398 = vmatprep.subr.bf16.mxu0 %v12305_v61  ;;  %5439 = vmatprep.subr.bf16.mxu1 %v12306_v51  ;;  %v12316_v61 = vld [vmem:[#allocation68_spill] sm:$0xff]  ;;  %v12317_v51 = vld [vmem:[#allocation37_spill] sm:$0xff] }
 0xb92   :  { %5399 = vmatpush1.bf16.msra.mxu0 %v12307_v40  ;;  %5440 = vmatpush1.bf16.msra.mxu1 %v12308_v43  ;;  %v12318_v40 = vld [vmem:[#allocation69_spill] sm:$0xff]  ;;  %v12319_v43 = vld [vmem:[#allocation38_spill] sm:$0xff] }
 0xb93   :  { %5400 = vmatprep.subr.bf16.mxu0 %v12309_v4  ;;  %5441 = vmatprep.subr.bf16.mxu1 %v12310_v12  ;;  %v12320_v4 = vld [vmem:[#allocation70_spill] sm:$0xff]  ;;  %v12321_v12 = vld [vmem:[#allocation39_spill] sm:$0xff] }
 0xb96   :  { %5401 = vmatpush1.bf16.msra.mxu0 %v12311_v41  ;;  %5442 = vmatpush1.bf16.msra.mxu1 %v12312_v13  ;;  %v12322_v41 = vld [vmem:[#allocation71_spill] sm:$0xff]  ;;  %v12323_v13 = vld [vmem:[#allocation40_spill] sm:$0xff] }
 0xb97   :  { %5402 = vmatprep.subr.bf16.mxu0 %v12313_v48  ;;  %5443 = vmatprep.subr.bf16.mxu1 %v12314_v44  ;;  %v12324_v48 = vld [vmem:[#allocation72_spill] sm:$0xff]  ;;  %v12325_v44 = vld [vmem:[#allocation41_spill] sm:$0xff] }
 0xb9a   :  { %5403 = vmatpush1.bf16.msra.mxu0 %v12315_v25  ;;  %5444 = vmatpush1.bf16.msra.mxu1 %v12316_v61  ;;  %v12326_v25 = vld [vmem:[#allocation73_spill] sm:$0xff]  ;;  %v12327_v61 = vld [vmem:[#allocation42_spill] sm:$0xff] }
 0xb9b   :  { %5404 = vmatprep.subr.bf16.mxu0 %v12317_v51  ;;  %5445 = vmatprep.subr.bf16.mxu1 %v12318_v40  ;;  %v12328_v51 = vld [vmem:[#allocation74_spill] sm:$0xff]  ;;  %v12329_v40 = vld [vmem:[#allocation43_spill] sm:$0xff] }
 0xb9e   :  { %5405 = vmatpush1.bf16.msra.mxu0 %v12319_v43  ;;  %5446 = vmatpush1.bf16.msra.mxu1 %v12320_v4  ;;  %v12330_v43 = vld [vmem:[#allocation75_spill] sm:$0xff]  ;;  %v12331_v4 = vld [vmem:[#allocation44_spill] sm:$0xff] }
 0xb9f   :  { %5406 = vmatprep.subr.bf16.mxu0 %v12321_v12  ;;  %5447 = vmatprep.subr.bf16.mxu1 %v12322_v41  ;;  %v12332_v12 = vld [vmem:[#allocation76_spill] sm:$0xff]  ;;  %v12333_v41 = vld [vmem:[#allocation45_spill] sm:$0xff] }
 0xba2   :  { %5407 = vmatpush1.bf16.msra.mxu0 %v12323_v13  ;;  %5448 = vmatpush1.bf16.msra.mxu1 %v12324_v48  ;;  %v12334_v13 = vld [vmem:[#allocation77_spill] sm:$0xff]  ;;  %v12335_v48 = vld [vmem:[#allocation46_spill] sm:$0xff] }
 0xba3   :  { %5408 = vmatprep.subr.bf16.mxu0 %v12325_v44  ;;  %5449 = vmatprep.subr.bf16.mxu1 %v12326_v25  ;;  %v12336_v44 = vld [vmem:[#allocation78_spill] sm:$0xff]  ;;  %v12337_v25 = vld [vmem:[#allocation47_spill] sm:$0xff] }
 0xba6   :  { %5409 = vmatpush1.bf16.msra.mxu0 %v12327_v61  ;;  %5450 = vmatpush1.bf16.msra.mxu1 %v12328_v51  ;;  %v12338_v61 = vld [vmem:[#allocation79_spill] sm:$0xff]  ;;  %v12339_v51 = vld [vmem:[#allocation48_spill] sm:$0xff] }
 0xba7   :  { %5410 = vmatprep.subr.bf16.mxu0 %v12329_v40  ;;  %5451 = vmatprep.subr.bf16.mxu1 %v12330_v43  ;;  %v12340_v40 = vld [vmem:[#allocation80_spill] sm:$0xff]  ;;  %v12341_v43 = vld [vmem:[#allocation49_spill] sm:$0xff] }
 0xbaa   :  { %5411 = vmatpush1.bf16.msra.mxu0 %v12331_v4  ;;  %5452 = vmatpush1.bf16.msra.mxu1 %v12332_v12  ;;  %v12342_v4 = vld [vmem:[#allocation81_spill] sm:$0xff]  ;;  %v12343_v12 = vld [vmem:[#allocation50_spill] sm:$0xff] }
 0xbab   :  { %5412 = vmatprep.subr.bf16.mxu0 %v12333_v41  ;;  %5453 = vmatprep.subr.bf16.mxu1 %v12334_v13  ;;  %v12344_v41 = vld [vmem:[#allocation82_spill] sm:$0xff]  ;;  %v12345_v13 = vld [vmem:[#allocation83_spill] sm:$0xff] }
 0xbae   :  { %5413 = vmatpush1.bf16.msra.mxu0 %v12335_v48  ;;  %5454 = vmatpush1.bf16.msra.mxu1 %v12336_v44  ;;  %v12346_v48 = vld [vmem:[#allocation123_spill] sm:$0xff]  ;;  %v12347_v44 = vld [vmem:[#allocation157_spill] sm:$0xff] }
 0xbaf   :  { %5414 = vmatprep.subr.bf16.mxu0 %v12337_v25  ;;  %5455 = vmatprep.subr.bf16.mxu1 %v12338_v61  ;;  %v12348_v25 = vld [vmem:[#allocation95_spill] sm:$0xff]  ;;  %v12350_v61 = vld [vmem:[#allocation158_spill] sm:$0xff] }
 0xbb0   :  { %v10655_v36 = vadd.f32 %v12348_v25, %v12347_v44 }
 0xbb2   :  { %5415 = vmatpush1.bf16.msra.mxu0 %v12339_v51  ;;  %5456 = vmatpush1.bf16.msra.mxu1 %v12340_v40  ;;  %12349 = vst [vmem:[#allocation88_spill] sm:$0xff] %v10655_v36  ;;  %v12351_v51 = vld [vmem:[#allocation96_spill] sm:$0xff] }
 0xbb3   :  { %5416 = vmatprep.subr.bf16.mxu0 %v12341_v43  ;;  %5457 = vmatprep.subr.bf16.mxu1 %v12342_v4  ;;  %v10659_v34 = vadd.f32 %v12351_v51, %v12350_v61 }
 0xbb5   :  { %12352 = vst [vmem:[#allocation107_spill] sm:$0xff] %v10659_v34 }
 0xbb6   :  { %5417 = vmatpush1.bf16.msra.mxu0 %v12343_v12  ;;  %5458 = vmatpush1.bf16.msra.mxu1 %v12344_v41 }
 0xbb7   :  { %5468 = vmatprep.subr.bf16.mxu0 %v12345_v13  ;;  %5509 = vmatprep.subr.bf16.mxu1 %v12346_v48 }
 0xc0c   :  { %v5192_v40 = vpop.f32.mrb[44].mxu0  ;;  %v5233_v43 = vpop.f32.mrb[56].mxu1 }
 0xc0d   :  { %v5324_v4 = vadd.f32 %v5233_v43, %v10655_v36  ;;  %v5194_v30 = vpop.f32.mrb[45].mxu0  ;;  %v5235_v12 = vpop.f32.mrb[57].mxu1  ;;  %v5370_v43 = vrot.slane %v10513_v33, 6 }
 0xc0e   :  { %v5325_v41 = vadd.f32 %v5235_v12, %v10659_v34  ;;  %v5196_v63 = vpop.f32.mrb[46].mxu0  ;;  %v5237_v13 = vpop.f32.mrb[58].mxu1  ;;  %v5371_v12 = vrot.slane %v10515_v59, 6  ;;  %v12363_v34 = vld [vmem:[#allocation105_spill] sm:$0xff] }
 0xc0f   :  { %v7452_v2 = vmul.f32 -1.442695, %v5324_v4  ;;  %v5197_v48 = vpop.f32.mrb[47].mxu0  ;;  %v5238_v37 = vpop.f32.mrb[59].mxu1  ;;  %v12353_v4 = vld [vmem:[#allocation155_spill] sm:$0xff] }
 0xc10   :  { %v7453_v55 = vmul.f32 -1.442695, %v5325_v41  ;;  %v12354_v48 = vld [vmem:[#allocation91_spill] sm:$0xff] }
 0xc11   :  { %8285 = vpow2.f32 %v7452_v2  ;;  %v10667_v37 = vadd.f32 %v12354_v48, %v12353_v4  ;;  %v12356_v2 = vld [vmem:[#allocation156_spill] sm:$0xff]  ;;  %v12362_v48 = vld [vmem:[#allocation161_spill] sm:$0xff] }
 0xc12   :  { %8287 = vpow2.f32 %v7453_v55  ;;  %v12357_v55 = vld [vmem:[#allocation92_spill] sm:$0xff] }
 0xc13   :  { %12355 = vst [vmem:[#allocation108_spill] sm:$0xff] %v10667_v37  ;;  %v10671_v41 = vadd.f32 %v12357_v55, %v12356_v2  ;;  %v10681_v2 = vadd.f32 %v12363_v34, %v12362_v48  ;;  %v12365_v55 = vld [vmem:[#allocation160_spill] sm:$0xff] }
 0xc15   :  { %12358 = vst [vmem:[#allocation109_spill] sm:$0xff] %v10671_v41  ;;  %12364 = vst [vmem:[#allocation124_spill] sm:$0xff] %v10681_v2 }
 0xc1b   :  { %v8286_v44 = vpop.eup %8285 }
 0xc1c   :  { %v5344_v25 = vadd.f32 1.0, %v8286_v44  ;;  %v8288_v61 = vpop.eup %8287  ;;  %v5322_v44 = vadd.f32 %v5192_v40, %v10667_v37  ;;  %v12366_v40 = vld [vmem:[#allocation100_spill] sm:$0xff] }
 0xc1d   :  { %v5345_v51 = vadd.f32 1.0, %v8288_v61  ;;  %v10685_v37 = vadd.f32 %v12366_v40, %v12365_v55 }
 0xc1e   :  { %8289 = vrcp.f32 %v5344_v25  ;;  %v5323_v25 = vadd.f32 %v5194_v30, %v10671_v41  ;;  %v7450_v61 = vmul.f32 -1.442695, %v5322_v44  ;;  %v12368_v30 = vld [vmem:[#allocation162_spill] sm:$0xff] }
 0xc1f   :  { %8291 = vrcp.f32 %v5345_v51  ;;  %12367 = vst [vmem:[#allocation125_spill] sm:$0xff] %v10685_v37  ;;  %v12369_v44 = vld [vmem:[#allocation106_spill] sm:$0xff] }
 0xc20   :  { %v7451_v33 = vmul.f32 -1.442695, %v5323_v25  ;;  %8293 = vpow2.f32 %v7450_v61  ;;  %v10689_v25 = vadd.f32 %v12369_v44, %v12368_v30 }
 0xc22   :  { %8295 = vpow2.f32 %v7451_v33 }
 0xc28   :  { %v8290_v36 = vpop.eup %8289 }
 0xc29   :  { %v5374_v47 = vmul.f32 %v8290_v36, %v5370_v43  ;;  %v8292_v63 = vpop.eup %8291 }
 0xc2a   :  { %v5375_v13 = vmul.f32 %v8292_v63, %v5371_v12  ;;  %v8294_v36 = vpop.eup %8293  ;;  %v12359_v12 = vld [vmem:[#allocation159_spill] sm:$0xff] }
 0xc2b   :  { %v5342_v51 = vadd.f32 1.0, %v8294_v36  ;;  %v12360_v63 = vld [vmem:[#allocation99_spill] sm:$0xff] }
 0xc2c   :  { %v8296_v59 = vpop.eup %8295  ;;  %v10677_v4 = vadd.f32 %v12360_v63, %v12359_v12 }
 0xc2d   :  { %v5343_v43 = vadd.f32 1.0, %v8296_v59  ;;  %8297 = vrcp.f32 %v5342_v51 }
 0xc2e   :  { %12361 = vst [vmem:[#allocation110_spill] sm:$0xff] %v10677_v4 }
 0xc2f   :  { %8299 = vrcp.f32 %v5343_v43 }
 0xc37   :  { %v8298_v51 = vpop.eup %8297 }
 0xc4c   :  { %v5274_v61 = vpop.f32.mrb[48].mxu0  ;;  %v5315_v33 = vpop.f32.mrb[60].mxu1 }
 0xc4d   :  { %v5326_v36 = vadd.f32 %v5274_v61, %v10677_v4  ;;  %v5328_v59 = vadd.f32 %v5315_v33, %v10681_v2  ;;  %v5276_v12 = vpop.f32.mrb[49].mxu0  ;;  %v5317_v63 = vpop.f32.mrb[61].mxu1 }
 0xc4e   :  { %v5327_v34 = vadd.f32 %v5276_v12, %v10685_v37  ;;  %v5329_v48 = vadd.f32 %v5317_v63, %v10689_v25  ;;  %v5278_v55 = vpop.f32.mrb[50].mxu0  ;;  %v5319_v40 = vpop.f32.mrb[62].mxu1 }
 0xc4f   :  { %8301 = vtanh.f32 %v5326_v36  ;;  %v7454_v41 = vmul.f32 -1.442695, %v5328_v59  ;;  %v5279_v30 = vpop.f32.mrb[51].mxu0  ;;  %v5320_v44 = vpop.f32.mrb[63].mxu1 }
 0xc50   :  { %8303 = vtanh.f32 %v5327_v34  ;;  %v7455_v26 = vmul.f32 -1.442695, %v5329_v48  ;;  %v8300_v61 = vpop.eup %8299  ;;  %v12374_v44 = vld [vmem:[#allocation146_spill] sm:$0xff] }
 0xc51   :  { %8305 = vpow2.f32 %v7454_v41 }
 0xc52   :  { %8307 = vpow2.f32 %v7455_v26 }
 0xc59   :  { %v8302_v33 = vpop.eup %8301 }
 0xc5a   :  { %v8304_v2 = vpop.eup %8303  ;;  %v5376_v4 = vmul.f32 %v8302_v33, %v8298_v51  ;;  %v12375_v51 = vld [vmem:[#allocation115_spill] sm:$0xff]  ;;  %v12377_v33 = vld [vmem:[#allocation116_spill] sm:$0xff] }
 0xc5b   :  { %v8306_v43 = vpop.eup %8305  ;;  %v5377_v58 = vmul.f32 %v8304_v2, %v8300_v61  ;;  %v12376_v61 = vld [vmem:[#allocation147_spill] sm:$0xff] }
 0xc5c   :  { %v8308_v12 = vpop.eup %8307  ;;  %v10695_v37 = vadd.f32 %v5376_v4, %v5374_v47  ;;  %v5362_v63 = vadd.f32 1.0, %v8306_v43  ;;  %v12371_v47 = vld [vmem:[#allocation113_spill] sm:$0xff]  ;;  %v12373_v4 = vld [vmem:[#allocation114_spill] sm:$0xff]  ;;  %v12378_v43 = vld [vmem:[#allocation148_spill] sm:$0xff] }
 0xc5d   :  { %v10697_v55 = vadd.f32 %v5377_v58, %v5375_v13  ;;  %v5363_v36 = vadd.f32 1.0, %v8308_v12  ;;  %v12370_v58 = vld [vmem:[#allocation144_spill] sm:$0xff]  ;;  %v12372_v13 = vld [vmem:[#allocation145_spill] sm:$0xff] }
 0xc5e   :  { %8309 = vtanh.f32 %v10695_v37  ;;  %v12379_v12 = vld [vmem:[#allocation117_spill] sm:$0xff] }
 0xc5f   :  { %8311 = vrcp.f32 %v5362_v63  ;;  %v12380_v63 = vld [vmem:[#allocation149_spill] sm:$0xff] }
 0xc60   :  { %8313 = vtanh.f32 %v10697_v55 }
 0xc61   :  { %8315 = vrcp.f32 %v5363_v36  ;;  %v12381_v36 = vld [vmem:[#allocation118_spill] sm:$0xff] }
 0xc68   :  { %v8310_v26 = vpop.eup %8309 }
 0xc69   :  { %v8312_v41 = vpop.eup %8311 }
 0xc6a   :  { %v8314_v59 = vpop.eup %8313  ;;  %v5382_v34 = vmul.f32 %v8312_v41, %v8310_v26  ;;  %v12382_v26 = vld [vmem:[#allocation150_spill] sm:$0xff]  ;;  %v12383_v41 = vld [vmem:[#allocation119_spill] sm:$0xff] }
 0xc6b   :  { %v8316_v48 = vpop.eup %8315 }
 0xc6c   :  { %v5383_v40 = vmul.f32 %v8316_v48, %v8314_v59  ;;  %v10701_v30 = vpack.c.bf16 %v5382_v34, %v5382_v34  ;;  %v12384_v59 = vld [vmem:[#allocation151_spill] sm:$0xff]  ;;  %v12385_v34 = vld [vmem:[#allocation120_spill] sm:$0xff] }
 0xc6d   :  { %v12386_v48 = vld [vmem:[#allocation152_spill] sm:$0xff] }
 0xc6e   :  { %v5385_v2 = vpack.c.bf16 %v5383_v40, %v5383_v40  ;;  %v12387_v40 = vld [vmem:[#allocation121_spill] sm:$0xff] }
 0xc70   :  { %5418 = vmatprep.mubr.bf16.mxu0 %v5385_v2  ;;  %5459 = vmatprep.mubr.bf16.mxu1 %v5385_v2 }
 0xc71   :  { %5419 = vmatmul.mubr.bf16.vlgmr.msra.gmra.mrb[52].mxu0 %v10701_v30  ;;  %5460 = vmatmul.mubr.bf16.vlgmr.msra.gmra.mrb[64].mxu1 %v10701_v30 }
 0xc72   :  { %5469 = vmatpush1.bf16.msra.mxu0 %v9608_v35  ;;  %5510 = vmatpush1.bf16.msra.mxu1 %v11898_v10 }
 0xc73   :  { %5500 = vmatprep.mubr.bf16.mxu0 %v5385_v2  ;;  %5541 = vmatprep.mubr.bf16.mxu1 %v5385_v2  ;;  %v12388_v2 = vld [vmem:[#allocation153_spill] sm:$0xff] }
 0xc74   :  { %5470 = vmatprep.subr.bf16.mxu0 %v9611_v16  ;;  %5511 = vmatprep.subr.bf16.mxu1 %v11899_v42 }
 0xc76   :  { %5471 = vmatpush1.bf16.msra.mxu0 %v9615_v17  ;;  %5512 = vmatpush1.bf16.msra.mxu1 %v11900_v31 }
 0xc77   :  { %5472 = vmatprep.subr.bf16.mxu0 %v9619_v24  ;;  %5513 = vmatprep.subr.bf16.mxu1 %v11901_v19 }
 0xc7a   :  { %5473 = vmatpush1.bf16.msra.mxu0 %v9622_v45  ;;  %5514 = vmatpush1.bf16.msra.mxu1 %v11902_v52 }
 0xc7b   :  { %5474 = vmatprep.subr.bf16.mxu0 %v9625_v14  ;;  %5515 = vmatprep.subr.bf16.mxu1 %v11903_v62 }
 0xc7e   :  { %5475 = vmatpush1.bf16.msra.mxu0 %v9628_v50  ;;  %5516 = vmatpush1.bf16.msra.mxu1 %v11904_v32 }
 0xc7f   :  { %5476 = vmatprep.subr.bf16.mxu0 %v9631_v1  ;;  %5517 = vmatprep.subr.bf16.mxu1 %v11905_v53 }
 0xc82   :  { %5477 = vmatpush1.bf16.msra.mxu0 %v9634_v22  ;;  %5518 = vmatpush1.bf16.msra.mxu1 %v11906_v27 }
 0xc83   :  { %5478 = vmatprep.subr.bf16.mxu0 %v9637_v11  ;;  %5519 = vmatprep.subr.bf16.mxu1 %v11907_v56 }
 0xc86   :  { %5479 = vmatpush1.bf16.msra.mxu0 %v11876_v8  ;;  %5520 = vmatpush1.bf16.msra.mxu1 %v11908_v0 }
 0xc87   :  { %5480 = vmatprep.subr.bf16.mxu0 %v11877_v9  ;;  %5521 = vmatprep.subr.bf16.mxu1 %v11909_v18 }
 0xc8a   :  { %5481 = vmatpush1.bf16.msra.mxu0 %v11878_v15  ;;  %5522 = vmatpush1.bf16.msra.mxu1 %v11910_v3 }
 0xc8b   :  { %5482 = vmatprep.subr.bf16.mxu0 %v11879_v29  ;;  %5523 = vmatprep.subr.bf16.mxu1 %v11911_v39 }
 0xc8e   :  { %5483 = vmatpush1.bf16.msra.mxu0 %v11880_v23  ;;  %5524 = vmatpush1.bf16.msra.mxu1 %v11912_v20 }
 0xc8f   :  { %5484 = vmatprep.subr.bf16.mxu0 %v11881_v28  ;;  %5525 = vmatprep.subr.bf16.mxu1 %v11913_v6 }
 0xc92   :  { %5485 = vmatpush1.bf16.msra.mxu0 %v11882_v21  ;;  %5526 = vmatpush1.bf16.msra.mxu1 %v11914_v54 }
 0xc93   :  { %5486 = vmatprep.subr.bf16.mxu0 %v11883_v38  ;;  %5527 = vmatprep.subr.bf16.mxu1 %v11915_v46 }
 0xc96   :  { %5487 = vmatpush1.bf16.msra.mxu0 %v11884_v5  ;;  %5528 = vmatpush1.bf16.msra.mxu1 %v12256_v57 }
 0xc97   :  { %5488 = vmatprep.subr.bf16.mxu0 %v12257_v7  ;;  %5529 = vmatprep.subr.bf16.mxu1 %v12258_v49 }
 0xc9a   :  { %5489 = vmatpush1.bf16.msra.mxu0 %v12259_v60  ;;  %5530 = vmatpush1.bf16.msra.mxu1 %v12370_v58 }
 0xc9b   :  { %5490 = vmatprep.subr.bf16.mxu0 %v12371_v47  ;;  %5531 = vmatprep.subr.bf16.mxu1 %v12372_v13 }
 0xc9e   :  { %5491 = vmatpush1.bf16.msra.mxu0 %v12373_v4  ;;  %5532 = vmatpush1.bf16.msra.mxu1 %v12374_v44  ;;  %v12458_v4 = vld [vmem:[#allocation107_spill] sm:$0xff] }
 0xc9f   :  { %5492 = vmatprep.subr.bf16.mxu0 %v12375_v51  ;;  %5533 = vmatprep.subr.bf16.mxu1 %v12376_v61  ;;  %v12457_v51 = vld [vmem:[#allocation88_spill] sm:$0xff] }
 0xca2   :  { %5493 = vmatpush1.bf16.msra.mxu0 %v12377_v33  ;;  %5534 = vmatpush1.bf16.msra.mxu1 %v12378_v43  ;;  %v12389_v43 = vld [vmem:[#allocation122_spill] sm:$0xff] }
 0xca3   :  { %5494 = vmatprep.subr.bf16.mxu0 %v12379_v12  ;;  %5535 = vmatprep.subr.bf16.mxu1 %v12380_v63  ;;  %v12390_v12 = vld [vmem:[#allocation154_spill] sm:$0xff]  ;;  %v12391_v63 = vld [vmem:[#allocation19_spill] sm:$0xff] }
 0xca6   :  { %5495 = vmatpush1.bf16.msra.mxu0 %v12381_v36  ;;  %5536 = vmatpush1.bf16.msra.mxu1 %v12382_v26  ;;  %v12392_v36 = vld [vmem:[#allocation51_spill] sm:$0xff] }
 0xca7   :  { %5496 = vmatprep.subr.bf16.mxu0 %v12383_v41  ;;  %5537 = vmatprep.subr.bf16.mxu1 %v12384_v59  ;;  %v12393_v59 = vld [vmem:[#allocation20_spill] sm:$0xff] }
 0xca8   :  { %v12402_v41 = vld [vmem:[#allocation56_spill] sm:$0xff] }
 0xcaa   :  { %5497 = vmatpush1.bf16.msra.mxu0 %v12385_v34  ;;  %5538 = vmatpush1.bf16.msra.mxu1 %v12386_v48  ;;  %v12394_v34 = vld [vmem:[#allocation52_spill] sm:$0xff]  ;;  %v12395_v48 = vld [vmem:[#allocation21_spill] sm:$0xff] }
 0xcab   :  { %5498 = vmatprep.subr.bf16.mxu0 %v12387_v40  ;;  %5539 = vmatprep.subr.bf16.mxu1 %v12388_v2  ;;  %v12396_v40 = vld [vmem:[#allocation53_spill] sm:$0xff]  ;;  %v12397_v2 = vld [vmem:[#allocation22_spill] sm:$0xff] }
 0xcae   :  { %5499 = vmatpush1.bf16.msra.mxu0 %v12389_v43  ;;  %5540 = vmatpush1.bf16.msra.mxu1 %v12390_v12  ;;  %v12398_v43 = vld [vmem:[#allocation54_spill] sm:$0xff]  ;;  %v12399_v12 = vld [vmem:[#allocation23_spill] sm:$0xff] }
 0xcaf   :  { %5644 = vmatprep.subr.bf16.mxu0 %v12391_v63  ;;  %5685 = vmatprep.subr.bf16.mxu1 %v12392_v36  ;;  %v12400_v63 = vld [vmem:[#allocation55_spill] sm:$0xff]  ;;  %v12401_v36 = vld [vmem:[#allocation24_spill] sm:$0xff] }
 0xcb1   :  { %5501 = vmatmul.mubr.bf16.vlgmr.msra.gmra.mrb[56].mxu0 %v10701_v30  ;;  %5542 = vmatmul.mubr.bf16.vlgmr.msra.gmra.mrb[68].mxu1 %v10701_v30  ;;  %v12403_v30 = vld [vmem:[#allocation25_spill] sm:$0xff] }
 0xcb2   :  { %5645 = vmatpush1.bf16.msra.mxu0 %v12393_v59  ;;  %5686 = vmatpush1.bf16.msra.mxu1 %v12394_v34  ;;  %v12404_v59 = vld [vmem:[#allocation57_spill] sm:$0xff]  ;;  %v12405_v34 = vld [vmem:[#allocation26_spill] sm:$0xff] }
 0xcb3   :  { %5646 = vmatprep.subr.bf16.mxu0 %v12395_v48  ;;  %5687 = vmatprep.subr.bf16.mxu1 %v12396_v40  ;;  %v12406_v48 = vld [vmem:[#allocation58_spill] sm:$0xff]  ;;  %v12407_v40 = vld [vmem:[#allocation27_spill] sm:$0xff] }
 0xcb6   :  { %5647 = vmatpush1.bf16.msra.mxu0 %v12397_v2  ;;  %5688 = vmatpush1.bf16.msra.mxu1 %v12398_v43  ;;  %v12408_v2 = vld [vmem:[#allocation59_spill] sm:$0xff]  ;;  %v12409_v43 = vld [vmem:[#allocation28_spill] sm:$0xff] }
 0xcb7   :  { %5648 = vmatprep.subr.bf16.mxu0 %v12399_v12  ;;  %5689 = vmatprep.subr.bf16.mxu1 %v12400_v63  ;;  %v12410_v12 = vld [vmem:[#allocation60_spill] sm:$0xff]  ;;  %v12411_v63 = vld [vmem:[#allocation29_spill] sm:$0xff] }
 0xcba   :  { %5649 = vmatpush1.bf16.msra.mxu0 %v12401_v36  ;;  %5690 = vmatpush1.bf16.msra.mxu1 %v12402_v41  ;;  %v12412_v36 = vld [vmem:[#allocation61_spill] sm:$0xff]  ;;  %v12413_v41 = vld [vmem:[#allocation30_spill] sm:$0xff] }
 0xcbb   :  { %5650 = vmatprep.subr.bf16.mxu0 %v12403_v30  ;;  %5691 = vmatprep.subr.bf16.mxu1 %v12404_v59  ;;  %v12414_v30 = vld [vmem:[#allocation62_spill] sm:$0xff]  ;;  %v12415_v59 = vld [vmem:[#allocation31_spill] sm:$0xff] }
 0xcbe   :  { %5651 = vmatpush1.bf16.msra.mxu0 %v12405_v34  ;;  %5692 = vmatpush1.bf16.msra.mxu1 %v12406_v48  ;;  %v12416_v34 = vld [vmem:[#allocation63_spill] sm:$0xff]  ;;  %v12417_v48 = vld [vmem:[#allocation32_spill] sm:$0xff] }
 0xcbf   :  { %5652 = vmatprep.subr.bf16.mxu0 %v12407_v40  ;;  %5693 = vmatprep.subr.bf16.mxu1 %v12408_v2  ;;  %v12418_v40 = vld [vmem:[#allocation64_spill] sm:$0xff]  ;;  %v12419_v2 = vld [vmem:[#allocation33_spill] sm:$0xff] }
 0xcc2   :  { %5653 = vmatpush1.bf16.msra.mxu0 %v12409_v43  ;;  %5694 = vmatpush1.bf16.msra.mxu1 %v12410_v12  ;;  %v12420_v43 = vld [vmem:[#allocation65_spill] sm:$0xff]  ;;  %v12421_v12 = vld [vmem:[#allocation34_spill] sm:$0xff] }
 0xcc3   :  { %5654 = vmatprep.subr.bf16.mxu0 %v12411_v63  ;;  %5695 = vmatprep.subr.bf16.mxu1 %v12412_v36  ;;  %v12422_v63 = vld [vmem:[#allocation66_spill] sm:$0xff]  ;;  %v12423_v36 = vld [vmem:[#allocation35_spill] sm:$0xff] }
 0xcc6   :  { %5655 = vmatpush1.bf16.msra.mxu0 %v12413_v41  ;;  %5696 = vmatpush1.bf16.msra.mxu1 %v12414_v30  ;;  %v12424_v41 = vld [vmem:[#allocation67_spill] sm:$0xff]  ;;  %v12425_v30 = vld [vmem:[#allocation36_spill] sm:$0xff] }
 0xcc7   :  { %5656 = vmatprep.subr.bf16.mxu0 %v12415_v59  ;;  %5697 = vmatprep.subr.bf16.mxu1 %v12416_v34  ;;  %v12426_v59 = vld [vmem:[#allocation68_spill] sm:$0xff]  ;;  %v12427_v34 = vld [vmem:[#allocation37_spill] sm:$0xff] }
 0xcca   :  { %5657 = vmatpush1.bf16.msra.mxu0 %v12417_v48  ;;  %5698 = vmatpush1.bf16.msra.mxu1 %v12418_v40  ;;  %v12428_v48 = vld [vmem:[#allocation69_spill] sm:$0xff]  ;;  %v12429_v40 = vld [vmem:[#allocation38_spill] sm:$0xff] }
 0xccb   :  { %5658 = vmatprep.subr.bf16.mxu0 %v12419_v2  ;;  %5699 = vmatprep.subr.bf16.mxu1 %v12420_v43  ;;  %v12430_v2 = vld [vmem:[#allocation70_spill] sm:$0xff]  ;;  %v12431_v43 = vld [vmem:[#allocation39_spill] sm:$0xff] }
 0xcce   :  { %5659 = vmatpush1.bf16.msra.mxu0 %v12421_v12  ;;  %5700 = vmatpush1.bf16.msra.mxu1 %v12422_v63  ;;  %v12432_v12 = vld [vmem:[#allocation71_spill] sm:$0xff]  ;;  %v12433_v63 = vld [vmem:[#allocation40_spill] sm:$0xff] }
 0xccf   :  { %5660 = vmatprep.subr.bf16.mxu0 %v12423_v36  ;;  %5701 = vmatprep.subr.bf16.mxu1 %v12424_v41  ;;  %v12434_v36 = vld [vmem:[#allocation72_spill] sm:$0xff]  ;;  %v12435_v41 = vld [vmem:[#allocation41_spill] sm:$0xff] }
 0xcd2   :  { %5661 = vmatpush1.bf16.msra.mxu0 %v12425_v30  ;;  %5702 = vmatpush1.bf16.msra.mxu1 %v12426_v59  ;;  %v12436_v30 = vld [vmem:[#allocation73_spill] sm:$0xff]  ;;  %v12437_v59 = vld [vmem:[#allocation42_spill] sm:$0xff] }
 0xcd3   :  { %5662 = vmatprep.subr.bf16.mxu0 %v12427_v34  ;;  %5703 = vmatprep.subr.bf16.mxu1 %v12428_v48  ;;  %v12438_v34 = vld [vmem:[#allocation74_spill] sm:$0xff]  ;;  %v12439_v48 = vld [vmem:[#allocation43_spill] sm:$0xff] }
 0xcd6   :  { %5663 = vmatpush1.bf16.msra.mxu0 %v12429_v40  ;;  %5704 = vmatpush1.bf16.msra.mxu1 %v12430_v2  ;;  %v12440_v40 = vld [vmem:[#allocation75_spill] sm:$0xff]  ;;  %v12441_v2 = vld [vmem:[#allocation44_spill] sm:$0xff] }
 0xcd7   :  { %5664 = vmatprep.subr.bf16.mxu0 %v12431_v43  ;;  %5705 = vmatprep.subr.bf16.mxu1 %v12432_v12  ;;  %v12442_v43 = vld [vmem:[#allocation76_spill] sm:$0xff]  ;;  %v12443_v12 = vld [vmem:[#allocation45_spill] sm:$0xff] }
 0xcda   :  { %5665 = vmatpush1.bf16.msra.mxu0 %v12433_v63  ;;  %5706 = vmatpush1.bf16.msra.mxu1 %v12434_v36  ;;  %v12444_v63 = vld [vmem:[#allocation77_spill] sm:$0xff]  ;;  %v12445_v36 = vld [vmem:[#allocation46_spill] sm:$0xff] }
 0xcdb   :  { %5666 = vmatprep.subr.bf16.mxu0 %v12435_v41  ;;  %5707 = vmatprep.subr.bf16.mxu1 %v12436_v30  ;;  %v12446_v41 = vld [vmem:[#allocation78_spill] sm:$0xff]  ;;  %v12447_v30 = vld [vmem:[#allocation47_spill] sm:$0xff] }
 0xcde   :  { %5667 = vmatpush1.bf16.msra.mxu0 %v12437_v59  ;;  %5708 = vmatpush1.bf16.msra.mxu1 %v12438_v34  ;;  %v12448_v59 = vld [vmem:[#allocation79_spill] sm:$0xff]  ;;  %v12449_v34 = vld [vmem:[#allocation48_spill] sm:$0xff] }
 0xcdf   :  { %5668 = vmatprep.subr.bf16.mxu0 %v12439_v48  ;;  %5709 = vmatprep.subr.bf16.mxu1 %v12440_v40  ;;  %v12450_v48 = vld [vmem:[#allocation80_spill] sm:$0xff]  ;;  %v12451_v40 = vld [vmem:[#allocation49_spill] sm:$0xff] }
 0xce2   :  { %5669 = vmatpush1.bf16.msra.mxu0 %v12441_v2  ;;  %5710 = vmatpush1.bf16.msra.mxu1 %v12442_v43  ;;  %v12452_v2 = vld [vmem:[#allocation81_spill] sm:$0xff]  ;;  %v12453_v43 = vld [vmem:[#allocation50_spill] sm:$0xff] }
 0xce3   :  { %5670 = vmatprep.subr.bf16.mxu0 %v12443_v12  ;;  %5711 = vmatprep.subr.bf16.mxu1 %v12444_v63  ;;  %v12454_v12 = vld [vmem:[#allocation82_spill] sm:$0xff]  ;;  %v12455_v63 = vld [vmem:[#allocation83_spill] sm:$0xff] }
 0xce6   :  { %5671 = vmatpush1.bf16.msra.mxu0 %v12445_v36  ;;  %5712 = vmatpush1.bf16.msra.mxu1 %v12446_v41  ;;  %v12456_v36 = vld [vmem:[#allocation123_spill] sm:$0xff] }
 0xce7   :  { %5672 = vmatprep.subr.bf16.mxu0 %v12447_v30  ;;  %5713 = vmatprep.subr.bf16.mxu1 %v12448_v59 }
 0xcea   :  { %5673 = vmatpush1.bf16.msra.mxu0 %v12449_v34  ;;  %5714 = vmatpush1.bf16.msra.mxu1 %v12450_v48 }
 0xceb   :  { %5674 = vmatprep.subr.bf16.mxu0 %v12451_v40  ;;  %5715 = vmatprep.subr.bf16.mxu1 %v12452_v2 }
 0xcee   :  { %5675 = vmatpush1.bf16.msra.mxu0 %v12453_v43  ;;  %5716 = vmatpush1.bf16.msra.mxu1 %v12454_v12 }
 0xcef   :  { %5726 = vmatprep.subr.bf16.mxu0 %v12455_v63  ;;  %5767 = vmatprep.subr.bf16.mxu1 %v12456_v36 }
 0xd44   :  { %v5420_v41 = vpop.f32.mrb[52].mxu0  ;;  %v5461_v30 = vpop.f32.mrb[64].mxu1 }
 0xd45   :  { %v5560_v26 = vrot.slane %v5461_v30, 6  ;;  %v5422_v59 = vpop.f32.mrb[53].mxu0  ;;  %v5463_v33 = vpop.f32.mrb[65].mxu1 }
 0xd46   :  { %v5561_v34 = vrot.slane %v5463_v33, 6  ;;  %v5424_v61 = vpop.f32.mrb[54].mxu0  ;;  %v5465_v48 = vpop.f32.mrb[66].mxu1  ;;  %v5622_v33 = vrot.slane %v10695_v37, 6 }
 0xd47   :  { %v5576_v40 = vadd.f32 %v5560_v26, %v12457_v51  ;;  %v5425_v44 = vpop.f32.mrb[55].mxu0  ;;  %v5466_v2 = vpop.f32.mrb[67].mxu1  ;;  %v5623_v48 = vrot.slane %v10697_v55, 6  ;;  %v5558_v51 = vrot.slane %v5420_v41, 6 }
 0xd48   :  { %v5577_v43 = vadd.f32 %v5561_v34, %v12458_v4  ;;  %v5559_v34 = vrot.slane %v5422_v59, 6 }
 0xd49   :  { %v7458_v13 = vmul.f32 -1.442695, %v5576_v40  ;;  %v12459_v40 = vld [vmem:[#allocation108_spill] sm:$0xff] }
 0xd4a   :  { %v7459_v12 = vmul.f32 -1.442695, %v5577_v43  ;;  %v5574_v43 = vadd.f32 %v5558_v51, %v12459_v40 }
 0xd4b   :  { %8317 = vpow2.f32 %v7458_v13  ;;  %v12460_v13 = vld [vmem:[#allocation109_spill] sm:$0xff] }
 0xd4c   :  { %8319 = vpow2.f32 %v7459_v12  ;;  %v5575_v12 = vadd.f32 %v5559_v34, %v12460_v13  ;;  %v7456_v4 = vmul.f32 -1.442695, %v5574_v43  ;;  %v12461_v34 = vld [vmem:[#allocation110_spill] sm:$0xff] }
 0xd55   :  { %v8318_v63 = vpop.eup %8317 }
 0xd56   :  { %v5596_v36 = vadd.f32 1.0, %v8318_v63  ;;  %v8320_v47 = vpop.eup %8319  ;;  %v7457_v63 = vmul.f32 -1.442695, %v5575_v12  ;;  %v12462_v12 = vld [vmem:[#allocation124_spill] sm:$0xff] }
 0xd57   :  { %v5597_v30 = vadd.f32 1.0, %v8320_v47 }
 0xd58   :  { %8321 = vrcp.f32 %v5596_v36 }
 0xd59   :  { %8323 = vrcp.f32 %v5597_v30 }
 0xd5a   :  { %8325 = vpow2.f32 %v7456_v4 }
 0xd5b   :  { %8327 = vpow2.f32 %v7457_v63 }
 0xd62   :  { %v8322_v61 = vpop.eup %8321 }
 0xd63   :  { %v5626_v26 = vmul.f32 %v8322_v61, %v5622_v33  ;;  %v8324_v44 = vpop.eup %8323 }
 0xd64   :  { %v5627_v2 = vmul.f32 %v8324_v44, %v5623_v48  ;;  %v8326_v47 = vpop.eup %8325 }
 0xd65   :  { %v8328_v36 = vpop.eup %8327  ;;  %v5594_v30 = vadd.f32 1.0, %v8326_v47  ;;  %v12463_v47 = vld [vmem:[#allocation125_spill] sm:$0xff] }
 0xd66   :  { %v5595_v37 = vadd.f32 1.0, %v8328_v36 }
 0xd67   :  { %8329 = vrcp.f32 %v5594_v30 }
 0xd68   :  { %8331 = vrcp.f32 %v5595_v37 }
 0xd84   :  { %v5502_v58 = vpop.f32.mrb[56].mxu0  ;;  %v5543_v60 = vpop.f32.mrb[68].mxu1 }
 0xd85   :  { %v5562_v55 = vrot.slane %v5502_v58, 6  ;;  %v5564_v33 = vrot.slane %v5543_v60, 6  ;;  %v5504_v61 = vpop.f32.mrb[57].mxu0  ;;  %v5545_v48 = vpop.f32.mrb[69].mxu1 }
 0xd86   :  { %v5563_v41 = vrot.slane %v5504_v61, 6  ;;  %v5565_v59 = vrot.slane %v5545_v48, 6  ;;  %v5506_v44 = vpop.f32.mrb[58].mxu0  ;;  %v5547_v51 = vpop.f32.mrb[70].mxu1 }
 0xd87   :  { %v5578_v43 = vadd.f32 %v5562_v55, %v12461_v34  ;;  %v5580_v4 = vadd.f32 %v5564_v33, %v12462_v12  ;;  %v5507_v63 = vpop.f32.mrb[59].mxu0  ;;  %v5548_v13 = vpop.f32.mrb[71].mxu1 }
 0xd88   :  { %v5579_v36 = vadd.f32 %v5563_v41, %v12463_v47  ;;  %v5581_v40 = vadd.f32 %v5565_v59, %v10689_v25  ;;  %v8330_v61 = vpop.eup %8329 }
 0xd89   :  { %8333 = vtanh.f32 %v5578_v43  ;;  %v7460_v60 = vmul.f32 -1.442695, %v5580_v4  ;;  %v8332_v48 = vpop.eup %8331 }
 0xd8a   :  { %8335 = vtanh.f32 %v5579_v36  ;;  %v7461_v58 = vmul.f32 -1.442695, %v5581_v40 }
 0xd8b   :  { %8337 = vpow2.f32 %v7460_v60 }
 0xd8c   :  { %8339 = vpow2.f32 %v7461_v58 }
 0xd93   :  { %v8334_v30 = vpop.eup %8333 }
 0xd94   :  { %v8336_v44 = vpop.eup %8335  ;;  %v5628_v55 = vmul.f32 %v8334_v30, %v8330_v61 }
 0xd95   :  { %v8338_v51 = vpop.eup %8337  ;;  %v5629_v33 = vmul.f32 %v8336_v44, %v8332_v48  ;;  %v12465_v44 = vld [vmem:[#allocation144_spill] sm:$0xff] }
 0xd96   :  { %v8340_v63 = vpop.eup %8339  ;;  %v10845_v13 = vadd.f32 %v5628_v55, %v5626_v26  ;;  %v5614_v37 = vadd.f32 1.0, %v8338_v51  ;;  %v12466_v55 = vld [vmem:[#allocation113_spill] sm:$0xff] }
 0xd97   :  { %v10847_v41 = vadd.f32 %v5629_v33, %v5627_v2  ;;  %v5615_v59 = vadd.f32 1.0, %v8340_v63  ;;  %v12464_v2 = vld [vmem:[#allocation112_spill] sm:$0xff]  ;;  %v12467_v51 = vld [vmem:[#allocation145_spill] sm:$0xff]  ;;  %v12468_v33 = vld [vmem:[#allocation114_spill] sm:$0xff] }
 0xd98   :  { %8341 = vtanh.f32 %v10845_v13  ;;  %v12469_v63 = vld [vmem:[#allocation146_spill] sm:$0xff] }
 0xd99   :  { %8343 = vrcp.f32 %v5614_v37  ;;  %v12470_v37 = vld [vmem:[#allocation115_spill] sm:$0xff] }
 0xd9a   :  { %8345 = vtanh.f32 %v10847_v41 }
 0xd9b   :  { %8347 = vrcp.f32 %v5615_v59  ;;  %v12471_v59 = vld [vmem:[#allocation147_spill] sm:$0xff] }
 0xda2   :  { %v8342_v40 = vpop.eup %8341 }
 0xda3   :  { %v8344_v43 = vpop.eup %8343 }
 0xda4   :  { %v8346_v4 = vpop.eup %8345  ;;  %v5634_v36 = vmul.f32 %v8344_v43, %v8342_v40  ;;  %v12472_v40 = vld [vmem:[#allocation116_spill] sm:$0xff] }
 0xda5   :  { %v8348_v60 = vpop.eup %8347  ;;  %v12473_v43 = vld [vmem:[#allocation148_spill] sm:$0xff] }
 0xda6   :  { %v5635_v58 = vmul.f32 %v8348_v60, %v8346_v4  ;;  %v5636_v61 = vpack.c.bf16 %v5634_v36, %v5634_v36  ;;  %v12474_v4 = vld [vmem:[#allocation117_spill] sm:$0xff]  ;;  %v12476_v60 = vld [vmem:[#allocation118_spill] sm:$0xff] }
 0xda7   :  { %v12475_v36 = vld [vmem:[#allocation149_spill] sm:$0xff] }
 0xda8   :  { %v5637_v48 = vpack.c.bf16 %v5635_v58, %v5635_v58  ;;  %v10851_v30 = vrot.slane %v5636_v61, 1  ;;  %v12477_v58 = vld [vmem:[#allocation150_spill] sm:$0xff]  ;;  %v12478_v61 = vld [vmem:[#allocation119_spill] sm:$0xff] }
 0xdaa   :  { %v5641_v26 = vrot.slane %v5637_v48, 1  ;;  %v12479_v48 = vld [vmem:[#allocation151_spill] sm:$0xff] }
 0xdac   :  { %5676 = vmatprep.mubr.bf16.mxu0 %v5641_v26  ;;  %5717 = vmatprep.mubr.bf16.mxu1 %v5641_v26 }
 0xdad   :  { %5677 = vmatmul.mubr.bf16.vlgmr.msra.gmra.mrb[60].mxu0 %v10851_v30  ;;  %5718 = vmatmul.mubr.bf16.vlgmr.msra.gmra.mrb[72].mxu1 %v10851_v30 }
 0xdae   :  { %5727 = vmatpush1.bf16.msra.mxu0 %v9608_v35  ;;  %5768 = vmatpush1.bf16.msra.mxu1 %v11898_v10 }
 0xdaf   :  { %5758 = vmatprep.mubr.bf16.mxu0 %v5641_v26  ;;  %5799 = vmatprep.mubr.bf16.mxu1 %v5641_v26  ;;  %v12480_v26 = vld [vmem:[#allocation120_spill] sm:$0xff] }
 0xdb0   :  { %5728 = vmatprep.subr.bf16.mxu0 %v9611_v16  ;;  %5769 = vmatprep.subr.bf16.mxu1 %v11899_v42 }
 0xdb2   :  { %5729 = vmatpush1.bf16.msra.mxu0 %v9615_v17  ;;  %5770 = vmatpush1.bf16.msra.mxu1 %v11900_v31 }
 0xdb3   :  { %5730 = vmatprep.subr.bf16.mxu0 %v9619_v24  ;;  %5771 = vmatprep.subr.bf16.mxu1 %v11901_v19 }
 0xdb6   :  { %5731 = vmatpush1.bf16.msra.mxu0 %v9622_v45  ;;  %5772 = vmatpush1.bf16.msra.mxu1 %v11902_v52 }
 0xdb7   :  { %5732 = vmatprep.subr.bf16.mxu0 %v9625_v14  ;;  %5773 = vmatprep.subr.bf16.mxu1 %v11903_v62 }
 0xdba   :  { %5733 = vmatpush1.bf16.msra.mxu0 %v9628_v50  ;;  %5774 = vmatpush1.bf16.msra.mxu1 %v11904_v32 }
 0xdbb   :  { %5734 = vmatprep.subr.bf16.mxu0 %v9631_v1  ;;  %5775 = vmatprep.subr.bf16.mxu1 %v11905_v53 }
 0xdbe   :  { %5735 = vmatpush1.bf16.msra.mxu0 %v9634_v22  ;;  %5776 = vmatpush1.bf16.msra.mxu1 %v11906_v27 }
 0xdbf   :  { %5736 = vmatprep.subr.bf16.mxu0 %v9637_v11  ;;  %5777 = vmatprep.subr.bf16.mxu1 %v11907_v56 }
 0xdc2   :  { %5737 = vmatpush1.bf16.msra.mxu0 %v11876_v8  ;;  %5778 = vmatpush1.bf16.msra.mxu1 %v11908_v0 }
 0xdc3   :  { %5738 = vmatprep.subr.bf16.mxu0 %v11877_v9  ;;  %5779 = vmatprep.subr.bf16.mxu1 %v11909_v18 }
 0xdc6   :  { %5739 = vmatpush1.bf16.msra.mxu0 %v11878_v15  ;;  %5780 = vmatpush1.bf16.msra.mxu1 %v11910_v3 }
 0xdc7   :  { %5740 = vmatprep.subr.bf16.mxu0 %v11879_v29  ;;  %5781 = vmatprep.subr.bf16.mxu1 %v11911_v39 }
 0xdca   :  { %5741 = vmatpush1.bf16.msra.mxu0 %v11880_v23  ;;  %5782 = vmatpush1.bf16.msra.mxu1 %v11912_v20 }
 0xdcb   :  { %5742 = vmatprep.subr.bf16.mxu0 %v11881_v28  ;;  %5783 = vmatprep.subr.bf16.mxu1 %v11913_v6 }
 0xdce   :  { %5743 = vmatpush1.bf16.msra.mxu0 %v11882_v21  ;;  %5784 = vmatpush1.bf16.msra.mxu1 %v11914_v54 }
 0xdcf   :  { %5744 = vmatprep.subr.bf16.mxu0 %v11883_v38  ;;  %5785 = vmatprep.subr.bf16.mxu1 %v11915_v46 }
 0xdd2   :  { %5745 = vmatpush1.bf16.msra.mxu0 %v11884_v5  ;;  %5786 = vmatpush1.bf16.msra.mxu1 %v12256_v57 }
 0xdd3   :  { %5746 = vmatprep.subr.bf16.mxu0 %v12257_v7  ;;  %5787 = vmatprep.subr.bf16.mxu1 %v12258_v49 }
 0xdd6   :  { %5747 = vmatpush1.bf16.msra.mxu0 %v12464_v2  ;;  %5788 = vmatpush1.bf16.msra.mxu1 %v12465_v44  ;;  %v12553_v44 = vld [vmem:[#allocation107_spill] sm:$0xff] }
 0xdd7   :  { %5748 = vmatprep.subr.bf16.mxu0 %v12466_v55  ;;  %5789 = vmatprep.subr.bf16.mxu1 %v12467_v51  ;;  %v12552_v51 = vld [vmem:[#allocation88_spill] sm:$0xff] }
 0xdda   :  { %5749 = vmatpush1.bf16.msra.mxu0 %v12468_v33  ;;  %5790 = vmatpush1.bf16.msra.mxu1 %v12469_v63 }
 0xddb   :  { %5750 = vmatprep.subr.bf16.mxu0 %v12470_v37  ;;  %5791 = vmatprep.subr.bf16.mxu1 %v12471_v59  ;;  %v12481_v37 = vld [vmem:[#allocation152_spill] sm:$0xff]  ;;  %v12482_v59 = vld [vmem:[#allocation121_spill] sm:$0xff] }
 0xdde   :  { %5751 = vmatpush1.bf16.msra.mxu0 %v12472_v40  ;;  %5792 = vmatpush1.bf16.msra.mxu1 %v12473_v43  ;;  %v12483_v40 = vld [vmem:[#allocation153_spill] sm:$0xff]  ;;  %v12484_v43 = vld [vmem:[#allocation122_spill] sm:$0xff] }
 0xddf   :  { %5752 = vmatprep.subr.bf16.mxu0 %v12474_v4  ;;  %5793 = vmatprep.subr.bf16.mxu1 %v12475_v36  ;;  %v12485_v4 = vld [vmem:[#allocation154_spill] sm:$0xff]  ;;  %v12486_v36 = vld [vmem:[#allocation19_spill] sm:$0xff] }
 0xde2   :  { %5753 = vmatpush1.bf16.msra.mxu0 %v12476_v60  ;;  %5794 = vmatpush1.bf16.msra.mxu1 %v12477_v58  ;;  %v12487_v60 = vld [vmem:[#allocation51_spill] sm:$0xff] }
 0xde3   :  { %5754 = vmatprep.subr.bf16.mxu0 %v12478_v61  ;;  %5795 = vmatprep.subr.bf16.mxu1 %v12479_v48  ;;  %v12488_v48 = vld [vmem:[#allocation20_spill] sm:$0xff] }
 0xde4   :  { %v12497_v61 = vld [vmem:[#allocation56_spill] sm:$0xff] }
 0xde6   :  { %5755 = vmatpush1.bf16.msra.mxu0 %v12480_v26  ;;  %5796 = vmatpush1.bf16.msra.mxu1 %v12481_v37  ;;  %v12489_v26 = vld [vmem:[#allocation52_spill] sm:$0xff]  ;;  %v12490_v37 = vld [vmem:[#allocation21_spill] sm:$0xff] }
 0xde7   :  { %5756 = vmatprep.subr.bf16.mxu0 %v12482_v59  ;;  %5797 = vmatprep.subr.bf16.mxu1 %v12483_v40  ;;  %v12491_v59 = vld [vmem:[#allocation53_spill] sm:$0xff]  ;;  %v12492_v40 = vld [vmem:[#allocation22_spill] sm:$0xff] }
 0xdea   :  { %5757 = vmatpush1.bf16.msra.mxu0 %v12484_v43  ;;  %5798 = vmatpush1.bf16.msra.mxu1 %v12485_v4  ;;  %v12493_v43 = vld [vmem:[#allocation54_spill] sm:$0xff]  ;;  %v12494_v4 = vld [vmem:[#allocation23_spill] sm:$0xff] }
 0xdeb   :  { %5902 = vmatprep.subr.bf16.mxu0 %v12486_v36  ;;  %5943 = vmatprep.subr.bf16.mxu1 %v12487_v60  ;;  %v12495_v36 = vld [vmem:[#allocation55_spill] sm:$0xff]  ;;  %v12496_v60 = vld [vmem:[#allocation24_spill] sm:$0xff] }
 0xded   :  { %5759 = vmatmul.mubr.bf16.vlgmr.msra.gmra.mrb[64].mxu0 %v10851_v30  ;;  %5800 = vmatmul.mubr.bf16.vlgmr.msra.gmra.mrb[76].mxu1 %v10851_v30  ;;  %v12498_v30 = vld [vmem:[#allocation25_spill] sm:$0xff] }
 0xdee   :  { %5903 = vmatpush1.bf16.msra.mxu0 %v12488_v48  ;;  %5944 = vmatpush1.bf16.msra.mxu1 %v12489_v26  ;;  %v12499_v48 = vld [vmem:[#allocation57_spill] sm:$0xff]  ;;  %v12500_v26 = vld [vmem:[#allocation26_spill] sm:$0xff] }
 0xdef   :  { %5904 = vmatprep.subr.bf16.mxu0 %v12490_v37  ;;  %5945 = vmatprep.subr.bf16.mxu1 %v12491_v59  ;;  %v12501_v37 = vld [vmem:[#allocation58_spill] sm:$0xff]  ;;  %v12502_v59 = vld [vmem:[#allocation27_spill] sm:$0xff] }
 0xdf2   :  { %5905 = vmatpush1.bf16.msra.mxu0 %v12492_v40  ;;  %5946 = vmatpush1.bf16.msra.mxu1 %v12493_v43  ;;  %v12503_v40 = vld [vmem:[#allocation59_spill] sm:$0xff]  ;;  %v12504_v43 = vld [vmem:[#allocation28_spill] sm:$0xff] }
 0xdf3   :  { %5906 = vmatprep.subr.bf16.mxu0 %v12494_v4  ;;  %5947 = vmatprep.subr.bf16.mxu1 %v12495_v36  ;;  %v12505_v4 = vld [vmem:[#allocation60_spill] sm:$0xff]  ;;  %v12506_v36 = vld [vmem:[#allocation29_spill] sm:$0xff] }
 0xdf6   :  { %5907 = vmatpush1.bf16.msra.mxu0 %v12496_v60  ;;  %5948 = vmatpush1.bf16.msra.mxu1 %v12497_v61  ;;  %v12507_v60 = vld [vmem:[#allocation61_spill] sm:$0xff]  ;;  %v12508_v61 = vld [vmem:[#allocation30_spill] sm:$0xff] }
 0xdf7   :  { %5908 = vmatprep.subr.bf16.mxu0 %v12498_v30  ;;  %5949 = vmatprep.subr.bf16.mxu1 %v12499_v48  ;;  %v12509_v30 = vld [vmem:[#allocation62_spill] sm:$0xff]  ;;  %v12510_v48 = vld [vmem:[#allocation31_spill] sm:$0xff] }
 0xdfa   :  { %5909 = vmatpush1.bf16.msra.mxu0 %v12500_v26  ;;  %5950 = vmatpush1.bf16.msra.mxu1 %v12501_v37  ;;  %v12511_v26 = vld [vmem:[#allocation63_spill] sm:$0xff]  ;;  %v12512_v37 = vld [vmem:[#allocation32_spill] sm:$0xff] }
 0xdfb   :  { %5910 = vmatprep.subr.bf16.mxu0 %v12502_v59  ;;  %5951 = vmatprep.subr.bf16.mxu1 %v12503_v40  ;;  %v12513_v59 = vld [vmem:[#allocation64_spill] sm:$0xff]  ;;  %v12514_v40 = vld [vmem:[#allocation33_spill] sm:$0xff] }
 0xdfe   :  { %5911 = vmatpush1.bf16.msra.mxu0 %v12504_v43  ;;  %5952 = vmatpush1.bf16.msra.mxu1 %v12505_v4  ;;  %v12515_v43 = vld [vmem:[#allocation65_spill] sm:$0xff]  ;;  %v12516_v4 = vld [vmem:[#allocation34_spill] sm:$0xff] }
 0xdff   :  { %5912 = vmatprep.subr.bf16.mxu0 %v12506_v36  ;;  %5953 = vmatprep.subr.bf16.mxu1 %v12507_v60  ;;  %v12517_v36 = vld [vmem:[#allocation66_spill] sm:$0xff]  ;;  %v12518_v60 = vld [vmem:[#allocation35_spill] sm:$0xff] }
 0xe02   :  { %5913 = vmatpush1.bf16.msra.mxu0 %v12508_v61  ;;  %5954 = vmatpush1.bf16.msra.mxu1 %v12509_v30  ;;  %v12519_v61 = vld [vmem:[#allocation67_spill] sm:$0xff]  ;;  %v12520_v30 = vld [vmem:[#allocation36_spill] sm:$0xff] }
 0xe03   :  { %5914 = vmatprep.subr.bf16.mxu0 %v12510_v48  ;;  %5955 = vmatprep.subr.bf16.mxu1 %v12511_v26  ;;  %v12521_v48 = vld [vmem:[#allocation68_spill] sm:$0xff]  ;;  %v12522_v26 = vld [vmem:[#allocation37_spill] sm:$0xff] }
 0xe06   :  { %5915 = vmatpush1.bf16.msra.mxu0 %v12512_v37  ;;  %5956 = vmatpush1.bf16.msra.mxu1 %v12513_v59  ;;  %v12523_v37 = vld [vmem:[#allocation69_spill] sm:$0xff]  ;;  %v12524_v59 = vld [vmem:[#allocation38_spill] sm:$0xff] }
 0xe07   :  { %5916 = vmatprep.subr.bf16.mxu0 %v12514_v40  ;;  %5957 = vmatprep.subr.bf16.mxu1 %v12515_v43  ;;  %v12525_v40 = vld [vmem:[#allocation70_spill] sm:$0xff]  ;;  %v12526_v43 = vld [vmem:[#allocation39_spill] sm:$0xff] }
 0xe0a   :  { %5917 = vmatpush1.bf16.msra.mxu0 %v12516_v4  ;;  %5958 = vmatpush1.bf16.msra.mxu1 %v12517_v36  ;;  %v12527_v4 = vld [vmem:[#allocation71_spill] sm:$0xff]  ;;  %v12528_v36 = vld [vmem:[#allocation40_spill] sm:$0xff] }
 0xe0b   :  { %5918 = vmatprep.subr.bf16.mxu0 %v12518_v60  ;;  %5959 = vmatprep.subr.bf16.mxu1 %v12519_v61  ;;  %v12529_v60 = vld [vmem:[#allocation72_spill] sm:$0xff]  ;;  %v12530_v61 = vld [vmem:[#allocation41_spill] sm:$0xff] }
 0xe0e   :  { %5919 = vmatpush1.bf16.msra.mxu0 %v12520_v30  ;;  %5960 = vmatpush1.bf16.msra.mxu1 %v12521_v48  ;;  %v12531_v30 = vld [vmem:[#allocation73_spill] sm:$0xff]  ;;  %v12532_v48 = vld [vmem:[#allocation42_spill] sm:$0xff] }
 0xe0f   :  { %5920 = vmatprep.subr.bf16.mxu0 %v12522_v26  ;;  %5961 = vmatprep.subr.bf16.mxu1 %v12523_v37  ;;  %v12533_v26 = vld [vmem:[#allocation74_spill] sm:$0xff]  ;;  %v12534_v37 = vld [vmem:[#allocation43_spill] sm:$0xff] }
 0xe12   :  { %5921 = vmatpush1.bf16.msra.mxu0 %v12524_v59  ;;  %5962 = vmatpush1.bf16.msra.mxu1 %v12525_v40  ;;  %v12535_v59 = vld [vmem:[#allocation75_spill] sm:$0xff]  ;;  %v12536_v40 = vld [vmem:[#allocation44_spill] sm:$0xff] }
 0xe13   :  { %5922 = vmatprep.subr.bf16.mxu0 %v12526_v43  ;;  %5963 = vmatprep.subr.bf16.mxu1 %v12527_v4  ;;  %v12537_v43 = vld [vmem:[#allocation76_spill] sm:$0xff]  ;;  %v12538_v4 = vld [vmem:[#allocation45_spill] sm:$0xff] }
 0xe16   :  { %5923 = vmatpush1.bf16.msra.mxu0 %v12528_v36  ;;  %5964 = vmatpush1.bf16.msra.mxu1 %v12529_v60  ;;  %v12539_v36 = vld [vmem:[#allocation77_spill] sm:$0xff]  ;;  %v12540_v60 = vld [vmem:[#allocation46_spill] sm:$0xff] }
 0xe17   :  { %5924 = vmatprep.subr.bf16.mxu0 %v12530_v61  ;;  %5965 = vmatprep.subr.bf16.mxu1 %v12531_v30  ;;  %v12541_v61 = vld [vmem:[#allocation78_spill] sm:$0xff]  ;;  %v12542_v30 = vld [vmem:[#allocation47_spill] sm:$0xff] }
 0xe1a   :  { %5925 = vmatpush1.bf16.msra.mxu0 %v12532_v48  ;;  %5966 = vmatpush1.bf16.msra.mxu1 %v12533_v26  ;;  %v12543_v48 = vld [vmem:[#allocation79_spill] sm:$0xff]  ;;  %v12544_v26 = vld [vmem:[#allocation48_spill] sm:$0xff] }
 0xe1b   :  { %5926 = vmatprep.subr.bf16.mxu0 %v12534_v37  ;;  %5967 = vmatprep.subr.bf16.mxu1 %v12535_v59  ;;  %v12545_v37 = vld [vmem:[#allocation80_spill] sm:$0xff]  ;;  %v12546_v59 = vld [vmem:[#allocation49_spill] sm:$0xff] }
 0xe1e   :  { %5927 = vmatpush1.bf16.msra.mxu0 %v12536_v40  ;;  %5968 = vmatpush1.bf16.msra.mxu1 %v12537_v43  ;;  %v12547_v40 = vld [vmem:[#allocation81_spill] sm:$0xff]  ;;  %v12548_v43 = vld [vmem:[#allocation50_spill] sm:$0xff] }
 0xe1f   :  { %5928 = vmatprep.subr.bf16.mxu0 %v12538_v4  ;;  %5969 = vmatprep.subr.bf16.mxu1 %v12539_v36  ;;  %v12549_v4 = vld [vmem:[#allocation82_spill] sm:$0xff]  ;;  %v12550_v36 = vld [vmem:[#allocation83_spill] sm:$0xff] }
 0xe22   :  { %5929 = vmatpush1.bf16.msra.mxu0 %v12540_v60  ;;  %5970 = vmatpush1.bf16.msra.mxu1 %v12541_v61  ;;  %v12551_v60 = vld [vmem:[#allocation123_spill] sm:$0xff] }
 0xe23   :  { %5930 = vmatprep.subr.bf16.mxu0 %v12542_v30  ;;  %5971 = vmatprep.subr.bf16.mxu1 %v12543_v48 }
 0xe26   :  { %5931 = vmatpush1.bf16.msra.mxu0 %v12544_v26  ;;  %5972 = vmatpush1.bf16.msra.mxu1 %v12545_v37 }
 0xe27   :  { %5932 = vmatprep.subr.bf16.mxu0 %v12546_v59  ;;  %5973 = vmatprep.subr.bf16.mxu1 %v12547_v40 }
 0xe2a   :  { %5933 = vmatpush1.bf16.msra.mxu0 %v12548_v43  ;;  %5974 = vmatpush1.bf16.msra.mxu1 %v12549_v4 }
 0xe2b   :  { %5984 = vmatprep.subr.bf16.mxu0 %v12550_v36  ;;  %6025 = vmatprep.subr.bf16.mxu1 %v12551_v60 }
 0xe80   :  { %v5678_v61 = vpop.f32.mrb[60].mxu0  ;;  %v5719_v30 = vpop.f32.mrb[72].mxu1 }
 0xe81   :  { %v5818_v58 = vrot.slane %v5719_v30, 4  ;;  %v5680_v48 = vpop.f32.mrb[61].mxu0  ;;  %v5721_v63 = vpop.f32.mrb[73].mxu1 }
 0xe82   :  { %v5819_v26 = vrot.slane %v5721_v63, 4  ;;  %v5682_v33 = vpop.f32.mrb[62].mxu0  ;;  %v5723_v37 = vpop.f32.mrb[74].mxu1  ;;  %v5880_v63 = vrot.slane %v10845_v13, 6 }
 0xe83   :  { %v5834_v59 = vadd.f32 %v5818_v58, %v12552_v51  ;;  %v5683_v55 = vpop.f32.mrb[63].mxu0  ;;  %v5724_v40 = vpop.f32.mrb[75].mxu1  ;;  %v5881_v37 = vrot.slane %v10847_v41, 6  ;;  %v5816_v51 = vrot.slane %v5678_v61, 4 }
 0xe84   :  { %v5835_v43 = vadd.f32 %v5819_v26, %v12553_v44  ;;  %v5817_v26 = vrot.slane %v5680_v48, 4 }
 0xe85   :  { %v7464_v2 = vmul.f32 -1.442695, %v5834_v59  ;;  %v12554_v59 = vld [vmem:[#allocation108_spill] sm:$0xff] }
 0xe86   :  { %v7465_v4 = vmul.f32 -1.442695, %v5835_v43  ;;  %v5832_v43 = vadd.f32 %v5816_v51, %v12554_v59 }
 0xe87   :  { %8349 = vpow2.f32 %v7464_v2  ;;  %v12555_v2 = vld [vmem:[#allocation109_spill] sm:$0xff] }
 0xe88   :  { %8351 = vpow2.f32 %v7465_v4  ;;  %v5833_v4 = vadd.f32 %v5817_v26, %v12555_v2  ;;  %v7462_v44 = vmul.f32 -1.442695, %v5832_v43 }
 0xe91   :  { %v8350_v36 = vpop.eup %8349 }
 0xe92   :  { %v5854_v60 = vadd.f32 1.0, %v8350_v36  ;;  %v8352_v49 = vpop.eup %8351  ;;  %v7463_v36 = vmul.f32 -1.442695, %v5833_v4 }
 0xe93   :  { %v5855_v30 = vadd.f32 1.0, %v8352_v49 }
 0xe94   :  { %8353 = vrcp.f32 %v5854_v60 }
 0xe95   :  { %8355 = vrcp.f32 %v5855_v30 }
 0xe96   :  { %8357 = vpow2.f32 %v7462_v44 }
 0xe97   :  { %8359 = vpow2.f32 %v7463_v36 }
 0xe9e   :  { %v8354_v33 = vpop.eup %8353 }
 0xe9f   :  { %v5884_v58 = vmul.f32 %v8354_v33, %v5880_v63  ;;  %v8356_v55 = vpop.eup %8355 }
 0xea0   :  { %v5885_v40 = vmul.f32 %v8356_v55, %v5881_v37  ;;  %v8358_v49 = vpop.eup %8357 }
 0xea1   :  { %v8360_v60 = vpop.eup %8359  ;;  %v5852_v30 = vadd.f32 1.0, %v8358_v49 }
 0xea2   :  { %v5853_v13 = vadd.f32 1.0, %v8360_v60 }
 0xea3   :  { %8361 = vrcp.f32 %v5852_v30 }
 0xea4   :  { %8363 = vrcp.f32 %v5853_v13 }
 0xead   :  { %v8362_v60 = vpop.eup %8361 }
 0xec0   :  { %v5760_v7 = vpop.f32.mrb[64].mxu0  ;;  %v5801_v57 = vpop.f32.mrb[76].mxu1 }
 0xec1   :  { %v5820_v41 = vrot.slane %v5760_v7, 4  ;;  %v5822_v63 = vrot.slane %v5801_v57, 4  ;;  %v5762_v33 = vpop.f32.mrb[65].mxu0  ;;  %v5803_v37 = vpop.f32.mrb[77].mxu1 }
 0xec2   :  { %v5821_v61 = vrot.slane %v5762_v33, 4  ;;  %v5823_v48 = vrot.slane %v5803_v37, 4  ;;  %v5764_v55 = vpop.f32.mrb[66].mxu0  ;;  %v5805_v51 = vpop.f32.mrb[78].mxu1 }
 0xec3   :  { %v5836_v26 = vadd.f32 %v5820_v41, %v12461_v34  ;;  %v5838_v44 = vadd.f32 %v5822_v63, %v12462_v12  ;;  %v5765_v43 = vpop.f32.mrb[67].mxu0  ;;  %v5806_v4 = vpop.f32.mrb[79].mxu1 }
 0xec4   :  { %v5837_v36 = vadd.f32 %v5821_v61, %v12463_v47  ;;  %v5839_v49 = vadd.f32 %v5823_v48, %v10689_v25  ;;  %v8364_v33 = vpop.eup %8363 }
 0xec5   :  { %8365 = vtanh.f32 %v5836_v26  ;;  %v7466_v57 = vmul.f32 -1.442695, %v5838_v44 }
 0xec6   :  { %8367 = vtanh.f32 %v5837_v36  ;;  %v7467_v7 = vmul.f32 -1.442695, %v5839_v49 }
 0xec7   :  { %8369 = vpow2.f32 %v7466_v57 }
 0xec8   :  { %8371 = vpow2.f32 %v7467_v7 }
 0xecf   :  { %v8366_v30 = vpop.eup %8365 }
 0xed0   :  { %v8368_v37 = vpop.eup %8367  ;;  %v5886_v41 = vmul.f32 %v8366_v30, %v8362_v60  ;;  %v8031_v30 = vld [vmem:[%s11216_s7 + $0x60] ss:$8 sps:$4 sm:$0xff]  }
 0xed1   :  { %v8370_v55 = vpop.eup %8369  ;;  %v5887_v63 = vmul.f32 %v8368_v37, %v8364_v33  ;;  %v8036_v37 = vld [vmem:[%s11216_s7 + $0x74] ss:$8 sps:$4 sm:$0xff]  }
 0xed2   :  { %v8372_v51 = vpop.eup %8371  ;;  %v10995_v43 = vadd.f32 %v5886_v41, %v5884_v58  ;;  %v5872_v13 = vadd.f32 1.0, %v8370_v55  ;;  %v8034_v41 = vld [vmem:[%s11216_s7 + $0x70] ss:$8 sps:$4 sm:$0xff]   ;;  %v8039_v55 = vld [vmem:[%s11216_s7 + $0x84] ss:$8 sps:$4 sm:$0xff]  }
 0xed3   :  { %v10997_v61 = vadd.f32 %v5887_v63, %v5885_v40  ;;  %v5873_v48 = vadd.f32 1.0, %v8372_v51  ;;  %v8033_v40 = vld [vmem:[%s11216_s7 + $0x64] ss:$8 sps:$4 sm:$0xff]   ;;  %v8037_v63 = vld [vmem:[%s11216_s7 + $0x80] ss:$8 sps:$4 sm:$0xff]  }
 0xed4   :  { %8373 = vtanh.f32 %v10995_v43  ;;  %v8042_v51 = vld [vmem:[%s11216_s7 + $0x94] ss:$8 sps:$4 sm:$0xff]  }
 0xed5   :  { %8375 = vrcp.f32 %v5872_v13  ;;  %v8040_v13 = vld [vmem:[%s11216_s7 + $0x90] ss:$8 sps:$4 sm:$0xff]  }
 0xed6   :  { %8377 = vtanh.f32 %v10997_v61 }
 0xed7   :  { %8379 = vrcp.f32 %v5873_v48  ;;  %v8045_v48 = vld [vmem:[%s11216_s7 + $0xa4] ss:$8 sps:$4 sm:$0xff]  }
 0xede   :  { %v8374_v26 = vpop.eup %8373 }
 0xedf   :  { %v8376_v44 = vpop.eup %8375 }
 0xee0   :  { %v8378_v4 = vpop.eup %8377  ;;  %v5892_v36 = vmul.f32 %v8376_v44, %v8374_v26  ;;  %v8043_v26 = vld [vmem:[%s11216_s7 + $0xa0] ss:$8 sps:$4 sm:$0xff]   ;;  %v8048_v44 = vld [vmem:[%s11216_s7 + $0xb4] ss:$8 sps:$4 sm:$0xff]  }
 0xee1   :  { %v8380_v49 = vpop.eup %8379 }
 0xee2   :  { %v5893_v57 = vmul.f32 %v8380_v49, %v8378_v4  ;;  %v5894_v7 = vpack.c.bf16 %v5892_v36, %v5892_v36  ;;  %v8046_v4 = vld [vmem:[%s11216_s7 + $0xb0] ss:$8 sps:$4 sm:$0xff]   ;;  %v8049_v36 = vld [vmem:[%s11216_s7 + $0xc0] ss:$8 sps:$4 sm:$0xff]   ;;  %v8051_v49 = vld [vmem:[%s11216_s7 + $0xc4] ss:$8 sps:$4 sm:$0xff]  }
 0xee4   :  { %v5895_v60 = vpack.c.bf16 %v5893_v57, %v5893_v57  ;;  %v11001_v33 = vrot.slane %v5894_v7, 2  ;;  %v8054_v57 = vld [vmem:[%s11216_s7 + $0xd4] ss:$8 sps:$4 sm:$0xff]   ;;  %v8052_v7 = vld [vmem:[%s11216_s7 + $0xd0] ss:$8 sps:$4 sm:$0xff]  }
 0xee6   :  { %v5899_v58 = vrot.slane %v5895_v60, 2  ;;  %v8057_v60 = vld [vmem:[%s11216_s7 + $0xe4] ss:$8 sps:$4 sm:$0xff]  }
 0xee8   :  { %5934 = vmatprep.mubr.bf16.mxu0 %v5899_v58  ;;  %5975 = vmatprep.mubr.bf16.mxu1 %v5899_v58 }
 0xee9   :  { %5935 = vmatmul.mubr.bf16.vlgmr.msra.gmra.mrb[68].mxu0 %v11001_v33  ;;  %5976 = vmatmul.mubr.bf16.vlgmr.msra.gmra.mrb[80].mxu1 %v11001_v33 }
 0xeea   :  { %5985 = vmatpush1.bf16.msra.mxu0 %v9608_v35  ;;  %6026 = vmatpush1.bf16.msra.mxu1 %v11898_v10  ;;  %v12573_v10 = vld [vmem:[#allocation119_spill] sm:$0xff]  ;;  %v12575_v35 = vld [vmem:[#allocation120_spill] sm:$0xff] }
 0xeeb   :  { %6016 = vmatprep.mubr.bf16.mxu0 %v5899_v58  ;;  %6057 = vmatprep.mubr.bf16.mxu1 %v5899_v58  ;;  %v8055_v58 = vld [vmem:[%s11216_s7 + $0xe0] ss:$8 sps:$4 sm:$0xff]  }
 0xeec   :  { %5986 = vmatprep.subr.bf16.mxu0 %v9611_v16  ;;  %6027 = vmatprep.subr.bf16.mxu1 %v11899_v42  ;;  %v12572_v42 = vld [vmem:[#allocation150_spill] sm:$0xff]  ;;  %v12576_v16 = vld [vmem:[#allocation152_spill] sm:$0xff] }
 0xeee   :  { %5987 = vmatpush1.bf16.msra.mxu0 %v9615_v17  ;;  %6028 = vmatpush1.bf16.msra.mxu1 %v11900_v31  ;;  %v12571_v31 = vld [vmem:[#allocation118_spill] sm:$0xff]  ;;  %v12577_v17 = vld [vmem:[#allocation121_spill] sm:$0xff] }
 0xeef   :  { %5988 = vmatprep.subr.bf16.mxu0 %v9619_v24  ;;  %6029 = vmatprep.subr.bf16.mxu1 %v11901_v19  ;;  %v12570_v19 = vld [vmem:[#allocation149_spill] sm:$0xff] }
 0xef0   :  { %v12578_v24 = vld [vmem:[#allocation153_spill] sm:$0xff] }
 0xef2   :  { %5989 = vmatpush1.bf16.msra.mxu0 %v9622_v45  ;;  %6030 = vmatpush1.bf16.msra.mxu1 %v11902_v52  ;;  %v12557_v45 = vld [vmem:[#allocation111_spill] sm:$0xff]  ;;  %v12569_v52 = vld [vmem:[#allocation117_spill] sm:$0xff] }
 0xef3   :  { %5990 = vmatprep.subr.bf16.mxu0 %v9625_v14  ;;  %6031 = vmatprep.subr.bf16.mxu1 %v11903_v62  ;;  %v12556_v14 = vld [vmem:[#allocation142_spill] sm:$0xff]  ;;  %v12568_v62 = vld [vmem:[#allocation148_spill] sm:$0xff] }
 0xef6   :  { %5991 = vmatpush1.bf16.msra.mxu0 %v9628_v50  ;;  %6032 = vmatpush1.bf16.msra.mxu1 %v11904_v32  ;;  %v12567_v32 = vld [vmem:[#allocation116_spill] sm:$0xff]  ;;  %v12579_v50 = vld [vmem:[#allocation122_spill] sm:$0xff] }
 0xef7   :  { %5992 = vmatprep.subr.bf16.mxu0 %v9631_v1  ;;  %6033 = vmatprep.subr.bf16.mxu1 %v11905_v53  ;;  %v12566_v53 = vld [vmem:[#allocation147_spill] sm:$0xff]  ;;  %v12580_v1 = vld [vmem:[#allocation154_spill] sm:$0xff] }
 0xefa   :  { %5993 = vmatpush1.bf16.msra.mxu0 %v9634_v22  ;;  %6034 = vmatpush1.bf16.msra.mxu1 %v11906_v27  ;;  %v12574_v27 = vld [vmem:[#allocation151_spill] sm:$0xff] }
 0xefb   :  { %5994 = vmatprep.subr.bf16.mxu0 %v9637_v11  ;;  %6035 = vmatprep.subr.bf16.mxu1 %v11907_v56  ;;  %v12564_v56 = vld [vmem:[#allocation146_spill] sm:$0xff]  ;;  %v8013_v22 = vld [vmem:[%s11216_s7] ss:$8 sps:$4 sm:$0xff]   ;;  %v8015_v11 = vld [vmem:[%s11216_s7 + $0x4] ss:$8 sps:$4 sm:$0xff]  }
 0xefe   :  { %5995 = vmatpush1.bf16.msra.mxu0 %v11876_v8  ;;  %6036 = vmatpush1.bf16.msra.mxu1 %v11908_v0  ;;  %v12562_v0 = vld [vmem:[#allocation145_spill] sm:$0xff] }
 0xeff   :  { %5996 = vmatprep.subr.bf16.mxu0 %v11877_v9  ;;  %6037 = vmatprep.subr.bf16.mxu1 %v11909_v18  ;;  %v8018_v8 = vld [vmem:[%s11216_s7 + $0x14] ss:$8 sps:$4 sm:$0xff]   ;;  %v8016_v9 = vld [vmem:[%s11216_s7 + $0x10] ss:$8 sps:$4 sm:$0xff]  }
 0xf00   :  { %v8028_v18 = vld [vmem:[%s11216_s7 + $0x50] ss:$8 sps:$4 sm:$0xff]  }
 0xf02   :  { %5997 = vmatpush1.bf16.msra.mxu0 %v11878_v15  ;;  %6038 = vmatpush1.bf16.msra.mxu1 %v11910_v3  ;;  %v12560_v3 = vld [vmem:[#allocation144_spill] sm:$0xff] }
 0xf03   :  { %5998 = vmatprep.subr.bf16.mxu0 %v11879_v29  ;;  %6039 = vmatprep.subr.bf16.mxu1 %v11911_v39  ;;  %v12558_v39 = vld [vmem:[#allocation143_spill] sm:$0xff] }
 0xf04   :  { %v8021_v15 = vld [vmem:[%s11216_s7 + $0x24] ss:$8 sps:$4 sm:$0xff]   ;;  %v8019_v29 = vld [vmem:[%s11216_s7 + $0x20] ss:$8 sps:$4 sm:$0xff]  }
 0xf06   :  { %5999 = vmatpush1.bf16.msra.mxu0 %v11880_v23  ;;  %6040 = vmatpush1.bf16.msra.mxu1 %v11912_v20  ;;  %v12559_v20 = vld [vmem:[#allocation112_spill] sm:$0xff]  ;;  %v8024_v23 = vld [vmem:[%s11216_s7 + $0x34] ss:$8 sps:$4 sm:$0xff]  }
 0xf07   :  { %6000 = vmatprep.subr.bf16.mxu0 %v11881_v28  ;;  %6041 = vmatprep.subr.bf16.mxu1 %v11913_v6  ;;  %v12561_v6 = vld [vmem:[#allocation113_spill] sm:$0xff] }
 0xf08   :  { %v8022_v28 = vld [vmem:[%s11216_s7 + $0x30] ss:$8 sps:$4 sm:$0xff]  }
 0xf0a   :  { %6001 = vmatpush1.bf16.msra.mxu0 %v11882_v21  ;;  %6042 = vmatpush1.bf16.msra.mxu1 %v11914_v54  ;;  %v12563_v54 = vld [vmem:[#allocation114_spill] sm:$0xff]  ;;  %v8027_v21 = vld [vmem:[%s11216_s7 + $0x44] ss:$8 sps:$4 sm:$0xff]  }
 0xf0b   :  { %6002 = vmatprep.subr.bf16.mxu0 %v11883_v38  ;;  %6043 = vmatprep.subr.bf16.mxu1 %v11915_v46  ;;  %v12565_v46 = vld [vmem:[#allocation115_spill] sm:$0xff] }
 0xf0c   :  { %v8025_v38 = vld [vmem:[%s11216_s7 + $0x40] ss:$8 sps:$4 sm:$0xff]  }
 0xf0e   :  { %6003 = vmatpush1.bf16.msra.mxu0 %v11884_v5  ;;  %6044 = vmatpush1.bf16.msra.mxu1 %v12556_v14  ;;  %v8030_v5 = vld [vmem:[%s11216_s7 + $0x54] ss:$8 sps:$4 sm:$0xff]   ;;  %v8058_v14 = vld [vmem:[%s11216_s7 + $0xf0] ss:$8 sps:$4 sm:$0xff]  }
 0xf0f   :  { %6004 = vmatprep.subr.bf16.mxu0 %v12557_v45  ;;  %6045 = vmatprep.subr.bf16.mxu1 %v12558_v39  ;;  %v8061_v45 = vld [vmem:[#allocation8 + $0x40] sm:$0xff]  }
 0xf10   :  { %v8062_v39 = vld [vmem:[#allocation8] sm:$0xff]  }
 0xf12   :  { %6005 = vmatpush1.bf16.msra.mxu0 %v12559_v20  ;;  %6046 = vmatpush1.bf16.msra.mxu1 %v12560_v3  ;;  %v8063_v20 = vld [vmem:[#allocation8 + $0x48] sm:$0xff]  }
 0xf13   :  { %6006 = vmatprep.subr.bf16.mxu0 %v12561_v6  ;;  %6047 = vmatprep.subr.bf16.mxu1 %v12562_v0  ;;  %v8064_v3 = vld [vmem:[#allocation8 + $0x8] sm:$0xff]   ;;  %v8065_v6 = vld [vmem:[#allocation8 + $0x50] sm:$0xff]  }
 0xf14   :  { %v8066_v0 = vld [vmem:[#allocation8 + $0x10] sm:$0xff]  }
 0xf16   :  { %6007 = vmatpush1.bf16.msra.mxu0 %v12563_v54  ;;  %6048 = vmatpush1.bf16.msra.mxu1 %v12564_v56  ;;  %v8067_v54 = vld [vmem:[#allocation8 + $0x58] sm:$0xff]  }
 0xf17   :  { %6008 = vmatprep.subr.bf16.mxu0 %v12565_v46  ;;  %6049 = vmatprep.subr.bf16.mxu1 %v12566_v53  ;;  %v8068_v56 = vld [vmem:[#allocation8 + $0x18] sm:$0xff]   ;;  %v8069_v46 = vld [vmem:[#allocation8 + $0x60] sm:$0xff]  }
 0xf18   :  { %v8070_v53 = vld [vmem:[#allocation8 + $0x20] sm:$0xff]  }
 0xf1a   :  { %6009 = vmatpush1.bf16.msra.mxu0 %v12567_v32  ;;  %6050 = vmatpush1.bf16.msra.mxu1 %v12568_v62  ;;  %v8071_v32 = vld [vmem:[#allocation8 + $0x68] sm:$0xff]  }
 0xf1b   :  { %6010 = vmatprep.subr.bf16.mxu0 %v12569_v52  ;;  %6051 = vmatprep.subr.bf16.mxu1 %v12570_v19  ;;  %v8072_v62 = vld [vmem:[#allocation8 + $0x28] sm:$0xff]  }
 0xf1e   :  { %6011 = vmatpush1.bf16.msra.mxu0 %v12571_v31  ;;  %6052 = vmatpush1.bf16.msra.mxu1 %v12572_v42 }
 0xf1f   :  { %6012 = vmatprep.subr.bf16.mxu0 %v12573_v10  ;;  %6053 = vmatprep.subr.bf16.mxu1 %v12574_v27 }
 0xf22   :  { %6013 = vmatpush1.bf16.msra.mxu0 %v12575_v35  ;;  %6054 = vmatpush1.bf16.msra.mxu1 %v12576_v16 }
 0xf23   :  { %6014 = vmatprep.subr.bf16.mxu0 %v12577_v17  ;;  %6055 = vmatprep.subr.bf16.mxu1 %v12578_v24  ;;  %v12581_v17 = vld [vmem:[#allocation88_spill] sm:$0xff] }
 0xf26   :  { %6015 = vmatpush1.bf16.msra.mxu0 %v12579_v50  ;;  %6056 = vmatpush1.bf16.msra.mxu1 %v12580_v1 }
 0xf27   :  { %6364 = vmatprep.subr.bf16.mxu0 %v8015_v11  ;;  %7555 = vmatprep.subr.bf16.mxu1 %v8061_v45 }
 0xf29   :  { %6017 = vmatmul.mubr.bf16.vlgmr.msra.gmra.mrb[72].mxu0 %v11001_v33  ;;  %6058 = vmatmul.mubr.bf16.vlgmr.msra.gmra.mrb[84].mxu1 %v11001_v33  ;;  %v8060_v33 = vld [vmem:[%s11216_s7 + $0xf4] ss:$8 sps:$4 sm:$0xff]  }
 0xf2a   :  { %6365 = vmatpush1.bf16.msra.mxu0 %v8013_v22  ;;  %7556 = vmatpush3.bf16.msra.mxu1 %v8062_v39  ;;  %v12582_v22 = vld [vmem:[#allocation107_spill] sm:$0xff] }
 0xf2b   :  { %6366 = vmatprep.subr.bf16.mxu0 %v8018_v8  ;;  %7557 = vmatprep.subr.bf16.mxu1 %v8063_v20 }
 0xf2e   :  { %6367 = vmatpush1.bf16.msra.mxu0 %v8016_v9  ;;  %7558 = vmatpush3.bf16.msra.mxu1 %v8064_v3 }
 0xf2f   :  { %6368 = vmatprep.subr.bf16.mxu0 %v8021_v15  ;;  %7559 = vmatprep.subr.bf16.mxu1 %v8065_v6 }
 0xf32   :  { %6369 = vmatpush1.bf16.msra.mxu0 %v8019_v29  ;;  %7560 = vmatpush3.bf16.msra.mxu1 %v8066_v0 }
 0xf33   :  { %6370 = vmatprep.subr.bf16.mxu0 %v8024_v23  ;;  %7561 = vmatprep.subr.bf16.mxu1 %v8067_v54 }
 0xf36   :  { %6371 = vmatpush1.bf16.msra.mxu0 %v8022_v28  ;;  %7562 = vmatpush3.bf16.msra.mxu1 %v8068_v56 }
 0xf37   :  { %6372 = vmatprep.subr.bf16.mxu0 %v8027_v21  ;;  %7563 = vmatprep.subr.bf16.mxu1 %v8069_v46  ;;  %v6138_v21 = vrot.slane %v10995_v43, 6 }
 0xf3a   :  { %6373 = vmatpush1.bf16.msra.mxu0 %v8025_v38  ;;  %7564 = vmatpush3.bf16.msra.mxu1 %v8070_v53 }
 0xf3b   :  { %6374 = vmatprep.subr.bf16.mxu0 %v8030_v5  ;;  %7565 = vmatprep.subr.bf16.mxu1 %v8071_v32  ;;  %v6139_v5 = vrot.slane %v10997_v61, 6 }
 0xf3e   :  { %6375 = vmatpush1.bf16.msra.mxu0 %v8028_v18  ;;  %7566 = vmatpush3.bf16.msra.mxu1 %v8072_v62 }
 0xf3f   :  { %6376 = vmatprep.subr.bf16.mxu0 %v8033_v40 }
 0xf42   :  { %6377 = vmatpush1.bf16.msra.mxu0 %v8031_v30 }
 0xf43   :  { %6378 = vmatprep.subr.bf16.mxu0 %v8036_v37 }
 0xf46   :  { %6379 = vmatpush1.bf16.msra.mxu0 %v8034_v41 }
 0xf47   :  { %6380 = vmatprep.subr.bf16.mxu0 %v8039_v55 }
 0xf4a   :  { %6381 = vmatpush1.bf16.msra.mxu0 %v8037_v63 }
 0xf4b   :  { %6382 = vmatprep.subr.bf16.mxu0 %v8042_v51 }
 0xf4e   :  { %6383 = vmatpush1.bf16.msra.mxu0 %v8040_v13 }
 0xf4f   :  { %6384 = vmatprep.subr.bf16.mxu0 %v8045_v48 }
 0xf52   :  { %6385 = vmatpush1.bf16.msra.mxu0 %v8043_v26 }
 0xf53   :  { %6386 = vmatprep.subr.bf16.mxu0 %v8048_v44 }
 0xf56   :  { %6387 = vmatpush1.bf16.msra.mxu0 %v8046_v4 }
 0xf57   :  { %6388 = vmatprep.subr.bf16.mxu0 %v8051_v49 }
 0xf5a   :  { %6389 = vmatpush1.bf16.msra.mxu0 %v8049_v36 }
 0xf5b   :  { %6390 = vmatprep.subr.bf16.mxu0 %v8054_v57 }
 0xf5e   :  { %6391 = vmatpush1.bf16.msra.mxu0 %v8052_v7 }
 0xf5f   :  { %6392 = vmatprep.subr.bf16.mxu0 %v8057_v60 }
 0xf62   :  { %6393 = vmatpush1.bf16.msra.mxu0 %v8055_v58 }
 0xf63   :  { %6394 = vmatprep.subr.bf16.mxu0 %v8060_v33 }
 0xf66   :  { %6395 = vmatpush1.bf16.msra.mxu0 %v8058_v14 }
 0xfbc   :  { %v5936_v52 = vpop.f32.mrb[68].mxu0  ;;  %v5977_v19 = vpop.f32.mrb[80].mxu1 }
 0xfbd   :  { %v6076_v31 = vrot.slane %v5977_v19, 2  ;;  %v5938_v42 = vpop.f32.mrb[69].mxu0  ;;  %v5979_v10 = vpop.f32.mrb[81].mxu1  ;;  %v6074_v37 = vrot.slane %v5936_v52, 2 }
 0xfbe   :  { %v6077_v27 = vrot.slane %v5979_v10, 2  ;;  %v5940_v35 = vpop.f32.mrb[70].mxu0  ;;  %v5981_v16 = vpop.f32.mrb[82].mxu1  ;;  %v6075_v41 = vrot.slane %v5938_v42, 2 }
 0xfbf   :  { %v6092_v24 = vadd.f32 %v6076_v31, %v12581_v17  ;;  %v5941_v50 = vpop.f32.mrb[71].mxu0  ;;  %v5982_v1 = vpop.f32.mrb[83].mxu1  ;;  %v6090_v55 = vadd.f32 %v6074_v37, %v12554_v59  ;;  %v8103_v37 = vld [vmem:[#allocation10 + $0x84] ss:$16 sps:$4 sm:$0xff]  }
 0xfc0   :  { %v6093_v11 = vadd.f32 %v6077_v27, %v12582_v22  ;;  %v6091_v63 = vadd.f32 %v6075_v41, %v12555_v2  ;;  %v12583_v22 = vmov 0   ;;  %v8101_v41 = vld [vmem:[#allocation10 + $0x80] ss:$16 sps:$4 sm:$0xff]  }
 0xfc1   :  { %v7470_v8 = vmul.f32 -1.442695, %v6092_v24  ;;  %v7468_v51 = vmul.f32 -1.442695, %v6090_v55  ;;  %v8109_v55 = vld [vmem:[#allocation10 + $0xa4] ss:$16 sps:$4 sm:$0xff]  }
 0xfc2   :  { %v7471_v9 = vmul.f32 -1.442695, %v6093_v11  ;;  %v7469_v13 = vmul.f32 -1.442695, %v6091_v63  ;;  %v8073_v11 = vld [vmem:[#allocation8 + $0x70] sm:$0xff]  }
 0xfc3   :  { %8381 = vpow2.f32 %v7470_v8  ;;  %v8074_v8 = vld [vmem:[#allocation8 + $0x30] sm:$0xff]   ;;  %7567 = vmatprep.subr.bf16.mxu1 %v8073_v11 }
 0xfc4   :  { %8383 = vpow2.f32 %v7471_v9  ;;  %7568 = vmatpush3.bf16.msra.mxu1 %v8074_v8  ;;  %v8075_v9 = vld [vmem:[#allocation8 + $0x78] sm:$0xff]   ;;  %v8107_v63 = vld [vmem:[#allocation10 + $0xa0] ss:$16 sps:$4 sm:$0xff]  }
 0xfc5   :  { %7569 = vmatprep.subr.bf16.mxu1 %v8075_v9  ;;  %v12588_v9 = vld [vmem:[#allocation16_spill] sm:$0xff] }
 0xfcd   :  { %v8382_v15 = vpop.eup %8381 }
 0xfce   :  { %v6112_v29 = vadd.f32 1.0, %v8382_v15  ;;  %v8384_v23 = vpop.eup %8383  ;;  %v8076_v15 = vld [vmem:[#allocation8 + $0x38] sm:$0xff]  }
 0xfcf   :  { %v6113_v28 = vadd.f32 1.0, %v8384_v23  ;;  %7570 = vmatpush3.bf16.msra.mxu1 %v8076_v15  ;;  %v8079_v23 = vld [vmem:[#allocation10 + $0x4] ss:$16 sps:$4 sm:$0xff]   ;;  %v12589_v15 = vsub.s32 2, %v12588_v9 }
 0xfd0   :  { %8385 = vrcp.f32 %v6112_v29  ;;  %v8077_v29 = vld [vmem:[#allocation10] ss:$16 sps:$4 sm:$0xff]   ;;  %6800 = vmatprep.subr.bf16.mxu0 %v8079_v23 }
 0xfd1   :  { %8387 = vrcp.f32 %v6113_v28  ;;  %v8082_v28 = vld [vmem:[#allocation10 + $0xc] ss:$16 sps:$4 sm:$0xff]  }
 0xfd2   :  { %8389 = vpow2.f32 %v7468_v51  ;;  %6841 = vmatprep.subr.bf16.mxu1 %v8082_v28  ;;  %v6186_v51 = vld [vmem:[%s11217_s8] sm:$0x3] }
 0xfd3   :  { %8391 = vpow2.f32 %v7469_v13  ;;  %v12584_v13 = vld [vmem:[#allocation101_spill] sm:$0xff] }
 0xfda   :  { %v8386_v38 = vpop.eup %8385 }
 0xfdb   :  { %v6142_v18 = vmul.f32 %v8386_v38, %v6138_v21  ;;  %v8388_v40 = vpop.eup %8387  ;;  %v8085_v21 = vld [vmem:[#allocation10 + $0x24] ss:$16 sps:$4 sm:$0xff]   ;;  %v8083_v38 = vld [vmem:[#allocation10 + $0x20] ss:$16 sps:$4 sm:$0xff]  }
 0xfdc   :  { %v6143_v30 = vmul.f32 %v8388_v40, %v6139_v5  ;;  %v8390_v48 = vpop.eup %8389  ;;  %v8091_v5 = vld [vmem:[#allocation10 + $0x44] ss:$16 sps:$4 sm:$0xff]  }
 0xfdd   :  { %v8392_v26 = vpop.eup %8391  ;;  %v6110_v44 = vadd.f32 1.0, %v8390_v48  ;;  %v8097_v40 = vld [vmem:[#allocation10 + $0x64] ss:$16 sps:$4 sm:$0xff]   ;;  %v6191_v48 = vrot.slane %v6186_v51, %v12584_v13 }
 0xfde   :  { %v6111_v43 = vadd.f32 1.0, %v8392_v26  ;;  %v12585_v26 = vld [vmem:[#allocation102_spill] sm:$0xff] }
 0xfdf   :  { %8393 = vrcp.f32 %v6110_v44  ;;  %v6195_v44 = vrot.slane %v6186_v51, %v12585_v26 }
 0xfe0   :  { %8395 = vrcp.f32 %v6111_v43 }
 0xfe9   :  { %v8394_v54 = vpop.eup %8393 }
 0xfea   :  { %v8396_v56 = vpop.eup %8395 }
 0xffc   :  { %v6018_v4 = vpop.f32.mrb[72].mxu0  ;;  %v6059_v36 = vpop.f32.mrb[84].mxu1 }
 0xffd   :  { %v6078_v61 = vrot.slane %v6018_v4, 2  ;;  %v6080_v49 = vrot.slane %v6059_v36, 2  ;;  %v6020_v57 = vpop.f32.mrb[73].mxu0  ;;  %v6061_v7 = vpop.f32.mrb[85].mxu1 }
 0xffe   :  { %v6079_v60 = vrot.slane %v6020_v57, 2  ;;  %v6081_v58 = vrot.slane %v6061_v7, 2  ;;  %v6022_v33 = vpop.f32.mrb[74].mxu0  ;;  %v6063_v59 = vpop.f32.mrb[86].mxu1  ;;  %v12586_v57 = vld [vmem:[#allocation103_spill] sm:$0xff] }
 0xfff   :  { %v6094_v2 = vadd.f32 %v6078_v61, %v12461_v34  ;;  %v6096_v14 = vadd.f32 %v6080_v49, %v12462_v12  ;;  %v6023_v45 = vpop.f32.mrb[75].mxu0  ;;  %v6064_v39 = vpop.f32.mrb[87].mxu1 }
0x1000   :  { %v6095_v20 = vadd.f32 %v6079_v60, %v12463_v47  ;;  %v6097_v3 = vadd.f32 %v6081_v58, %v10689_v25  ;;  %v12587_v58 = vld [vmem:[#allocation104_spill] sm:$0xff] }
0x1001   :  { %8397 = vtanh.f32 %v6094_v2  ;;  %v7472_v6 = vmul.f32 -1.442695, %v6096_v14  ;;  %v8080_v2 = vld [vmem:[#allocation10 + $0x8] ss:$16 sps:$4 sm:$0xff]   ;;  %v8088_v45 = vld [vmem:[#allocation10 + $0x2c] ss:$16 sps:$4 sm:$0xff]  }
0x1002   :  { %8399 = vtanh.f32 %v6095_v20  ;;  %v7473_v0 = vmul.f32 -1.442695, %v6097_v3  ;;  %v8086_v39 = vld [vmem:[#allocation10 + $0x28] ss:$16 sps:$4 sm:$0xff]   ;;  %v8094_v20 = vld [vmem:[#allocation10 + $0x4c] ss:$16 sps:$4 sm:$0xff]  }
0x1003   :  { %8401 = vpow2.f32 %v7472_v6  ;;  %v8092_v3 = vld [vmem:[#allocation10 + $0x48] ss:$16 sps:$4 sm:$0xff]   ;;  %v8100_v6 = vld [vmem:[#allocation10 + $0x6c] ss:$16 sps:$4 sm:$0xff]  }
0x1004   :  { %8403 = vpow2.f32 %v7473_v0  ;;  %v8098_v0 = vld [vmem:[#allocation10 + $0x68] ss:$16 sps:$4 sm:$0xff]  }
0x100b   :  { %v8398_v46 = vpop.eup %8397 }
0x100c   :  { %v8400_v53 = vpop.eup %8399  ;;  %v6144_v34 = vmul.f32 %v8398_v46, %v8394_v54  ;;  %v8106_v54 = vld [vmem:[#allocation10 + $0x8c] ss:$16 sps:$4 sm:$0xff]  }
0x100d   :  { %v8402_v32 = vpop.eup %8401  ;;  %v6145_v12 = vmul.f32 %v8400_v53, %v8396_v56  ;;  %v8104_v56 = vld [vmem:[#allocation10 + $0x88] ss:$16 sps:$4 sm:$0xff]   ;;  %v8112_v46 = vld [vmem:[#allocation10 + $0xac] ss:$16 sps:$4 sm:$0xff]  }
0x100e   :  { %v8404_v62 = vpop.eup %8403  ;;  %v6146_v52 = vadd.f32 %v6144_v34, %v6142_v18  ;;  %v6130_v19 = vadd.f32 1.0, %v8402_v32  ;;  %v8089_v18 = vld [vmem:[#allocation10 + $0x40] ss:$16 sps:$4 sm:$0xff]   ;;  %v8110_v53 = vld [vmem:[#allocation10 + $0xa8] ss:$16 sps:$4 sm:$0xff]  }
0x100f   :  { %v6147_v31 = vadd.f32 %v6145_v12, %v6143_v30  ;;  %v6131_v47 = vadd.f32 1.0, %v8404_v62  ;;  %v8095_v30 = vld [vmem:[#allocation10 + $0x60] ss:$16 sps:$4 sm:$0xff]   ;;  %v8115_v34 = vld [vmem:[#allocation10 + $0xc4] ss:$16 sps:$4 sm:$0xff]  }
0x1010   :  { %8405 = vtanh.f32 %v6146_v52  ;;  %v8118_v32 = vld [vmem:[#allocation10 + $0xcc] ss:$16 sps:$4 sm:$0xff]   ;;  %v8113_v12 = vld [vmem:[#allocation10 + $0xc0] ss:$16 sps:$4 sm:$0xff]   ;;  %v8116_v62 = vld [vmem:[#allocation10 + $0xc8] ss:$16 sps:$4 sm:$0xff]  }
0x1011   :  { %8407 = vrcp.f32 %v6130_v19  ;;  %v8121_v52 = vld [vmem:[#allocation10 + $0xe4] ss:$16 sps:$4 sm:$0xff]   ;;  %v8124_v19 = vld [vmem:[#allocation10 + $0xec] ss:$16 sps:$4 sm:$0xff]  }
0x1012   :  { %8409 = vrcp.f32 %v6131_v47  ;;  %v8122_v47 = vld [vmem:[#allocation10 + $0xe8] ss:$16 sps:$4 sm:$0xff]  }
0x1013   :  { %8411 = vtanh.f32 %v6147_v31  ;;  %v8119_v31 = vld [vmem:[#allocation10 + $0xe0] ss:$16 sps:$4 sm:$0xff]  }
0x101a   :  { %v8406_v25 = vpop.eup %8405 }
0x101b   :  { %v8408_v42 = vpop.eup %8407 }
0x101c   :  { %v8410_v10 = vpop.eup %8409  ;;  %v6150_v27 = vmul.f32 %v8408_v42, %v8406_v25  ;;  %v7506_v42 = vld [vmem:[%s11219_s10] ss:$0 sm:$0xff]  ;;  %s8569_s10 = smov [#allocation11]  }
0x101d   :  { %v8412_v35 = vpop.eup %8411 }
0x101e   :  { %v6151_v16 = vmul.f32 %v8412_v35, %v8410_v10  ;;  %v6152_v17 = vpack.c.bf16 %v6150_v27, %v6150_v27 }
0x1020   :  { %v6153_v24 = vpack.c.bf16 %v6151_v16, %v6151_v16  ;;  %v6200_v1 = vrot.slane %v6152_v17, 3 }
0x1022   :  { %v6201_v50 = vrot.slane %v6153_v24, 3 }
0x1024   :  { %6396 = vmatprep.mubr.bf16.mxu0 %v6201_v50 }
0x1025   :  { %6397 = vmatmul.mubr.bf16.vlgmr.msra.gmra.mrb[76].mxu0 %v6200_v1  ;;  %v6618_v1 = vld [vmem:[%s11221_s12] sm:$0xf]  ;;  %s6911_s12 = sshll.u32 %s8569_s10, 4  ;;  %s6912_s12 = int_to_ptr.vmem [resolvable:$true] %s6911_s12 }
0x1026   :  { %6832 = vmatprep.mubr.bf16.mxu0 %v12583_v22  ;;  %6801 = vmatpush1.bf16.msra.mxu0 %v8077_v29  ;;  %v6623_v8 = vrot.slane %v6618_v1, %v12584_v13  ;;  %v6631_v29 = vrot.slane %v6618_v1, %v12589_v15  ;;  %v6627_v23 = vrot.slane %v6618_v1, %v12585_v26  ;;  %s8523_s25 = scalar_lea.vmem %s6912_s12, 128  ;;  %p8528_p13 = scmp.lt.s32.totalorder %s6912_s12, %s6912_s12 }
0x1027   :  { %6802 = vmatprep.subr.bf16.mxu0 %v8085_v21  ;;  %v12590_v21 = vsub.s32 3, %v12588_v9  ;;  %p8524_p12 = scmp.ne.s32.totalorder %s6912_s12, %s8523_s25  ;;  %p8529_p0 = scmp.lt.s32.totalorder %s8523_s25, %s8523_s25 }
0x1029   :  { %p8530_p1 = por %p8529_p0, %p8528_p13 }
0x102a   :  { %6803 = vmatpush1.bf16.msra.mxu0 %v8083_v38  ;;  %v6635_v38 = vrot.slane %v6618_v1, %v12590_v21 }
0x102b   :  { %6804 = vmatprep.subr.bf16.mxu0 %v8091_v5  ;;  %p8531_p2 = pnand %p8530_p1, %p8524_p12 }
0x102e   :  { %6805 = vmatpush1.bf16.msra.mxu0 %v8089_v18 }
0x102f   :  { %6806 = vmatprep.subr.bf16.mxu0 %v8097_v40 }
0x1032   :  { %6807 = vmatpush1.bf16.msra.mxu0 %v8095_v30 }
0x1033   :  { %6808 = vmatprep.subr.bf16.mxu0 %v8103_v37 }
0x1036   :  { %6809 = vmatpush1.bf16.msra.mxu0 %v8101_v41 }
0x1037   :  { %6810 = vmatprep.subr.bf16.mxu0 %v8109_v55 }
0x103a   :  { %6811 = vmatpush1.bf16.msra.mxu0 %v8107_v63 }
0x103b   :  { %6812 = vmatprep.subr.bf16.mxu0 %v8115_v34 }
0x103e   :  { %6813 = vmatpush1.bf16.msra.mxu0 %v8113_v12 }
0x103f   :  { %6814 = vmatprep.subr.bf16.mxu0 %v8121_v52 }
0x1042   :  { %6815 = vmatpush1.bf16.msra.mxu0 %v8119_v31 }
0x10f8   :  { %v6398_v43 = vpop.f32.mrb[76].mxu0 }
0x10f9   :  { %v6399_v4 = vadd.f32 %v6398_v43, %v6191_v48  ;;  %v6400_v36 = vpop.f32.mrb[77].mxu0 }
0x10fa   :  { %v6401_v61 = vadd.f32 %v6400_v36, %v6195_v44  ;;  %v6402_v49 = vpop.f32.mrb[78].mxu0 }
0x10fb   :  { %v6405_v7 = vadd.f32 %v6399_v4, %v12586_v57  ;;  %v6403_v60 = vpop.f32.mrb[79].mxu0 }
0x10fc   :  { %v6406_v33 = vadd.f32 %v6401_v61, %v12587_v58 }
0x10fd   :  { %v6407_v14 = vpack.c.bf16 %v6405_v7, %v6405_v7 }
0x10fe   :  { %v6408_v59 = vpack.c.bf16 %v6406_v33, %v6406_v33 }
0x1100   :  { %6576 = vmatprep.mubr.bf16.mxu1 %v6408_v59 }
0x1101   :  { %6577 = vmatmul.mubr.bf16.vlgmr.msra.gmra.mrb[88].mxu1 %v6407_v14 }
0x1102   :  { %6842 = vmatpush1.bf16.msra.mxu1 %v8080_v2  ;;  %6873 = vmatprep.mubr.bf16.mxu1 %v12583_v22  ;;  %v8568_v22 = vmov 1983009808  }
0x1103   :  { %6843 = vmatprep.subr.bf16.mxu1 %v8088_v45  ;;  %v6889_v11 = vunpack.c.l.s4 %v8568_v22 }
0x1105   :  { %v6890_v28 = vunpack.c.0.s8 %v6889_v11 }
0x1106   :  { %6844 = vmatpush1.bf16.msra.mxu1 %v8086_v39 }
0x1107   :  { %6845 = vmatprep.subr.bf16.mxu1 %v8094_v20  ;;  %v6893_v63 = vsub.s32 %v6890_v28, %v12588_v9 }
0x110a   :  { %6846 = vmatpush1.bf16.msra.mxu1 %v8092_v3 }
0x110b   :  { %6847 = vmatprep.subr.bf16.mxu1 %v8100_v6 }
0x110e   :  { %6848 = vmatpush1.bf16.msra.mxu1 %v8098_v0 }
0x110f   :  { %6849 = vmatprep.subr.bf16.mxu1 %v8106_v54 }
0x1112   :  { %6850 = vmatpush1.bf16.msra.mxu1 %v8104_v56 }
0x1113   :  { %6851 = vmatprep.subr.bf16.mxu1 %v8112_v46 }
0x1116   :  { %6852 = vmatpush1.bf16.msra.mxu1 %v8110_v53 }
0x1117   :  { %6853 = vmatprep.subr.bf16.mxu1 %v8118_v32 }
0x111a   :  { %6854 = vmatpush1.bf16.msra.mxu1 %v8116_v62 }
0x111b   :  { %6855 = vmatprep.subr.bf16.mxu1 %v8124_v19 }
0x111e   :  { %6856 = vmatpush1.bf16.msra.mxu1 %v8122_v47 }
0x11d4   :  { %v7571_v25 = vpop.f32.mrb[88].mxu1 }
0x11d5   :  { %v7572_v10 = vpop.f32.mrb[89].mxu1 }
0x11d6   :  { %v7573_v27 = vadd.f32 %v7572_v10, %v7571_v25  ;;  %v7574_v35 = vpop.f32.mrb[90].mxu1 }
0x11d7   :  { %v7575_v16 = vpop.f32.mrb[91].mxu1 }
0x11d8   :  { %v6579_v17 = vadd.f32 %v7573_v27, %v7506_v42 }
0x11da   :  { %v6584_v24 = vmax.f32 %v6579_v17, 0.0 }
0x11dc   :  { %v6585_v50 = vpack.c.bf16 %v6584_v24, %v6584_v24 }
0x11de   :  { %6833 = vmatmul.mubr.bf16.vlgmr.msra.gmra.mrb[80].mxu0 %v6585_v50  ;;  %6874 = vmatmul.mubr.bf16.vlgmr.msra.gmra.mrb[92].mxu1 %v6585_v50 }
0x12b1   :  { %v6834_v5 = vpop.f32.mrb[80].mxu0  ;;  %v6875_v18 = vpop.f32.mrb[92].mxu1 }
0x12b2   :  { %v6835_v40 = vadd.f32 %v6834_v5, %v6623_v8  ;;  %v6876_v30 = vadd.f32 %v6875_v18, %v6631_v29  ;;  %v6836_v37 = vpop.f32.mrb[81].mxu0  ;;  %v6877_v41 = vpop.f32.mrb[93].mxu1 }
0x12b3   :  { %v6837_v55 = vadd.f32 %v6836_v37, %v6627_v23  ;;  %v6878_v51 = vadd.f32 %v6877_v41, %v6635_v38  ;;  %v6838_v13 = vpop.f32.mrb[82].mxu0  ;;  %v6879_v48 = vpop.f32.mrb[94].mxu1 }
0x12b4   :  { %v6839_v44 = vpop.f32.mrb[83].mxu0  ;;  %v6880_v43 = vpop.f32.mrb[95].mxu1 }
0x12b5   :  { %v6886_v4 = vcombine.low %v6835_v40, %v6837_v55  ;;  %v6887_v26 = vcombine.low %v6876_v30, %v6878_v51 }
0x12b7   :  { %v6894_v36 = vrot.slane %v6886_v4, %v6893_v63  ;;  %v6901_v61 = vrot.slane %v6887_v26, %v6893_v63 }
0x12b9   :  { %v6902_v49 = vcombine.low %v6894_v36, %v6901_v61 }
0x12bb   :  { %6904 = vst [vmem:[#allocation11] sm:$0xff] %v6902_v49 }
0x12bc   :  { %8534 = shalt.err (!%p8531_p2)
}
0x12bd   :  { %s8535_s28 = scalar_lea.hbm %s11222_s13, 128 }
0x12be   :  { %p8536_p3 = scmp.ne.s32.totalorder %s11222_s13, %s8535_s28  ;;  %p8539_p4 = scmp.lt.u32.totalorder %s8535_s28, %s11222_s13 }
0x12c0   :  { %p8541_p5 = pnand %p8539_p4, %p8536_p3 }
0x12c2   :  { %8544 = shalt.err (!%p8541_p5)
}
0x12c3   :  { %6914 = dma.vmem_to_hbm [thread:$0]  %s6912_s12, 128, %s11222_s13, [#allocation4]  }
0x12c4   :  { %8551 = dma.done.wait [#allocation4], 128  }
0x12c5   :  { %8552 = vsyncadd [#allocation4], 4294967168 }
0x12c6   :  { %6918 = vsyncpa [#allocation3], 1 }
0x12c7   :  { %6919 = vsyncpa [#allocation6], 1 }
0x12c8   :  { %6920 = vsyncpa [#allocation9], 1 }
0x12c9   :  { %6921 = vsyncpa [#allocation4], 1 }

</bundles_post_ra>
